<compile_context>
chip_gen: v6e
topology: v6e:2x2x1
jax: 0.10.0
libtpu: 0.0.40
codegen_flags: <defaults>
</compile_context>

<pallas_src>
import functools

import jax
import jax.numpy as jnp
import numpy as np
from jax import lax
from jax.experimental import pallas as pl
from jax.experimental.pallas import tpu as pltpu


# ----------------------------------------------------------------------------
# helpers
# ----------------------------------------------------------------------------
def _nan_to_num(x, nan, posinf=None, neginf=None):
    """Replicates torch.Tensor.nan_to_num defaults (posinf=None -> dtype max,
    neginf=None -> dtype min). Used by the pure-JAX reference."""
    finfo = jnp.finfo(x.dtype)
    pos = finfo.max if posinf is None else posinf
    neg = finfo.min if neginf is None else neginf
    isnan = jnp.isnan(x)
    ispos = x == jnp.inf
    isneg = x == -jnp.inf
    out = jnp.where(isnan, jnp.asarray(nan, x.dtype), x)
    out = jnp.where(ispos, jnp.asarray(pos, x.dtype), out)
    out = jnp.where(isneg, jnp.asarray(neg, x.dtype), out)
    return out


def _first_argext_onehot(x, ext_keepdims, axis):
    """Float one-hot of the FIRST index attaining the given extreme value
    (max or min, passed in with keepdims) along `axis`.  Matches torch
    argmax/argmin first-occurrence tie-break."""
    k = x.shape[axis]
    iota = lax.broadcasted_iota(jnp.int32, x.shape, axis)
    masked = jnp.where(x == ext_keepdims, iota, jnp.int32(k))
    first = masked == jnp.min(masked, axis=axis, keepdims=True)
    return first.astype(x.dtype)


# ----------------------------------------------------------------------------
# Pallas kernel (points in lanes; vectorized over obstacles)
# ----------------------------------------------------------------------------
def _dist_grad_kernel(pt_ref, A_ref, b_ref, G_ref, nA_ref, v1_ref, d21_ref,
                      invss_ref, dist_ref, grad_ref, *, eps):
    pt = pt_ref[...]        # (3, TP)   points in lanes
    A = A_ref[...]          # (O, H, 3)
    b = b_ref[...]          # (O, H)
    G = G_ref[...]          # (O, H, H)   Gram matrix A_o @ A_o^T
    nA = nA_ref[...]        # (O, H)      ||A_oh||
    v1 = v1_ref[...]        # (O, V, 3)
    d21 = d21_ref[...]      # (O, V, 3)   v2 - v1
    invss = invss_ref[...]  # (O, V)      1 / ||v2 - v1||^2  (inf if degenerate)

    H = A.shape[1]
    dt = pt.dtype
    inf = jnp.asarray(jnp.inf, dt)
    maxf = jnp.asarray(jnp.finfo(dt).max, dt)
    minf = jnp.asarray(jnp.finfo(dt).min, dt)
    zero = jnp.asarray(0.0, dt)
    one = jnp.asarray(1.0, dt)

    p_row = [pt[d:d + 1] for d in range(3)]      # each (1, TP)
    p_b3 = [r[None] for r in p_row]              # each (1, 1, TP)

    # ---- signed residuals  ApmB[o,h,p] = A[o,h,:] . p - b[o,h]   (O,H,TP) ---
    ApmB = (A[:, :, 0:1] * p_b3[0] + A[:, :, 1:2] * p_b3[1]
            + A[:, :, 2:3] * p_b3[2] - b[:, :, None])
    # torch nan_to_num(nan=-inf, posinf=-inf): -inf -> finfo.min, nan/+inf -> -inf
    ApmB = jnp.where(ApmB == -inf, minf, ApmB)
    ApmB = jnp.where(ApmB < inf, ApmB, -inf)

    maxv_k = jnp.max(ApmB, axis=1, keepdims=True)            # (O, 1, TP)
    maxv = maxv_k[:, 0, :]                                    # (O, TP)
    is_neg = maxv <= zero                                     # inside the zonotope
    oh_max = _first_argext_onehot(ApmB, maxv_k, axis=1)       # (O, H, TP)

    # ---- perpendicular (face) distances via the Gram identity ---------------
    # Appr[o,j,k,p] = ApmB[o,k,p] - ApmB[o,j,p] * G[o,j,k]; only its max over k
    # is needed, so accumulate a running maximum (never materialize (O,H,H,TP)).
    # (Non-finite inputs are handled by the nan_to_num on ApmB above; with
    #  finite inputs all quantities below are finite, matching the reference.)
    maxk = None
    for k in range(H):
        cand = ApmB[:, k:k + 1, :] - ApmB * G[:, :, k:k + 1]  # (O, H, TP)
        maxk = cand if maxk is None else jnp.maximum(maxk, cand)
    on_z = maxk <= eps                                        # (O, H, TP)

    # ||p - proj_j(p)|| = |ApmB_j| * ||A_j||
    perp = jnp.abs(ApmB) * nA[:, :, None]                     # (O, H, TP)
    # off-zonotope faces -> +inf, then torch nan_to_num(posinf default) -> finfo.max
    perp = jnp.where(on_z, perp, maxf)
    minp_k = jnp.min(perp, axis=1, keepdims=True)             # (O, 1, TP)
    minp = minp_k[:, 0, :]                                    # (O, TP)
    oh_perp = _first_argext_onehot(perp, minp_k, axis=1)      # (O, H, TP)

    # ---- closest point on edge segments (squared distances for the min) -----
    dot = None
    for d in range(3):
        t = (p_b3[d] - v1[:, :, d:d + 1]) * d21[:, :, d:d + 1]
        dot = t if dot is None else dot + t                   # (O, V, TP)
    t_hat = dot * invss[:, :, None]
    # NaN-propagating clamp(0, 1), like torch.clamp (degenerate segments -> NaN)
    t_star = jnp.minimum(jnp.maximum(t_hat, zero), one)

    edist2 = None
    for d in range(3):
        vpt_d = v1[:, :, d:d + 1] + t_star * d21[:, :, d:d + 1]
        e = p_b3[d] - vpt_d
        edist2 = e * e if edist2 is None else edist2 + e * e  # (O, V, TP)
    edist2 = jnp.where(jnp.isnan(edist2), inf, edist2)        # degenerate -> +inf
    emin2_k = jnp.min(edist2, axis=1, keepdims=True)          # (O, 1, TP)
    oh_edge = _first_argext_onehot(edist2, emin2_k, axis=1)   # (O, V, TP)
    emin = jnp.sqrt(emin2_k[:, 0, :])                         # (O, TP)  only the winner
    # NaN segments (degenerate) can never be the winner (their edist2 is +inf),
    # so sanitize t for the one-hot gather to keep the sum NaN-free.
    t_gather = oh_edge * jnp.where(jnp.isnan(t_star), zero, t_star)

    # ---- combine branches ----------------------------------------------------
    non_neg = jnp.logical_not(is_neg)
    use_edge = jnp.logical_and(emin < minp, non_neg)
    dist = jnp.where(is_neg, maxv, jnp.where(use_edge, emin, minp))

    inv_emin = one / emin                                     # exact; (O,TP) only
    grads = []
    for d in range(3):
        g_neg = jnp.sum(oh_max * A[:, :, d:d + 1], axis=1)                # (O,TP)
        g_perp = jnp.sum(oh_perp * A[:, :, d:d + 1], axis=1)              # (O,TP)
        v_close = jnp.sum(oh_edge * v1[:, :, d:d + 1]
                          + t_gather * d21[:, :, d:d + 1], axis=1)        # (O,TP)
        g_edge = (p_row[d] - v_close) * inv_emin                          # (O,TP)
        grads.append(jnp.where(is_neg, g_neg,
                               jnp.where(use_edge, g_edge, g_perp)))

    # single full-block stores (lane-dense, unmasked)
    dist_ref[...] = dist                                      # (O, TP)
    grad_ref[...] = jnp.stack(grads, axis=0)                  # (3, O, TP)


# ----------------------------------------------------------------------------
# wrapper
# ----------------------------------------------------------------------------
def _pick_point_tile(P):
    """Largest lane-dense tile (multiple of 128) keeping >=2 grid steps when
    possible (v7x megacore); fall back to a single full block otherwise."""
    if P % 128 != 0:
        return P
    for cand in (512, 256, 128):
        if P % cand == 0 and P // cand >= 2:
            return cand
    for cand in (512, 256, 128):
        if P % cand == 0:
            return min(P, cand)
    return P


def batched_distance_gradient(point, hyperplane_A, hyperplane_b, v1, v2,
                              eps=1e-4):
    point = jnp.asarray(point)
    P = point.shape[0]
    O, H, _ = hyperplane_A.shape
    V = v1.shape[1]
    dt = point.dtype

    # point-independent precomputation (tiny, plain XLA)
    pt_T = point.T                                                  # (3, P)
    G = jnp.einsum("ohd,okd->ohk", hyperplane_A, hyperplane_A)      # (O, H, H)
    nA = jnp.sqrt(jnp.sum(hyperplane_A * hyperplane_A, axis=-1))    # (O, H)
    d21 = v2 - v1                                                   # (O, V, 3)
    ss = jnp.sum(d21 * d21, axis=-1)                                # (O, V)
    invss = 1.0 / ss                                                # inf if degenerate

    tp = _pick_point_tile(P)
    assert P % tp == 0
    kernel = functools.partial(_dist_grad_kernel, eps=float(eps))

    dist_t, grad_t = pl.pallas_call(
        kernel,
        out_shape=(jax.ShapeDtypeStruct((O, P), dt),
                   jax.ShapeDtypeStruct((3, O, P), dt)),
        grid_spec=pltpu.PrefetchScalarGridSpec(
            num_scalar_prefetch=0,
            grid=(P // tp,),
            in_specs=[
                pl.BlockSpec((3, tp), lambda i: (0, i)),
                pl.BlockSpec((O, H, 3), lambda i: (0, 0, 0)),
                pl.BlockSpec((O, H), lambda i: (0, 0)),
                pl.BlockSpec((O, H, H), lambda i: (0, 0, 0)),
                pl.BlockSpec((O, H), lambda i: (0, 0)),
                pl.BlockSpec((O, V, 3), lambda i: (0, 0, 0)),
                pl.BlockSpec((O, V, 3), lambda i: (0, 0, 0)),
                pl.BlockSpec((O, V), lambda i: (0, 0)),
            ],
            out_specs=[
                pl.BlockSpec((O, tp), lambda i: (0, i)),
                pl.BlockSpec((3, O, tp), lambda i: (0, 0, i)),
            ],
        ),
        compiler_params=pltpu.CompilerParams(
            dimension_semantics=("parallel",)),
    )(pt_T, hyperplane_A, hyperplane_b, G, nA, v1, d21, invss)

    dist = dist_t.T                                   # (P, O)
    grad = jnp.transpose(grad_t, (2, 1, 0))           # (P, O, 3)
    return dist, grad


# ----------------------------------------------------------------------------
# pure-JAX reference (mirrors the torch forward) + decision-sensitivity mask
# ----------------------------------------------------------------------------
def reference(point, A, b, v1, v2, eps=1e-4, sensitivity_tol=1e-5):
    P = point.shape[0]
    O, H, _ = A.shape
    pts = point[:, None, None, :]                                        # (P,1,1,3)

    ApmB = jnp.sum(A[None] * pts, axis=-1) - b[None]                     # (P,O,H)
    ApmB = _nan_to_num(ApmB, nan=-jnp.inf, posinf=-jnp.inf)
    is_neg = jnp.all(ApmB <= 0, axis=-1)                                 # (P,O)
    maxv = jnp.max(ApmB, axis=-1)
    amax = jnp.argmax(ApmB, axis=-1)
    A_full = jnp.broadcast_to(A[None], (P, O, H, 3))
    grad_neg = jnp.take_along_axis(A_full, amax[..., None, None], axis=2)[..., 0, :]

    proj = pts - ApmB[..., None] * A[None]                               # (P,O,H,3)
    Appr = jnp.einsum("pohd,okd->pohk", proj, A) - b[None, :, None, :]   # (P,O,H,H)
    Appr = _nan_to_num(Appr, nan=-jnp.inf, posinf=-jnp.inf)
    on_z = jnp.all(Appr <= eps, axis=-1)                                 # (P,O,H)
    perp = jnp.linalg.norm(pts - proj, axis=-1)
    perp = jnp.where(on_z, perp, jnp.inf)
    perp = _nan_to_num(perp, nan=jnp.inf, neginf=jnp.inf)
    minp = jnp.min(perp, axis=-1)
    aminp = jnp.argmin(perp, axis=-1)
    grad_perp = jnp.take_along_axis(A_full, aminp[..., None, None], axis=2)[..., 0, :]

    d21 = v2 - v1
    ss = jnp.sum(d21 * d21, axis=-1, keepdims=True)                      # (O,V,1)
    t_hat = jnp.sum((pts - v1[None]) * d21[None], axis=-1, keepdims=True) / ss[None]
    t_star = jnp.minimum(jnp.maximum(t_hat, 0.0), 1.0)                   # NaN-propagating, like torch.clamp
    vv = v1[None] + t_star * d21[None]                                   # (P,O,V,3)
    ed = jnp.linalg.norm(pts - vv, axis=-1)                              # (P,O,V)
    ed = _nan_to_num(ed, nan=jnp.inf)
    emin = jnp.min(ed, axis=-1)
    amine = jnp.argmin(ed, axis=-1)
    vc = jnp.take_along_axis(vv, amine[..., None, None], axis=2)[..., 0, :]  # (P,O,3)

    non_neg = jnp.logical_not(is_neg)
    use_edge = jnp.logical_and(emin < minp, non_neg)

    dist = jnp.where(is_neg, maxv, jnp.where(use_edge, emin, minp))
    grad_edge = (point[:, None, :] - vc) / emin[..., None]
    grad = jnp.where(is_neg[..., None], grad_neg,
                     jnp.where(use_edge[..., None], grad_edge, grad_perp))

    # (P,O) mask of points whose branch / argmin decisions lie within
    # `sensitivity_tol` of a threshold -- there the output is legitimately
    # rounding-order dependent (kernel uses the algebraically-equivalent Gram
    # form), so those few (typically zero) points are excluded from the check.
    def _gap(x, largest=False):
        s = jnp.sort(x, axis=-1)
        return (s[..., -1] - s[..., -2]) if largest else (s[..., 1] - s[..., 0])

    big = jnp.finfo(point.dtype).max / 2
    sens = jnp.abs(maxv) < sensitivity_tol
    sens |= jnp.any(jnp.abs(Appr - eps) < sensitivity_tol, axis=(-1, -2))
    sens |= _gap(ApmB, largest=True) < sensitivity_tol
    sens |= (_gap(perp) < sensitivity_tol) & (minp < big)
    sens |= (_gap(ed) < sensitivity_tol) & (emin < big)
    sens |= jnp.abs(emin - minp) < sensitivity_tol
    return dist, grad, sens


# ----------------------------------------------------------------------------
if __name__ == "__main__":
    key = jax.random.PRNGKey(0)
    kp, ka, kb, k1, k2 = jax.random.split(key, 5)

    P, O, H, V = 1024, 4, 8, 8
    point = jax.random.normal(kp, (P, 3), dtype=jnp.float32)
    hyperplane_A = jax.random.normal(ka, (O, H, 3), dtype=jnp.float32)
    # positive offsets -> zonotopes contain the origin, exercising both the
    # "inside" (negative distance) and "outside" branches.
    hyperplane_b = jnp.abs(jax.random.normal(kb, (O, H), dtype=jnp.float32)) + 0.5
    v1 = jax.random.normal(k1, (O, V, 3), dtype=jnp.float32)
    v2 = jax.random.normal(k2, (O, V, 3), dtype=jnp.float32)
    # one degenerate segment (v1 == v2) to exercise the NaN -> inf edge path
    v2 = v2.at[0, 0].set(v1[0, 0])

    dist, grad = batched_distance_gradient(point, hyperplane_A, hyperplane_b,
                                           v1, v2, eps=1e-4)
    jax.block_until_ready((dist, grad))

    ref_d, ref_g, ref_sens = reference(point, hyperplane_A, hyperplane_b,
                                       v1, v2, eps=1e-4)
    keep = ~np.asarray(ref_sens)
    assert keep.mean() > 0.99, "too many threshold-sensitive points in test data"
    np.testing.assert_allclose(np.asarray(dist)[keep], np.asarray(ref_d)[keep],
                               rtol=1e-5, atol=1e-5)
    np.testing.assert_allclose(np.asarray(grad)[keep], np.asarray(ref_g)[keep],
                               rtol=1e-5, atol=1e-5)

    print("KERNEL_OK")
</pallas_src>

<mosaic_0001>
module attributes {stable_mosaic.version = 11 : i64} {
  func.func @_dist_grad_kernel(%arg0: i32, %arg1: memref<3x512xf32, #tpu.memory_space<vmem>>, %arg2: memref<4x8x3xf32, #tpu.memory_space<vmem>>, %arg3: memref<4x8xf32, #tpu.memory_space<vmem>>, %arg4: memref<4x8x8xf32, #tpu.memory_space<vmem>>, %arg5: memref<4x8xf32, #tpu.memory_space<vmem>>, %arg6: memref<4x8x3xf32, #tpu.memory_space<vmem>>, %arg7: memref<4x8x3xf32, #tpu.memory_space<vmem>>, %arg8: memref<4x8xf32, #tpu.memory_space<vmem>>, %arg9: memref<4x512xf32, #tpu.memory_space<vmem>>, %arg10: memref<3x4x512xf32, #tpu.memory_space<vmem>>) attributes {dimension_semantics = [#tpu.dimension_semantics<parallel>], iteration_bounds = array<i64: 2>, scalar_prefetch = 0 : i64, scratch_operands = 0 : i64, tpu.core_type = #tpu.core_type<tc>, window_params = [{transform_indices = @transform_0, window_bounds = array<i64: 3, 512>}, {pipeline_mode = #tpu.pipeline_mode<synchronous>, transform_indices = @transform_1, window_bounds = array<i64: 4, 8, 3>}, {pipeline_mode = #tpu.pipeline_mode<synchronous>, transform_indices = @transform_2, window_bounds = array<i64: 4, 8>}, {pipeline_mode = #tpu.pipeline_mode<synchronous>, transform_indices = @transform_3, window_bounds = array<i64: 4, 8, 8>}, {pipeline_mode = #tpu.pipeline_mode<synchronous>, transform_indices = @transform_4, window_bounds = array<i64: 4, 8>}, {pipeline_mode = #tpu.pipeline_mode<synchronous>, transform_indices = @transform_5, window_bounds = array<i64: 4, 8, 3>}, {pipeline_mode = #tpu.pipeline_mode<synchronous>, transform_indices = @transform_6, window_bounds = array<i64: 4, 8, 3>}, {pipeline_mode = #tpu.pipeline_mode<synchronous>, transform_indices = @transform_7, window_bounds = array<i64: 4, 8>}, {transform_indices = @transform_8, window_bounds = array<i64: 4, 512>}, {transform_indices = @transform_9, window_bounds = array<i64: 3, 4, 512>}]} {
    %c0 = arith.constant 0 : index
    %c0_0 = arith.constant 0 : index
    %0 = vector.load %arg1[%c0, %c0_0] : memref<3x512xf32, #tpu.memory_space<vmem>>, vector<3x512xf32>
    %c0_1 = arith.constant 0 : index
    %c0_2 = arith.constant 0 : index
    %c0_3 = arith.constant 0 : index
    %1 = vector.load %arg2[%c0_1, %c0_2, %c0_3] : memref<4x8x3xf32, #tpu.memory_space<vmem>>, vector<4x8x3xf32>
    %c0_4 = arith.constant 0 : index
    %c0_5 = arith.constant 0 : index
    %2 = vector.load %arg3[%c0_4, %c0_5] : memref<4x8xf32, #tpu.memory_space<vmem>>, vector<4x8xf32>
    %c0_6 = arith.constant 0 : index
    %c0_7 = arith.constant 0 : index
    %c0_8 = arith.constant 0 : index
    %3 = vector.load %arg4[%c0_6, %c0_7, %c0_8] : memref<4x8x8xf32, #tpu.memory_space<vmem>>, vector<4x8x8xf32>
    %c0_9 = arith.constant 0 : index
    %c0_10 = arith.constant 0 : index
    %4 = vector.load %arg5[%c0_9, %c0_10] : memref<4x8xf32, #tpu.memory_space<vmem>>, vector<4x8xf32>
    %c0_11 = arith.constant 0 : index
    %c0_12 = arith.constant 0 : index
    %c0_13 = arith.constant 0 : index
    %5 = vector.load %arg6[%c0_11, %c0_12, %c0_13] : memref<4x8x3xf32, #tpu.memory_space<vmem>>, vector<4x8x3xf32>
    %c0_14 = arith.constant 0 : index
    %c0_15 = arith.constant 0 : index
    %c0_16 = arith.constant 0 : index
    %6 = vector.load %arg7[%c0_14, %c0_15, %c0_16] : memref<4x8x3xf32, #tpu.memory_space<vmem>>, vector<4x8x3xf32>
    %c0_17 = arith.constant 0 : index
    %c0_18 = arith.constant 0 : index
    %7 = vector.load %arg8[%c0_17, %c0_18] : memref<4x8xf32, #tpu.memory_space<vmem>>, vector<4x8xf32>
    %8 = vector.extract_strided_slice %0 {offsets = [0, 0], sizes = [1, 512], strides = [1, 1]} : vector<3x512xf32> to vector<1x512xf32>
    %9 = vector.extract_strided_slice %0 {offsets = [1, 0], sizes = [1, 512], strides = [1, 1]} : vector<3x512xf32> to vector<1x512xf32>
    %10 = vector.extract_strided_slice %0 {offsets = [2, 0], sizes = [1, 512], strides = [1, 1]} : vector<3x512xf32> to vector<1x512xf32>
    %11 = vector.shape_cast %8 : vector<1x512xf32> to vector<1x1x512xf32>
    %12 = vector.shape_cast %9 : vector<1x512xf32> to vector<1x1x512xf32>
    %13 = vector.shape_cast %10 : vector<1x512xf32> to vector<1x1x512xf32>
    %14 = vector.extract_strided_slice %1 {offsets = [0, 0, 0], sizes = [4, 8, 1], strides = [1, 1, 1]} : vector<4x8x3xf32> to vector<4x8x1xf32>
    %15 = vector.broadcast %14 : vector<4x8x1xf32> to vector<4x8x512xf32>
    %16 = vector.broadcast %11 : vector<1x1x512xf32> to vector<4x8x512xf32>
    %17 = arith.mulf %15, %16 : vector<4x8x512xf32>
    %18 = vector.extract_strided_slice %1 {offsets = [0, 0, 1], sizes = [4, 8, 1], strides = [1, 1, 1]} : vector<4x8x3xf32> to vector<4x8x1xf32>
    %19 = vector.broadcast %18 : vector<4x8x1xf32> to vector<4x8x512xf32>
    %20 = vector.broadcast %12 : vector<1x1x512xf32> to vector<4x8x512xf32>
    %21 = arith.mulf %19, %20 : vector<4x8x512xf32>
    %22 = arith.addf %17, %21 : vector<4x8x512xf32>
    %23 = vector.extract_strided_slice %1 {offsets = [0, 0, 2], sizes = [4, 8, 1], strides = [1, 1, 1]} : vector<4x8x3xf32> to vector<4x8x1xf32>
    %24 = vector.broadcast %23 : vector<4x8x1xf32> to vector<4x8x512xf32>
    %25 = vector.broadcast %13 : vector<1x1x512xf32> to vector<4x8x512xf32>
    %26 = arith.mulf %24, %25 : vector<4x8x512xf32>
    %27 = arith.addf %22, %26 : vector<4x8x512xf32>
    %28 = vector.shape_cast %2 : vector<4x8xf32> to vector<4x8x1xf32>
    %29 = vector.broadcast %28 : vector<4x8x1xf32> to vector<4x8x512xf32>
    %30 = arith.subf %27, %29 : vector<4x8x512xf32>
    %cst = arith.constant 0.000000e+00 : f32
    %cst_19 = arith.constant 0x7F800000 : f32
    %31 = arith.subf %cst, %cst_19 : f32
    %32 = vector.broadcast %31 : f32 to vector<4x8x512xf32>
    %33 = arith.cmpf oeq, %30, %32 : vector<4x8x512xf32>
    %cst_20 = arith.constant -3.40282347E+38 : f32
    %34 = vector.broadcast %cst_20 : f32 to vector<4x8x512xf32>
    %35 = arith.select %33, %34, %30 : vector<4x8x512xi1>, vector<4x8x512xf32>
    %cst_21 = arith.constant 0x7F800000 : f32
    %36 = vector.broadcast %cst_21 : f32 to vector<4x8x512xf32>
    %37 = arith.cmpf olt, %35, %36 : vector<4x8x512xf32>
    %cst_22 = arith.constant 0.000000e+00 : f32
    %cst_23 = arith.constant 0x7F800000 : f32
    %38 = arith.subf %cst_22, %cst_23 : f32
    %39 = vector.broadcast %38 : f32 to vector<4x8x512xf32>
    %40 = arith.select %37, %35, %39 : vector<4x8x512xi1>, vector<4x8x512xf32>
    %cst_24 = arith.constant dense<0xFF800000> : vector<4x512xf32>
    %41 = vector.multi_reduction <maximumf>, %40, %cst_24 [1] : vector<4x8x512xf32> to vector<4x512xf32>
    %42 = vector.shape_cast %41 : vector<4x512xf32> to vector<4x1x512xf32>
    %43 = vector.shape_cast %42 : vector<4x1x512xf32> to vector<4x512xf32>
    %cst_25 = arith.constant 0.000000e+00 : f32
    %44 = vector.broadcast %cst_25 : f32 to vector<4x512xf32>
    %45 = arith.cmpf ole, %43, %44 : vector<4x512xf32>
    %46 = tpu.iota {dimensions = array<i32: 1>} : vector<4x8x512xi32>
    %47 = vector.broadcast %42 : vector<4x1x512xf32> to vector<4x8x512xf32>
    %48 = arith.cmpf oeq, %40, %47 : vector<4x8x512xf32>
    %c8_i32 = arith.constant 8 : i32
    %49 = vector.broadcast %c8_i32 : i32 to vector<4x8x512xi32>
    %50 = arith.select %48, %46, %49 : vector<4x8x512xi1>, vector<4x8x512xi32>
    %cst_26 = arith.constant dense<2147483647> : vector<4x512xi32>
    %51 = vector.multi_reduction <minsi>, %50, %cst_26 [1] : vector<4x8x512xi32> to vector<4x512xi32>
    %52 = vector.shape_cast %51 : vector<4x512xi32> to vector<4x1x512xi32>
    %53 = vector.broadcast %52 : vector<4x1x512xi32> to vector<4x8x512xi32>
    %54 = arith.cmpi eq, %50, %53 : vector<4x8x512xi32>
    %55 = arith.extui %54 : vector<4x8x512xi1> to vector<4x8x512xi32>
    %56 = arith.sitofp %55 : vector<4x8x512xi32> to vector<4x8x512xf32>
    %57 = vector.extract_strided_slice %40 {offsets = [0, 0, 0], sizes = [4, 1, 512], strides = [1, 1, 1]} : vector<4x8x512xf32> to vector<4x1x512xf32>
    %58 = vector.extract_strided_slice %3 {offsets = [0, 0, 0], sizes = [4, 8, 1], strides = [1, 1, 1]} : vector<4x8x8xf32> to vector<4x8x1xf32>
    %59 = vector.broadcast %58 : vector<4x8x1xf32> to vector<4x8x512xf32>
    %60 = arith.mulf %40, %59 : vector<4x8x512xf32>
    %61 = vector.broadcast %57 : vector<4x1x512xf32> to vector<4x8x512xf32>
    %62 = arith.subf %61, %60 : vector<4x8x512xf32>
    %63 = vector.extract_strided_slice %40 {offsets = [0, 1, 0], sizes = [4, 1, 512], strides = [1, 1, 1]} : vector<4x8x512xf32> to vector<4x1x512xf32>
    %64 = vector.extract_strided_slice %3 {offsets = [0, 0, 1], sizes = [4, 8, 1], strides = [1, 1, 1]} : vector<4x8x8xf32> to vector<4x8x1xf32>
    %65 = vector.broadcast %64 : vector<4x8x1xf32> to vector<4x8x512xf32>
    %66 = arith.mulf %40, %65 : vector<4x8x512xf32>
    %67 = vector.broadcast %63 : vector<4x1x512xf32> to vector<4x8x512xf32>
    %68 = arith.subf %67, %66 : vector<4x8x512xf32>
    %69 = arith.maximumf %62, %68 : vector<4x8x512xf32>
    %70 = vector.extract_strided_slice %40 {offsets = [0, 2, 0], sizes = [4, 1, 512], strides = [1, 1, 1]} : vector<4x8x512xf32> to vector<4x1x512xf32>
    %71 = vector.extract_strided_slice %3 {offsets = [0, 0, 2], sizes = [4, 8, 1], strides = [1, 1, 1]} : vector<4x8x8xf32> to vector<4x8x1xf32>
    %72 = vector.broadcast %71 : vector<4x8x1xf32> to vector<4x8x512xf32>
    %73 = arith.mulf %40, %72 : vector<4x8x512xf32>
    %74 = vector.broadcast %70 : vector<4x1x512xf32> to vector<4x8x512xf32>
    %75 = arith.subf %74, %73 : vector<4x8x512xf32>
    %76 = arith.maximumf %69, %75 : vector<4x8x512xf32>
    %77 = vector.extract_strided_slice %40 {offsets = [0, 3, 0], sizes = [4, 1, 512], strides = [1, 1, 1]} : vector<4x8x512xf32> to vector<4x1x512xf32>
    %78 = vector.extract_strided_slice %3 {offsets = [0, 0, 3], sizes = [4, 8, 1], strides = [1, 1, 1]} : vector<4x8x8xf32> to vector<4x8x1xf32>
    %79 = vector.broadcast %78 : vector<4x8x1xf32> to vector<4x8x512xf32>
    %80 = arith.mulf %40, %79 : vector<4x8x512xf32>
    %81 = vector.broadcast %77 : vector<4x1x512xf32> to vector<4x8x512xf32>
    %82 = arith.subf %81, %80 : vector<4x8x512xf32>
    %83 = arith.maximumf %76, %82 : vector<4x8x512xf32>
    %84 = vector.extract_strided_slice %40 {offsets = [0, 4, 0], sizes = [4, 1, 512], strides = [1, 1, 1]} : vector<4x8x512xf32> to vector<4x1x512xf32>
    %85 = vector.extract_strided_slice %3 {offsets = [0, 0, 4], sizes = [4, 8, 1], strides = [1, 1, 1]} : vector<4x8x8xf32> to vector<4x8x1xf32>
    %86 = vector.broadcast %85 : vector<4x8x1xf32> to vector<4x8x512xf32>
    %87 = arith.mulf %40, %86 : vector<4x8x512xf32>
    %88 = vector.broadcast %84 : vector<4x1x512xf32> to vector<4x8x512xf32>
    %89 = arith.subf %88, %87 : vector<4x8x512xf32>
    %90 = arith.maximumf %83, %89 : vector<4x8x512xf32>
    %91 = vector.extract_strided_slice %40 {offsets = [0, 5, 0], sizes = [4, 1, 512], strides = [1, 1, 1]} : vector<4x8x512xf32> to vector<4x1x512xf32>
    %92 = vector.extract_strided_slice %3 {offsets = [0, 0, 5], sizes = [4, 8, 1], strides = [1, 1, 1]} : vector<4x8x8xf32> to vector<4x8x1xf32>
    %93 = vector.broadcast %92 : vector<4x8x1xf32> to vector<4x8x512xf32>
    %94 = arith.mulf %40, %93 : vector<4x8x512xf32>
    %95 = vector.broadcast %91 : vector<4x1x512xf32> to vector<4x8x512xf32>
    %96 = arith.subf %95, %94 : vector<4x8x512xf32>
    %97 = arith.maximumf %90, %96 : vector<4x8x512xf32>
    %98 = vector.extract_strided_slice %40 {offsets = [0, 6, 0], sizes = [4, 1, 512], strides = [1, 1, 1]} : vector<4x8x512xf32> to vector<4x1x512xf32>
    %99 = vector.extract_strided_slice %3 {offsets = [0, 0, 6], sizes = [4, 8, 1], strides = [1, 1, 1]} : vector<4x8x8xf32> to vector<4x8x1xf32>
    %100 = vector.broadcast %99 : vector<4x8x1xf32> to vector<4x8x512xf32>
    %101 = arith.mulf %40, %100 : vector<4x8x512xf32>
    %102 = vector.broadcast %98 : vector<4x1x512xf32> to vector<4x8x512xf32>
    %103 = arith.subf %102, %101 : vector<4x8x512xf32>
    %104 = arith.maximumf %97, %103 : vector<4x8x512xf32>
    %105 = vector.extract_strided_slice %40 {offsets = [0, 7, 0], sizes = [4, 1, 512], strides = [1, 1, 1]} : vector<4x8x512xf32> to vector<4x1x512xf32>
    %106 = vector.extract_strided_slice %3 {offsets = [0, 0, 7], sizes = [4, 8, 1], strides = [1, 1, 1]} : vector<4x8x8xf32> to vector<4x8x1xf32>
    %107 = vector.broadcast %106 : vector<4x8x1xf32> to vector<4x8x512xf32>
    %108 = arith.mulf %40, %107 : vector<4x8x512xf32>
    %109 = vector.broadcast %105 : vector<4x1x512xf32> to vector<4x8x512xf32>
    %110 = arith.subf %109, %108 : vector<4x8x512xf32>
    %111 = arith.maximumf %104, %110 : vector<4x8x512xf32>
    %cst_27 = arith.constant 9.99999974E-5 : f32
    %112 = vector.broadcast %cst_27 : f32 to vector<4x8x512xf32>
    %113 = arith.cmpf ole, %111, %112 : vector<4x8x512xf32>
    %114 = math.absf %40 : vector<4x8x512xf32>
    %115 = vector.shape_cast %4 : vector<4x8xf32> to vector<4x8x1xf32>
    %116 = vector.broadcast %115 : vector<4x8x1xf32> to vector<4x8x512xf32>
    %117 = arith.mulf %114, %116 : vector<4x8x512xf32>
    %cst_28 = arith.constant 3.40282347E+38 : f32
    %118 = vector.broadcast %cst_28 : f32 to vector<4x8x512xf32>
    %119 = arith.select %113, %117, %118 : vector<4x8x512xi1>, vector<4x8x512xf32>
    %cst_29 = arith.constant dense<0x7F800000> : vector<4x512xf32>
    %120 = vector.multi_reduction <minimumf>, %119, %cst_29 [1] : vector<4x8x512xf32> to vector<4x512xf32>
    %121 = vector.shape_cast %120 : vector<4x512xf32> to vector<4x1x512xf32>
    %122 = vector.shape_cast %121 : vector<4x1x512xf32> to vector<4x512xf32>
    %123 = tpu.iota {dimensions = array<i32: 1>} : vector<4x8x512xi32>
    %124 = vector.broadcast %121 : vector<4x1x512xf32> to vector<4x8x512xf32>
    %125 = arith.cmpf oeq, %119, %124 : vector<4x8x512xf32>
    %c8_i32_30 = arith.constant 8 : i32
    %126 = vector.broadcast %c8_i32_30 : i32 to vector<4x8x512xi32>
    %127 = arith.select %125, %123, %126 : vector<4x8x512xi1>, vector<4x8x512xi32>
    %cst_31 = arith.constant dense<2147483647> : vector<4x512xi32>
    %128 = vector.multi_reduction <minsi>, %127, %cst_31 [1] : vector<4x8x512xi32> to vector<4x512xi32>
    %129 = vector.shape_cast %128 : vector<4x512xi32> to vector<4x1x512xi32>
    %130 = vector.broadcast %129 : vector<4x1x512xi32> to vector<4x8x512xi32>
    %131 = arith.cmpi eq, %127, %130 : vector<4x8x512xi32>
    %132 = arith.extui %131 : vector<4x8x512xi1> to vector<4x8x512xi32>
    %133 = arith.sitofp %132 : vector<4x8x512xi32> to vector<4x8x512xf32>
    %134 = vector.extract_strided_slice %5 {offsets = [0, 0, 0], sizes = [4, 8, 1], strides = [1, 1, 1]} : vector<4x8x3xf32> to vector<4x8x1xf32>
    %135 = vector.broadcast %11 : vector<1x1x512xf32> to vector<4x8x512xf32>
    %136 = vector.broadcast %134 : vector<4x8x1xf32> to vector<4x8x512xf32>
    %137 = arith.subf %135, %136 : vector<4x8x512xf32>
    %138 = vector.extract_strided_slice %6 {offsets = [0, 0, 0], sizes = [4, 8, 1], strides = [1, 1, 1]} : vector<4x8x3xf32> to vector<4x8x1xf32>
    %139 = vector.broadcast %138 : vector<4x8x1xf32> to vector<4x8x512xf32>
    %140 = arith.mulf %137, %139 : vector<4x8x512xf32>
    %141 = vector.extract_strided_slice %5 {offsets = [0, 0, 1], sizes = [4, 8, 1], strides = [1, 1, 1]} : vector<4x8x3xf32> to vector<4x8x1xf32>
    %142 = vector.broadcast %12 : vector<1x1x512xf32> to vector<4x8x512xf32>
    %143 = vector.broadcast %141 : vector<4x8x1xf32> to vector<4x8x512xf32>
    %144 = arith.subf %142, %143 : vector<4x8x512xf32>
    %145 = vector.extract_strided_slice %6 {offsets = [0, 0, 1], sizes = [4, 8, 1], strides = [1, 1, 1]} : vector<4x8x3xf32> to vector<4x8x1xf32>
    %146 = vector.broadcast %145 : vector<4x8x1xf32> to vector<4x8x512xf32>
    %147 = arith.mulf %144, %146 : vector<4x8x512xf32>
    %148 = arith.addf %140, %147 : vector<4x8x512xf32>
    %149 = vector.extract_strided_slice %5 {offsets = [0, 0, 2], sizes = [4, 8, 1], strides = [1, 1, 1]} : vector<4x8x3xf32> to vector<4x8x1xf32>
    %150 = vector.broadcast %13 : vector<1x1x512xf32> to vector<4x8x512xf32>
    %151 = vector.broadcast %149 : vector<4x8x1xf32> to vector<4x8x512xf32>
    %152 = arith.subf %150, %151 : vector<4x8x512xf32>
    %153 = vector.extract_strided_slice %6 {offsets = [0, 0, 2], sizes = [4, 8, 1], strides = [1, 1, 1]} : vector<4x8x3xf32> to vector<4x8x1xf32>
    %154 = vector.broadcast %153 : vector<4x8x1xf32> to vector<4x8x512xf32>
    %155 = arith.mulf %152, %154 : vector<4x8x512xf32>
    %156 = arith.addf %148, %155 : vector<4x8x512xf32>
    %157 = vector.shape_cast %7 : vector<4x8xf32> to vector<4x8x1xf32>
    %158 = vector.broadcast %157 : vector<4x8x1xf32> to vector<4x8x512xf32>
    %159 = arith.mulf %156, %158 : vector<4x8x512xf32>
    %cst_32 = arith.constant 0.000000e+00 : f32
    %160 = vector.broadcast %cst_32 : f32 to vector<4x8x512xf32>
    %161 = arith.maximumf %159, %160 : vector<4x8x512xf32>
    %cst_33 = arith.constant 1.000000e+00 : f32
    %162 = vector.broadcast %cst_33 : f32 to vector<4x8x512xf32>
    %163 = arith.minimumf %161, %162 : vector<4x8x512xf32>
    %164 = vector.extract_strided_slice %5 {offsets = [0, 0, 0], sizes = [4, 8, 1], strides = [1, 1, 1]} : vector<4x8x3xf32> to vector<4x8x1xf32>
    %165 = vector.extract_strided_slice %6 {offsets = [0, 0, 0], sizes = [4, 8, 1], strides = [1, 1, 1]} : vector<4x8x3xf32> to vector<4x8x1xf32>
    %166 = vector.broadcast %165 : vector<4x8x1xf32> to vector<4x8x512xf32>
    %167 = arith.mulf %163, %166 : vector<4x8x512xf32>
    %168 = vector.broadcast %164 : vector<4x8x1xf32> to vector<4x8x512xf32>
    %169 = arith.addf %168, %167 : vector<4x8x512xf32>
    %170 = vector.broadcast %11 : vector<1x1x512xf32> to vector<4x8x512xf32>
    %171 = arith.subf %170, %169 : vector<4x8x512xf32>
    %172 = arith.mulf %171, %171 : vector<4x8x512xf32>
    %173 = vector.extract_strided_slice %5 {offsets = [0, 0, 1], sizes = [4, 8, 1], strides = [1, 1, 1]} : vector<4x8x3xf32> to vector<4x8x1xf32>
    %174 = vector.extract_strided_slice %6 {offsets = [0, 0, 1], sizes = [4, 8, 1], strides = [1, 1, 1]} : vector<4x8x3xf32> to vector<4x8x1xf32>
    %175 = vector.broadcast %174 : vector<4x8x1xf32> to vector<4x8x512xf32>
    %176 = arith.mulf %163, %175 : vector<4x8x512xf32>
    %177 = vector.broadcast %173 : vector<4x8x1xf32> to vector<4x8x512xf32>
    %178 = arith.addf %177, %176 : vector<4x8x512xf32>
    %179 = vector.broadcast %12 : vector<1x1x512xf32> to vector<4x8x512xf32>
    %180 = arith.subf %179, %178 : vector<4x8x512xf32>
    %181 = arith.mulf %180, %180 : vector<4x8x512xf32>
    %182 = arith.addf %172, %181 : vector<4x8x512xf32>
    %183 = vector.extract_strided_slice %5 {offsets = [0, 0, 2], sizes = [4, 8, 1], strides = [1, 1, 1]} : vector<4x8x3xf32> to vector<4x8x1xf32>
    %184 = vector.extract_strided_slice %6 {offsets = [0, 0, 2], sizes = [4, 8, 1], strides = [1, 1, 1]} : vector<4x8x3xf32> to vector<4x8x1xf32>
    %185 = vector.broadcast %184 : vector<4x8x1xf32> to vector<4x8x512xf32>
    %186 = arith.mulf %163, %185 : vector<4x8x512xf32>
    %187 = vector.broadcast %183 : vector<4x8x1xf32> to vector<4x8x512xf32>
    %188 = arith.addf %187, %186 : vector<4x8x512xf32>
    %189 = vector.broadcast %13 : vector<1x1x512xf32> to vector<4x8x512xf32>
    %190 = arith.subf %189, %188 : vector<4x8x512xf32>
    %191 = arith.mulf %190, %190 : vector<4x8x512xf32>
    %192 = arith.addf %182, %191 : vector<4x8x512xf32>
    %193 = arith.cmpf one, %192, %192 : vector<4x8x512xf32>
    %cst_34 = arith.constant 0x7F800000 : f32
    %194 = vector.broadcast %cst_34 : f32 to vector<4x8x512xf32>
    %195 = arith.select %193, %194, %192 : vector<4x8x512xi1>, vector<4x8x512xf32>
    %cst_35 = arith.constant dense<0x7F800000> : vector<4x512xf32>
    %196 = vector.multi_reduction <minimumf>, %195, %cst_35 [1] : vector<4x8x512xf32> to vector<4x512xf32>
    %197 = vector.shape_cast %196 : vector<4x512xf32> to vector<4x1x512xf32>
    %198 = tpu.iota {dimensions = array<i32: 1>} : vector<4x8x512xi32>
    %199 = vector.broadcast %197 : vector<4x1x512xf32> to vector<4x8x512xf32>
    %200 = arith.cmpf oeq, %195, %199 : vector<4x8x512xf32>
    %c8_i32_36 = arith.constant 8 : i32
    %201 = vector.broadcast %c8_i32_36 : i32 to vector<4x8x512xi32>
    %202 = arith.select %200, %198, %201 : vector<4x8x512xi1>, vector<4x8x512xi32>
    %cst_37 = arith.constant dense<2147483647> : vector<4x512xi32>
    %203 = vector.multi_reduction <minsi>, %202, %cst_37 [1] : vector<4x8x512xi32> to vector<4x512xi32>
    %204 = vector.shape_cast %203 : vector<4x512xi32> to vector<4x1x512xi32>
    %205 = vector.broadcast %204 : vector<4x1x512xi32> to vector<4x8x512xi32>
    %206 = arith.cmpi eq, %202, %205 : vector<4x8x512xi32>
    %207 = arith.extui %206 : vector<4x8x512xi1> to vector<4x8x512xi32>
    %208 = arith.sitofp %207 : vector<4x8x512xi32> to vector<4x8x512xf32>
    %209 = vector.shape_cast %197 : vector<4x1x512xf32> to vector<4x512xf32>
    %210 = math.sqrt %209 : vector<4x512xf32>
    %211 = arith.cmpf one, %163, %163 : vector<4x8x512xf32>
    %cst_38 = arith.constant 0.000000e+00 : f32
    %212 = vector.broadcast %cst_38 : f32 to vector<4x8x512xf32>
    %213 = arith.select %211, %212, %163 : vector<4x8x512xi1>, vector<4x8x512xf32>
    %214 = arith.mulf %208, %213 : vector<4x8x512xf32>
    %cst_39 = arith.constant dense<true> : vector<4x512xi1>
    %215 = arith.xori %45, %cst_39 : vector<4x512xi1>
    %216 = arith.cmpf olt, %210, %122 : vector<4x512xf32>
    %217 = arith.andi %216, %215 : vector<4x512xi1>
    %218 = arith.select %217, %210, %122 : vector<4x512xi1>, vector<4x512xf32>
    %219 = arith.select %45, %43, %218 : vector<4x512xi1>, vector<4x512xf32>
    %cst_40 = arith.constant 1.000000e+00 : f32
    %220 = vector.broadcast %cst_40 : f32 to vector<4x512xf32>
    %221 = arith.divf %220, %210 : vector<4x512xf32>
    %222 = vector.extract_strided_slice %1 {offsets = [0, 0, 0], sizes = [4, 8, 1], strides = [1, 1, 1]} : vector<4x8x3xf32> to vector<4x8x1xf32>
    %223 = vector.broadcast %222 : vector<4x8x1xf32> to vector<4x8x512xf32>
    %224 = arith.mulf %56, %223 : vector<4x8x512xf32>
    %cst_41 = arith.constant dense<0.000000e+00> : vector<4x512xf32>
    %225 = vector.multi_reduction <add>, %224, %cst_41 [1] : vector<4x8x512xf32> to vector<4x512xf32>
    %226 = vector.extract_strided_slice %1 {offsets = [0, 0, 0], sizes = [4, 8, 1], strides = [1, 1, 1]} : vector<4x8x3xf32> to vector<4x8x1xf32>
    %227 = vector.broadcast %226 : vector<4x8x1xf32> to vector<4x8x512xf32>
    %228 = arith.mulf %133, %227 : vector<4x8x512xf32>
    %cst_42 = arith.constant dense<0.000000e+00> : vector<4x512xf32>
    %229 = vector.multi_reduction <add>, %228, %cst_42 [1] : vector<4x8x512xf32> to vector<4x512xf32>
    %230 = vector.extract_strided_slice %5 {offsets = [0, 0, 0], sizes = [4, 8, 1], strides = [1, 1, 1]} : vector<4x8x3xf32> to vector<4x8x1xf32>
    %231 = vector.broadcast %230 : vector<4x8x1xf32> to vector<4x8x512xf32>
    %232 = arith.mulf %208, %231 : vector<4x8x512xf32>
    %233 = vector.extract_strided_slice %6 {offsets = [0, 0, 0], sizes = [4, 8, 1], strides = [1, 1, 1]} : vector<4x8x3xf32> to vector<4x8x1xf32>
    %234 = vector.broadcast %233 : vector<4x8x1xf32> to vector<4x8x512xf32>
    %235 = arith.mulf %214, %234 : vector<4x8x512xf32>
    %236 = arith.addf %232, %235 : vector<4x8x512xf32>
    %cst_43 = arith.constant dense<0.000000e+00> : vector<4x512xf32>
    %237 = vector.multi_reduction <add>, %236, %cst_43 [1] : vector<4x8x512xf32> to vector<4x512xf32>
    %238 = vector.broadcast %8 : vector<1x512xf32> to vector<4x512xf32>
    %239 = arith.subf %238, %237 : vector<4x512xf32>
    %240 = arith.mulf %239, %221 : vector<4x512xf32>
    %241 = arith.select %217, %240, %229 : vector<4x512xi1>, vector<4x512xf32>
    %242 = arith.select %45, %225, %241 : vector<4x512xi1>, vector<4x512xf32>
    %243 = vector.extract_strided_slice %1 {offsets = [0, 0, 1], sizes = [4, 8, 1], strides = [1, 1, 1]} : vector<4x8x3xf32> to vector<4x8x1xf32>
    %244 = vector.broadcast %243 : vector<4x8x1xf32> to vector<4x8x512xf32>
    %245 = arith.mulf %56, %244 : vector<4x8x512xf32>
    %cst_44 = arith.constant dense<0.000000e+00> : vector<4x512xf32>
    %246 = vector.multi_reduction <add>, %245, %cst_44 [1] : vector<4x8x512xf32> to vector<4x512xf32>
    %247 = vector.extract_strided_slice %1 {offsets = [0, 0, 1], sizes = [4, 8, 1], strides = [1, 1, 1]} : vector<4x8x3xf32> to vector<4x8x1xf32>
    %248 = vector.broadcast %247 : vector<4x8x1xf32> to vector<4x8x512xf32>
    %249 = arith.mulf %133, %248 : vector<4x8x512xf32>
    %cst_45 = arith.constant dense<0.000000e+00> : vector<4x512xf32>
    %250 = vector.multi_reduction <add>, %249, %cst_45 [1] : vector<4x8x512xf32> to vector<4x512xf32>
    %251 = vector.extract_strided_slice %5 {offsets = [0, 0, 1], sizes = [4, 8, 1], strides = [1, 1, 1]} : vector<4x8x3xf32> to vector<4x8x1xf32>
    %252 = vector.broadcast %251 : vector<4x8x1xf32> to vector<4x8x512xf32>
    %253 = arith.mulf %208, %252 : vector<4x8x512xf32>
    %254 = vector.extract_strided_slice %6 {offsets = [0, 0, 1], sizes = [4, 8, 1], strides = [1, 1, 1]} : vector<4x8x3xf32> to vector<4x8x1xf32>
    %255 = vector.broadcast %254 : vector<4x8x1xf32> to vector<4x8x512xf32>
    %256 = arith.mulf %214, %255 : vector<4x8x512xf32>
    %257 = arith.addf %253, %256 : vector<4x8x512xf32>
    %cst_46 = arith.constant dense<0.000000e+00> : vector<4x512xf32>
    %258 = vector.multi_reduction <add>, %257, %cst_46 [1] : vector<4x8x512xf32> to vector<4x512xf32>
    %259 = vector.broadcast %9 : vector<1x512xf32> to vector<4x512xf32>
    %260 = arith.subf %259, %258 : vector<4x512xf32>
    %261 = arith.mulf %260, %221 : vector<4x512xf32>
    %262 = arith.select %217, %261, %250 : vector<4x512xi1>, vector<4x512xf32>
    %263 = arith.select %45, %246, %262 : vector<4x512xi1>, vector<4x512xf32>
    %264 = vector.extract_strided_slice %1 {offsets = [0, 0, 2], sizes = [4, 8, 1], strides = [1, 1, 1]} : vector<4x8x3xf32> to vector<4x8x1xf32>
    %265 = vector.broadcast %264 : vector<4x8x1xf32> to vector<4x8x512xf32>
    %266 = arith.mulf %56, %265 : vector<4x8x512xf32>
    %cst_47 = arith.constant dense<0.000000e+00> : vector<4x512xf32>
    %267 = vector.multi_reduction <add>, %266, %cst_47 [1] : vector<4x8x512xf32> to vector<4x512xf32>
    %268 = vector.extract_strided_slice %1 {offsets = [0, 0, 2], sizes = [4, 8, 1], strides = [1, 1, 1]} : vector<4x8x3xf32> to vector<4x8x1xf32>
    %269 = vector.broadcast %268 : vector<4x8x1xf32> to vector<4x8x512xf32>
    %270 = arith.mulf %133, %269 : vector<4x8x512xf32>
    %cst_48 = arith.constant dense<0.000000e+00> : vector<4x512xf32>
    %271 = vector.multi_reduction <add>, %270, %cst_48 [1] : vector<4x8x512xf32> to vector<4x512xf32>
    %272 = vector.extract_strided_slice %5 {offsets = [0, 0, 2], sizes = [4, 8, 1], strides = [1, 1, 1]} : vector<4x8x3xf32> to vector<4x8x1xf32>
    %273 = vector.broadcast %272 : vector<4x8x1xf32> to vector<4x8x512xf32>
    %274 = arith.mulf %208, %273 : vector<4x8x512xf32>
    %275 = vector.extract_strided_slice %6 {offsets = [0, 0, 2], sizes = [4, 8, 1], strides = [1, 1, 1]} : vector<4x8x3xf32> to vector<4x8x1xf32>
    %276 = vector.broadcast %275 : vector<4x8x1xf32> to vector<4x8x512xf32>
    %277 = arith.mulf %214, %276 : vector<4x8x512xf32>
    %278 = arith.addf %274, %277 : vector<4x8x512xf32>
    %cst_49 = arith.constant dense<0.000000e+00> : vector<4x512xf32>
    %279 = vector.multi_reduction <add>, %278, %cst_49 [1] : vector<4x8x512xf32> to vector<4x512xf32>
    %280 = vector.broadcast %10 : vector<1x512xf32> to vector<4x512xf32>
    %281 = arith.subf %280, %279 : vector<4x512xf32>
    %282 = arith.mulf %281, %221 : vector<4x512xf32>
    %283 = arith.select %217, %282, %271 : vector<4x512xi1>, vector<4x512xf32>
    %284 = arith.select %45, %267, %283 : vector<4x512xi1>, vector<4x512xf32>
    %c0_50 = arith.constant 0 : index
    %c0_51 = arith.constant 0 : index
    %285 = vector.load %arg9[%c0_50, %c0_51] : memref<4x512xf32, #tpu.memory_space<vmem>>, vector<4x512xf32>
    tpu.vector_store %arg9[%c0_50, %c0_51], %219 {strides = array<i32>} : memref<4x512xf32, #tpu.memory_space<vmem>>, vector<4x512xf32>,
    %286 = vector.shape_cast %242 : vector<4x512xf32> to vector<1x4x512xf32>
    %287 = vector.shape_cast %263 : vector<4x512xf32> to vector<1x4x512xf32>
    %288 = vector.shape_cast %284 : vector<4x512xf32> to vector<1x4x512xf32>
    %289 = tpu.concatenate %286, %287, %288 in 0 : vector<1x4x512xf32>, vector<1x4x512xf32>, vector<1x4x512xf32> -> vector<3x4x512xf32>
    %c0_52 = arith.constant 0 : index
    %c0_53 = arith.constant 0 : index
    %c0_54 = arith.constant 0 : index
    %290 = vector.load %arg10[%c0_52, %c0_53, %c0_54] : memref<3x4x512xf32, #tpu.memory_space<vmem>>, vector<3x4x512xf32>
    tpu.vector_store %arg10[%c0_52, %c0_53, %c0_54], %289 {strides = array<i32>} : memref<3x4x512xf32, #tpu.memory_space<vmem>>, vector<3x4x512xf32>,
    return
  }
  func.func @transform_0(%arg0: i32) -> (i32, i32) {
    %c0_i32 = arith.constant 0 : i32
    %c0_i32_0 = arith.constant 0 : i32
    return %c0_i32, %arg0 : i32, i32
  }
  func.func @transform_1(%arg0: i32) -> (i32, i32, i32) {
    %c0_i32 = arith.constant 0 : i32
    %c0_i32_0 = arith.constant 0 : i32
    %c0_i32_1 = arith.constant 0 : i32
    %c0_i32_2 = arith.constant 0 : i32
    return %c0_i32, %c0_i32_0, %c0_i32_1 : i32, i32, i32
  }
  func.func @transform_2(%arg0: i32) -> (i32, i32) {
    %c0_i32 = arith.constant 0 : i32
    %c0_i32_0 = arith.constant 0 : i32
    %c0_i32_1 = arith.constant 0 : i32
    return %c0_i32, %c0_i32_0 : i32, i32
  }
  func.func @transform_3(%arg0: i32) -> (i32, i32, i32) {
    %c0_i32 = arith.constant 0 : i32
    %c0_i32_0 = arith.constant 0 : i32
    %c0_i32_1 = arith.constant 0 : i32
    %c0_i32_2 = arith.constant 0 : i32
    return %c0_i32, %c0_i32_0, %c0_i32_1 : i32, i32, i32
  }
  func.func @transform_4(%arg0: i32) -> (i32, i32) {
    %c0_i32 = arith.constant 0 : i32
    %c0_i32_0 = arith.constant 0 : i32
    %c0_i32_1 = arith.constant 0 : i32
    return %c0_i32, %c0_i32_0 : i32, i32
  }
  func.func @transform_5(%arg0: i32) -> (i32, i32, i32) {
    %c0_i32 = arith.constant 0 : i32
    %c0_i32_0 = arith.constant 0 : i32
    %c0_i32_1 = arith.constant 0 : i32
    %c0_i32_2 = arith.constant 0 : i32
    return %c0_i32, %c0_i32_0, %c0_i32_1 : i32, i32, i32
  }
  func.func @transform_6(%arg0: i32) -> (i32, i32, i32) {
    %c0_i32 = arith.constant 0 : i32
    %c0_i32_0 = arith.constant 0 : i32
    %c0_i32_1 = arith.constant 0 : i32
    %c0_i32_2 = arith.constant 0 : i32
    return %c0_i32, %c0_i32_0, %c0_i32_1 : i32, i32, i32
  }
  func.func @transform_7(%arg0: i32) -> (i32, i32) {
    %c0_i32 = arith.constant 0 : i32
    %c0_i32_0 = arith.constant 0 : i32
    %c0_i32_1 = arith.constant 0 : i32
    return %c0_i32, %c0_i32_0 : i32, i32
  }
  func.func @transform_8(%arg0: i32) -> (i32, i32) {
    %c0_i32 = arith.constant 0 : i32
    %c0_i32_0 = arith.constant 0 : i32
    return %c0_i32, %arg0 : i32, i32
  }
  func.func @transform_9(%arg0: i32) -> (i32, i32, i32) {
    %c0_i32 = arith.constant 0 : i32
    %c0_i32_0 = arith.constant 0 : i32
    %c0_i32_1 = arith.constant 0 : i32
    return %c0_i32, %c0_i32_0, %arg0 : i32, i32, i32
  }
}

</mosaic_0001>

<bundles_post_ra>
// kernel: tpu_custom_call.1
= control target key start
LH: loop header
LB: loop body
LE: loop exit
PB: predicated region body
PF: predicated region fallthrough
CT: control target
= control target key end

     0   :  { %s11092_s0 = inlined_call_operand.vmem [shape: f32[3,1024], index: 0, kind: input, shape index: {}]   ;;  %s11093_s1 = inlined_call_operand.vmem [shape: f32[4,8,3], index: 1, kind: input, shape index: {}]   ;;  %s11094_s2 = inlined_call_operand.vmem [shape: f32[4,8], index: 2, kind: input, shape index: {}]   ;;  %s11095_s3 = inlined_call_operand.vmem [shape: f32[4,8,8], index: 3, kind: input, shape index: {}]   ;;  %s11096_s4 = inlined_call_operand.vmem [shape: f32[4,8], index: 4, kind: input, shape index: {}]   ;;  %s11097_s5 = inlined_call_operand.vmem [shape: f32[4,8,3], index: 5, kind: input, shape index: {}]   ;;  %s11098_s6 = inlined_call_operand.vmem [shape: f32[4,8,3], index: 6, kind: input, shape index: {}]   ;;  %s11099_s7 = inlined_call_operand.vmem [shape: f32[4,8], index: 7, kind: input, shape index: {}]   ;;  %s11100_s8 = inlined_call_operand.hbm [shape: f32[4,1024], index: 8, kind: output, shape index: {0}]   ;;  %s11101_s9 = inlined_call_operand.hbm [shape: f32[3,4,1024], index: 9, kind: output, shape index: {1}]  }
   0x1   :  { %11543 = sst [smem:[#allocation193_spill]] %s11092_s0 }
   0x2   :  { %15 = vsyncpa [#allocation3], 0 }
   0x3   :  { %17 = vsyncpa [#allocation3 + $0x1], 0 }
   0x4   :  { %18 = vsyncpa [#allocation5], 0 }
   0x5   :  { %20 = vsyncpa [#allocation5 + $0x1], 0  ;;  %s5777_s30 = smov 0   ;;  %s5779_s10 = smov 0  }
   0x6   :  { %s5781_s11 = smov 0   ;;  %s5783_s12 = smov 0  }
   0x7 LB: > { %s5798_s13 = sadd.s32 4294967295, %s5710_s12   ;;  %s5400_s14 = sadd.s32 4294967294, %s5710_s12   ;;  %s5710_s12 = sphi %s5783_s12, %s12729_s12   ;;  %s5706_s11 = sphi %s5781_s11, %s12728_s11   ;;  %s5702_s10 = sphi %s5779_s10, %s12727_s10   ;;  %s5698_s30 = sphi %s5777_s30, %s12726_s30  }
   0x8   : > { %s5802_s15 = sadd.s32 1, %s5710_s12   ;;  %s206_s16 = sadd.s32 1, %s5706_s11 }
   0x9   : > { %s203_s17 = ssub.s32 %s5710_s12, %s5802_s15  ;;  %p216_p0 = scmp.ne.s32.totalorder %s5706_s11, %s5702_s10 }
   0xa   : > { %p204_p1 = scmp.eq.s32.totalorder %s203_s17, 0  ;;  %p217_p2 = scmp.eq.s32.totalorder %s5798_s13, 1 }
   0xb   : > { %p222_p3 = scmp.ne.s32.totalorder %s5702_s10, %s5698_s30  ;;  %p223_p4 = scmp.eq.s32.totalorder %s5400_s14, 1 }
   0xc   : > { %s5813_s18 = scalar_select %p204_p1, %s5706_s11, %s206_s16  }
   0xd   : > { %p5815_p5 = por %p217_p2, %p216_p0  ;;  %p5819_p6 = por %p223_p4, %p222_p3 }
   0xe   : > { %p5403_p7 = scmp.ge.s32.totalorder %s5710_s12, 1  ;;  %p297_p8 = scmp.lt.s32.totalorder %s5710_s12, 3 }
  0x10   : > { %p298_p9 = pnand %p5403_p7, %p297_p8 }
  0x12   : > { %301 = sbr.rel (%p298_p9) target bundleno = 1196 (0x4ac), region = 52 }
  0x17   : > { %v350_v0 = vld [vmem:[%s11093_s1 + $0x10] sm:$0xff]  ;;  %v389_v1 = vlaneseq  ;;  %v5712_v2 = vmov 0   ;;  %v5713_v4 = vmov 3   ;;  %v351_v5 = vld [vmem:[%s11093_s1 + $0x18] sm:$0xff]  ;;  %v352_v6 = vld [vmem:[%s11094_s2] sm:$0xf] }
  0x18   : > { %5522 = vset.pattern.permute.xlu1 %v5712_v2  ;;  %5529 = vset.pattern.permute.xlu0 %v5713_v4  ;;  %v5847_v10 = vld [vmem:[%s11093_s1 + $0x8] sm:$0xff]  ;;  %v5714_v12 = vmov 1   ;;  %v348_v14 = vld [vmem:[%s11093_s1] sm:$0xff]  ;;  %v5715_v16 = vmov 2   ;;  %v5716_v17 = vmov 4   ;;  %v5871_v18 = vld [vmem:[%s11095_s3 + $0x18] sm:$0xff] }
  0x19   : > { %379 = vperm.xlu1 %5522, %v350_v0   ;;  %v5829_v3 = vshrl.u32 %v389_v1, 7  ;;  %v5855_v13 = vld [vmem:[%s11095_s3 + $0x8] sm:$0xff]  ;;  %v5864_v15 = vld [vmem:[%s11095_s3] sm:$0xff]  ;;  %v5890_v23 = vld [vmem:[%s11095_s3 + $0x10] sm:$0xff]  ;;  %v11105_v29 = vmov 5   ;;  %s5405_s16 = sshll.u32 %s5798_s13, 2 }
  0x1a   : > { %v358_v24 = vld [vmem:[%s11097_s5] sm:$0xff]  ;;  %v5900_v25 = vld [vmem:[%s11097_s5 + $0x18] sm:$0xff]  ;;  %v5914_v26 = vld [vmem:[%s11097_s5 + $0x8] sm:$0xff]  ;;  %p339_p10 = scmp.lt.s32.totalorder %s5405_s16, 7  ;;  %v11103_v36 = vmov 6   ;;  %s11550_s0 = sld [smem:[#allocation193_spill]] }
  0x1b   : > { %11546 = vst [vmem:[#allocation8_spill] sm:$0xff] %v5829_v3  ;;  %v5838_v7 = vsub.s32 0, %v5829_v3  ;;  %v5841_v8 = vsub.s32 2, %v5829_v3  ;;  %v5874_v19 = vsub.s32 1, %v5829_v3  ;;  %v5879_v21 = vsub.s32 3, %v5829_v3  ;;  %v5923_v27 = vld [vmem:[%s11098_s6 + $0x10] sm:$0xff] }
  0x1c   : > { %v5930_v28 = vld [vmem:[%s11098_s6 + $0x18] sm:$0xff]  ;;  %v362_v30 = vld [vmem:[%s11098_s6] sm:$0xff]  ;;  %v5959_v33 = vld [vmem:[%s11097_s5 + $0x10] sm:$0xff]  ;;  %s12731_s16 = smov (!%p339_p10, %s5405_s16), 7  ;;  %v11102_v41 = vmov 7   ;;  %v6001_v43 = vsub.s32 4, %v5829_v3 }
  0x1d   : > { %11547 = vst [vmem:[#allocation9_spill] sm:$0xff] %v5838_v7  ;;  %384 = vperm.xlu1 %5522, %v351_v5   ;;  %v612_v9 = vrot.slane %v352_v6, %v5838_v7  ;;  %v626_v11 = vrot.slane %v352_v6, %v5841_v8  ;;  %11548 = vst [vmem:[#allocation10_spill] sm:$0xff] %v5874_v19  ;;  %v619_v20 = vrot.slane %v352_v6, %v5874_v19  ;;  %v5950_v31 = vld [vmem:[%s11099_s7] sm:$0xf]  ;;  %v5974_v35 = vld [vmem:[%s11098_s6 + $0x8] sm:$0xff]  ;;  %s5406_s22 = sshll.u32 %s12731_s16, 2 }
  0x1e   : > { %v633_v22 = vrot.slane %v352_v6, %v5879_v21  ;;  %v2721_v32 = vrot.slane %v5950_v31, %v5874_v19  ;;  %v2735_v34 = vrot.slane %v5950_v31, %v5879_v21  ;;  %v5988_v39 = vld [vmem:[%s11096_s4] sm:$0xf]  ;;  %11552 = vst [vmem:[#allocation13_spill] sm:$0xff] %v6001_v43  ;;  %v6004_v46 = vsub.s32 5, %v5829_v3  ;;  %s10541_s28 = sand.u32 1, %s5702_s10   ;;  %s11527_s14 = sshll.u32 %s5798_s13, 8 }
  0x1f   : > { %614 = vbcast.lane.b32.xlu0 %v612_v9, 256  ;;  %v2102_v42 = vrot.slane %v5988_v39, %v5838_v7  ;;  %v2123_v49 = vrot.slane %v5988_v39, %v5879_v21  ;;  %v6026_v59 = vsub.s32 6, %v5829_v3  ;;  %s5404_s29 = sshll.u32 %s10541_s28, 4  ;;  %s10617_s23 = scalar_lea.hbm %s11100_s8, %s11527_s14 }
  0x20   : > { %s342_s27 = scalar_lea.vmem %s11550_s0, %s5406_s22  ;;  %11553 = vst [vmem:[#allocation14_spill] sm:$0xff] %v6004_v46  ;;  %s330_s16 = scalar_lea.vmem [#allocation2], %s5404_s29 }
  0x21   : > { %5523 = vset.pattern.permute.xlu1 %v5714_v12  ;;  %v346_v44 = vld [vmem:[%s342_s27] sm:$0x77]  ;;  %v347_v45 = vld [vmem:[%s342_s27 + $0x8] sm:$0x77]  ;;  %11556 = vst [vmem:[#allocation17_spill] sm:$0xff] %v6026_v59  ;;  %s5293_s17 = sshll.u32 %s330_s16, 4  ;;  %s10619_s17 = int_to_ptr.vmem [resolvable:$true] %s5293_s17 }
  0x22   : > { %446 = vperm.xlu1 %5523, %v5847_v10   ;;  %v392_v50 = vrot.slane %v346_v44, %v5838_v7  ;;  %v396_v51 = vrot.slane %v346_v44, %v6001_v43  ;;  %v400_v52 = vrot.slane %v347_v45, %v5838_v7  ;;  %v404_v53 = vrot.slane %v347_v45, %v6001_v43  ;;  %s5274_s24 = scalar_lea.sflag [#allocation3], %s10541_s28  ;;  %s5620_s25 = scalar_lea.vmem %s10619_s17, 256 }
  0x23   : > { %628 = vbcast.lane.b32.xlu0 %v626_v11, 256  ;;  %v460_v54 = vrot.slane %v346_v44, %v5874_v19  ;;  %v464_v55 = vrot.slane %v346_v44, %v6004_v46  ;;  %v468_v56 = vrot.slane %v347_v45, %v5874_v19  ;;  %v472_v57 = vrot.slane %v347_v45, %v6004_v46  ;;  %p5621_p11 = scmp.ne.s32.totalorder %s10619_s17, %s5620_s25  ;;  %s5722_s26 = smov [#allocation2]  }
  0x24   : > { %v6031_v61 = vrot.slane %v392_v50, %v5838_v7  ;;  %v6034_v62 = vrot.slane %v396_v51, %v5838_v7  ;;  %v6037_v63 = vrot.slane %v400_v52, %v5838_v7  ;;  %v544_v9 = vrot.slane %v346_v44, %v5841_v8  ;;  %s5624_s27 = sshll.u32 %s5722_s26, 4  ;;  %s5625_s27 = int_to_ptr.vmem [resolvable:$false] %s5624_s27 }
  0x25   : > { %v6044_v1 = vrot.slane %v460_v54, %v5874_v19  ;;  %v6053_v6 = vrot.slane %v472_v57, %v5874_v19  ;;  %v552_v11 = vrot.slane %v347_v45, %v5841_v8  ;;  %p5622_p12 = pnand %p5621_p11, %p5815_p5  ;;  %s5626_s29 = scalar_lea.vmem %s5625_s27, 512 }
  0x26   : > { %450 = vperm.xlu1 %5523, %v350_v0   ;;  %11558 = vst [vmem:[#allocation19_spill] sm:$0xff] %v6031_v61  ;;  %11559 = vst [vmem:[#allocation20_spill] sm:$0xff] %v6034_v62  ;;  %p5627_p0 = scmp.lt.s32.totalorder %s10619_s17, %s5625_s27  ;;  %p5628_p1 = scmp.lt.s32.totalorder %s5626_s29, %s5620_s25 }
  0x27   : > { %1432 = vperm.xlu0 %5529, %v5855_v13   ;;  %11560 = vst [vmem:[#allocation21_spill] sm:$0xff] %v6037_v63  ;;  %11562 = vst [vmem:[#allocation23_spill] sm:$0xff] %v6044_v1  ;;  %p5623_p13 = pneg %p5622_p12 }
  0x28   : > { %11565 = vst [vmem:[#allocation26_spill] sm:$0xff] %v6053_v6  ;;  %p5629_p2 = por %p5628_p1, %p5627_p0 }
  0x2a   : > { %5524 = vset.pattern.permute.xlu1 %v5715_v16  ;;  %p5630_p3 = pnand %p5629_p2, %p5623_p13 }
  0x2b   : > { %5530 = vset.pattern.permute.xlu0 %v5716_v17  ;;  %526 = vperm.xlu1 %5524, %v348_v14  }
  0x2c   : > { %1556 = vperm.xlu0 %5530, %v5864_v15  }
  0x2f   : > { %534 = vperm.xlu1 %5524, %v350_v0   ;;  %v6040_v0 = vrot.slane %v404_v53, %v5838_v7 }
  0x30   : > { %1568 = vperm.xlu0 %5530, %v5871_v18  }
  0x31   : > { %11561 = vst [vmem:[#allocation22_spill] sm:$0xff] %v6040_v0 }
  0x33   : > { %538 = vperm.xlu1 %5524, %v351_v5  }
  0x34   : > { %5532 = vset.pattern.permute.xlu0 %v5712_v2 }
  0x35   : > { %369 = vperm.xlu0 %5532, %v348_v14  }
  0x37   : > { %621 = vbcast.lane.b32.xlu1 %v619_v20, 256 }
  0x38   : > { %5525 = vset.pattern.permute.xlu1 %v5712_v2 }
  0x39   : > { %374 = vperm.xlu0 %5532, %v5847_v10  }
  0x3b   : > { %635 = vbcast.lane.b32.xlu1 %v633_v22, 256 }
  0x3d   : > { %1057 = vperm.xlu0 %5532, %v5864_v15  }
  0x3f   : > { %1062 = vperm.xlu1 %5525, %v5855_v13  }
  0x41   : > { %1072 = vperm.xlu0 %5532, %v5871_v18  }
  0x43   : > { %1067 = vperm.xlu1 %5525, %v5890_v23  }
  0x45   : > { %2481 = vperm.xlu0 %5532, %v358_v24  }
  0x47   : > { %5526 = vset.pattern.permute.xlu1 %v5714_v12 }
  0x48   : > { %1172 = vperm.xlu1 %5526, %v5864_v15  }
  0x49   : > { %2496 = vperm.xlu0 %5532, %v5900_v25  }
  0x4c   : > { %1180 = vperm.xlu1 %5526, %v5890_v23  }
  0x4d   : > { %5538 = vset.pattern.permute.xlu0 %v5714_v12 }
  0x4e   : > { %442 = vperm.xlu0 %5538, %v348_v14  }
  0x50   : > { %1184 = vperm.xlu1 %5526, %v5871_v18  }
  0x52   : > { %454 = vperm.xlu0 %5538, %v351_v5   ;;  %v6050_v5 = vrot.slane %v468_v56, %v5874_v19 }
  0x54   : > { %5527 = vset.pattern.permute.xlu1 %v5715_v16  ;;  %11564 = vst [vmem:[#allocation25_spill] sm:$0xff] %v6050_v5 }
  0x55   : > { %1304 = vperm.xlu1 %5527, %v5855_v13  }
  0x56   : > { %1176 = vperm.xlu0 %5538, %v5855_v13  }
  0x59   : > { %1308 = vperm.xlu1 %5527, %v5890_v23  }
  0x5a   : > { %2556 = vperm.xlu0 %5538, %v5914_v26  }
  0x5d   : > { %5528 = vset.pattern.permute.xlu1 %v5713_v4  ;;  %v6047_v4 = vrot.slane %v464_v55, %v5874_v19 }
  0x5e   : > { %2564 = vperm.xlu0 %5538, %v5900_v25   ;;  %1428 = vperm.xlu1 %5528, %v5864_v15  }
  0x5f   : > { %11563 = vst [vmem:[#allocation24_spill] sm:$0xff] %v6047_v4 }
  0x62   : > { %2592 = vperm.xlu0 %5538, %v5923_v27   ;;  %1436 = vperm.xlu1 %5528, %v5890_v23  }
  0x66   : > { %2596 = vperm.xlu0 %5538, %v5930_v28   ;;  %1440 = vperm.xlu1 %5528, %v5871_v18  }
  0x6a   : > { %5545 = vset.pattern.permute.xlu0 %v5715_v16  ;;  %5531 = vset.pattern.permute.xlu1 %v5716_v17 }
  0x6b   : > { %530 = vperm.xlu0 %5545, %v5847_v10   ;;  %1560 = vperm.xlu1 %5531, %v5855_v13   ;;  %v548_v10 = vrot.slane %v346_v44, %v6026_v59  ;;  %v6082_v44 = vrot.slane %v544_v9, %v5841_v8 }
  0x6d   : > { %11568 = vst [vmem:[#allocation29_spill] sm:$0xff] %v6082_v44 }
  0x6f   : > { %1300 = vperm.xlu0 %5545, %v5864_v15   ;;  %1564 = vperm.xlu1 %5531, %v5890_v23  }
  0x73   : > { %1312 = vperm.xlu0 %5545, %v5871_v18   ;;  %5533 = vset.pattern.permute.xlu1 %v11105_v29 }
  0x74   : > { %1684 = vperm.xlu1 %5533, %v5864_v15  }
  0x77   : > { %2632 = vperm.xlu0 %5545, %v358_v24  }
  0x78   : > { %5534 = vset.pattern.permute.xlu1 %v5712_v2 }
  0x79   : > { %2486 = vperm.xlu1 %5534, %v5914_v26  }
  0x7b   : > { %2664 = vperm.xlu0 %5545, %v362_v30  }
  0x7d   : > { %5535 = vset.pattern.permute.xlu1 %v5714_v12 }
  0x7e   : > { %2552 = vperm.xlu1 %5535, %v358_v24  }
  0x7f   : > { %2676 = vperm.xlu0 %5545, %v5930_v28  }
  0x82   : > { %5536 = vset.pattern.permute.xlu1 %v5712_v2 }
  0x83   : > { %2723 = vbcast.lane.b32.xlu0 %v2721_v32, 256  ;;  %2491 = vperm.xlu1 %5536, %v5959_v33  }
  0x84   : > { %5548 = vset.pattern.permute.xlu0 %v11105_v29 }
  0x87   : > { %2737 = vbcast.lane.b32.xlu0 %v2735_v34, 256  ;;  %5537 = vset.pattern.permute.xlu1 %v5714_v12 }
  0x88   : > { %2560 = vperm.xlu1 %5537, %v5959_v33  }
  0x8b   : > { %1692 = vperm.xlu0 %5548, %v5890_v23  }
  0x8c   : > { %5539 = vset.pattern.permute.xlu1 %v5712_v2 }
  0x8d   : > { %2517 = vperm.xlu1 %5539, %v362_v30  }
  0x8f   : > { %5551 = vset.pattern.permute.xlu0 %v11103_v36 }
  0x90   : > { %1812 = vperm.xlu0 %5551, %v5864_v15  }
  0x91   : > { %2522 = vperm.xlu1 %5539, %v5974_v35   ;;  %v5983_v38 = vpop.permute.xlu0 %614 }
  0x94   : > { %v5979_v37 = vpop.permute.xlu1 %379  ;;  %1824 = vperm.xlu0 %5551, %v5871_v18  }
  0x95   : > { %11549 = vst [vmem:[#allocation11_spill] sm:$0xff] %v5979_v37  ;;  %5540 = vset.pattern.permute.xlu1 %v5714_v12  ;;  %v6006_v47 = vpop.permute.xlu0 %628  ;;  %v556_v12 = vrot.slane %v347_v45, %v6026_v59  ;;  %v434_v32 = vmul.f32 %v6034_v62, %v5979_v37  ;;  %v435_v34 = vmul.f32 %v6037_v63, %v5979_v37 }
  0x96   : > { %2584 = vperm.xlu1 %5540, %v362_v30   ;;  %v433_v30 = vmul.f32 %v6031_v61, %v5979_v37  ;;  %v6085_v45 = vrot.slane %v548_v10, %v5841_v8 }
  0x97   : > { %v6091_v50 = vrot.slane %v556_v12, %v5841_v8 }
  0x98   : > { %v5993_v40 = vpop.permute.xlu1 %384  ;;  %5554 = vset.pattern.permute.xlu0 %v11102_v41  ;;  %11569 = vst [vmem:[#allocation30_spill] sm:$0xff] %v6085_v45 }
  0x99   : > { %11551 = vst [vmem:[#allocation12_spill] sm:$0xff] %v5993_v40  ;;  %1948 = vperm.xlu0 %5554, %v5890_v23   ;;  %11571 = vst [vmem:[#allocation32_spill] sm:$0xff] %v6091_v50  ;;  %v6170_v41 = vmul.f32 %v6040_v0, %v5993_v40 }
  0x9a   : > { %2588 = vperm.xlu1 %5540, %v5974_v35  }
  0x9d   : > { %v6008_v48 = vpop.permute.xlu1 %446  ;;  %2104 = vbcast.lane.b32.xlu0 %v2102_v42, 256  ;;  %v436_v42 = vmul.f32 %v6040_v0, %v5979_v37 }
  0x9e   : > { %11554 = vst [vmem:[#allocation15_spill] sm:$0xff] %v6008_v48  ;;  %5541 = vset.pattern.permute.xlu1 %v5715_v16  ;;  %5555 = vset.pattern.permute.xlu0 %v5715_v16  ;;  %v497_v36 = vmul.f32 %v6044_v1, %v6008_v48  ;;  %v498_v29 = vmul.f32 %v6047_v4, %v6008_v48 }
  0x9f   : > { %2636 = vperm.xlu1 %5541, %v5914_v26   ;;  %v500_v3 = vmul.f32 %v6053_v6, %v6008_v48 }
  0xa1   : > { %v6023_v58 = vpop.permute.xlu1 %450  ;;  %2125 = vbcast.lane.b32.xlu0 %v2123_v49, 256  ;;  %v6088_v49 = vrot.slane %v552_v11, %v5841_v8 }
  0xa2   : > { %11555 = vst [vmem:[#allocation16_spill] sm:$0xff] %v6023_v58  ;;  %v6028_v60 = vpop.permute.xlu0 %1432  ;;  %v501_v14 = vmul.f32 %v6044_v1, %v6023_v58  ;;  %v502_v17 = vmul.f32 %v6047_v4, %v6023_v58  ;;  %v503_v20 = vmul.f32 %v6050_v5, %v6023_v58  ;;  %v504_v22 = vmul.f32 %v6053_v6, %v6023_v58 }
  0xa3   : > { %11557 = vst [vmem:[#allocation18_spill] sm:$0xff] %v6028_v60  ;;  %5542 = vset.pattern.permute.xlu1 %v5712_v2  ;;  %11570 = vst [vmem:[#allocation31_spill] sm:$0xff] %v6088_v49  ;;  %v11586_v58 = vmov 5  }
  0xa4   : > { %2527 = vperm.xlu1 %5542, %v5923_v27   ;;  %v517_v51 = vadd.f32 %v501_v14, %v433_v30  ;;  %v518_v52 = vadd.f32 %v502_v17, %v434_v32  ;;  %v519_v53 = vadd.f32 %v503_v20, %v435_v34  ;;  %v520_v54 = vadd.f32 %v504_v22, %v436_v42 }
  0xa6   : > { %v6068_v24 = vpop.permute.xlu1 %526 }
  0xa7   : > { %11566 = vst [vmem:[#allocation27_spill] sm:$0xff] %v6068_v24  ;;  %v6070_v26 = vpop.permute.xlu0 %1556  ;;  %v577_v59 = vmul.f32 %v6082_v44, %v6068_v24 }
  0xa8   : > { %11567 = vst [vmem:[#allocation28_spill] sm:$0xff] %v6070_v26  ;;  %5543 = vset.pattern.permute.xlu1 %v5715_v16 }
  0xa9   : > { %2640 = vperm.xlu1 %5543, %v5959_v33  }
  0xaa   : > { %v6094_v55 = vpop.permute.xlu1 %534 }
  0xab   : > { %11572 = vst [vmem:[#allocation33_spill] sm:$0xff] %v6094_v55  ;;  %v585_v56 = vmul.f32 %v6082_v44, %v6094_v55  ;;  %v586_v57 = vmul.f32 %v6085_v45, %v6094_v55  ;;  %v587_v9 = vmul.f32 %v6088_v49, %v6094_v55  ;;  %v588_v10 = vmul.f32 %v6091_v50, %v6094_v55  ;;  %v6104_v11 = vpop.permute.xlu0 %1568 }
  0xac   : > { %11573 = vst [vmem:[#allocation34_spill] sm:$0xff] %v6104_v11 }
  0xad   : > { %v601_v33 = vadd.f32 %v585_v56, %v517_v51  ;;  %v602_v12 = vadd.f32 %v586_v57, %v518_v52  ;;  %v603_v14 = vadd.f32 %v587_v9, %v519_v53  ;;  %v604_v17 = vadd.f32 %v588_v10, %v520_v54  ;;  %5544 = vset.pattern.permute.xlu1 %v5712_v2 }
  0xae   : > { %2532 = vperm.xlu1 %5544, %v5930_v28   ;;  %v6108_v20 = vpop.permute.xlu1 %538 }
  0xaf   : > { %11574 = vst [vmem:[#allocation35_spill] sm:$0xff] %v6108_v20  ;;  %v645_v22 = vsub.f32 %v601_v33, %v6006_v47  ;;  %v646_v30 = vsub.f32 %v602_v12, %v6006_v47  ;;  %v647_v32 = vsub.f32 %v603_v14, %v6006_v47  ;;  %v648_v34 = vsub.f32 %v604_v17, %v6006_v47 }
  0xb0   : > { %v6114_v42 = vpop.permute.xlu0 %369  ;;  %v6144_v12 = vmul.f32 %v6031_v61, %v5993_v40  ;;  %v6148_v14 = vmul.f32 %v6034_v62, %v5993_v40  ;;  %v2728_v17 = vrot.slane %v5950_v31, %v5841_v8 }
  0xb1   : > { %11575 = vst [vmem:[#allocation36_spill] sm:$0xff] %v6114_v42  ;;  %vm661_vm0 = vcmp.eq.f32.partialorder %v645_v22, -inf  ;;  %vm662_vm1 = vcmp.eq.f32.partialorder %v646_v30, -inf  ;;  %vm663_vm2 = vcmp.eq.f32.partialorder %v647_v32, -inf  ;;  %vm664_vm3 = vcmp.eq.f32.partialorder %v648_v34, -inf }
  0xb2   : > { %5546 = vset.pattern.permute.xlu1 %v5715_v16  ;;  %v6117_v2 = vpop.permute.xlu1 %621  ;;  %v677_v28 = vsel %vm661_vm0, -3.4028235e+38, %v645_v22  ;;  %v678_v52 = vsel %vm662_vm1, -3.4028235e+38, %v646_v30  ;;  %v679_v53 = vsel %vm663_vm2, -3.4028235e+38, %v647_v32  ;;  %v425_v26 = vmul.f32 %v6031_v61, %v6114_v42 }
  0xb3   : > { %11576 = vst [vmem:[#allocation37_spill] sm:$0xff] %v6117_v2  ;;  %2644 = vperm.xlu1 %5546, %v5900_v25   ;;  %v680_v54 = vsel %vm664_vm3, -3.4028235e+38, %v648_v34  ;;  %vm693_vm4 = vcmp.lt.f32.partialorder %v677_v28, inf  ;;  %vm694_vm5 = vcmp.lt.f32.partialorder %v678_v52, inf  ;;  %vm695_vm6 = vcmp.lt.f32.partialorder %v679_v53, inf }
  0xb4   : > { %v6120_v51 = vpop.permute.xlu0 %374  ;;  %vm696_vm7 = vcmp.lt.f32.partialorder %v680_v54, inf  ;;  %v2714_v25 = vrot.slane %v5950_v31, %v5838_v7  ;;  %v6131_v57 = vsel %vm693_vm4, %v677_v28, -inf  ;;  %v6133_v9 = vsel %vm694_vm5, %v678_v52, -inf }
  0xb5   : > { %11577 = vst [vmem:[#allocation38_spill] sm:$0xff] %v6120_v51  ;;  %11580 = vst [vmem:[#allocation41_spill] sm:$0xff] %v6131_v57  ;;  %v6135_v10 = vsel %vm695_vm6, %v679_v53, -inf  ;;  %v6137_v33 = vsel %vm696_vm7, %v680_v54, -inf  ;;  %v1126_v30 = vrot.slane %v6131_v57, %v5838_v7  ;;  %v6166_v54 = vmul.f32 %v6037_v63, %v5993_v40 }
  0xb6   : > { %v6122_v56 = vpop.permute.xlu1 %635  ;;  %11581 = vst [vmem:[#allocation42_spill] sm:$0xff] %v6133_v9  ;;  %11582 = vst [vmem:[#allocation43_spill] sm:$0xff] %v6135_v10  ;;  %v1134_v32 = vrot.slane %v6135_v10, %v5838_v7  ;;  %v1138_v34 = vrot.slane %v6137_v33, %v5838_v7  ;;  %v499_v40 = vmul.f32 %v6050_v5, %v6008_v48 }
  0xb7   : > { %2668 = vperm.xlu1 %5546, %v5974_v35   ;;  %11583 = vst [vmem:[#allocation44_spill] sm:$0xff] %v6137_v33  ;;  %v430_v48 = vmul.f32 %v6034_v62, %v6120_v51  ;;  %v432_v46 = vmul.f32 %v6040_v0, %v6120_v51 }
  0xb8   : > { %v6125_v47 = vpop.permute.xlu0 %1057 }
  0xb9   : > { %11578 = vst [vmem:[#allocation39_spill] sm:$0xff] %v6125_v47 }
  0xba   : > { %v6127_v16 = vpop.permute.xlu1 %1062 }
  0xbb   : > { %11579 = vst [vmem:[#allocation40_spill] sm:$0xff] %v6127_v16  ;;  %2672 = vperm.xlu1 %5546, %v5923_v27   ;;  %v1130_v27 = vrot.slane %v6133_v9, %v5838_v7  ;;  %v1238_v16 = vrot.slane %v6131_v57, %v5874_v19  ;;  %v6254_v7 = vadd.f32 %v498_v29, %v430_v48 }
  0xbc   : > { %v6140_v35 = vpop.permute.xlu0 %1072 }
  0xbd   : > { %11584 = vst [vmem:[#allocation45_spill] sm:$0xff] %v6140_v35  ;;  %v428_v35 = vmul.f32 %v6040_v0, %v6114_v42 }
  0xbe   : > { %v1068_v22 = vpop.permute.xlu1 %1067 }
  0xbf   : > { %v1083_v28 = vmul.f32 %v1068_v22, %v6131_v57  ;;  %v1084_v52 = vmul.f32 %v1068_v22, %v6133_v9  ;;  %v1085_v53 = vmul.f32 %v1068_v22, %v6135_v10  ;;  %v1086_v31 = vmul.f32 %v1068_v22, %v6137_v33  ;;  %2716 = vbcast.lane.b32.xlu1 %v2714_v25, 256 }
  0xc0   : > { %v6176_v55 = vpop.permute.xlu0 %2481  ;;  %5547 = vset.pattern.permute.xlu1 %v11586_v58 }
  0xc1   : > { %11585 = vst [vmem:[#allocation46_spill] sm:$0xff] %v6176_v55  ;;  %v6179_v22 = vsub.f32 %v1126_v30, %v1083_v28  ;;  %v6181_v25 = vsub.f32 %v1130_v27, %v1084_v52  ;;  %v6183_v37 = vsub.f32 %v1134_v32, %v1085_v53  ;;  %v6185_v11 = vsub.f32 %v1138_v34, %v1086_v31 }
  0xc2   : > { %v578_v55 = vmul.f32 %v6085_v45, %v6068_v24  ;;  %v579_v30 = vmul.f32 %v6088_v49, %v6068_v24  ;;  %v580_v27 = vmul.f32 %v6091_v50, %v6068_v24  ;;  %v6207_v52 = vmul.f32 %v6082_v44, %v6108_v20 }
  0xc3   : > { %2730 = vbcast.lane.b32.xlu1 %v2728_v17, 256  ;;  %v6199_v32 = vpop.permute.xlu1 %1172  ;;  %v6211_v53 = vmul.f32 %v6085_v45, %v6108_v20  ;;  %v6215_v31 = vmul.f32 %v6088_v49, %v6108_v20  ;;  %v6219_v17 = vmul.f32 %v6091_v50, %v6108_v20  ;;  %v429_v28 = vmul.f32 %v6031_v61, %v6120_v51 }
  0xc4   : > { %11587 = vst [vmem:[#allocation47_spill] sm:$0xff] %v6199_v32  ;;  %v6221_v34 = vpop.permute.xlu0 %2496  ;;  %v431_v24 = vmul.f32 %v6037_v63, %v6120_v51  ;;  %v426_v20 = vmul.f32 %v6034_v62, %v6114_v42  ;;  %v1242_v51 = vrot.slane %v6133_v9, %v5874_v19  ;;  %v1246_v61 = vrot.slane %v6135_v10, %v5874_v19 }
  0xc5   : > { %11588 = vst [vmem:[#allocation48_spill] sm:$0xff] %v6221_v34  ;;  %v427_v34 = vmul.f32 %v6037_v63, %v6114_v42  ;;  %v1250_v62 = vrot.slane %v6137_v33, %v5874_v19  ;;  %v6252_v2 = vadd.f32 %v497_v36, %v429_v28  ;;  %v6258_v50 = vadd.f32 %v500_v3, %v432_v46 }
  0xc6   : > { %v6256_v47 = vadd.f32 %v499_v40, %v431_v24  ;;  %v11590_v46 = vmov 6  }
  0xc7   : > { %1688 = vperm.xlu1 %5547, %v5855_v13   ;;  %v1181_v60 = vpop.permute.xlu1 %1180 }
  0xc8   : > { %v1195_v63 = vmul.f32 %v1181_v60, %v6131_v57  ;;  %v1196_v32 = vmul.f32 %v1181_v60, %v6133_v9  ;;  %v1197_v42 = vmul.f32 %v1181_v60, %v6135_v10  ;;  %v1198_v0 = vmul.f32 %v1181_v60, %v6137_v33 }
  0xc9   : > { %v6260_v49 = vpop.permute.xlu0 %442 }
  0xca   : > { %11589 = vst [vmem:[#allocation49_spill] sm:$0xff] %v6260_v49  ;;  %v6262_v45 = vsub.f32 %v1238_v16, %v1195_v63  ;;  %v6264_v44 = vsub.f32 %v1242_v51, %v1196_v32  ;;  %v6266_v43 = vsub.f32 %v1246_v61, %v1197_v42  ;;  %v6268_v19 = vsub.f32 %v1250_v62, %v1198_v0 }
  0xcb   : > { %v493_v36 = vmul.f32 %v6044_v1, %v6260_v49  ;;  %v494_v29 = vmul.f32 %v6047_v4, %v6260_v49  ;;  %v495_v3 = vmul.f32 %v6050_v5, %v6260_v49  ;;  %v496_v40 = vmul.f32 %v6053_v6, %v6260_v49  ;;  %5549 = vset.pattern.permute.xlu1 %v11590_v46  ;;  %v6279_v48 = vpop.permute.xlu1 %1184 }
  0xcc   : > { %11591 = vst [vmem:[#allocation50_spill] sm:$0xff] %v6279_v48  ;;  %1816 = vperm.xlu1 %5549, %v5855_v13  }
  0xcd   : > { %v509_v0 = vadd.f32 %v493_v36, %v425_v26  ;;  %v510_v24 = vadd.f32 %v494_v29, %v426_v20  ;;  %v511_v42 = vadd.f32 %v495_v3, %v427_v34  ;;  %v512_v51 = vadd.f32 %v496_v40, %v428_v35  ;;  %v6290_v16 = vpop.permute.xlu0 %454 }
  0xce   : > { %11592 = vst [vmem:[#allocation51_spill] sm:$0xff] %v6290_v16  ;;  %v505_v32 = vmul.f32 %v6044_v1, %v6290_v16  ;;  %v506_v28 = vmul.f32 %v6047_v4, %v6290_v16  ;;  %v507_v62 = vmul.f32 %v6050_v5, %v6290_v16  ;;  %v508_v63 = vmul.f32 %v6053_v6, %v6290_v16 }
  0xcf   : > { %v593_v61 = vadd.f32 %v577_v59, %v509_v0  ;;  %v594_v60 = vadd.f32 %v578_v55, %v510_v24  ;;  %v595_v26 = vadd.f32 %v579_v30, %v511_v42  ;;  %v596_v20 = vadd.f32 %v580_v27, %v512_v51 }
  0xd0   : > { %v521_v35 = vadd.f32 %v505_v32, %v6144_v12  ;;  %v522_v34 = vadd.f32 %v506_v28, %v6148_v14  ;;  %v523_v36 = vadd.f32 %v507_v62, %v6166_v54  ;;  %v524_v29 = vadd.f32 %v508_v63, %v6170_v41  ;;  %5550 = vset.pattern.permute.xlu1 %v11586_v58  ;;  %v6305_v3 = vpop.permute.xlu1 %1304 }
  0xd1   : > { %v637_v40 = vsub.f32 %v593_v61, %v5983_v38  ;;  %v638_v16 = vsub.f32 %v594_v60, %v5983_v38  ;;  %v639_v59 = vsub.f32 %v595_v26, %v5983_v38  ;;  %v640_v55 = vsub.f32 %v596_v20, %v5983_v38  ;;  %1696 = vperm.xlu1 %5550, %v5871_v18   ;;  %v6312_v12 = vpop.permute.xlu0 %1176 }
  0xd2   : > { %v605_v14 = vadd.f32 %v6207_v52, %v521_v35  ;;  %v606_v41 = vadd.f32 %v6211_v53, %v522_v34  ;;  %v607_v58 = vadd.f32 %v6215_v31, %v523_v36  ;;  %v608_v54 = vadd.f32 %v6219_v17, %v524_v29 }
  0xd3   : > { %vm653_vm8 = vcmp.eq.f32.partialorder %v637_v40, -inf  ;;  %vm654_vm9 = vcmp.eq.f32.partialorder %v638_v16, -inf  ;;  %vm655_vm10 = vcmp.eq.f32.partialorder %v639_v59, -inf  ;;  %vm656_vm11 = vcmp.eq.f32.partialorder %v640_v55, -inf }
  0xd4   : > { %v669_v30 = vsel %vm653_vm8, -3.4028235e+38, %v637_v40  ;;  %v670_v27 = vsel %vm654_vm9, -3.4028235e+38, %v638_v16  ;;  %v671_v60 = vsel %vm655_vm10, -3.4028235e+38, %v639_v59  ;;  %v649_v38 = vsub.f32 %v605_v14, %v6122_v56  ;;  %v1309_v61 = vpop.permute.xlu1 %1308 }
  0xd5   : > { %v1366_v62 = vrot.slane %v6131_v57, %v5841_v8  ;;  %v1370_v52 = vrot.slane %v6133_v9, %v5841_v8  ;;  %v1374_v53 = vrot.slane %v6135_v10, %v5841_v8  ;;  %v1378_v31 = vrot.slane %v6137_v33, %v5841_v8  ;;  %5552 = vset.pattern.permute.xlu1 %v11590_v46  ;;  %v6328_v17 = vpop.permute.xlu0 %2556 }
  0xd6   : > { %11593 = vst [vmem:[#allocation52_spill] sm:$0xff] %v6328_v17  ;;  %v672_v63 = vsel %vm656_vm11, -3.4028235e+38, %v640_v55  ;;  %vm685_vm12 = vcmp.lt.f32.partialorder %v669_v30, inf  ;;  %vm686_vm13 = vcmp.lt.f32.partialorder %v670_v27, inf  ;;  %1820 = vperm.xlu1 %5552, %v5890_v23   ;;  %v1494_v0 = vrot.slane %v6131_v57, %v5879_v21  ;;  %v11626_v17 = vld [vmem:[#allocation37_spill] sm:$0xff] }
  0xd7   : > { %vm687_vm14 = vcmp.lt.f32.partialorder %v671_v60, inf  ;;  %v650_v24 = vsub.f32 %v606_v41, %v6122_v56  ;;  %v651_v42 = vsub.f32 %v607_v58, %v6122_v56  ;;  %v652_v51 = vsub.f32 %v608_v54, %v6122_v56 }
  0xd8   : > { %vm665_vm15 = vcmp.eq.f32.partialorder %v649_v38, -inf  ;;  %v1323_v46 = vmul.f32 %v1309_v61, %v6131_v57  ;;  %v1324_v16 = vmul.f32 %v1309_v61, %v6133_v9  ;;  %v1325_v32 = vmul.f32 %v1309_v61, %v6135_v10 }
  0xd9   : > { %vm688_vm0 = vcmp.lt.f32.partialorder %v672_v63, inf  ;;  %vm666_vm1 = vcmp.eq.f32.partialorder %v650_v24, -inf  ;;  %vm667_vm2 = vcmp.eq.f32.partialorder %v651_v42, -inf  ;;  %vm668_vm3 = vcmp.eq.f32.partialorder %v652_v51, -inf  ;;  %v1429_v23 = vpop.permute.xlu1 %1428  ;;  %v6339_v28 = vpop.permute.xlu0 %2564 }
  0xda   : > { %11594 = vst [vmem:[#allocation53_spill] sm:$0xff] %v6339_v28  ;;  %v681_v26 = vsel %vm665_vm15, -3.4028235e+38, %v649_v38  ;;  %v1326_v20 = vmul.f32 %v1309_v61, %v6137_v33  ;;  %v11595_v35 = vmov 7   ;;  %v1498_v56 = vrot.slane %v6133_v9, %v5879_v21 }
  0xdb   : > { %5553 = vset.pattern.permute.xlu1 %v11595_v35  ;;  %v1502_v34 = vrot.slane %v6135_v10, %v5879_v21  ;;  %v682_v36 = vsel %vm666_vm1, -3.4028235e+38, %v650_v24  ;;  %v683_v29 = vsel %vm667_vm2, -3.4028235e+38, %v651_v42  ;;  %v684_v40 = vsel %vm668_vm3, -3.4028235e+38, %v652_v51 }
  0xdc   : > { %1944 = vperm.xlu1 %5553, %v5855_v13   ;;  %v1506_v59 = vrot.slane %v6137_v33, %v5879_v21  ;;  %v6351_v55 = vsel %vm685_vm12, %v669_v30, -inf  ;;  %v6354_v14 = vsel %vm686_vm13, %v670_v27, -inf  ;;  %v6357_v41 = vsel %vm687_vm14, %v671_v60, -inf }
  0xdd   : > { %11596 = vst [vmem:[#allocation54_spill] sm:$0xff] %v6351_v55  ;;  %11597 = vst [vmem:[#allocation55_spill] sm:$0xff] %v6354_v14  ;;  %v6360_v58 = vsel %vm688_vm0, %v672_v63, -inf  ;;  %v1403_v54 = vsub.f32 %v1366_v62, %v1323_v46  ;;  %v1404_v38 = vsub.f32 %v1370_v52, %v1324_v16  ;;  %v1405_v61 = vsub.f32 %v1374_v53, %v1325_v32  ;;  %v1437_v13 = vpop.permute.xlu1 %1436  ;;  %v6362_v42 = vpop.permute.xlu0 %2592 }
  0xde   : > { %11598 = vst [vmem:[#allocation56_spill] sm:$0xff] %v6357_v41  ;;  %11599 = vst [vmem:[#allocation57_spill] sm:$0xff] %v6360_v58  ;;  %v1406_v24 = vsub.f32 %v1378_v31, %v1326_v20  ;;  %vm697_vm4 = vcmp.lt.f32.partialorder %v681_v26, inf  ;;  %vm698_vm5 = vcmp.lt.f32.partialorder %v682_v36, inf  ;;  %vm699_vm6 = vcmp.lt.f32.partialorder %v683_v29, inf }
  0xdf   : > { %11600 = vst [vmem:[#allocation58_spill] sm:$0xff] %v6362_v42  ;;  %vm700_vm7 = vcmp.lt.f32.partialorder %v684_v40, inf  ;;  %v11601_v30 = vmax.f32 %v6179_v22, %v6262_v45  ;;  %v11602_v60 = vmax.f32 %v6181_v25, %v6264_v44  ;;  %v11603_v62 = vmax.f32 %v6183_v37, %v6266_v43 }
  0xe0   : > { %v11604_v53 = vmax.f32 %v6185_v11, %v6268_v19  ;;  %1940 = vperm.xlu1 %5553, %v5864_v15   ;;  %v1443_v45 = vmul.f32 %v1429_v23, %v6351_v55  ;;  %v1444_v22 = vmul.f32 %v1429_v23, %v6354_v14  ;;  %v1445_v44 = vmul.f32 %v1429_v23, %v6357_v41 }
  0xe1   : > { %v6367_v27 = vmax.f32 %v11601_v30, %v1403_v54  ;;  %v6372_v63 = vmax.f32 %v11602_v60, %v1404_v38  ;;  %v6377_v52 = vmax.f32 %v11603_v62, %v1405_v61  ;;  %v1446_v25 = vmul.f32 %v1429_v23, %v6360_v58  ;;  %v1441_v11 = vpop.permute.xlu1 %1440  ;;  %v6409_v23 = vpop.permute.xlu0 %2596 }
  0xe2   : > { %v6382_v31 = vmax.f32 %v11604_v53, %v1406_v24  ;;  %v1462_v37 = vrot.slane %v6351_v55, %v5879_v21  ;;  %v1466_v43 = vrot.slane %v6354_v14, %v5879_v21  ;;  %v1470_v19 = vrot.slane %v6357_v41, %v5879_v21  ;;  %11609 = vst [vmem:[#allocation63_spill] sm:$0xff] %v6409_v23 }
  0xe3   : > { %v1474_v15 = vrot.slane %v6360_v58, %v5879_v21  ;;  %v6398_v51 = vsel %vm697_vm4, %v681_v26, -inf  ;;  %v6401_v46 = vsel %vm698_vm5, %v682_v36, -inf  ;;  %v6404_v16 = vsel %vm699_vm6, %v683_v29, -inf }
  0xe4   : > { %11605 = vst [vmem:[#allocation59_spill] sm:$0xff] %v6398_v51  ;;  %11606 = vst [vmem:[#allocation60_spill] sm:$0xff] %v6401_v46  ;;  %v6407_v32 = vsel %vm700_vm7, %v684_v40, -inf  ;;  %v6411_v20 = vsub.f32 %v1462_v37, %v1443_v45  ;;  %v6413_v35 = vsub.f32 %v1466_v43, %v1444_v22  ;;  %v6415_v54 = vsub.f32 %v1470_v19, %v1445_v44  ;;  %v11624_v19 = vld [vmem:[#allocation39_spill] sm:$0xff] }
  0xe5   : > { %11607 = vst [vmem:[#allocation61_spill] sm:$0xff] %v6404_v16  ;;  %11608 = vst [vmem:[#allocation62_spill] sm:$0xff] %v6407_v32  ;;  %v6417_v38 = vsub.f32 %v1474_v15, %v1446_v25  ;;  %1952 = vperm.xlu1 %5553, %v5871_v18   ;;  %v1451_v26 = vmul.f32 %v1437_v13, %v6131_v57  ;;  %v1452_v36 = vmul.f32 %v1437_v13, %v6133_v9 }
  0xe6   : > { %v1453_v29 = vmul.f32 %v1437_v13, %v6135_v10  ;;  %v1454_v40 = vmul.f32 %v1437_v13, %v6137_v33  ;;  %v1455_v61 = vmul.f32 %v1441_v11, %v6398_v51  ;;  %v1456_v24 = vmul.f32 %v1441_v11, %v6401_v46  ;;  %v6439_v13 = vpop.permute.xlu1 %1560  ;;  %v6460_v15 = vpop.permute.xlu0 %530 }
  0xe7   : > { %v1457_v30 = vmul.f32 %v1441_v11, %v6404_v16  ;;  %v1458_v60 = vmul.f32 %v1441_v11, %v6407_v32  ;;  %v6431_v18 = vsub.f32 %v1494_v0, %v1451_v26  ;;  %v6433_v62 = vsub.f32 %v1498_v56, %v1452_v36  ;;  %v11611_v56 = vld [vmem:[#allocation10_spill] sm:$0xff] }
  0xe8   : > { %v6435_v53 = vsub.f32 %v1502_v34, %v1453_v29  ;;  %v6437_v45 = vsub.f32 %v1506_v59, %v1454_v40  ;;  %v1510_v22 = vrot.slane %v6398_v51, %v5879_v21  ;;  %v1514_v44 = vrot.slane %v6401_v46, %v5879_v21  ;;  %11613 = vst [vmem:[#allocation10_spill] sm:$0xff] %v6460_v15 }
  0xe9   : > { %v1518_v25 = vrot.slane %v6404_v16, %v5879_v21  ;;  %v1522_v0 = vrot.slane %v6407_v32, %v5879_v21  ;;  %v11612_v34 = vrot.slane %v5988_v39, %v11611_v56  ;;  %v11623_v43 = vrot.slane %v5988_v39, %v5841_v8 }
  0xea   : > { %11610 = vst [vmem:[#allocation64_spill] sm:$0xff] %v6437_v45  ;;  %v6462_v11 = vsub.f32 %v1510_v22, %v1455_v61  ;;  %v6464_v26 = vsub.f32 %v1514_v44, %v1456_v24  ;;  %v6470_v40 = vpop.permute.xlu1 %1564  ;;  %v11619_v24 = vld [vmem:[#allocation29_spill] sm:$0xff]  ;;  %v11621_v44 = vld [vmem:[#allocation31_spill] sm:$0xff]  ;;  %v1075_v37 = vmul.f32 %v11624_v19, %v6351_v55  ;;  %v1076_v61 = vmul.f32 %v11624_v19, %v6354_v14 }
  0xeb   : > { %2111 = vbcast.lane.b32.xlu1 %v11612_v34, 256  ;;  %v6466_v36 = vsub.f32 %v1518_v25, %v1457_v30  ;;  %v6468_v29 = vsub.f32 %v1522_v0, %v1458_v60  ;;  %v11618_v34 = vld [vmem:[#allocation13_spill] sm:$0xff]  ;;  %v581_v30 = vmul.f32 %v11619_v24, %v6460_v15  ;;  %v11620_v60 = vld [vmem:[#allocation30_spill] sm:$0xff]  ;;  %v583_v25 = vmul.f32 %v11621_v44, %v6460_v15  ;;  %v11622_v0 = vld [vmem:[#allocation32_spill] sm:$0xff] }
  0xec   : > { %11614 = vst [vmem:[#allocation65_spill] sm:$0xff] %v6462_v11  ;;  %11615 = vst [vmem:[#allocation66_spill] sm:$0xff] %v6464_v26  ;;  %v582_v22 = vmul.f32 %v11620_v60, %v6460_v15  ;;  %v584_v59 = vmul.f32 %v11622_v0, %v6460_v15  ;;  %v1077_v49 = vmul.f32 %v11624_v19, %v6357_v41 }
  0xed   : > { %11616 = vst [vmem:[#allocation67_spill] sm:$0xff] %v6466_v36  ;;  %11617 = vst [vmem:[#allocation68_spill] sm:$0xff] %v6468_v29  ;;  %v1078_v42 = vmul.f32 %v11624_v19, %v6360_v58  ;;  %v597_v44 = vadd.f32 %v581_v30, %v6252_v2  ;;  %v599_v0 = vadd.f32 %v583_v25, %v6256_v47 }
  0xee   : > { %v598_v15 = vadd.f32 %v582_v22, %v6254_v7  ;;  %v600_v39 = vadd.f32 %v584_v59, %v6258_v50 }
  0xef   : > { %2118 = vbcast.lane.b32.xlu1 %v11623_v43, 256  ;;  %v11625_v43 = vld [vmem:[#allocation9_spill] sm:$0xff]  ;;  %v641_v2 = vsub.f32 %v597_v44, %v11626_v17  ;;  %v643_v47 = vsub.f32 %v599_v0, %v11626_v17  ;;  %v6515_v59 = vpop.permute.xlu1 %1684  ;;  %v11628_v0 = vld [vmem:[#allocation47_spill] sm:$0xff] }
  0xf0   : > { %v1094_v60 = vrot.slane %v6351_v55, %v11625_v43  ;;  %v1098_v24 = vrot.slane %v6354_v14, %v11625_v43  ;;  %v1102_v23 = vrot.slane %v6357_v41, %v11625_v43  ;;  %v1106_v19 = vrot.slane %v6360_v58, %v11625_v43  ;;  %11627 = vst [vmem:[#allocation39_spill] sm:$0xff] %v6515_v59  ;;  %v6563_v59 = vpop.permute.xlu0 %1300 }
  0xf1   : > { %v642_v7 = vsub.f32 %v598_v15, %v11626_v17  ;;  %v644_v50 = vsub.f32 %v600_v39, %v11626_v17  ;;  %vm657_vm8 = vcmp.eq.f32.partialorder %v641_v2, -inf  ;;  %vm659_vm10 = vcmp.eq.f32.partialorder %v643_v47, -inf }
  0xf2   : > { %v6517_v30 = vsub.f32 %v1094_v60, %v1075_v37  ;;  %v6519_v22 = vsub.f32 %v1098_v24, %v1076_v61  ;;  %v6521_v25 = vsub.f32 %v1102_v23, %v1077_v49  ;;  %v6523_v6 = vsub.f32 %v1106_v19, %v1078_v42  ;;  %v11634_v24 = vld [vmem:[#allocation40_spill] sm:$0xff] }
  0xf3   : > { %vm658_vm9 = vcmp.eq.f32.partialorder %v642_v7, -inf  ;;  %vm660_vm11 = vcmp.eq.f32.partialorder %v644_v50, -inf  ;;  %v673_v44 = vsel %vm657_vm8, -3.4028235e+38, %v641_v2  ;;  %v675_v5 = vsel %vm659_vm10, -3.4028235e+38, %v643_v47 }
  0xf4   : > { %v674_v15 = vsel %vm658_vm9, -3.4028235e+38, %v642_v7  ;;  %v6527_v17 = vmul.f32 %v11628_v0, %v6351_v55  ;;  %v676_v39 = vsel %vm660_vm11, -3.4028235e+38, %v644_v50  ;;  %vm689_vm12 = vcmp.lt.f32.partialorder %v673_v44, inf  ;;  %v6535_v37 = vpop.permute.xlu1 %2486 }
  0xf5   : > { %vm690_vm13 = vcmp.lt.f32.partialorder %v674_v15, inf  ;;  %vm691_vm14 = vcmp.lt.f32.partialorder %v675_v5, inf  ;;  %vm692_vm15 = vcmp.lt.f32.partialorder %v676_v39, inf  ;;  %v6529_v49 = vsel %vm689_vm12, %v673_v44, -inf  ;;  %11632 = vst [vmem:[#allocation70_spill] sm:$0xff] %v6535_v37 }
  0xf6   : > { %11629 = vst [vmem:[#allocation37_spill] sm:$0xff] %v6529_v49  ;;  %v6531_v42 = vsel %vm690_vm13, %v674_v15, -inf  ;;  %v6533_v23 = vsel %vm691_vm14, %v675_v5, -inf  ;;  %v6537_v61 = vsel %vm692_vm15, %v676_v39, -inf  ;;  %v1079_v60 = vmul.f32 %v11634_v24, %v6529_v49 }
  0xf7   : > { %11630 = vst [vmem:[#allocation47_spill] sm:$0xff] %v6531_v42  ;;  %11631 = vst [vmem:[#allocation69_spill] sm:$0xff] %v6533_v23  ;;  %v1080_v19 = vmul.f32 %v11634_v24, %v6531_v42  ;;  %v1081_v2 = vmul.f32 %v11634_v24, %v6533_v23  ;;  %v1082_v7 = vmul.f32 %v11634_v24, %v6537_v61 }
  0xf8   : > { %11633 = vst [vmem:[#allocation71_spill] sm:$0xff] %v6537_v61  ;;  %v1110_v5 = vrot.slane %v6529_v49, %v11625_v43  ;;  %v1114_v47 = vrot.slane %v6531_v42, %v11625_v43  ;;  %v1118_v50 = vrot.slane %v6533_v23, %v11625_v43  ;;  %v1122_v44 = vrot.slane %v6537_v61, %v11625_v43 }
  0xf9   : > { %v1191_v15 = vmul.f32 %v6312_v12, %v6529_v49  ;;  %v1192_v39 = vmul.f32 %v6312_v12, %v6531_v42  ;;  %v1193_v24 = vmul.f32 %v6312_v12, %v6533_v23  ;;  %v1194_v28 = vmul.f32 %v6312_v12, %v6537_v61  ;;  %v6571_v48 = vpop.permute.xlu1 %2552 }
  0xfa   : > { %v1159_v37 = vsub.f32 %v1110_v5, %v1079_v60  ;;  %v1160_v4 = vsub.f32 %v1114_v47, %v1080_v19  ;;  %v1161_v1 = vsub.f32 %v1118_v50, %v1081_v2  ;;  %v1162_v29 = vsub.f32 %v1122_v44, %v1082_v7  ;;  %11635 = vst [vmem:[#allocation40_spill] sm:$0xff] %v6571_v48 }
  0xfb   : > { %v1222_v36 = vrot.slane %v6529_v49, %v11611_v56  ;;  %v1226_v26 = vrot.slane %v6531_v42, %v11611_v56  ;;  %v1230_v11 = vrot.slane %v6533_v23, %v11611_v56  ;;  %v1234_v60 = vrot.slane %v6537_v61, %v11611_v56 }
  0xfc   : > { %v1319_v12 = vmul.f32 %v6305_v3, %v6529_v49  ;;  %v1320_v19 = vmul.f32 %v6305_v3, %v6531_v42  ;;  %v1321_v2 = vmul.f32 %v6305_v3, %v6533_v23  ;;  %v1322_v50 = vmul.f32 %v6305_v3, %v6537_v61 }
  0xfd   : > { %v1271_v7 = vsub.f32 %v1222_v36, %v1191_v15  ;;  %v1272_v5 = vsub.f32 %v1226_v26, %v1192_v39  ;;  %v1273_v47 = vsub.f32 %v1230_v11, %v1193_v24  ;;  %v1274_v44 = vsub.f32 %v1234_v60, %v1194_v28  ;;  %v6591_v28 = vpop.permute.xlu0 %1312  ;;  %v11636_v24 = vld [vmem:[#allocation18_spill] sm:$0xff] }
  0xfe   : > { %v1350_v48 = vrot.slane %v6529_v49, %v5841_v8  ;;  %v1354_v43 = vrot.slane %v6531_v42, %v5841_v8  ;;  %v1358_v32 = vrot.slane %v6533_v23, %v5841_v8  ;;  %v1362_v26 = vrot.slane %v6537_v61, %v5841_v8 }
  0xff   : > { %v1287_v16 = vmax.f32 %v1159_v37, %v1271_v7  ;;  %v1288_v46 = vmax.f32 %v1160_v4, %v1272_v5  ;;  %v1289_v51 = vmax.f32 %v1161_v1, %v1273_v47  ;;  %v1290_v11 = vmax.f32 %v1162_v29, %v1274_v44  ;;  %v6599_v1 = vpop.permute.xlu1 %2491 }
 0x100   : > { %v1399_v36 = vsub.f32 %v1350_v48, %v1319_v12  ;;  %v1400_v15 = vsub.f32 %v1354_v43, %v1320_v19  ;;  %v1401_v3 = vsub.f32 %v1358_v32, %v1321_v2  ;;  %v1402_v39 = vsub.f32 %v1362_v26, %v1322_v50  ;;  %11637 = vst [vmem:[#allocation18_spill] sm:$0xff] %v6599_v1 }
 0x101   : > { %v1447_v60 = vmul.f32 %v11636_v24, %v6529_v49  ;;  %v1448_v45 = vmul.f32 %v11636_v24, %v6531_v42  ;;  %v1449_v4 = vmul.f32 %v11636_v24, %v6533_v23  ;;  %v1450_v48 = vmul.f32 %v11636_v24, %v6537_v61 }
 0x102   : > { %v1415_v37 = vmax.f32 %v1287_v16, %v1399_v36  ;;  %v1416_v7 = vmax.f32 %v1288_v46, %v1400_v15  ;;  %v1417_v29 = vmax.f32 %v1289_v51, %v1401_v3  ;;  %v1418_v32 = vmax.f32 %v1290_v11, %v1402_v39  ;;  %v6625_v15 = vpop.permute.xlu0 %2632 }
 0x103   : > { %v1478_v43 = vrot.slane %v6529_v49, %v5879_v21  ;;  %v1482_v12 = vrot.slane %v6531_v42, %v5879_v21  ;;  %v1486_v19 = vrot.slane %v6533_v23, %v5879_v21  ;;  %v1490_v2 = vrot.slane %v6537_v61, %v5879_v21  ;;  %11638 = vst [vmem:[#allocation72_spill] sm:$0xff] %v6625_v15 }
 0x104   : > { %v1575_v46 = vmul.f32 %v6439_v13, %v6529_v49  ;;  %v1576_v51 = vmul.f32 %v6439_v13, %v6531_v42  ;;  %v1577_v16 = vmul.f32 %v6439_v13, %v6533_v23  ;;  %v1578_v44 = vmul.f32 %v6439_v13, %v6537_v61 }
 0x105   : > { %v1527_v5 = vsub.f32 %v1478_v43, %v1447_v60  ;;  %v1528_v47 = vsub.f32 %v1482_v12, %v1448_v45  ;;  %v1529_v50 = vsub.f32 %v1486_v19, %v1449_v4  ;;  %v1530_v26 = vsub.f32 %v1490_v2, %v1450_v48  ;;  %v6629_v60 = vpop.permute.xlu1 %2560 }
 0x106   : > { %v1606_v11 = vrot.slane %v6529_v49, %v11618_v34  ;;  %v1610_v21 = vrot.slane %v6531_v42, %v11618_v34  ;;  %v1614_v36 = vrot.slane %v6533_v23, %v11618_v34  ;;  %v1618_v45 = vrot.slane %v6537_v61, %v11618_v34  ;;  %11639 = vst [vmem:[#allocation73_spill] sm:$0xff] %v6629_v60 }
 0x107   : > { %v1543_v3 = vmax.f32 %v1415_v37, %v1527_v5  ;;  %v1544_v39 = vmax.f32 %v1416_v7, %v1528_v47  ;;  %v1545_v24 = vmax.f32 %v1417_v29, %v1529_v50  ;;  %v1546_v13 = vmax.f32 %v1418_v32, %v1530_v26 }
 0x108   : > { %v1655_v4 = vsub.f32 %v1606_v11, %v1575_v46  ;;  %v1656_v48 = vsub.f32 %v1610_v21, %v1576_v51  ;;  %v1657_v43 = vsub.f32 %v1614_v36, %v1577_v16  ;;  %v1658_v12 = vsub.f32 %v1618_v45, %v1578_v44  ;;  %v6660_v11 = vpop.permute.xlu0 %2664 }
 0x109   : > { %v1188_v19 = vmul.f32 %v11628_v0, %v6354_v14  ;;  %v1189_v2 = vmul.f32 %v11628_v0, %v6357_v41  ;;  %v1190_v37 = vmul.f32 %v11628_v0, %v6360_v58  ;;  %v1206_v32 = vrot.slane %v6351_v55, %v11611_v56  ;;  %11644 = vst [vmem:[#allocation78_spill] sm:$0xff] %v6660_v11 }
 0x10a   : > { %v6637_v7 = vmax.f32 %v1543_v3, %v1655_v4  ;;  %v6639_v29 = vmax.f32 %v1544_v39, %v1656_v48  ;;  %v6641_v5 = vmax.f32 %v1545_v24, %v1657_v43  ;;  %v6645_v46 = vmax.f32 %v1546_v13, %v1658_v12  ;;  %v6664_v24 = vpop.permute.xlu1 %2517 }
 0x10b   : > { %v1210_v51 = vrot.slane %v6354_v14, %v11611_v56  ;;  %v1214_v16 = vrot.slane %v6357_v41, %v11611_v56  ;;  %v1218_v0 = vrot.slane %v6360_v58, %v11611_v56  ;;  %v1267_v47 = vsub.f32 %v1206_v32, %v6527_v17  ;;  %11645 = vst [vmem:[#allocation79_spill] sm:$0xff] %v6664_v24 }
 0x10c   : > { %11640 = vst [vmem:[#allocation74_spill] sm:$0xff] %v6637_v7  ;;  %11641 = vst [vmem:[#allocation75_spill] sm:$0xff] %v6639_v29  ;;  %v1315_v50 = vmul.f32 %v6563_v59, %v6351_v55  ;;  %v1316_v44 = vmul.f32 %v6563_v59, %v6354_v14  ;;  %v1317_v26 = vmul.f32 %v6563_v59, %v6357_v41 }
 0x10d   : > { %11642 = vst [vmem:[#allocation76_spill] sm:$0xff] %v6641_v5  ;;  %11643 = vst [vmem:[#allocation77_spill] sm:$0xff] %v6645_v46  ;;  %v1268_v21 = vsub.f32 %v1210_v51, %v1188_v19  ;;  %v1269_v36 = vsub.f32 %v1214_v16, %v1189_v2  ;;  %v1270_v3 = vsub.f32 %v1218_v0, %v1190_v37 }
 0x10e   : > { %v1318_v39 = vmul.f32 %v6563_v59, %v6360_v58  ;;  %v1283_v17 = vmax.f32 %v6517_v30, %v1267_v47  ;;  %v1334_v45 = vrot.slane %v6351_v55, %v5841_v8  ;;  %v1338_v13 = vrot.slane %v6354_v14, %v5841_v8 }
 0x10f   : > { %v1342_v4 = vrot.slane %v6357_v41, %v5841_v8  ;;  %v1284_v48 = vmax.f32 %v6519_v22, %v1268_v21  ;;  %v1285_v43 = vmax.f32 %v6521_v25, %v1269_v36  ;;  %v1286_v12 = vmax.f32 %v6523_v6, %v1270_v3 }
 0x110   : > { %v1346_v59 = vrot.slane %v6360_v58, %v5841_v8  ;;  %v1395_v19 = vsub.f32 %v1334_v45, %v1315_v50  ;;  %v1396_v30 = vsub.f32 %v1338_v13, %v1316_v44  ;;  %v1579_v37 = vmul.f32 %v6470_v40, %v6131_v57  ;;  %v6695_v44 = vpop.permute.xlu0 %2676  ;;  %v6708_v45 = vpop.permute.xlu1 %2522 }
 0x111   : > { %v1397_v2 = vsub.f32 %v1342_v4, %v1317_v26  ;;  %v1580_v51 = vmul.f32 %v6470_v40, %v6133_v9  ;;  %v1581_v22 = vmul.f32 %v6470_v40, %v6135_v10  ;;  %v1582_v25 = vmul.f32 %v6470_v40, %v6137_v33  ;;  %11647 = vst [vmem:[#allocation80_spill] sm:$0xff] %v6695_v44 }
 0x112   : > { %v1398_v32 = vsub.f32 %v1346_v59, %v1318_v39  ;;  %v6686_v6 = vmax.f32 %v1283_v17, %v1395_v19  ;;  %v6688_v16 = vmax.f32 %v1284_v48, %v1396_v30  ;;  %v11646_v47 = vrot.slane %v6131_v57, %v11618_v34  ;;  %11651 = vst [vmem:[#allocation81_spill] sm:$0xff] %v6708_v45 }
 0x113   : > { %v6690_v0 = vmax.f32 %v1285_v43, %v1397_v2  ;;  %v11648_v21 = vrot.slane %v6133_v9, %v11618_v34  ;;  %v11649_v40 = vrot.slane %v6135_v10, %v11618_v34  ;;  %v11650_v39 = vrot.slane %v6137_v33, %v11618_v34 }
 0x114   : > { %v1659_v50 = vsub.f32 %v11646_v47, %v1579_v37  ;;  %v6697_v26 = vmax.f32 %v1286_v12, %v1398_v32  ;;  %v11652_v43 = vmax.f32 %v6367_v27, %v6431_v18  ;;  %v11654_v19 = vmax.f32 %v6372_v63, %v6433_v62  ;;  %v11658_v32 = vld [vmem:[#allocation64_spill] sm:$0xff]  ;;  %v11661_v27 = vld [vmem:[#allocation59_spill] sm:$0xff]  ;;  %v11662_v18 = vld [vmem:[#allocation45_spill] sm:$0xff]  ;;  %v6764_v4 = vpop.permute.xlu1 %2584 }
 0x115   : > { %v1660_v36 = vsub.f32 %v11648_v21, %v1580_v51  ;;  %v1661_v3 = vsub.f32 %v11649_v40, %v1581_v22  ;;  %v1662_v17 = vsub.f32 %v11650_v39, %v1582_v25  ;;  %v11656_v2 = vmax.f32 %v6377_v52, %v6435_v53  ;;  %v11663_v47 = vld [vmem:[#allocation60_spill] sm:$0xff]  ;;  %v11664_v21 = vld [vmem:[#allocation61_spill] sm:$0xff]  ;;  %v11665_v62 = vld [vmem:[#allocation62_spill] sm:$0xff]  ;;  %11668 = vst [vmem:[#allocation45_spill] sm:$0xff] %v6764_v4 }
 0x116   : > { %v6719_v12 = vmax.f32 %v11652_v43, %v1659_v50  ;;  %v11659_v51 = vmax.f32 %v6382_v31, %v11658_v32  ;;  %v1087_v25 = vmul.f32 %v11662_v18, %v11661_v27  ;;  %v1088_v50 = vmul.f32 %v11662_v18, %v11663_v47  ;;  %v11666_v52 = vld [vmem:[#allocation9_spill] sm:$0xff]  ;;  %v11667_v39 = vld [vmem:[#allocation50_spill] sm:$0xff]  ;;  %v6762_v32 = vpop.permute.xlu0 %2723 }
 0x117   : > { %v6726_v30 = vmax.f32 %v11654_v19, %v1660_v36  ;;  %v6731_v37 = vmax.f32 %v11656_v2, %v1661_v3  ;;  %v1089_v63 = vmul.f32 %v11662_v18, %v11664_v21  ;;  %v1090_v36 = vmul.f32 %v11662_v18, %v11665_v62 }
 0x118   : > { %11653 = vst [vmem:[#allocation82_spill] sm:$0xff] %v6719_v12  ;;  %v6736_v22 = vmax.f32 %v11659_v51, %v1662_v17  ;;  %v1142_v53 = vrot.slane %v11661_v27, %v11666_v52  ;;  %v1146_v31 = vrot.slane %v11663_v47, %v11666_v52  ;;  %v1150_v40 = vrot.slane %v11664_v21, %v11666_v52  ;;  %v11712_v12 = vld [vmem:[#allocation63_spill] sm:$0xff] }
 0x119   : > { %11655 = vst [vmem:[#allocation83_spill] sm:$0xff] %v6726_v30  ;;  %11657 = vst [vmem:[#allocation84_spill] sm:$0xff] %v6731_v37  ;;  %v1154_v3 = vrot.slane %v11665_v62, %v11666_v52  ;;  %v1199_v17 = vmul.f32 %v11667_v39, %v11661_v27  ;;  %v1200_v43 = vmul.f32 %v11667_v39, %v11663_v47  ;;  %v11711_v30 = vld [vmem:[#allocation70_spill] sm:$0xff] }
 0x11a   : > { %11660 = vst [vmem:[#allocation64_spill] sm:$0xff] %v6736_v22  ;;  %v1201_v19 = vmul.f32 %v11667_v39, %v11664_v21  ;;  %v1202_v2 = vmul.f32 %v11667_v39, %v11665_v62  ;;  %v1167_v51 = vsub.f32 %v1142_v53, %v1087_v25  ;;  %v1168_v18 = vsub.f32 %v1146_v31, %v1088_v50 }
 0x11b   : > { %v1169_v59 = vsub.f32 %v1150_v40, %v1089_v63  ;;  %v1170_v48 = vsub.f32 %v1154_v3, %v1090_v36  ;;  %v1254_v52 = vrot.slane %v11661_v27, %v11611_v56  ;;  %v1258_v13 = vrot.slane %v11663_v47, %v11611_v56 }
 0x11c   : > { %v1262_v46 = vrot.slane %v11664_v21, %v11611_v56  ;;  %v1266_v39 = vrot.slane %v11665_v62, %v11611_v56  ;;  %v1327_v25 = vmul.f32 %v6591_v28, %v11661_v27  ;;  %v1328_v50 = vmul.f32 %v6591_v28, %v11663_v47 }
 0x11d   : > { %v1329_v63 = vmul.f32 %v6591_v28, %v11664_v21  ;;  %v1330_v36 = vmul.f32 %v6591_v28, %v11665_v62  ;;  %v1279_v53 = vsub.f32 %v1254_v52, %v1199_v17  ;;  %v1280_v31 = vsub.f32 %v1258_v13, %v1200_v43  ;;  %v6790_v17 = vpop.permute.xlu0 %2737  ;;  %v11670_v52 = vld [vmem:[#allocation28_spill] sm:$0xff] }
 0x11e   : > { %v1281_v40 = vsub.f32 %v1262_v46, %v1201_v19  ;;  %v1282_v3 = vsub.f32 %v1266_v39, %v1202_v2  ;;  %v1382_v5 = vrot.slane %v11661_v27, %v5841_v8  ;;  %v1386_v56 = vrot.slane %v11663_v47, %v5841_v8  ;;  %v6792_v2 = vpop.permute.xlu1 %2588 }
 0x11f   : > { %v1390_v29 = vrot.slane %v11664_v21, %v5841_v8  ;;  %v1394_v7 = vrot.slane %v11665_v62, %v5841_v8  ;;  %v1295_v61 = vmax.f32 %v1167_v51, %v1279_v53  ;;  %v1296_v23 = vmax.f32 %v1168_v18, %v1280_v31  ;;  %11669 = vst [vmem:[#allocation9_spill] sm:$0xff] %v6792_v2 }
 0x120   : > { %v1297_v42 = vmax.f32 %v1169_v59, %v1281_v40  ;;  %v1298_v28 = vmax.f32 %v1170_v48, %v1282_v3  ;;  %v1407_v46 = vsub.f32 %v1382_v5, %v1327_v25  ;;  %v1408_v13 = vsub.f32 %v1386_v56, %v1328_v50  ;;  %v11685_v40 = vld [vmem:[#allocation14_spill] sm:$0xff] }
 0x121   : > { %v1409_v43 = vsub.f32 %v1390_v29, %v1329_v63  ;;  %v1410_v19 = vsub.f32 %v1394_v7, %v1330_v36  ;;  %v1571_v39 = vmul.f32 %v11670_v52, %v6351_v55  ;;  %v1572_v49 = vmul.f32 %v11670_v52, %v6354_v14 }
 0x122   : > { %v1573_v8 = vmul.f32 %v11670_v52, %v6357_v41  ;;  %v1574_v48 = vmul.f32 %v11670_v52, %v6360_v58  ;;  %v6802_v59 = vmax.f32 %v1295_v61, %v1407_v46  ;;  %v6804_v5 = vmax.f32 %v1296_v23, %v1408_v13  ;;  %v1693_v13 = vpop.permute.xlu0 %1692  ;;  %v6834_v23 = vpop.permute.xlu1 %2636 }
 0x123   : > { %v6806_v29 = vmax.f32 %v1297_v42, %v1409_v43  ;;  %v6808_v7 = vmax.f32 %v1298_v28, %v1410_v19  ;;  %v1590_v51 = vrot.slane %v6351_v55, %v11618_v34  ;;  %v1594_v18 = vrot.slane %v6354_v14, %v11618_v34  ;;  %v11679_v43 = vld [vmem:[#allocation39_spill] sm:$0xff] }
 0x124   : > { %11671 = vst [vmem:[#allocation50_spill] sm:$0xff] %v6802_v59  ;;  %11672 = vst [vmem:[#allocation28_spill] sm:$0xff] %v6804_v5  ;;  %v1598_v25 = vrot.slane %v6357_v41, %v11618_v34  ;;  %v1602_v50 = vrot.slane %v6360_v58, %v11618_v34  ;;  %v1699_v19 = vmul.f32 %v11679_v43, %v6351_v55 }
 0x125   : > { %11673 = vst [vmem:[#allocation85_spill] sm:$0xff] %v6806_v29  ;;  %11674 = vst [vmem:[#allocation86_spill] sm:$0xff] %v6808_v7  ;;  %v1651_v3 = vsub.f32 %v1590_v51, %v1571_v39  ;;  %v1652_v56 = vsub.f32 %v1594_v18, %v1572_v49  ;;  %v1700_v52 = vmul.f32 %v11679_v43, %v6354_v14 }
 0x126   : > { %v1653_v28 = vsub.f32 %v1598_v25, %v1573_v8  ;;  %v1654_v46 = vsub.f32 %v1602_v50, %v1574_v48  ;;  %v1701_v42 = vmul.f32 %v11679_v43, %v6357_v41  ;;  %v1702_v53 = vmul.f32 %v11679_v43, %v6360_v58  ;;  %11680 = vst [vmem:[#allocation39_spill] sm:$0xff] %v6834_v23  ;;  %v6868_v63 = vpop.permute.xlu1 %2527 }
 0x127   : > { %v11681_v49 = vmax.f32 %v6686_v6, %v6411_v20  ;;  %v11682_v8 = vmax.f32 %v6688_v16, %v6413_v35  ;;  %v11683_v51 = vmax.f32 %v6690_v0, %v6415_v54  ;;  %v11684_v25 = vmax.f32 %v6697_v26, %v6417_v38  ;;  %11686 = vst [vmem:[#allocation87_spill] sm:$0xff] %v6868_v63 }
 0x128   : > { %v1718_v43 = vrot.slane %v6351_v55, %v11685_v40  ;;  %v1722_v31 = vrot.slane %v6354_v14, %v11685_v40  ;;  %v1726_v20 = vrot.slane %v6357_v41, %v11685_v40  ;;  %v1730_v35 = vrot.slane %v6360_v58, %v11685_v40 }
 0x129   : > { %v1667_v39 = vmax.f32 %v11681_v49, %v1651_v3  ;;  %v1668_v48 = vmax.f32 %v11682_v8, %v1652_v56  ;;  %v1669_v18 = vmax.f32 %v11683_v51, %v1653_v28  ;;  %v1670_v50 = vmax.f32 %v11684_v25, %v1654_v46  ;;  %v1813_v51 = vpop.permute.xlu0 %1812 }
 0x12a   : > { %v1750_v54 = vrot.slane %v6131_v57, %v11685_v40  ;;  %v1754_v6 = vrot.slane %v6133_v9, %v11685_v40  ;;  %v1758_v38 = vrot.slane %v6135_v10, %v11685_v40  ;;  %v1762_v16 = vrot.slane %v6137_v33, %v11685_v40 }
 0x12b   : > { %v1779_v0 = vsub.f32 %v1718_v43, %v1699_v19  ;;  %v1780_v26 = vsub.f32 %v1722_v31, %v1700_v52  ;;  %v1781_v3 = vsub.f32 %v1726_v20, %v1701_v42  ;;  %v1782_v56 = vsub.f32 %v1730_v35, %v1702_v53  ;;  %v11691_v20 = vld [vmem:[#allocation17_spill] sm:$0xff] }
 0x12c   : > { %v1707_v28 = vmul.f32 %v1693_v13, %v6131_v57  ;;  %v1708_v46 = vmul.f32 %v1693_v13, %v6133_v9  ;;  %v1709_v49 = vmul.f32 %v1693_v13, %v6135_v10  ;;  %v1710_v8 = vmul.f32 %v1693_v13, %v6137_v33 }
 0x12d   : > { %v1795_v25 = vmax.f32 %v1667_v39, %v1779_v0  ;;  %v1796_v7 = vmax.f32 %v1668_v48, %v1780_v26  ;;  %v1797_v36 = vmax.f32 %v1669_v18, %v1781_v3  ;;  %v1798_v29 = vmax.f32 %v1670_v50, %v1782_v56  ;;  %v6898_v56 = vpop.permute.xlu1 %2640  ;;  %v11707_v18 = vld [vmem:[#allocation20_spill] sm:$0xff]  ;;  %v1825_v61 = vpop.permute.xlu0 %1824 }
 0x12e   : > { %v6870_v5 = vsub.f32 %v1750_v54, %v1707_v28  ;;  %v6872_v31 = vsub.f32 %v1754_v6, %v1708_v46  ;;  %v6874_v42 = vsub.f32 %v1758_v38, %v1709_v49  ;;  %v6876_v53 = vsub.f32 %v1762_v16, %v1710_v8  ;;  %11692 = vst [vmem:[#allocation92_spill] sm:$0xff] %v6898_v56  ;;  %v11693_v28 = vld [vmem:[#allocation8_spill] sm:$0xff] }
 0x12f   : > { %v1827_v19 = vmul.f32 %v1813_v51, %v6351_v55  ;;  %v1828_v52 = vmul.f32 %v1813_v51, %v6354_v14  ;;  %v1829_v13 = vmul.f32 %v1813_v51, %v6357_v41  ;;  %v1830_v39 = vmul.f32 %v1813_v51, %v6360_v58 }
 0x130   : > { %11687 = vst [vmem:[#allocation88_spill] sm:$0xff] %v6870_v5  ;;  %11688 = vst [vmem:[#allocation89_spill] sm:$0xff] %v6872_v31  ;;  %v1846_v35 = vrot.slane %v6351_v55, %v11691_v20  ;;  %v1850_v54 = vrot.slane %v6354_v14, %v11691_v20  ;;  %v1854_v6 = vrot.slane %v6357_v41, %v11691_v20  ;;  %v6901_v46 = vsub.s32 7, %v11693_v28 }
 0x131   : > { %11689 = vst [vmem:[#allocation90_spill] sm:$0xff] %v6874_v42  ;;  %11690 = vst [vmem:[#allocation91_spill] sm:$0xff] %v6876_v53  ;;  %v1858_v38 = vrot.slane %v6360_v58, %v11691_v20  ;;  %v11709_v53 = vld [vmem:[#allocation22_spill] sm:$0xff]  ;;  %v11710_v42 = vld [vmem:[#allocation52_spill] sm:$0xff]  ;;  %v6967_v11 = vmul.f32 %v1825_v61, %v11661_v27 }
 0x132   : > { %v1907_v16 = vsub.f32 %v1846_v35, %v1827_v19  ;;  %v1908_v0 = vsub.f32 %v1850_v54, %v1828_v52  ;;  %v1909_v26 = vsub.f32 %v1854_v6, %v1829_v13  ;;  %11694 = vst [vmem:[#allocation93_spill] sm:$0xff] %v6901_v46  ;;  %v6915_v52 = vpop.permute.xlu1 %2532  ;;  %v11700_v13 = vld [vmem:[#allocation53_spill] sm:$0xff]  ;;  %v11704_v6 = vld [vmem:[#allocation48_spill] sm:$0xff]  ;;  %v2506_v40 = vsub.f32 %v11709_v53, %v11711_v30 }
 0x133   : > { %v1910_v3 = vsub.f32 %v1858_v38, %v1830_v39  ;;  %11699 = vst [vmem:[#allocation98_spill] sm:$0xff] %v6915_v52  ;;  %v11701_v39 = vld [vmem:[#allocation23_spill] sm:$0xff]  ;;  %v2512_v48 = vsub.f32 %v11707_v18, %v11704_v6  ;;  %v11708_v19 = vld [vmem:[#allocation21_spill] sm:$0xff]  ;;  %v2514_v22 = vsub.f32 %v11709_v53, %v11704_v6 }
 0x134   : > { %v6903_v49 = vmax.f32 %v1795_v25, %v1907_v16  ;;  %v6905_v8 = vmax.f32 %v1796_v7, %v1908_v0  ;;  %v6907_v51 = vmax.f32 %v1797_v36, %v1909_v26  ;;  %v2579_v35 = vsub.f32 %v11701_v39, %v11700_v13  ;;  %v11702_v25 = vld [vmem:[#allocation24_spill] sm:$0xff]  ;;  %v11703_v7 = vld [vmem:[#allocation25_spill] sm:$0xff]  ;;  %v11705_v38 = vld [vmem:[#allocation19_spill] sm:$0xff] }
 0x135   : > { %v6909_v43 = vmax.f32 %v1798_v29, %v1910_v3  ;;  %v2580_v54 = vsub.f32 %v11702_v25, %v11700_v13  ;;  %v2581_v36 = vsub.f32 %v11703_v7, %v11700_v13  ;;  %v2511_v16 = vsub.f32 %v11705_v38, %v11704_v6  ;;  %v11706_v0 = vld [vmem:[#allocation26_spill] sm:$0xff] }
 0x136   : > { %11695 = vst [vmem:[#allocation94_spill] sm:$0xff] %v6903_v49  ;;  %11696 = vst [vmem:[#allocation95_spill] sm:$0xff] %v6905_v8  ;;  %v2582_v26 = vsub.f32 %v11706_v0, %v11700_v13  ;;  %v2513_v50 = vsub.f32 %v11708_v19, %v11704_v6  ;;  %v2571_v29 = vsub.f32 %v11701_v39, %v11710_v42  ;;  %v6958_v60 = vpop.permute.xlu1 %2644 }
 0x137   : > { %11697 = vst [vmem:[#allocation96_spill] sm:$0xff] %v6907_v51  ;;  %11698 = vst [vmem:[#allocation97_spill] sm:$0xff] %v6909_v43  ;;  %v2572_v37 = vsub.f32 %v11702_v25, %v11710_v42  ;;  %v2573_v31 = vsub.f32 %v11703_v7, %v11710_v42  ;;  %v2574_v3 = vsub.f32 %v11706_v0, %v11710_v42  ;;  %v11718_v42 = vld [vmem:[#allocation32_spill] sm:$0xff] }
 0x138   : > { %v2503_v5 = vsub.f32 %v11705_v38, %v11711_v30  ;;  %v2611_v43 = vmul.f32 %v11712_v12, %v2579_v35  ;;  %v2612_v51 = vmul.f32 %v11712_v12, %v2580_v54  ;;  %v2613_v8 = vmul.f32 %v11712_v12, %v2581_v36 }
 0x139   : > { %v2504_v49 = vsub.f32 %v11707_v18, %v11711_v30  ;;  %v2614_v59 = vmul.f32 %v11712_v12, %v2582_v26  ;;  %v2505_v34 = vsub.f32 %v11708_v19, %v11711_v30  ;;  %v2547_v54 = vmul.f32 %v6915_v52, %v2511_v16 }
 0x13a   : > { %v2539_v56 = vmul.f32 %v6708_v45, %v2503_v5  ;;  %v2548_v36 = vmul.f32 %v6915_v52, %v2512_v48  ;;  %v2549_v63 = vmul.f32 %v6915_v52, %v2513_v50  ;;  %v2542_v1 = vmul.f32 %v6708_v45, %v2506_v40  ;;  %v11715_v48 = vld [vmem:[#allocation29_spill] sm:$0xff]  ;;  %v11716_v40 = vld [vmem:[#allocation30_spill] sm:$0xff] }
 0x13b   : > { %v2540_v35 = vmul.f32 %v6708_v45, %v2504_v49  ;;  %v2541_v26 = vmul.f32 %v6708_v45, %v2505_v34  ;;  %v2550_v15 = vmul.f32 %v6915_v52, %v2514_v22  ;;  %v6971_v5 = vmul.f32 %v1825_v61, %v11663_v47  ;;  %v11717_v22 = vld [vmem:[#allocation31_spill] sm:$0xff] }
 0x13c   : > { %v6974_v49 = vmul.f32 %v1825_v61, %v11664_v21  ;;  %v6977_v16 = vmul.f32 %v1825_v61, %v11665_v62  ;;  %v2659_v50 = vsub.f32 %v11715_v48, %v6958_v60  ;;  %v2660_v4 = vsub.f32 %v11716_v40, %v6958_v60 }
 0x13d   : > { %v2661_v24 = vsub.f32 %v11717_v22, %v6958_v60  ;;  %v2662_v30 = vsub.f32 %v11718_v42, %v6958_v60  ;;  %v2627_v28 = vadd.f32 %v2611_v43, %v2547_v54  ;;  %v2628_v58 = vadd.f32 %v2612_v51, %v2548_v36 }
 0x13e   : > { %11713 = vst [vmem:[#allocation99_spill] sm:$0xff] %v6974_v49  ;;  %11714 = vst [vmem:[#allocation100_spill] sm:$0xff] %v6977_v16  ;;  %v2629_v41 = vadd.f32 %v2613_v8, %v2549_v63  ;;  %v2691_v61 = vmul.f32 %v6695_v44, %v2659_v50  ;;  %v2630_v45 = vadd.f32 %v2614_v59, %v2550_v15  ;;  %v6997_v49 = vpop.permute.xlu0 %1948  ;;  %v7063_v16 = vpop.permute.xlu1 %2668 }
 0x13f   : > { %v2692_v14 = vmul.f32 %v6695_v44, %v2660_v4  ;;  %v2693_v55 = vmul.f32 %v6695_v44, %v2661_v24  ;;  %v2694_v34 = vmul.f32 %v6695_v44, %v2662_v30  ;;  %v2603_v43 = vmul.f32 %v6792_v2, %v2571_v29  ;;  %11721 = vst [vmem:[#allocation103_spill] sm:$0xff] %v7063_v16 }
 0x140   : > { %v2707_v63 = vadd.f32 %v2691_v61, %v2627_v28  ;;  %v2604_v8 = vmul.f32 %v6792_v2, %v2572_v37  ;;  %v2605_v30 = vmul.f32 %v6792_v2, %v2573_v31  ;;  %v2606_v51 = vmul.f32 %v6792_v2, %v2574_v3 }
 0x141   : > { %v2708_v15 = vadd.f32 %v2692_v14, %v2628_v58  ;;  %v2709_v59 = vadd.f32 %v2693_v55, %v2629_v41  ;;  %v2710_v4 = vadd.f32 %v2694_v34, %v2630_v45  ;;  %v7008_v36 = vmul.f32 %v6997_v49, %v6131_v57 }
 0x142   : > { %v2751_v54 = vmul.f32 %v6790_v17, %v2707_v63  ;;  %v7015_v14 = vmul.f32 %v6997_v49, %v6133_v9  ;;  %v2619_v41 = vadd.f32 %v2603_v43, %v2539_v56  ;;  %v2651_v58 = vsub.f32 %v11715_v48, %v6834_v23 }
 0x143   : > { %v2752_v28 = vmul.f32 %v6790_v17, %v2708_v15  ;;  %v2753_v37 = vmul.f32 %v6790_v17, %v2709_v59  ;;  %v2754_v55 = vmul.f32 %v6790_v17, %v2710_v4  ;;  %v7019_v31 = vadd.f32 %v2604_v8, %v2540_v35 }
 0x144   : > { %v2767_v45 = vmax.f32 %v2751_v54, 0.0  ;;  %v7021_v34 = vadd.f32 %v2605_v30, %v2541_v26  ;;  %v7023_v61 = vadd.f32 %v2606_v51, %v2542_v1  ;;  %v2652_v17 = vsub.f32 %v11716_v40, %v6834_v23 }
 0x145   : > { %v2768_v29 = vmax.f32 %v2752_v28, 0.0  ;;  %v2769_v3 = vmax.f32 %v2753_v37, 0.0  ;;  %v2770_v50 = vmax.f32 %v2754_v55, 0.0  ;;  %v2653_v56 = vsub.f32 %v11717_v22, %v6834_v23 }
 0x146   : > { %v7027_v63 = vmin.f32 %v2767_v45, 1.0  ;;  %v2654_v26 = vsub.f32 %v11718_v42, %v6834_v23 }
 0x147   : > { %v7031_v43 = vmin.f32 %v2768_v29, 1.0  ;;  %v7033_v15 = vmin.f32 %v2769_v3, 1.0  ;;  %v7035_v35 = vmin.f32 %v2770_v50, 1.0 }
 0x148   : > { %11719 = vst [vmem:[#allocation101_spill] sm:$0xff] %v7027_v63  ;;  %v2799_v1 = vmul.f32 %v7027_v63, %v6915_v52  ;;  %v2863_v8 = vmul.f32 %v7027_v63, %v11712_v12  ;;  %v2943_v59 = vmul.f32 %v7027_v63, %v6695_v44 }
 0x149   : > { %11720 = vst [vmem:[#allocation102_spill] sm:$0xff] %v7035_v35  ;;  %v2800_v4 = vmul.f32 %v7031_v43, %v6915_v52  ;;  %v2801_v30 = vmul.f32 %v7033_v15, %v6915_v52  ;;  %v2802_v51 = vmul.f32 %v7035_v35, %v6915_v52  ;;  %v2864_v54 = vmul.f32 %v7031_v43, %v11712_v12 }
 0x14a   : > { %v2815_v28 = vadd.f32 %v2799_v1, %v11704_v6  ;;  %v2865_v37 = vmul.f32 %v7033_v15, %v11712_v12  ;;  %v2866_v55 = vmul.f32 %v7035_v35, %v11712_v12  ;;  %v2879_v45 = vadd.f32 %v2863_v8, %v11700_v13 }
 0x14b   : > { %v2816_v29 = vadd.f32 %v2800_v4, %v11704_v6  ;;  %v2817_v3 = vadd.f32 %v2801_v30, %v11704_v6  ;;  %v2818_v50 = vadd.f32 %v2802_v51, %v11704_v6  ;;  %v2880_v24 = vadd.f32 %v2864_v54, %v11700_v13 }
 0x14c   : > { %v2831_v1 = vsub.f32 %v11705_v38, %v2815_v28  ;;  %v2881_v46 = vadd.f32 %v2865_v37, %v11700_v13  ;;  %v2882_v52 = vadd.f32 %v2866_v55, %v11700_v13  ;;  %v2895_v12 = vsub.f32 %v11701_v39, %v2879_v45 }
 0x14d   : > { %v2832_v8 = vsub.f32 %v11707_v18, %v2816_v29  ;;  %v2833_v4 = vsub.f32 %v11708_v19, %v2817_v3  ;;  %v2834_v30 = vsub.f32 %v11709_v53, %v2818_v50  ;;  %v2896_v51 = vsub.f32 %v11702_v25, %v2880_v24 }
 0x14e   : > { %v2897_v54 = vsub.f32 %v11703_v7, %v2881_v46  ;;  %v2898_v6 = vsub.f32 %v11706_v0, %v2882_v52  ;;  %v2683_v28 = vmul.f32 %v7063_v16, %v2651_v58  ;;  %v2684_v37 = vmul.f32 %v7063_v16, %v2652_v17 }
 0x14f   : > { %v2847_v63 = vmul.f32 %v2831_v1, %v2831_v1  ;;  %v2848_v55 = vmul.f32 %v2832_v8, %v2832_v8  ;;  %v2849_v13 = vmul.f32 %v2833_v4, %v2833_v4  ;;  %v2911_v45 = vmul.f32 %v2895_v12, %v2895_v12 }
 0x150   : > { %v2850_v23 = vmul.f32 %v2834_v30, %v2834_v30  ;;  %v2912_v29 = vmul.f32 %v2896_v51, %v2896_v51  ;;  %v2913_v39 = vmul.f32 %v2897_v54, %v2897_v54  ;;  %v2944_v3 = vmul.f32 %v7031_v43, %v6695_v44 }
 0x151   : > { %v2914_v50 = vmul.f32 %v2898_v6, %v2898_v6  ;;  %v2945_v46 = vmul.f32 %v7033_v15, %v6695_v44  ;;  %v2946_v52 = vmul.f32 %v7035_v35, %v6695_v44  ;;  %v2959_v24 = vadd.f32 %v2943_v59, %v6958_v60 }
 0x152   : > { %v2960_v58 = vadd.f32 %v2944_v3, %v6958_v60  ;;  %v2685_v17 = vmul.f32 %v7063_v16, %v2653_v56  ;;  %v2686_v12 = vmul.f32 %v7063_v16, %v2654_v26  ;;  %v2699_v1 = vadd.f32 %v2683_v28, %v2619_v41 }
 0x153   : > { %v2927_v8 = vadd.f32 %v2911_v45, %v2847_v63  ;;  %v2961_v4 = vadd.f32 %v2945_v46, %v6958_v60  ;;  %v2962_v6 = vadd.f32 %v2946_v52, %v6958_v60  ;;  %v2975_v30 = vsub.f32 %v11715_v48, %v2959_v24 }
 0x154   : > { %v2928_v51 = vadd.f32 %v2912_v29, %v2848_v55  ;;  %v2929_v54 = vadd.f32 %v2913_v39, %v2849_v13  ;;  %v2976_v44 = vsub.f32 %v11716_v40, %v2960_v58  ;;  %v2700_v59 = vadd.f32 %v2684_v37, %v7019_v31 }
 0x155   : > { %v2930_v35 = vadd.f32 %v2914_v50, %v2850_v23  ;;  %v2977_v3 = vsub.f32 %v11717_v22, %v2961_v4  ;;  %v2978_v56 = vsub.f32 %v11718_v42, %v2962_v6  ;;  %v2991_v26 = vmul.f32 %v2975_v30, %v2975_v30 }
 0x156   : > { %v1965_v41 = vmul.f32 %v6997_v49, %v6135_v10  ;;  %v2992_v63 = vmul.f32 %v2976_v44, %v2976_v44  ;;  %v2701_v28 = vadd.f32 %v2685_v17, %v7021_v34  ;;  %v2702_v45 = vadd.f32 %v2686_v12, %v7023_v61 }
 0x157   : > { %v1966_v13 = vmul.f32 %v6997_v49, %v6137_v33  ;;  %v2993_v39 = vmul.f32 %v2977_v3, %v2977_v3  ;;  %v2994_v55 = vmul.f32 %v2978_v56, %v2978_v56  ;;  %v3007_v31 = vadd.f32 %v2991_v26, %v2927_v8  ;;  %v11732_v56 = vld [vmem:[#allocation93_spill] sm:$0xff] }
 0x158   : > { %v11722_v23 = vrot.slane %v11661_v27, %v11691_v20  ;;  %v11724_v44 = vrot.slane %v11663_v47, %v11691_v20  ;;  %v3008_v34 = vadd.f32 %v2992_v63, %v2928_v51  ;;  %v2743_v61 = vmul.f32 %v6762_v32, %v2699_v1  ;;  %v11726_v1 = vld [vmem:[#allocation99_spill] sm:$0xff] }
 0x159   : > { %v3009_v50 = vadd.f32 %v2993_v39, %v2929_v54  ;;  %v3010_v49 = vadd.f32 %v2994_v55, %v2930_v35  ;;  %vm3023_vm0 = vcmp.ne.f32.partialorder %v3007_v31, %v3007_v31  ;;  %v2744_v46 = vmul.f32 %v6762_v32, %v2700_v59  ;;  %v11729_v59 = vld [vmem:[#allocation100_spill] sm:$0xff] }
 0x15a   : > { %v7104_v37 = vsub.f32 %v11722_v23, %v6967_v11  ;;  %v7110_v29 = vsub.f32 %v11724_v44, %v6971_v5  ;;  %vm3024_vm1 = vcmp.ne.f32.partialorder %v3008_v34, %v3008_v34  ;;  %v3039_v52 = vsel %vm3023_vm0, inf, %v3007_v31 }
 0x15b   : > { %v2745_v24 = vmul.f32 %v6762_v32, %v2701_v28  ;;  %v2746_v11 = vmul.f32 %v6762_v32, %v2702_v45  ;;  %vm3025_vm2 = vcmp.ne.f32.partialorder %v3009_v50, %v3009_v50  ;;  %vm3026_vm3 = vcmp.ne.f32.partialorder %v3010_v49, %v3010_v49 }
 0x15c   : > { %11723 = vst [vmem:[#allocation104_spill] sm:$0xff] %v7104_v37  ;;  %11725 = vst [vmem:[#allocation105_spill] sm:$0xff] %v7110_v29  ;;  %v3040_v58 = vsel %vm3024_vm1, inf, %v3008_v34  ;;  %v3115_v17 = vrot.slane %v3039_v52, 4  ;;  %v3041_v5 = vsel %vm3025_vm2, inf, %v3009_v50  ;;  %v3042_v12 = vsel %vm3026_vm3, inf, %v3010_v49 }
 0x15d   : > { %v3121_v8 = vrot.slane %v3040_v58, 4  ;;  %v2759_v4 = vmax.f32 %v2743_v61, 0.0  ;;  %v11727_v35 = vrot.slane %v11664_v21, %v11691_v20  ;;  %v3127_v51 = vrot.slane %v3041_v5, 4 }
 0x15e   : > { %v3116_v30 = vmin.f32 %v3039_v52, %v3115_v17  ;;  %v3133_v54 = vrot.slane %v3042_v12, 4  ;;  %v11730_v32 = vrot.slane %v11665_v62, %v11691_v20  ;;  %v11733_v26 = vrot.slane %v6131_v57, %v11732_v56 }
 0x15f   : > { %v7120_v6 = vsub.f32 %v11727_v35, %v11726_v1  ;;  %v3122_v28 = vmin.f32 %v3040_v58, %v3121_v8  ;;  %v2760_v45 = vmax.f32 %v2744_v46, 0.0  ;;  %v3128_v55 = vmin.f32 %v3041_v5, %v3127_v51  ;;  %v11741_v51 = vld [vmem:[#allocation54_spill] sm:$0xff] }
 0x160   : > { %v7126_v3 = vsub.f32 %v11730_v32, %v11729_v59  ;;  %v7132_v63 = vsub.f32 %v11733_v26, %v7008_v36  ;;  %v3117_v39 = vrot.slane %v3116_v30, 2  ;;  %v3134_v31 = vmin.f32 %v3042_v12, %v3133_v54 }
 0x161   : > { %11728 = vst [vmem:[#allocation99_spill] sm:$0xff] %v7120_v6  ;;  %v2761_v23 = vmax.f32 %v2745_v24, 0.0  ;;  %v11735_v44 = vrot.slane %v6133_v9, %v11732_v56  ;;  %v3123_v61 = vrot.slane %v3122_v28, 2  ;;  %v2762_v50 = vmax.f32 %v2746_v11, 0.0  ;;  %v7155_v11 = vpop.permute.xlu0 %2104 }
 0x162   : > { %11731 = vst [vmem:[#allocation100_spill] sm:$0xff] %v7126_v3  ;;  %11734 = vst [vmem:[#allocation106_spill] sm:$0xff] %v7132_v63  ;;  %v7140_v49 = vmin.f32 %v2759_v4, 1.0  ;;  %v11737_v36 = vrot.slane %v6135_v10, %v11732_v56  ;;  %v3118_v46 = vmin.f32 %v3116_v30, %v3117_v39  ;;  %v3129_v8 = vrot.slane %v3128_v55, 2  ;;  %v11743_v30 = vld [vmem:[#allocation55_spill] sm:$0xff] }
 0x163   : > { %v7138_v34 = vsub.f32 %v11735_v44, %v7015_v14  ;;  %v3135_v1 = vrot.slane %v3134_v31, 2  ;;  %v11739_v24 = vrot.slane %v6137_v33, %v11732_v56  ;;  %v2083_v14 = vand.u32 2147483647, %v11741_v51  ;;  %v11754_v56 = vld [vmem:[#allocation52_spill] sm:$0xff]  ;;  %v11757_v33 = vld [vmem:[#allocation23_spill] sm:$0xff] }
 0x164   : > { %v7145_v17 = vsub.f32 %v11737_v36, %v1965_v41  ;;  %v3124_v54 = vmin.f32 %v3122_v28, %v3123_v61  ;;  %v7153_v59 = vmin.f32 %v2760_v45, 1.0  ;;  %v3119_v4 = vrot.slane %v3118_v46, 1 }
 0x165   : > { %11736 = vst [vmem:[#allocation107_spill] sm:$0xff] %v7138_v34  ;;  %v7150_v35 = vsub.f32 %v11739_v24, %v1966_v13  ;;  %v3130_v32 = vmin.f32 %v3128_v55, %v3129_v8  ;;  %v3136_v26 = vmin.f32 %v3134_v31, %v3135_v1  ;;  %v7157_v41 = vmin.f32 %v2761_v23, 1.0  ;;  %v11745_v24 = vld [vmem:[#allocation56_spill] sm:$0xff]  ;;  %v11747_v34 = vld [vmem:[#allocation57_spill] sm:$0xff] }
 0x166   : > { %11738 = vst [vmem:[#allocation108_spill] sm:$0xff] %v7145_v17  ;;  %v2084_v39 = vand.u32 2147483647, %v11743_v30  ;;  %v3125_v44 = vrot.slane %v3124_v54, 1  ;;  %v7160_v36 = vmin.f32 %v2762_v50, 1.0  ;;  %v11744_v17 = vld [vmem:[#allocation81_spill] sm:$0xff]  ;;  %v7165_v28 = vmin.f32 %v3118_v46, %v3119_v4 }
 0x167   : > { %11740 = vst [vmem:[#allocation109_spill] sm:$0xff] %v7150_v35  ;;  %11742 = vst [vmem:[#allocation110_spill] sm:$0xff] %v7157_v41  ;;  %v2791_v13 = vmul.f32 %v7140_v49, %v11744_v17  ;;  %v2085_v35 = vand.u32 2147483647, %v11745_v24  ;;  %v3131_v45 = vrot.slane %v3130_v32, 1  ;;  %v3137_v61 = vrot.slane %v3136_v26, 1 }
 0x168   : > { %11746 = vst [vmem:[#allocation111_spill] sm:$0xff] %v7165_v28  ;;  %v7169_v55 = vmul.f32 %v7155_v11, %v2083_v14  ;;  %v7171_v31 = vmin.f32 %v3124_v54, %v3125_v44  ;;  %v2792_v23 = vmul.f32 %v7153_v59, %v11744_v17  ;;  %vm3151_vm4 = vcmp.eq.f32.partialorder %v3039_v52, %v7165_v28  ;;  %v11752_v1 = vld [vmem:[#allocation8_spill] sm:$0xff]  ;;  %v11753_v54 = vld [vmem:[#allocation70_spill] sm:$0xff] }
 0x169   : > { %v7175_v50 = vmin.f32 %v3130_v32, %v3131_v45  ;;  %v7177_v8 = vmin.f32 %v3136_v26, %v3137_v61  ;;  %v2793_v46 = vmul.f32 %v7157_v41, %v11744_v17  ;;  %v7184_v4 = vsel %vm3151_vm4, %v11752_v1, 8 }
 0x16a   : > { %11748 = vst [vmem:[#allocation112_spill] sm:$0xff] %v7169_v55  ;;  %11749 = vst [vmem:[#allocation113_spill] sm:$0xff] %v7171_v31  ;;  %vm3152_vm5 = vcmp.eq.f32.partialorder %v3040_v58, %v7171_v31  ;;  %v2794_v14 = vmul.f32 %v7160_v36, %v11744_v17  ;;  %v2807_v44 = vadd.f32 %v2791_v13, %v11753_v54  ;;  %v3279_v52 = vrot.slane %v7184_v4, 4 }
 0x16b   : > { %11750 = vst [vmem:[#allocation114_spill] sm:$0xff] %v7175_v50  ;;  %11751 = vst [vmem:[#allocation115_spill] sm:$0xff] %v7177_v8  ;;  %vm3153_vm6 = vcmp.eq.f32.partialorder %v3041_v5, %v7175_v50  ;;  %vm3154_vm7 = vcmp.eq.f32.partialorder %v3042_v12, %v7177_v8  ;;  %v7192_v32 = vsel %vm3152_vm5, %v11752_v1, 8  ;;  %v2855_v13 = vmul.f32 %v7140_v49, %v6792_v2 }
 0x16c   : > { %v7196_v26 = vsel %vm3153_vm6, %v11752_v1, 8  ;;  %v7199_v58 = vsel %vm3154_vm7, %v11752_v1, 8  ;;  %v3288_v45 = vrot.slane %v7192_v32, 4  ;;  %vm3280_vm8 = vcmp.lt.s32.totalorder %v7184_v4, %v3279_v52 }
 0x16d   : > { %v3297_v5 = vrot.slane %v7196_v26, 4  ;;  %v3306_v12 = vrot.slane %v7199_v58, 4  ;;  %v2856_v61 = vmul.f32 %v7153_v59, %v6792_v2  ;;  %v3281_v63 = vsel %vm3280_vm8, %v7184_v4, %v3279_v52 }
 0x16e   : > { %vm3289_vm9 = vcmp.lt.s32.totalorder %v7192_v32, %v3288_v45  ;;  %v2857_v8 = vmul.f32 %v7157_v41, %v6792_v2  ;;  %v2858_v50 = vmul.f32 %v7160_v36, %v6792_v2  ;;  %v3282_v31 = vrot.slane %v3281_v63, 2 }
 0x16f   : > { %v3290_v28 = vsel %vm3289_vm9, %v7192_v32, %v3288_v45  ;;  %vm3298_vm10 = vcmp.lt.s32.totalorder %v7196_v26, %v3297_v5  ;;  %vm3307_vm11 = vcmp.lt.s32.totalorder %v7199_v58, %v3306_v12  ;;  %v2808_v6 = vadd.f32 %v2792_v23, %v11753_v54 }
 0x170   : > { %v3299_v3 = vsel %vm3298_vm10, %v7196_v26, %v3297_v5  ;;  %v2809_v52 = vadd.f32 %v2793_v46, %v11753_v54  ;;  %v2810_v29 = vadd.f32 %v2794_v14, %v11753_v54  ;;  %v3308_v37 = vsel %vm3307_vm11, %v7199_v58, %v3306_v12 }
 0x171   : > { %v2823_v55 = vsub.f32 %v11705_v38, %v2807_v44  ;;  %v2871_v24 = vadd.f32 %v2855_v13, %v11754_v56  ;;  %v2872_v45 = vadd.f32 %v2856_v61, %v11754_v56  ;;  %v7227_v30 = vmul.f32 %v7155_v11, %v2084_v39 }
 0x172   : > { %v3291_v51 = vrot.slane %v3290_v28, 2  ;;  %v2873_v5 = vadd.f32 %v2857_v8, %v11754_v56  ;;  %v2874_v23 = vadd.f32 %v2858_v50, %v11754_v56  ;;  %v7232_v46 = vmul.f32 %v7155_v11, %v2085_v35 }
 0x173   : > { %11755 = vst [vmem:[#allocation116_spill] sm:$0xff] %v7227_v30  ;;  %v2095_v14 = vand.u32 2147483647, %v11661_v27  ;;  %vm3283_vm12 = vcmp.lt.s32.totalorder %v3281_v63, %v3282_v31  ;;  %v3300_v12 = vrot.slane %v3299_v3, 2  ;;  %v3309_v44 = vrot.slane %v3308_v37, 2 }
 0x174   : > { %11756 = vst [vmem:[#allocation117_spill] sm:$0xff] %v7232_v46  ;;  %v2824_v13 = vsub.f32 %v11707_v18, %v2808_v6  ;;  %v2825_v61 = vsub.f32 %v11708_v19, %v2809_v52  ;;  %v2935_v39 = vmul.f32 %v7140_v49, %v7063_v16  ;;  %v2826_v30 = vsub.f32 %v11709_v53, %v2810_v29 }
 0x175   : > { %v2839_v8 = vmul.f32 %v2823_v55, %v2823_v55  ;;  %v2887_v50 = vsub.f32 %v11757_v33, %v2871_v24  ;;  %v2888_v35 = vsub.f32 %v11702_v25, %v2872_v45  ;;  %v3284_v46 = vsel %vm3283_vm12, %v3281_v63, %v3282_v31  ;;  %v11758_v45 = vld [vmem:[#allocation39_spill] sm:$0xff] }
 0x176   : > { %vm3292_vm13 = vcmp.lt.s32.totalorder %v3290_v28, %v3291_v51  ;;  %v2889_v10 = vsub.f32 %v11703_v7, %v2873_v5  ;;  %v2890_v9 = vsub.f32 %v11706_v0, %v2874_v23  ;;  %vm3301_vm14 = vcmp.lt.s32.totalorder %v3299_v3, %v3300_v12 }
 0x177   : > { %v2936_v6 = vmul.f32 %v7153_v59, %v7063_v16  ;;  %v2937_v52 = vmul.f32 %v7157_v41, %v7063_v16  ;;  %v2938_v29 = vmul.f32 %v7160_v36, %v7063_v16  ;;  %vm3310_vm15 = vcmp.lt.s32.totalorder %v3308_v37, %v3309_v44 }
 0x178   : > { %v2840_v24 = vmul.f32 %v2824_v13, %v2824_v13  ;;  %v2841_v55 = vmul.f32 %v2825_v61, %v2825_v61  ;;  %v2951_v63 = vadd.f32 %v2935_v39, %v11758_v45  ;;  %v3285_v31 = vrot.slane %v3284_v46, 1 }
 0x179   : > { %v3293_v57 = vsel %vm3292_vm13, %v3290_v28, %v3291_v51  ;;  %v2842_v5 = vmul.f32 %v2826_v30, %v2826_v30  ;;  %v2903_v27 = vmul.f32 %v2887_v50, %v2887_v50  ;;  %v3302_v23 = vsel %vm3301_vm14, %v3299_v3, %v3300_v12  ;;  %v2126_v28 = vpop.permute.xlu0 %2125 }
 0x17a   : > { %v2904_v20 = vmul.f32 %v2888_v35, %v2888_v35  ;;  %v2905_v2 = vmul.f32 %v2889_v10, %v2889_v10  ;;  %v2906_v56 = vmul.f32 %v2890_v9, %v2890_v9  ;;  %v3311_v17 = vsel %vm3310_vm15, %v3308_v37, %v3309_v44 }
 0x17b   : > { %v2952_v54 = vadd.f32 %v2936_v6, %v11758_v45  ;;  %v2953_v41 = vadd.f32 %v2937_v52, %v11758_v45  ;;  %v2954_v16 = vadd.f32 %v2938_v29, %v11758_v45  ;;  %v11759_v13 = vand.u32 2147483647, %v11747_v34 }
 0x17c   : > { %v2096_v51 = vand.u32 2147483647, %v11663_v47  ;;  %v3294_v30 = vrot.slane %v3293_v57, 1  ;;  %v2967_v3 = vsub.f32 %v11715_v48, %v2951_v63  ;;  %v2097_v9 = vand.u32 2147483647, %v11664_v21 }
 0x17d   : > { %v7257_v61 = vmul.f32 %v7155_v11, %v11759_v13  ;;  %v2098_v10 = vand.u32 2147483647, %v11665_v62  ;;  %vm3286_vm0 = vcmp.lt.s32.totalorder %v3284_v46, %v3285_v31  ;;  %v3303_v37 = vrot.slane %v3302_v23, 1 }
 0x17e   : > { %v3312_v12 = vrot.slane %v3311_v17, 1  ;;  %v2919_v44 = vadd.f32 %v2903_v27, %v2839_v8  ;;  %v2920_v39 = vadd.f32 %v2904_v20, %v2840_v24  ;;  %v2921_v50 = vadd.f32 %v2905_v2, %v2841_v55 }
 0x17f   : > { %11760 = vst [vmem:[#allocation118_spill] sm:$0xff] %v7257_v61  ;;  %v2922_v35 = vadd.f32 %v2906_v56, %v2842_v5  ;;  %v2968_v11 = vsub.f32 %v11716_v40, %v2952_v54  ;;  %v2969_v6 = vsub.f32 %v11717_v22, %v2953_v41  ;;  %v2970_v52 = vsub.f32 %v11718_v42, %v2954_v16 }
 0x180   : > { %v7266_v29 = vmul.f32 %v2126_v28, %v2095_v14  ;;  %v3287_v63 = vsel %vm3286_vm0, %v3284_v46, %v3285_v31  ;;  %vm3295_vm1 = vcmp.lt.s32.totalorder %v3293_v57, %v3294_v30  ;;  %v2983_v13 = vmul.f32 %v2967_v3, %v2967_v3 }
 0x181   : > { %vm3304_vm2 = vcmp.lt.s32.totalorder %v3302_v23, %v3303_v37  ;;  %v2984_v61 = vmul.f32 %v2968_v11, %v2968_v11  ;;  %v2985_v34 = vmul.f32 %v2969_v6, %v2969_v6  ;;  %v2986_v62 = vmul.f32 %v2970_v52, %v2970_v52 }
 0x182   : > { %11761 = vst [vmem:[#allocation119_spill] sm:$0xff] %v7266_v29  ;;  %v7268_v21 = vmul.f32 %v2126_v28, %v2096_v51  ;;  %v7270_v27 = vmul.f32 %v2126_v28, %v2097_v9  ;;  %vm3313_vm3 = vcmp.lt.s32.totalorder %v3311_v17, %v3312_v12  ;;  %v2999_v2 = vadd.f32 %v2983_v13, %v2919_v44  ;;  %v11766_v9 = vld [vmem:[#allocation102_spill] sm:$0xff] }
 0x183   : > { %v7272_v20 = vmul.f32 %v2126_v28, %v2098_v10  ;;  %v3000_v56 = vadd.f32 %v2984_v61, %v2920_v39  ;;  %v3001_v41 = vadd.f32 %v2985_v34, %v2921_v50  ;;  %v3002_v16 = vadd.f32 %v2986_v62, %v2922_v35 }
 0x184   : > { %11762 = vst [vmem:[#allocation120_spill] sm:$0xff] %v7268_v21  ;;  %11763 = vst [vmem:[#allocation121_spill] sm:$0xff] %v7270_v27  ;;  %v3296_v54 = vsel %vm3295_vm1, %v3293_v57, %v3294_v30  ;;  %v3305_v14 = vsel %vm3304_vm2, %v3302_v23, %v3303_v37  ;;  %vm3327_vm4 = vcmp.eq.s32.totalorder %v7184_v4, %v3287_v63  ;;  %v11765_v57 = vld [vmem:[#allocation101_spill] sm:$0xff]  ;;  %v11295_v61 = vmov 0.0   ;;  %v7413_v27 = vpop.permute.xlu1 %2672 }
 0x185   : > { %11764 = vst [vmem:[#allocation122_spill] sm:$0xff] %v7272_v20  ;;  %vm3015_vm5 = vcmp.ne.f32.partialorder %v2999_v2, %v2999_v2  ;;  %v3314_v46 = vsel %vm3313_vm3, %v3311_v17, %v3312_v12  ;;  %vm3016_vm6 = vcmp.ne.f32.partialorder %v3000_v56, %v3000_v56  ;;  %vm3017_vm7 = vcmp.ne.f32.partialorder %v3001_v41, %v3001_v41 }
 0x186   : > { %vm3018_vm8 = vcmp.ne.f32.partialorder %v3002_v16, %v3002_v16  ;;  %v3031_v8 = vsel %vm3015_vm5, inf, %v2999_v2  ;;  %v3032_v24 = vsel %vm3016_vm6, inf, %v3000_v56  ;;  %v3033_v55 = vsel %vm3017_vm7, inf, %v3001_v41 }
 0x187   : > { %v3034_v31 = vsel %vm3018_vm8, inf, %v3002_v16  ;;  %v3067_v5 = vrot.slane %v3031_v8, 4  ;;  %v3073_v51 = vrot.slane %v3032_v24, 4  ;;  %v3079_v3 = vrot.slane %v3033_v55, 4 }
 0x188   : > { %v3085_v28 = vrot.slane %v3034_v31, 4  ;;  %vm3328_vm9 = vcmp.eq.s32.totalorder %v7192_v32, %v3296_v54  ;;  %vm3329_vm10 = vcmp.eq.s32.totalorder %v7196_v26, %v3305_v14  ;;  %vm3330_vm11 = vcmp.eq.s32.totalorder %v7199_v58, %v3314_v46 }
 0x189   : > { %vm3487_vm12 = vcmp.ne.f32.partialorder %v11765_v57, %v11765_v57  ;;  %v3068_v62 = vmin.f32 %v3031_v8, %v3067_v5  ;;  %v3074_v34 = vmin.f32 %v3032_v24, %v3073_v51  ;;  %v3080_v17 = vmin.f32 %v3033_v55, %v3079_v3  ;;  %v11771_v5 = vld [vmem:[#allocation48_spill] sm:$0xff] }
 0x18a   : > { %v3086_v23 = vmin.f32 %v3034_v31, %v3085_v28  ;;  %v5451_v30 = vsel %vm3327_vm4, 1.0, %v11295_v61  ;;  %vm3488_vm13 = vcmp.ne.f32.partialorder %v7031_v43, %v7031_v43  ;;  %vm3489_vm14 = vcmp.ne.f32.partialorder %v7033_v15, %v7033_v15 }
 0x18b   : > { %vm3490_vm15 = vcmp.ne.f32.partialorder %v11766_v9, %v11766_v9  ;;  %v3069_v10 = vrot.slane %v3068_v62, 2  ;;  %v3075_v37 = vrot.slane %v3074_v34, 2  ;;  %v3081_v12 = vrot.slane %v3080_v17, 2 }
 0x18c   : > { %v3087_v44 = vrot.slane %v3086_v23, 2  ;;  %v5452_v39 = vsel %vm3328_vm9, 1.0, %v11295_v61  ;;  %v7295_v4 = vsel %vm3329_vm10, 1.0, %v11295_v61  ;;  %v7300_v50 = vsel %vm3330_vm11, 1.0, %v11295_v61 }
 0x18d   : > { %v3503_v35 = vsel %vm3487_vm12, 0.0, %v11765_v57  ;;  %v3070_v11 = vmin.f32 %v3068_v62, %v3069_v10  ;;  %v3076_v6 = vmin.f32 %v3074_v34, %v3075_v37  ;;  %v3082_v52 = vmin.f32 %v3080_v17, %v3081_v12  ;;  %v11780_v17 = vld [vmem:[#allocation53_spill] sm:$0xff] }
 0x18e   : > { %v3088_v32 = vmin.f32 %v3086_v23, %v3087_v44  ;;  %v3504_v63 = vsel %vm3488_vm13, 0.0, %v7031_v43  ;;  %v3505_v26 = vsel %vm3489_vm14, 0.0, %v7033_v15  ;;  %v3506_v13 = vsel %vm3490_vm15, 0.0, %v11766_v9 }
 0x18f   : > { %v7309_v2 = vmul.f32 %v5451_v30, %v3503_v35  ;;  %v3071_v58 = vrot.slane %v3070_v11, 1  ;;  %v3077_v56 = vrot.slane %v3076_v6, 1  ;;  %v3083_v41 = vrot.slane %v3082_v52, 1 }
 0x190   : > { %v3089_v16 = vrot.slane %v3088_v32, 1  ;;  %v7311_v54 = vmul.f32 %v5452_v39, %v3504_v63  ;;  %v7314_v14 = vmul.f32 %v7295_v4, %v3505_v26  ;;  %v7317_v46 = vmul.f32 %v7300_v50, %v3506_v13  ;;  %v11786_v13 = vld [vmem:[#allocation40_spill] sm:$0xff] }
 0x191   : > { %11767 = vst [vmem:[#allocation101_spill] sm:$0xff] %v7309_v2  ;;  %v7320_v43 = vmul.f32 %v5451_v30, %v11771_v5  ;;  %v7322_v15 = vmin.f32 %v3070_v11, %v3071_v58  ;;  %v7324_v51 = vmin.f32 %v3076_v6, %v3077_v56  ;;  %v7326_v3 = vmin.f32 %v3082_v52, %v3083_v41  ;;  %v11785_v6 = vld [vmem:[#allocation46_spill] sm:$0xff] }
 0x192   : > { %11768 = vst [vmem:[#allocation102_spill] sm:$0xff] %v7311_v54  ;;  %11769 = vst [vmem:[#allocation123_spill] sm:$0xff] %v7314_v14  ;;  %v7328_v28 = vmin.f32 %v3088_v32, %v3089_v16  ;;  %v7331_v57 = vmul.f32 %v5452_v39, %v11771_v5  ;;  %v7335_v62 = vmul.f32 %v7295_v4, %v11771_v5 }
 0x193   : > { %11770 = vst [vmem:[#allocation124_spill] sm:$0xff] %v7317_v46  ;;  %11772 = vst [vmem:[#allocation48_spill] sm:$0xff] %v7320_v43  ;;  %v7339_v34 = vmul.f32 %v7300_v50, %v11771_v5  ;;  %v7342_v23 = vmul.f32 %v5451_v30, %v11780_v17  ;;  %vm3143_vm0 = vcmp.eq.f32.partialorder %v3031_v8, %v7322_v15 }
 0x194   : > { %11773 = vst [vmem:[#allocation125_spill] sm:$0xff] %v7322_v15  ;;  %11774 = vst [vmem:[#allocation126_spill] sm:$0xff] %v7324_v51  ;;  %vm3144_vm1 = vcmp.eq.f32.partialorder %v3032_v24, %v7324_v51  ;;  %vm3145_vm2 = vcmp.eq.f32.partialorder %v3033_v55, %v7326_v3  ;;  %vm3146_vm3 = vcmp.eq.f32.partialorder %v3034_v31, %v7328_v28  ;;  %v7349_v9 = vsel %vm3143_vm0, %v11752_v1, 8  ;;  %v11789_v15 = vld [vmem:[#allocation72_spill] sm:$0xff] }
 0x195   : > { %11775 = vst [vmem:[#allocation127_spill] sm:$0xff] %v7326_v3  ;;  %11776 = vst [vmem:[#allocation128_spill] sm:$0xff] %v7328_v28  ;;  %v7352_v10 = vsel %vm3144_vm1, %v11752_v1, 8  ;;  %v7355_v37 = vsel %vm3145_vm2, %v11752_v1, 8  ;;  %v7358_v12 = vsel %vm3146_vm3, %v11752_v1, 8  ;;  %v3207_v8 = vrot.slane %v7349_v9, 4 }
 0x196   : > { %11777 = vst [vmem:[#allocation129_spill] sm:$0xff] %v7331_v57  ;;  %11778 = vst [vmem:[#allocation130_spill] sm:$0xff] %v7335_v62  ;;  %v3216_v24 = vrot.slane %v7352_v10, 4  ;;  %v3225_v55 = vrot.slane %v7355_v37, 4  ;;  %v3234_v31 = vrot.slane %v7358_v12, 4  ;;  %v7365_v44 = vmul.f32 %v5452_v39, %v11780_v17  ;;  %v11788_v57 = vld [vmem:[#allocation45_spill] sm:$0xff] }
 0x197   : > { %11779 = vst [vmem:[#allocation131_spill] sm:$0xff] %v7339_v34  ;;  %11781 = vst [vmem:[#allocation53_spill] sm:$0xff] %v7342_v23  ;;  %v4850_v35 = vmul.f32 %v5451_v30, %v6958_v60  ;;  %v4851_v11 = vmul.f32 %v5452_v39, %v6958_v60  ;;  %v2499_v52 = vsub.f32 %v11705_v38, %v11785_v6 }
 0x198   : > { %11782 = vst [vmem:[#allocation132_spill] sm:$0xff] %v7355_v37  ;;  %11783 = vst [vmem:[#allocation133_spill] sm:$0xff] %v7358_v12  ;;  %vm3208_vm4 = vcmp.lt.s32.totalorder %v7349_v9, %v3207_v8  ;;  %vm3217_vm5 = vcmp.lt.s32.totalorder %v7352_v10, %v3216_v24  ;;  %vm3226_vm6 = vcmp.lt.s32.totalorder %v7355_v37, %v3225_v55 }
 0x199   : > { %11784 = vst [vmem:[#allocation134_spill] sm:$0xff] %v7365_v44  ;;  %vm3235_vm7 = vcmp.lt.s32.totalorder %v7358_v12, %v3234_v31  ;;  %v3209_v32 = vsel %vm3208_vm4, %v7349_v9, %v3207_v8  ;;  %v3218_v63 = vsel %vm3217_vm5, %v7352_v10, %v3216_v24  ;;  %v3227_v26 = vsel %vm3226_vm6, %v7355_v37, %v3225_v55  ;;  %v11787_v44 = vld [vmem:[#allocation79_spill] sm:$0xff] }
 0x19a   : > { %v2500_v30 = vsub.f32 %v11707_v18, %v11785_v6  ;;  %v2501_v39 = vsub.f32 %v11708_v19, %v11785_v6  ;;  %v2567_v58 = vsub.f32 %v11757_v33, %v11786_v13  ;;  %v2568_v56 = vsub.f32 %v11702_v25, %v11786_v13  ;;  %11791 = vst [vmem:[#allocation46_spill] sm:$0xff] %v7413_v27 }
 0x19b   : > { %v2569_v41 = vsub.f32 %v11703_v7, %v11786_v13  ;;  %v3210_v16 = vrot.slane %v3209_v32, 2  ;;  %v3219_v5 = vrot.slane %v3218_v63, 2  ;;  %v3228_v8 = vrot.slane %v3227_v26, 2 }
 0x19c   : > { %v3236_v24 = vsel %vm3235_vm7, %v7358_v12, %v3234_v31  ;;  %v4852_v55 = vmul.f32 %v7295_v4, %v6958_v60  ;;  %v2502_v61 = vsub.f32 %v11709_v53, %v11785_v6  ;;  %v2535_v23 = vmul.f32 %v11787_v44, %v2499_v52 }
 0x19d   : > { %v2536_v34 = vmul.f32 %v11787_v44, %v2500_v30  ;;  %v2537_v62 = vmul.f32 %v11787_v44, %v2501_v39  ;;  %v2599_v43 = vmul.f32 %v11788_v57, %v2567_v58  ;;  %v2600_v28 = vmul.f32 %v11788_v57, %v2568_v56  ;;  %v11790_v39 = vld [vmem:[#allocation80_spill] sm:$0xff] }
 0x19e   : > { %v2601_v3 = vmul.f32 %v11788_v57, %v2569_v41  ;;  %v3237_v51 = vrot.slane %v3236_v24, 2  ;;  %v2570_v31 = vsub.f32 %v11706_v0, %v11786_v13  ;;  %v2647_v20 = vsub.f32 %v11715_v48, %v11789_v15 }
 0x19f   : > { %v2648_v52 = vsub.f32 %v11716_v40, %v11789_v15  ;;  %vm3211_vm8 = vcmp.lt.s32.totalorder %v3209_v32, %v3210_v16  ;;  %vm3220_vm9 = vcmp.lt.s32.totalorder %v3218_v63, %v3219_v5  ;;  %vm3229_vm10 = vcmp.lt.s32.totalorder %v3227_v26, %v3228_v8 }
 0x1a0   : > { %v2649_v30 = vsub.f32 %v11717_v22, %v11789_v15  ;;  %v4866_v58 = vmul.f32 %v7309_v2, %v11790_v39  ;;  %v4867_v56 = vmul.f32 %v7311_v54, %v11790_v39  ;;  %v4868_v41 = vmul.f32 %v7314_v14, %v11790_v39  ;;  %v11794_v14 = vld [vmem:[#allocation78_spill] sm:$0xff] }
 0x1a1   : > { %v2538_v21 = vmul.f32 %v11787_v44, %v2502_v61  ;;  %v2602_v29 = vmul.f32 %v11788_v57, %v2570_v31  ;;  %v2615_v47 = vadd.f32 %v2599_v43, %v2535_v23  ;;  %v2616_v1 = vadd.f32 %v2600_v28, %v2536_v34 }
 0x1a2   : > { %v2617_v45 = vadd.f32 %v2601_v3, %v2537_v62  ;;  %v3212_v12 = vsel %vm3211_vm8, %v3209_v32, %v3210_v16  ;;  %v3221_v37 = vsel %vm3220_vm9, %v3218_v63, %v3219_v5  ;;  %v3230_v22 = vsel %vm3229_vm10, %v3227_v26, %v3228_v8 }
 0x1a3   : > { %vm7417_vm11 = vcmp.lt.s32.totalorder %v3236_v24, %v3237_v51  ;;  %v2650_v54 = vsub.f32 %v11718_v42, %v11789_v15  ;;  %v2679_v40 = vmul.f32 %v11794_v14, %v2647_v20  ;;  %v2680_v27 = vmul.f32 %v11794_v14, %v2648_v52 }
 0x1a4   : > { %v2681_v61 = vmul.f32 %v11794_v14, %v2649_v30  ;;  %v4869_v43 = vmul.f32 %v7317_v46, %v11790_v39  ;;  %v4882_v3 = vadd.f32 %v4866_v58, %v4850_v35  ;;  %v4883_v28 = vadd.f32 %v4867_v56, %v4851_v11  ;;  %v2717_v11 = vpop.permute.xlu1 %2716 }
 0x1a5   : > { %v4884_v62 = vadd.f32 %v4868_v41, %v4852_v55  ;;  %v7430_v34 = vmul.f32 %v7295_v4, %v11780_v17  ;;  %v7434_v23 = vmul.f32 %v7300_v50, %v11780_v17  ;;  %v4853_v20 = vmul.f32 %v7300_v50, %v6958_v60 }
 0x1a6   : > { %v2618_v32 = vadd.f32 %v2602_v29, %v2538_v21  ;;  %v3213_v63 = vrot.slane %v3212_v12, 1  ;;  %v3222_v26 = vrot.slane %v3221_v37, 1  ;;  %v3231_v16 = vrot.slane %v3230_v22, 1 }
 0x1a7   : > { %11795 = vst [vmem:[#allocation40_spill] sm:$0xff] %v7430_v34  ;;  %11796 = vst [vmem:[#allocation79_spill] sm:$0xff] %v7434_v23  ;;  %v7440_v35 = vsel %vm7417_vm11, %v3236_v24, %v3237_v51  ;;  %v2682_v5 = vmul.f32 %v11794_v14, %v2650_v54  ;;  %v2695_v4 = vadd.f32 %v2679_v40, %v2615_v47  ;;  %v4958_v17 = vrot.slane %v4882_v3, 4 }
 0x1a8   : > { %v2696_v8 = vadd.f32 %v2680_v27, %v2616_v1  ;;  %v2697_v55 = vadd.f32 %v2681_v61, %v2617_v45  ;;  %v7443_v31 = vadd.f32 %v4869_v43, %v4853_v20  ;;  %v4964_v52 = vrot.slane %v4883_v28, 4 }
 0x1a9   : > { %v4970_v30 = vrot.slane %v4884_v62, 4  ;;  %v2698_v60 = vadd.f32 %v2682_v5, %v2618_v32  ;;  %v2739_v21 = vmul.f32 %v2717_v11, %v2695_v4  ;;  %vm7445_vm12 = vcmp.lt.s32.totalorder %v3212_v12, %v3213_v63 }
 0x1aa   : > { %v2740_v29 = vmul.f32 %v2717_v11, %v2696_v8  ;;  %v2741_v50 = vmul.f32 %v2717_v11, %v2697_v55  ;;  %vm7449_vm13 = vcmp.lt.s32.totalorder %v3221_v37, %v3222_v26  ;;  %vm7453_vm14 = vcmp.lt.s32.totalorder %v3230_v22, %v3231_v16 }
 0x1ab   : > { %v3240_v40 = vrot.slane %v7440_v35, 1  ;;  %v2742_v1 = vmul.f32 %v2717_v11, %v2698_v60  ;;  %v2755_v45 = vmax.f32 %v2739_v21, 0.0  ;;  %v7458_v51 = vadd.f32 %v4958_v17, %v4882_v3 }
 0x1ac   : > { %v2756_v27 = vmax.f32 %v2740_v29, 0.0  ;;  %v2757_v54 = vmax.f32 %v2741_v50, 0.0  ;;  %v7460_v24 = vadd.f32 %v4964_v52, %v4883_v28  ;;  %v7462_v58 = vadd.f32 %v4970_v30, %v4884_v62  ;;  %v11808_v29 = vld [vmem:[#allocation110_spill] sm:$0xff] }
 0x1ad   : > { %11803 = vst [vmem:[#allocation45_spill] sm:$0xff] %v7458_v51  ;;  %v2758_v41 = vmax.f32 %v2742_v1, 0.0  ;;  %v7465_v61 = vmin.f32 %v2755_v45, 1.0  ;;  %v7473_v32 = vsel %vm7445_vm12, %v3212_v12, %v3213_v63  ;;  %v7477_v3 = vsel %vm7449_vm13, %v3221_v37, %v3222_v26 }
 0x1ae   : > { %11804 = vst [vmem:[#allocation72_spill] sm:$0xff] %v7460_v24  ;;  %11805 = vst [vmem:[#allocation80_spill] sm:$0xff] %v7462_v58  ;;  %v7467_v43 = vmin.f32 %v2756_v27, 1.0  ;;  %v7469_v20 = vmin.f32 %v2757_v54, 1.0  ;;  %v7481_v28 = vsel %vm7453_vm14, %v3230_v22, %v3231_v16  ;;  %vm7484_vm15 = vcmp.lt.s32.totalorder %v7440_v35, %v3240_v40 }
 0x1af   : > { %v7488_v11 = vmin.f32 %v2758_v41, 1.0  ;;  %v2787_v5 = vmul.f32 %v7465_v61, %v11787_v44  ;;  %v2851_v22 = vmul.f32 %v7465_v61, %v11788_v57  ;;  %v2931_v16 = vmul.f32 %v7465_v61, %v11794_v14 }
 0x1b0   : > { %v2788_v12 = vmul.f32 %v7467_v43, %v11787_v44  ;;  %v2789_v37 = vmul.f32 %v7469_v20, %v11787_v44  ;;  %v2852_v63 = vmul.f32 %v7467_v43, %v11788_v57  ;;  %v2853_v26 = vmul.f32 %v7469_v20, %v11788_v57 }
 0x1b1   : > { %v2790_v4 = vmul.f32 %v7488_v11, %v11787_v44  ;;  %v2803_v8 = vadd.f32 %v2787_v5, %v11785_v6  ;;  %v2854_v52 = vmul.f32 %v7488_v11, %v11788_v57  ;;  %v2867_v30 = vadd.f32 %v2851_v22, %v11786_v13 }
 0x1b2   : > { %v2804_v55 = vadd.f32 %v2788_v12, %v11785_v6  ;;  %v2805_v17 = vadd.f32 %v2789_v37, %v11785_v6  ;;  %v2868_v60 = vadd.f32 %v2852_v63, %v11786_v13  ;;  %v2869_v21 = vadd.f32 %v2853_v26, %v11786_v13 }
 0x1b3   : > { %vm3479_vm0 = vcmp.ne.f32.partialorder %v7140_v49, %v7140_v49  ;;  %vm3480_vm1 = vcmp.ne.f32.partialorder %v7153_v59, %v7153_v59  ;;  %vm3481_vm2 = vcmp.ne.f32.partialorder %v11808_v29, %v11808_v29  ;;  %vm3482_vm3 = vcmp.ne.f32.partialorder %v7160_v36, %v7160_v36 }
 0x1b4   : > { %v2806_v50 = vadd.f32 %v2790_v4, %v11785_v6  ;;  %v2819_v39 = vsub.f32 %v11705_v38, %v2803_v8  ;;  %v2820_v2 = vsub.f32 %v11707_v18, %v2804_v55  ;;  %v2821_v47 = vsub.f32 %v11708_v19, %v2805_v17 }
 0x1b5   : > { %v2870_v1 = vadd.f32 %v2854_v52, %v11786_v13  ;;  %v2883_v45 = vsub.f32 %v11757_v33, %v2867_v30  ;;  %v2884_v27 = vsub.f32 %v11702_v25, %v2868_v60  ;;  %v2885_v54 = vsub.f32 %v11703_v7, %v2869_v21 }
 0x1b6   : > { %v2822_v41 = vsub.f32 %v11709_v53, %v2806_v50  ;;  %v2835_v5 = vmul.f32 %v2819_v39, %v2819_v39  ;;  %v2836_v12 = vmul.f32 %v2820_v2, %v2820_v2  ;;  %v2837_v37 = vmul.f32 %v2821_v47, %v2821_v47 }
 0x1b7   : > { %v2886_v22 = vsub.f32 %v11706_v0, %v2870_v1  ;;  %v2899_v63 = vmul.f32 %v2883_v45, %v2883_v45  ;;  %v2900_v26 = vmul.f32 %v2884_v27, %v2884_v27  ;;  %v2901_v4 = vmul.f32 %v2885_v54, %v2885_v54  ;;  %v11810_v54 = vld [vmem:[#allocation31_spill] sm:$0xff] }
 0x1b8   : > { %v2838_v8 = vmul.f32 %v2822_v41, %v2822_v41  ;;  %v2932_v55 = vmul.f32 %v7467_v43, %v11794_v14  ;;  %v2933_v17 = vmul.f32 %v7469_v20, %v11794_v14  ;;  %v2934_v52 = vmul.f32 %v7488_v11, %v11794_v14 }
 0x1b9   : > { %v3242_v30 = vsel %vm7484_vm15, %v7440_v35, %v3240_v40  ;;  %vm3319_vm4 = vcmp.eq.s32.totalorder %v7349_v9, %v7473_v32  ;;  %vm3320_vm5 = vcmp.eq.s32.totalorder %v7352_v10, %v7477_v3  ;;  %v2902_v60 = vmul.f32 %v2886_v22, %v2886_v22  ;;  %v11809_v40 = vld [vmem:[#allocation30_spill] sm:$0xff] }
 0x1ba   : > { %v2947_v21 = vadd.f32 %v2931_v16, %v11789_v15  ;;  %v2948_v50 = vadd.f32 %v2932_v55, %v11789_v15  ;;  %v2949_v39 = vadd.f32 %v2933_v17, %v11789_v15  ;;  %v2950_v2 = vadd.f32 %v2934_v52, %v11789_v15  ;;  %v11811_v16 = vld [vmem:[#allocation132_spill] sm:$0xff]  ;;  %v11812_v55 = vld [vmem:[#allocation133_spill] sm:$0xff] }
 0x1bb   : > { %v2915_v47 = vadd.f32 %v2899_v63, %v2835_v5  ;;  %v2916_v1 = vadd.f32 %v2900_v26, %v2836_v12  ;;  %v2917_v45 = vadd.f32 %v2901_v4, %v2837_v37  ;;  %v2918_v62 = vadd.f32 %v2902_v60, %v2838_v8 }
 0x1bc   : > { %v2963_v35 = vsub.f32 %v11715_v48, %v2947_v21  ;;  %v2964_v27 = vsub.f32 %v11809_v40, %v2948_v50  ;;  %v2965_v41 = vsub.f32 %v11810_v54, %v2949_v39  ;;  %v2966_v22 = vsub.f32 %v11718_v42, %v2950_v2 }
 0x1bd   : > { %vm3321_vm6 = vcmp.eq.s32.totalorder %v11811_v16, %v7481_v28  ;;  %vm3322_vm7 = vcmp.eq.s32.totalorder %v11812_v55, %v3242_v30  ;;  %v11813_v17 = vmov 0.0   ;;  %v3495_v8 = vsel %vm3479_vm0, 0.0, %v7140_v49 }
 0x1be   : > { %v7560_v5 = vsel %vm3319_vm4, 1.0, %v11813_v17  ;;  %v7566_v12 = vsel %vm3320_vm5, 1.0, %v11813_v17  ;;  %v2979_v37 = vmul.f32 %v2963_v35, %v2963_v35  ;;  %v2980_v63 = vmul.f32 %v2964_v27, %v2964_v27  ;;  %v11814_v27 = vld [vmem:[#allocation39_spill] sm:$0xff] }
 0x1bf   : > { %v2981_v26 = vmul.f32 %v2965_v41, %v2965_v41  ;;  %v2982_v4 = vmul.f32 %v2966_v22, %v2966_v22  ;;  %v3496_v9 = vsel %vm3480_vm1, 0.0, %v7153_v59  ;;  %v3497_v10 = vsel %vm3481_vm2, 0.0, %v11808_v29  ;;  %v11815_v22 = vld [vmem:[#allocation103_spill] sm:$0xff] }
 0x1c0   : > { %v3498_v32 = vsel %vm3482_vm3, 0.0, %v7160_v36  ;;  %v2995_v3 = vadd.f32 %v2979_v37, %v2915_v47  ;;  %v2996_v52 = vadd.f32 %v2980_v63, %v2916_v1  ;;  %v7588_v49 = vsel %vm3321_vm6, 1.0, %v11813_v17 }
 0x1c1   : > { %v2997_v60 = vadd.f32 %v2981_v26, %v2917_v45  ;;  %v2998_v21 = vadd.f32 %v2982_v4, %v2918_v62  ;;  %v7593_v59 = vsel %vm3322_vm7, 1.0, %v11813_v17  ;;  %v7596_v29 = vmul.f32 %v7560_v5, %v3495_v8 }
 0x1c2   : > { %v7599_v36 = vmul.f32 %v7566_v12, %v3496_v9  ;;  %vm3011_vm8 = vcmp.ne.f32.partialorder %v2995_v3, %v2995_v3  ;;  %vm3012_vm9 = vcmp.ne.f32.partialorder %v2996_v52, %v2996_v52  ;;  %v7602_v62 = vmul.f32 %v7588_v49, %v3497_v10 }
 0x1c3   : > { %vm3013_vm10 = vcmp.ne.f32.partialorder %v2997_v60, %v2997_v60  ;;  %vm3014_vm11 = vcmp.ne.f32.partialorder %v2998_v21, %v2998_v21  ;;  %v3027_v50 = vsel %vm3011_vm8, inf, %v2995_v3  ;;  %v3028_v39 = vsel %vm3012_vm9, inf, %v2996_v52 }
 0x1c4   : > { %v3029_v28 = vsel %vm3013_vm10, inf, %v2997_v60  ;;  %v3030_v2 = vsel %vm3014_vm11, inf, %v2998_v21  ;;  %v3043_v47 = vrot.slane %v3027_v50, 4  ;;  %v3049_v1 = vrot.slane %v3028_v39, 4 }
 0x1c5   : > { %v3055_v45 = vrot.slane %v3029_v28, 4  ;;  %v3061_v30 = vrot.slane %v3030_v2, 4  ;;  %v7605_v35 = vmul.f32 %v7593_v59, %v3498_v32  ;;  %v4842_v41 = vmul.f32 %v7560_v5, %v11814_v27 }
 0x1c6   : > { %v4858_v16 = vmul.f32 %v7596_v29, %v11815_v22  ;;  %v3044_v55 = vmin.f32 %v3027_v50, %v3043_v47  ;;  %v3050_v37 = vmin.f32 %v3028_v39, %v3049_v1  ;;  %v7613_v4 = vmul.f32 %v7566_v12, %v11814_v27 }
 0x1c7   : > { %v3056_v63 = vmin.f32 %v3029_v28, %v3055_v45  ;;  %v3062_v26 = vmin.f32 %v3030_v2, %v3061_v30  ;;  %v7617_v8 = vmul.f32 %v7588_v49, %v11814_v27  ;;  %v7621_v9 = vmul.f32 %v7593_v59, %v11814_v27  ;;  %v11816_v45 = vld [vmem:[#allocation70_spill] sm:$0xff] }
 0x1c8   : > { %v7625_v10 = vmul.f32 %v7599_v36, %v11815_v22  ;;  %v3045_v32 = vrot.slane %v3044_v55, 2  ;;  %v3051_v3 = vrot.slane %v3050_v37, 2  ;;  %v7629_v21 = vmul.f32 %v7602_v62, %v11815_v22 }
 0x1c9   : > { %v3057_v52 = vrot.slane %v3056_v63, 2  ;;  %v3063_v60 = vrot.slane %v3062_v26, 2  ;;  %v7633_v47 = vmul.f32 %v7605_v35, %v11815_v22  ;;  %v7635_v1 = vadd.f32 %v4858_v16, %v4842_v41 }
 0x1ca   : > { %v3863_v30 = vmul.f32 %v7560_v5, %v11816_v45  ;;  %v3046_v27 = vmin.f32 %v3044_v55, %v3045_v32  ;;  %v3052_v56 = vmin.f32 %v3050_v37, %v3051_v3  ;;  %vm3475_vm12 = vcmp.ne.f32.partialorder %v7465_v61, %v7465_v61  ;;  %v11817_v55 = vld [vmem:[#allocation81_spill] sm:$0xff] }
 0x1cb   : > { %v3058_v58 = vmin.f32 %v3056_v63, %v3057_v52  ;;  %v3064_v24 = vmin.f32 %v3062_v26, %v3063_v60  ;;  %v3864_v51 = vmul.f32 %v7566_v12, %v11816_v45  ;;  %v3865_v23 = vmul.f32 %v7588_v49, %v11816_v45 }
 0x1cc   : > { %v3866_v41 = vmul.f32 %v7593_v59, %v11816_v45  ;;  %v3047_v22 = vrot.slane %v3046_v27, 1  ;;  %v3053_v16 = vrot.slane %v3052_v56, 1  ;;  %v3879_v37 = vmul.f32 %v7596_v29, %v11817_v55 }
 0x1cd   : > { %v3059_v34 = vrot.slane %v3058_v58, 1  ;;  %v3065_v46 = vrot.slane %v3064_v24, 1  ;;  %v3880_v63 = vmul.f32 %v7599_v36, %v11817_v55  ;;  %v3881_v26 = vmul.f32 %v7602_v62, %v11817_v55 }
 0x1ce   : > { %v3882_v32 = vmul.f32 %v7605_v35, %v11817_v55  ;;  %v7655_v3 = vmin.f32 %v3046_v27, %v3047_v22  ;;  %v7657_v52 = vmin.f32 %v3052_v56, %v3053_v16  ;;  %vm3476_vm13 = vcmp.ne.f32.partialorder %v7467_v43, %v7467_v43 }
 0x1cf   : > { %v7659_v60 = vmin.f32 %v3058_v58, %v3059_v34  ;;  %v7661_v45 = vmin.f32 %v3064_v24, %v3065_v46  ;;  %vm3477_vm14 = vcmp.ne.f32.partialorder %v7469_v20, %v7469_v20  ;;  %vm3478_vm15 = vcmp.ne.f32.partialorder %v7488_v11, %v7488_v11  ;;  %v11822_v46 = vld [vmem:[#allocation8_spill] sm:$0xff] }
 0x1d0   : > { %11818 = vst [vmem:[#allocation78_spill] sm:$0xff] %v7655_v3  ;;  %11819 = vst [vmem:[#allocation110_spill] sm:$0xff] %v7657_v52  ;;  %v7673_v27 = vsel %vm3475_vm12, 0.0, %v7465_v61  ;;  %vm3139_vm0 = vcmp.eq.f32.partialorder %v3027_v50, %v7655_v3  ;;  %vm3140_vm1 = vcmp.eq.f32.partialorder %v3028_v39, %v7657_v52  ;;  %v3492_v50 = vsel %vm3476_vm13, 0.0, %v7467_v43 }
 0x1d1   : > { %11820 = vst [vmem:[#allocation132_spill] sm:$0xff] %v7659_v60  ;;  %11821 = vst [vmem:[#allocation133_spill] sm:$0xff] %v7661_v45  ;;  %vm3141_vm2 = vcmp.eq.f32.partialorder %v3029_v28, %v7659_v60  ;;  %vm3142_vm3 = vcmp.eq.f32.partialorder %v3030_v2, %v7661_v45  ;;  %v3155_v34 = vsel %vm3139_vm0, %v11822_v46, 8  ;;  %v3156_v24 = vsel %vm3140_vm1, %v11822_v46, 8 }
 0x1d2   : > { %v3157_v58 = vsel %vm3141_vm2, %v11822_v46, 8  ;;  %v3158_v56 = vsel %vm3142_vm3, %v11822_v46, 8  ;;  %v3171_v22 = vrot.slane %v3155_v34, 4  ;;  %v3180_v16 = vrot.slane %v3156_v24, 4 }
 0x1d3   : > { %v3189_v61 = vrot.slane %v3157_v58, 4  ;;  %v3198_v55 = vrot.slane %v3158_v56, 4  ;;  %v3493_v39 = vsel %vm3477_vm14, 0.0, %v7469_v20  ;;  %v3494_v28 = vsel %vm3478_vm15, 0.0, %v7488_v11 }
 0x1d4   : > { %v3895_v2 = vadd.f32 %v3879_v37, %v3863_v30  ;;  %vm3172_vm4 = vcmp.lt.s32.totalorder %v3155_v34, %v3171_v22  ;;  %vm3181_vm5 = vcmp.lt.s32.totalorder %v3156_v24, %v3180_v16  ;;  %v3896_v40 = vadd.f32 %v3880_v63, %v3864_v51 }
 0x1d5   : > { %vm3190_vm6 = vcmp.lt.s32.totalorder %v3157_v58, %v3189_v61  ;;  %vm3199_vm7 = vcmp.lt.s32.totalorder %v3158_v56, %v3198_v55  ;;  %v3173_v45 = vsel %vm3172_vm4, %v3155_v34, %v3171_v22  ;;  %v3182_v60 = vsel %vm3181_vm5, %v3156_v24, %v3180_v16 }
 0x1d6   : > { %v3191_v52 = vsel %vm3190_vm6, %v3157_v58, %v3189_v61  ;;  %v3200_v3 = vsel %vm3199_vm7, %v3158_v56, %v3198_v55  ;;  %v3174_v43 = vrot.slane %v3173_v45, 2  ;;  %v3183_v46 = vrot.slane %v3182_v60, 2 }
 0x1d7   : > { %v3192_v42 = vrot.slane %v3191_v52, 2  ;;  %v3201_v54 = vrot.slane %v3200_v3, 2  ;;  %v3897_v20 = vadd.f32 %v3881_v26, %v3865_v23  ;;  %v3898_v48 = vadd.f32 %v3882_v32, %v3866_v41 }
 0x1d8   : > { %v3931_v0 = vrot.slane %v3895_v2, 4  ;;  %vm3175_vm8 = vcmp.lt.s32.totalorder %v3173_v45, %v3174_v43  ;;  %vm3184_vm9 = vcmp.lt.s32.totalorder %v3182_v60, %v3183_v46  ;;  %v3937_v33 = vrot.slane %v3896_v40, 4 }
 0x1d9   : > { %vm3193_vm10 = vcmp.lt.s32.totalorder %v3191_v52, %v3192_v42  ;;  %vm3202_vm11 = vcmp.lt.s32.totalorder %v3200_v3, %v3201_v54  ;;  %v3176_v11 = vsel %vm3175_vm8, %v3173_v45, %v3174_v43  ;;  %v3185_v30 = vsel %vm3184_vm9, %v3182_v60, %v3183_v46 }
 0x1da   : > { %v3194_v37 = vsel %vm3193_vm10, %v3191_v52, %v3192_v42  ;;  %v3203_v7 = vsel %vm3202_vm11, %v3200_v3, %v3201_v54  ;;  %v3177_v22 = vrot.slane %v3176_v11, 1  ;;  %v3186_v16 = vrot.slane %v3185_v30, 1 }
 0x1db   : > { %v3195_v61 = vrot.slane %v3194_v37, 1  ;;  %v3204_v55 = vrot.slane %v3203_v7, 1  ;;  %v3932_v25 = vadd.f32 %v3931_v0, %v3895_v2  ;;  %v3943_v53 = vrot.slane %v3897_v20, 4 }
 0x1dc   : > { %v3949_v19 = vrot.slane %v3898_v48, 4  ;;  %vm3178_vm12 = vcmp.lt.s32.totalorder %v3176_v11, %v3177_v22  ;;  %vm3187_vm13 = vcmp.lt.s32.totalorder %v3185_v30, %v3186_v16  ;;  %v7722_v60 = vadd.f32 %v7625_v10, %v7613_v4 }
 0x1dd   : > { %vm3196_vm14 = vcmp.lt.s32.totalorder %v3194_v37, %v3195_v61  ;;  %vm3205_vm15 = vcmp.lt.s32.totalorder %v3203_v7, %v3204_v55  ;;  %v3179_v23 = vsel %vm3178_vm12, %v3176_v11, %v3177_v22  ;;  %v3188_v51 = vsel %vm3187_vm13, %v3185_v30, %v3186_v16 }
 0x1de   : > { %v3197_v41 = vsel %vm3196_vm14, %v3194_v37, %v3195_v61  ;;  %v3206_v63 = vsel %vm3205_vm15, %v3203_v7, %v3204_v55  ;;  %vm3315_vm0 = vcmp.eq.s32.totalorder %v3155_v34, %v3179_v23  ;;  %vm3316_vm1 = vcmp.eq.s32.totalorder %v3156_v24, %v3188_v51  ;;  %11823 = vst [vmem:[#allocation39_spill] sm:$0xff] %v7722_v60  ;;  %v11828_v37 = vld [vmem:[#allocation52_spill] sm:$0xff]  ;;  %v11829_v61 = vld [vmem:[#allocation9_spill] sm:$0xff] }
 0x1df   : > { %vm3317_vm2 = vcmp.eq.s32.totalorder %v3157_v58, %v3197_v41  ;;  %vm3318_vm3 = vcmp.eq.s32.totalorder %v3158_v56, %v3206_v63  ;;  %v7696_v42 = vsel %vm3315_vm0, 1.0, %v11813_v17  ;;  %v7699_v0 = vsel %vm3316_vm1, 1.0, %v11813_v17 }
 0x1e0   : > { %v7702_v54 = vsel %vm3317_vm2, 1.0, %v11813_v17  ;;  %v7705_v26 = vsel %vm3318_vm3, 1.0, %v11813_v17  ;;  %v7709_v32 = vmul.f32 %v7696_v42, %v7673_v27  ;;  %v7712_v7 = vmul.f32 %v7699_v0, %v3492_v50 }
 0x1e1   : > { %v7715_v3 = vmul.f32 %v7702_v54, %v3493_v39  ;;  %v7718_v52 = vmul.f32 %v7705_v26, %v3494_v28  ;;  %v7726_v45 = vadd.f32 %v7629_v21, %v7617_v8  ;;  %v7730_v27 = vadd.f32 %v7633_v47, %v7621_v9 }
 0x1e2   : > { %v3938_v46 = vadd.f32 %v3937_v33, %v3896_v40  ;;  %v3875_v34 = vmul.f32 %v7709_v32, %v11787_v44  ;;  %v3876_v24 = vmul.f32 %v7712_v7, %v11787_v44  ;;  %v3859_v8 = vmul.f32 %v7696_v42, %v11785_v6 }
 0x1e3   : > { %11824 = vst [vmem:[#allocation103_spill] sm:$0xff] %v7726_v45  ;;  %11825 = vst [vmem:[#allocation70_spill] sm:$0xff] %v7730_v27  ;;  %v3877_v58 = vmul.f32 %v7715_v3, %v11787_v44  ;;  %v3878_v4 = vmul.f32 %v7718_v52, %v11787_v44  ;;  %v3933_v10 = vrot.slane %v3932_v25, 2  ;;  %v3944_v21 = vadd.f32 %v3943_v53, %v3897_v20 }
 0x1e4   : > { %v3950_v9 = vadd.f32 %v3949_v19, %v3898_v48  ;;  %v11826_v33 = vrot.slane %v7443_v31, 4  ;;  %v3860_v47 = vmul.f32 %v7699_v0, %v11785_v6  ;;  %v3861_v56 = vmul.f32 %v7702_v54, %v11785_v6 }
 0x1e5   : > { %v3862_v44 = vmul.f32 %v7705_v26, %v11785_v6  ;;  %v3891_v19 = vadd.f32 %v3875_v34, %v3859_v8  ;;  %v7757_v43 = vadd.f32 %v3933_v10, %v3932_v25  ;;  %v3939_v20 = vrot.slane %v3938_v46, 2 }
 0x1e6   : > { %v7745_v40 = vadd.f32 %v11826_v33, %v7443_v31  ;;  %v3892_v31 = vadd.f32 %v3876_v24, %v3860_v47  ;;  %v3893_v28 = vadd.f32 %v3877_v58, %v3861_v56  ;;  %v3945_v11 = vrot.slane %v3944_v21, 2 }
 0x1e7   : > { %v3894_v2 = vadd.f32 %v3878_v4, %v3862_v44  ;;  %v3951_v30 = vrot.slane %v3950_v9, 2  ;;  %v4370_v6 = vmul.f32 %v7560_v5, %v11828_v37  ;;  %v4382_v22 = vmul.f32 %v7709_v32, %v11788_v57 }
 0x1e8   : > { %11827 = vst [vmem:[#allocation81_spill] sm:$0xff] %v7745_v40  ;;  %v4383_v16 = vmul.f32 %v7712_v7, %v11788_v57  ;;  %v4386_v55 = vmul.f32 %v7596_v29, %v11829_v61  ;;  %v3907_v23 = vrot.slane %v3891_v19, 4  ;;  %v4366_v25 = vmul.f32 %v7696_v42, %v11786_v13 }
 0x1e9   : > { %v4384_v51 = vmul.f32 %v7715_v3, %v11788_v57  ;;  %v4385_v41 = vmul.f32 %v7718_v52, %v11788_v57  ;;  %v3913_v5 = vrot.slane %v3892_v31, 4  ;;  %v3919_v63 = vrot.slane %v3893_v28, 4 }
 0x1ea   : > { %v3925_v34 = vrot.slane %v3894_v2, 4  ;;  %v4367_v24 = vmul.f32 %v7699_v0, %v11786_v13  ;;  %v4368_v58 = vmul.f32 %v7702_v54, %v11786_v13  ;;  %v4369_v29 = vmul.f32 %v7705_v26, %v11786_v13 }
 0x1eb   : > { %v4387_v4 = vmul.f32 %v7599_v36, %v11829_v61  ;;  %v4388_v8 = vmul.f32 %v7602_v62, %v11829_v61  ;;  %v4371_v57 = vmul.f32 %v7566_v12, %v11828_v37  ;;  %v4372_v10 = vmul.f32 %v7588_v49, %v11828_v37 }
 0x1ec   : > { %v4398_v33 = vadd.f32 %v4382_v22, %v4366_v25  ;;  %v4399_v47 = vadd.f32 %v4383_v16, %v4367_v24  ;;  %v3908_v56 = vadd.f32 %v3907_v23, %v3891_v19  ;;  %v4389_v44 = vmul.f32 %v7605_v35, %v11829_v61 }
 0x1ed   : > { %v4400_v48 = vadd.f32 %v4384_v51, %v4368_v58  ;;  %v4401_v13 = vadd.f32 %v4385_v41, %v4369_v29  ;;  %v3914_v53 = vadd.f32 %v3913_v5, %v3892_v31  ;;  %v3920_v39 = vadd.f32 %v3919_v63, %v3893_v28 }
 0x1ee   : > { %v3926_v36 = vadd.f32 %v3925_v34, %v3894_v2  ;;  %v4402_v50 = vadd.f32 %v4386_v55, %v4370_v6  ;;  %v3940_v40 = vadd.f32 %v3939_v20, %v3938_v46  ;;  %v4373_v62 = vmul.f32 %v7593_v59, %v11828_v37 }
 0x1ef   : > { %v4403_v12 = vadd.f32 %v4387_v4, %v4371_v57  ;;  %v4404_v27 = vadd.f32 %v4388_v8, %v4372_v10  ;;  %v3946_v45 = vadd.f32 %v3945_v11, %v3944_v21  ;;  %v3952_v49 = vadd.f32 %v3951_v30, %v3950_v9 }
 0x1f0   : > { %v4414_v22 = vrot.slane %v4398_v33, 4  ;;  %v4420_v16 = vrot.slane %v4399_v47, 4  ;;  %v3909_v19 = vrot.slane %v3908_v56, 2  ;;  %v4405_v23 = vadd.f32 %v4389_v44, %v4373_v62 }
 0x1f1   : > { %v4426_v25 = vrot.slane %v4400_v48, 4  ;;  %v4432_v35 = vrot.slane %v4401_v13, 4  ;;  %v3915_v61 = vrot.slane %v3914_v53, 2  ;;  %v3921_v51 = vrot.slane %v3920_v39, 2 }
 0x1f2   : > { %v3927_v31 = vrot.slane %v3926_v36, 2  ;;  %v4438_v28 = vrot.slane %v4402_v50, 4  ;;  %v3935_v2 = vrot.slane %v7757_v43, 1  ;;  %v3941_v46 = vrot.slane %v3940_v40, 1 }
 0x1f3   : > { %v4444_v20 = vrot.slane %v4403_v12, 4  ;;  %v4450_v6 = vrot.slane %v4404_v27, 4  ;;  %v3947_v59 = vrot.slane %v3946_v45, 1  ;;  %v3953_v37 = vrot.slane %v3952_v49, 1 }
 0x1f4   : > { %v4415_v55 = vadd.f32 %v4414_v22, %v4398_v33  ;;  %v4421_v21 = vadd.f32 %v4420_v16, %v4399_v47  ;;  %v3910_v9 = vadd.f32 %v3909_v19, %v3908_v56  ;;  %v4427_v11 = vadd.f32 %v4426_v25, %v4400_v48 }
 0x1f5   : > { %v4433_v30 = vadd.f32 %v4432_v35, %v4401_v13  ;;  %v4456_v41 = vrot.slane %v4405_v23, 4  ;;  %v3916_v5 = vadd.f32 %v3915_v61, %v3914_v53  ;;  %v3922_v63 = vadd.f32 %v3921_v51, %v3920_v39 }
 0x1f6   : > { %v3928_v34 = vadd.f32 %v3927_v31, %v3926_v36  ;;  %v4439_v24 = vadd.f32 %v4438_v28, %v4402_v50  ;;  %v3936_v58 = vadd.f32 %v3935_v2, %v7757_v43  ;;  %v3942_v29 = vadd.f32 %v3941_v46, %v3940_v40 }
 0x1f7   : > { %v4445_v4 = vadd.f32 %v4444_v20, %v4403_v12  ;;  %v4451_v8 = vadd.f32 %v4450_v6, %v4404_v27  ;;  %v3948_v57 = vadd.f32 %v3947_v59, %v3946_v45  ;;  %v3954_v10 = vadd.f32 %v3953_v37, %v3952_v49 }
 0x1f8   : > { %v4416_v44 = vrot.slane %v4415_v55, 2  ;;  %v4422_v62 = vrot.slane %v4421_v21, 2  ;;  %v3911_v60 = vrot.slane %v3910_v9, 1  ;;  %v4428_v33 = vrot.slane %v4427_v11, 2 }
 0x1f9   : > { %v4434_v47 = vrot.slane %v4433_v30, 2  ;;  %v4457_v56 = vadd.f32 %v4456_v41, %v4405_v23  ;;  %v3917_v48 = vrot.slane %v3916_v5, 1  ;;  %v3923_v13 = vrot.slane %v3922_v63, 1 }
 0x1fa   : > { %v3929_v22 = vrot.slane %v3928_v34, 1  ;;  %v4440_v53 = vrot.slane %v4439_v24, 2  ;;  %vm11392_vm4 = vcmask 1041409   ;;  %v4446_v39 = vrot.slane %v4445_v4, 2 }
 0x1fb   : > { %v4452_v50 = vrot.slane %v4451_v8, 2  ;;  %v4854_v40 = vmul.f32 %v7709_v32, %v11794_v14  ;;  %v4855_v45 = vmul.f32 %v7712_v7, %v11794_v14  ;;  %v4417_v27 = vadd.f32 %v4416_v44, %v4415_v55 }
 0x1fc   : > { %v4423_v43 = vadd.f32 %v4422_v62, %v4421_v21  ;;  %v4856_v36 = vmul.f32 %v7715_v3, %v11794_v14  ;;  %v4857_v12 = vmul.f32 %v7718_v52, %v11794_v14  ;;  %v4429_v49 = vadd.f32 %v4428_v33, %v4427_v11 }
 0x1fd   : > { %v4458_v16 = vrot.slane %v4457_v56, 2  ;;  %v4838_v19 = vmul.f32 %v7696_v42, %v11789_v15  ;;  %v4839_v23 = vmul.f32 %v7699_v0, %v11789_v15  ;;  %v4435_v32 = vadd.f32 %v4434_v47, %v4433_v30  ;;  %v2731_v47 = vpop.permute.xlu1 %2730 }
 0x1fe   : > { %v4441_v25 = vadd.f32 %v4440_v53, %v4439_v24  ;;  %v4840_v7 = vmul.f32 %v7702_v54, %v11789_v15  ;;  %v4841_v35 = vmul.f32 %v7705_v26, %v11789_v15  ;;  %v4447_v3 = vadd.f32 %v4446_v39, %v4445_v4 }
 0x1ff   : > { %v4453_v61 = vadd.f32 %v4452_v50, %v4451_v8  ;;  %v4870_v51 = vadd.f32 %v4854_v40, %v4838_v19  ;;  %v4871_v14 = vadd.f32 %v4855_v45, %v4839_v23  ;;  %v3912_v52 = vadd.f32 %v3911_v60, %v3910_v9  ;;  %v11834_v50 = vld [vmem:[#allocation21_spill] sm:$0xff]  ;;  %v11839_v23 = vld [vmem:[#allocation23_spill] sm:$0xff] }
 0x200   : > { %v3918_v31 = vadd.f32 %v3917_v48, %v3916_v5  ;;  %v4872_v28 = vadd.f32 %v4856_v36, %v4840_v7  ;;  %v4873_v2 = vadd.f32 %v4857_v12, %v4841_v35  ;;  %v3924_v42 = vadd.f32 %v3923_v13, %v3922_v63  ;;  %v11831_v48 = vld [vmem:[#allocation18_spill] sm:$0xff]  ;;  %v11837_v36 = vld [vmem:[#allocation87_spill] sm:$0xff]  ;;  %v11838_v19 = vld [vmem:[#allocation73_spill] sm:$0xff] }
 0x201   : > { %v4418_v46 = vrot.slane %v4417_v27, 1  ;;  %v4424_v20 = vrot.slane %v4423_v43, 1  ;;  %v4459_v0 = vadd.f32 %v4458_v16, %v4457_v56  ;;  %v3930_v6 = vadd.f32 %v3929_v22, %v3928_v34  ;;  %v11841_v35 = vld [vmem:[#allocation25_spill] sm:$0xff] }
 0x202   : > { %v4430_v59 = vrot.slane %v4429_v49, 1  ;;  %v4436_v37 = vrot.slane %v4435_v32, 1  ;;  %v4442_v55 = vrot.slane %v4441_v25, 1  ;;  %v4448_v54 = vrot.slane %v4447_v3, 1 }
 0x203   : > { %v4454_v21 = vrot.slane %v4453_v61, 1  ;;  %v4886_v11 = vrot.slane %v4870_v51, 4  ;;  %v4892_v15 = vrot.slane %v4871_v14, 4  ;;  %v7810_v26 = vsel %vm11392_vm4, %v3936_v58, %v3912_v52  ;;  %v11843_v52 = vld [vmem:[#allocation92_spill] sm:$0xff] }
 0x204   : > { %v7813_v60 = vsel %vm11392_vm4, %v3942_v29, %v3918_v31  ;;  %v4898_v9 = vrot.slane %v4872_v28, 4  ;;  %v4904_v30 = vrot.slane %v4873_v2, 4  ;;  %v7816_v41 = vsel %vm11392_vm4, %v3948_v57, %v3924_v42  ;;  %v11844_v31 = vld [vmem:[#allocation29_spill] sm:$0xff] }
 0x205   : > { %v4419_v5 = vadd.f32 %v4418_v46, %v4417_v27  ;;  %v4425_v63 = vadd.f32 %v4424_v20, %v4423_v43  ;;  %v4460_v34 = vrot.slane %v4459_v0, 1  ;;  %v7819_v24 = vsel %vm11392_vm4, %v3954_v10, %v3930_v6  ;;  %v11836_v27 = vld [vmem:[#allocation22_spill] sm:$0xff] }
 0x206   : > { %11830 = vst [vmem:[#allocation52_spill] sm:$0xff] %v7819_v24  ;;  %v4431_v4 = vadd.f32 %v4430_v59, %v4429_v49  ;;  %v7821_v8 = vadd.f32 %v4436_v37, %v4435_v32  ;;  %v4443_v44 = vadd.f32 %v4442_v55, %v4441_v25  ;;  %v4449_v58 = vadd.f32 %v4448_v54, %v4447_v3  ;;  %v11840_v25 = vld [vmem:[#allocation24_spill] sm:$0xff]  ;;  %v11846_v46 = vld [vmem:[#allocation58_spill] sm:$0xff]  ;;  %v11847_v59 = vld [vmem:[#allocation31_spill] sm:$0xff]  ;;  %v1689_v55 = vpop.permute.xlu1 %1688 }
 0x207   : > { %v4455_v62 = vadd.f32 %v4454_v21, %v4453_v61  ;;  %v7823_v33 = vadd.f32 %v4886_v11, %v4870_v51  ;;  %v7825_v29 = vadd.f32 %v4892_v15, %v4871_v14  ;;  %v7827_v56 = vadd.f32 %v4898_v9, %v4872_v28  ;;  %v11842_v51 = vld [vmem:[#allocation26_spill] sm:$0xff]  ;;  %v11848_v21 = vld [vmem:[#allocation32_spill] sm:$0xff] }
 0x208   : > { %v7829_v57 = vadd.f32 %v4904_v30, %v4873_v2  ;;  %v2507_v13 = vsub.f32 %v11705_v38, %v11831_v48  ;;  %v2508_v10 = vsub.f32 %v11707_v18, %v11831_v48  ;;  %v7835_v22 = vadd.f32 %v4460_v34, %v4459_v0  ;;  %v11845_v2 = vld [vmem:[#allocation30_spill] sm:$0xff] }
 0x209   : > { %v7838_v53 = vsel %vm11392_vm4, %v4443_v44, %v4419_v5  ;;  %v7841_v39 = vsel %vm11392_vm4, %v4449_v58, %v4425_v63  ;;  %v2509_v40 = vsub.f32 %v11834_v50, %v11831_v48  ;;  %v7846_v45 = vsel %vm11392_vm4, %v4455_v62, %v4431_v4  ;;  %v11849_v15 = vld [vmem:[#allocation46_spill] sm:$0xff]  ;;  %v11850_v62 = vld [vmem:[#allocation37_spill] sm:$0xff] }
 0x20a   : > { %11832 = vst [vmem:[#allocation9_spill] sm:$0xff] %v7838_v53  ;;  %11833 = vst [vmem:[#allocation18_spill] sm:$0xff] %v7841_v39  ;;  %v2510_v43 = vsub.f32 %v11836_v27, %v11831_v48  ;;  %v2543_v12 = vmul.f32 %v11837_v36, %v2507_v13  ;;  %v2544_v49 = vmul.f32 %v11837_v36, %v2508_v10  ;;  %v11851_v10 = vld [vmem:[#allocation47_spill] sm:$0xff] }
 0x20b   : > { %11835 = vst [vmem:[#allocation135_spill] sm:$0xff] %v7846_v45  ;;  %v2545_v16 = vmul.f32 %v11837_v36, %v2509_v40  ;;  %v2575_v32 = vsub.f32 %v11839_v23, %v11838_v19  ;;  %v2576_v7 = vsub.f32 %v11840_v25, %v11838_v19  ;;  %v2577_v3 = vsub.f32 %v11841_v35, %v11838_v19  ;;  %v11853_v45 = vld [vmem:[#allocation71_spill] sm:$0xff] }
 0x20c   : > { %v2546_v61 = vmul.f32 %v11837_v36, %v2510_v43  ;;  %v2578_v14 = vsub.f32 %v11842_v51, %v11838_v19  ;;  %v2655_v28 = vsub.f32 %v11844_v31, %v11843_v52  ;;  %v2656_v42 = vsub.f32 %v11845_v2, %v11843_v52 }
 0x20d   : > { %v2607_v20 = vmul.f32 %v11846_v46, %v2575_v32  ;;  %v2608_v0 = vmul.f32 %v11846_v46, %v2576_v7  ;;  %v2609_v6 = vmul.f32 %v11846_v46, %v2577_v3  ;;  %v2657_v37 = vsub.f32 %v11847_v59, %v11843_v52  ;;  %v11852_v3 = vld [vmem:[#allocation69_spill] sm:$0xff] }
 0x20e   : > { %v2610_v54 = vmul.f32 %v11846_v46, %v2578_v14  ;;  %v2658_v11 = vsub.f32 %v11848_v21, %v11843_v52  ;;  %v2687_v9 = vmul.f32 %v11849_v15, %v2655_v28  ;;  %v2688_v30 = vmul.f32 %v11849_v15, %v2656_v42 }
 0x20f   : > { %v2623_v5 = vadd.f32 %v2607_v20, %v2543_v12  ;;  %v2624_v63 = vadd.f32 %v2608_v0, %v2544_v49  ;;  %v2625_v34 = vadd.f32 %v2609_v6, %v2545_v16  ;;  %v2689_v4 = vmul.f32 %v11849_v15, %v2657_v37  ;;  %v11854_v12 = vld [vmem:[#allocation14_spill] sm:$0xff] }
 0x210   : > { %v2626_v44 = vadd.f32 %v2610_v54, %v2546_v61  ;;  %v2690_v58 = vmul.f32 %v11849_v15, %v2658_v11  ;;  %v1703_v13 = vmul.f32 %v1689_v55, %v11850_v62  ;;  %v1704_v40 = vmul.f32 %v1689_v55, %v11851_v10 }
 0x211   : > { %v2703_v43 = vadd.f32 %v2687_v9, %v2623_v5  ;;  %v2704_v32 = vadd.f32 %v2688_v30, %v2624_v63  ;;  %v2705_v7 = vadd.f32 %v2689_v4, %v2625_v34  ;;  %v1705_v14 = vmul.f32 %v1689_v55, %v11852_v3 }
 0x212   : > { %v2706_v28 = vadd.f32 %v2690_v58, %v2626_v44  ;;  %v1706_v42 = vmul.f32 %v1689_v55, %v11853_v45  ;;  %v1734_v49 = vrot.slane %v11850_v62, %v11854_v12  ;;  %v1738_v16 = vrot.slane %v11851_v10, %v11854_v12  ;;  %v11855_v44 = vld [vmem:[#allocation74_spill] sm:$0xff] }
 0x213   : > { %v2747_v61 = vmul.f32 %v2731_v47, %v2703_v43  ;;  %v2748_v20 = vmul.f32 %v2731_v47, %v2704_v32  ;;  %v2749_v0 = vmul.f32 %v2731_v47, %v2705_v7  ;;  %v1742_v6 = vrot.slane %v11852_v3, %v11854_v12  ;;  %v11857_v7 = vld [vmem:[#allocation76_spill] sm:$0xff] }
 0x214   : > { %v2750_v37 = vmul.f32 %v2731_v47, %v2706_v28  ;;  %v1746_v54 = vrot.slane %v11853_v45, %v11854_v12  ;;  %v7890_v11 = vsub.f32 %v1734_v49, %v1703_v13  ;;  %v7892_v9 = vsub.f32 %v1738_v16, %v1704_v40  ;;  %v11856_v47 = vld [vmem:[#allocation75_spill] sm:$0xff]  ;;  %v11858_v16 = vld [vmem:[#allocation77_spill] sm:$0xff] }
 0x215   : > { %v2763_v55 = vmax.f32 %v2747_v61, 0.0  ;;  %v2764_v30 = vmax.f32 %v2748_v20, 0.0  ;;  %v2765_v5 = vmax.f32 %v2749_v0, 0.0  ;;  %v7894_v63 = vsub.f32 %v1742_v6, %v1705_v14 }
 0x216   : > { %v2766_v34 = vmax.f32 %v2750_v37, 0.0  ;;  %v7896_v4 = vsub.f32 %v1746_v54, %v1706_v42 }
 0x217   : > { %v7902_v32 = vmin.f32 %v2763_v55, 1.0  ;;  %v7904_v13 = vmin.f32 %v2764_v30, 1.0  ;;  %v7906_v40 = vmin.f32 %v2765_v5, 1.0 }
 0x218   : > { %v7912_v49 = vmin.f32 %v2766_v34, 1.0 }
 0x219   : > { %v2795_v20 = vmul.f32 %v7902_v32, %v11837_v36  ;;  %v2796_v0 = vmul.f32 %v7904_v13, %v11837_v36  ;;  %v2797_v6 = vmul.f32 %v7906_v40, %v11837_v36  ;;  %v2859_v37 = vmul.f32 %v7902_v32, %v11846_v46 }
 0x21a   : > { %v2798_v54 = vmul.f32 %v7912_v49, %v11837_v36  ;;  %v2860_v55 = vmul.f32 %v7904_v13, %v11846_v46  ;;  %v2861_v30 = vmul.f32 %v7906_v40, %v11846_v46  ;;  %v2862_v5 = vmul.f32 %v7912_v49, %v11846_v46 }
 0x21b   : > { %v2811_v34 = vadd.f32 %v2795_v20, %v11831_v48  ;;  %v2812_v42 = vadd.f32 %v2796_v0, %v11831_v48  ;;  %v2813_v14 = vadd.f32 %v2797_v6, %v11831_v48  ;;  %v2875_v61 = vadd.f32 %v2859_v37, %v11838_v19 }
 0x21c   : > { %v2814_v28 = vadd.f32 %v2798_v54, %v11831_v48  ;;  %v2876_v43 = vadd.f32 %v2860_v55, %v11838_v19  ;;  %v2877_v58 = vadd.f32 %v2861_v30, %v11838_v19  ;;  %v2878_v39 = vadd.f32 %v2862_v5, %v11838_v19 }
 0x21d   : > { %v2827_v53 = vsub.f32 %v11705_v38, %v2811_v34  ;;  %v2828_v24 = vsub.f32 %v11707_v18, %v2812_v42  ;;  %v2829_v20 = vsub.f32 %v11834_v50, %v2813_v14  ;;  %v2891_v0 = vsub.f32 %v11839_v23, %v2875_v61 }
 0x21e   : > { %v2830_v6 = vsub.f32 %v11836_v27, %v2814_v28  ;;  %v2892_v37 = vsub.f32 %v11840_v25, %v2876_v43  ;;  %v2893_v54 = vsub.f32 %v11841_v35, %v2877_v58  ;;  %v2894_v55 = vsub.f32 %v11842_v51, %v2878_v39 }
 0x21f   : > { %v7951_v30 = vsel %vm11392_vm4, %v7835_v22, %v7821_v8  ;;  %v2843_v14 = vmul.f32 %v2827_v53, %v2827_v53  ;;  %v2844_v34 = vmul.f32 %v2828_v24, %v2828_v24  ;;  %v2845_v61 = vmul.f32 %v2829_v20, %v2829_v20  ;;  %v1817_v22 = vpop.permute.xlu1 %1816 }
 0x220   : > { %v2907_v23 = vmul.f32 %v2891_v0, %v2891_v0  ;;  %v2908_v28 = vmul.f32 %v2892_v37, %v2892_v37  ;;  %v2909_v27 = vmul.f32 %v2893_v54, %v2893_v54  ;;  %v2939_v58 = vmul.f32 %v7902_v32, %v11849_v15 }
 0x221   : > { %v2940_v39 = vmul.f32 %v7904_v13, %v11849_v15  ;;  %v2941_v8 = vmul.f32 %v7906_v40, %v11849_v15  ;;  %v11859_v43 = vrot.slane %v7635_v1, 4  ;;  %v2846_v24 = vmul.f32 %v2830_v6, %v2830_v6 }
 0x222   : > { %v2910_v53 = vmul.f32 %v2894_v55, %v2894_v55  ;;  %v2942_v20 = vmul.f32 %v7912_v49, %v11849_v15  ;;  %v2955_v0 = vadd.f32 %v2939_v58, %v11843_v52  ;;  %vm3483_vm5 = vcmp.ne.f32.partialorder %v7902_v32, %v7902_v32 }
 0x223   : > { %v7964_v42 = vadd.f32 %v11859_v43, %v7635_v1  ;;  %v2956_v37 = vadd.f32 %v2940_v39, %v11843_v52  ;;  %v2957_v54 = vadd.f32 %v2941_v8, %v11843_v52  ;;  %v2923_v5 = vadd.f32 %v2907_v23, %v2843_v14 }
 0x224   : > { %v2924_v51 = vadd.f32 %v2908_v28, %v2844_v34  ;;  %v2958_v35 = vadd.f32 %v2942_v20, %v11843_v52  ;;  %v1831_v1 = vmul.f32 %v1817_v22, %v11850_v62  ;;  %v2925_v6 = vadd.f32 %v2909_v27, %v2845_v61 }
 0x225   : > { %v2971_v55 = vsub.f32 %v11844_v31, %v2955_v0  ;;  %v2972_v43 = vsub.f32 %v11845_v2, %v2956_v37  ;;  %v2973_v58 = vsub.f32 %v11847_v59, %v2957_v54  ;;  %v2926_v25 = vadd.f32 %v2910_v53, %v2846_v24  ;;  %v11860_v0 = vld [vmem:[#allocation17_spill] sm:$0xff] }
 0x226   : > { %v2974_v39 = vsub.f32 %v11848_v21, %v2958_v35  ;;  %v7980_v8 = vsel %vm3483_vm5, 0.0, %v7902_v32  ;;  %v1832_v23 = vmul.f32 %v1817_v22, %v11851_v10  ;;  %v1833_v20 = vmul.f32 %v1817_v22, %v11852_v3 }
 0x227   : > { %v2987_v14 = vmul.f32 %v2971_v55, %v2971_v55  ;;  %v2988_v34 = vmul.f32 %v2972_v43, %v2972_v43  ;;  %v2989_v28 = vmul.f32 %v2973_v58, %v2973_v58  ;;  %v1834_v61 = vmul.f32 %v1817_v22, %v11853_v45 }
 0x228   : > { %v2990_v27 = vmul.f32 %v2974_v39, %v2974_v39  ;;  %v1862_v37 = vrot.slane %v11850_v62, %v11860_v0  ;;  %v1866_v24 = vrot.slane %v11851_v10, %v11860_v0  ;;  %v1870_v54 = vrot.slane %v11852_v3, %v11860_v0 }
 0x229   : > { %v3003_v35 = vadd.f32 %v2987_v14, %v2923_v5  ;;  %v3004_v53 = vadd.f32 %v2988_v34, %v2924_v51  ;;  %v3005_v32 = vadd.f32 %v2989_v28, %v2925_v6  ;;  %v1874_v43 = vrot.slane %v11853_v45, %v11860_v0 }
 0x22a   : > { %v3006_v55 = vadd.f32 %v2990_v27, %v2926_v25  ;;  %v1911_v58 = vsub.f32 %v1862_v37, %v1831_v1  ;;  %v1912_v39 = vsub.f32 %v1866_v24, %v1832_v23  ;;  %v1913_v22 = vsub.f32 %v1870_v54, %v1833_v20  ;;  %v11870_v54 = vld [vmem:[#allocation34_spill] sm:$0xff] }
 0x22b   : > { %vm3019_vm6 = vcmp.ne.f32.partialorder %v3003_v35, %v3003_v35  ;;  %vm3020_vm7 = vcmp.ne.f32.partialorder %v3004_v53, %v3004_v53  ;;  %vm3021_vm8 = vcmp.ne.f32.partialorder %v3005_v32, %v3005_v32  ;;  %vm3484_vm10 = vcmp.ne.f32.partialorder %v7904_v13, %v7904_v13 }
 0x22c   : > { %vm3022_vm9 = vcmp.ne.f32.partialorder %v3006_v55, %v3006_v55  ;;  %v3035_v21 = vsel %vm3019_vm6, inf, %v3003_v35  ;;  %v3036_v59 = vsel %vm3020_vm7, inf, %v3004_v53  ;;  %v3037_v2 = vsel %vm3021_vm8, inf, %v3005_v32 }
 0x22d   : > { %v3038_v5 = vsel %vm3022_vm9, inf, %v3006_v55  ;;  %v3091_v51 = vrot.slane %v3035_v21, 4  ;;  %v3097_v6 = vrot.slane %v3036_v59, 4  ;;  %v3103_v14 = vrot.slane %v3037_v2, 4 }
 0x22e   : > { %v3109_v25 = vrot.slane %v3038_v5, 4  ;;  %v1914_v34 = vsub.f32 %v1874_v43, %v1834_v61  ;;  %v11861_v1 = vmax.f32 %v11855_v44, %v7890_v11  ;;  %v11863_v28 = vmax.f32 %v11856_v47, %v7892_v9  ;;  %v11869_v44 = vld [vmem:[#allocation59_spill] sm:$0xff]  ;;  %v11871_v9 = vld [vmem:[#allocation60_spill] sm:$0xff] }
 0x22f   : > { %v3092_v27 = vmin.f32 %v3035_v21, %v3091_v51  ;;  %v3098_v37 = vmin.f32 %v3036_v59, %v3097_v6  ;;  %v3104_v24 = vmin.f32 %v3037_v2, %v3103_v14  ;;  %v11865_v35 = vmax.f32 %v11857_v7, %v7894_v63  ;;  %v11872_v51 = vld [vmem:[#allocation61_spill] sm:$0xff] }
 0x230   : > { %v7998_v23 = vmax.f32 %v11861_v1, %v1911_v58  ;;  %v8003_v20 = vmax.f32 %v11863_v28, %v1912_v39  ;;  %v3110_v32 = vmin.f32 %v3038_v5, %v3109_v25  ;;  %v11867_v61 = vmax.f32 %v11858_v16, %v7896_v4  ;;  %v11874_v14 = vld [vmem:[#allocation13_spill] sm:$0xff] }
 0x231   : > { %v8008_v53 = vmax.f32 %v11865_v35, %v1913_v22  ;;  %v1583_v55 = vmul.f32 %v11870_v54, %v11869_v44  ;;  %v1584_v47 = vmul.f32 %v11870_v54, %v11871_v9  ;;  %v3093_v43 = vrot.slane %v3092_v27, 2  ;;  %v11873_v22 = vld [vmem:[#allocation62_spill] sm:$0xff] }
 0x232   : > { %11862 = vst [vmem:[#allocation87_spill] sm:$0xff] %v7998_v23  ;;  %11864 = vst [vmem:[#allocation73_spill] sm:$0xff] %v8003_v20  ;;  %v8013_v11 = vmax.f32 %v11867_v61, %v1914_v34  ;;  %v3099_v58 = vrot.slane %v3098_v37, 2  ;;  %v3105_v39 = vrot.slane %v3104_v24, 2  ;;  %v1585_v63 = vmul.f32 %v11870_v54, %v11872_v51  ;;  %v11886_v20 = vld [vmem:[#allocation85_spill] sm:$0xff] }
 0x233   : > { %11866 = vst [vmem:[#allocation92_spill] sm:$0xff] %v8008_v53  ;;  %v3111_v7 = vrot.slane %v3110_v32, 2  ;;  %v1586_v6 = vmul.f32 %v11870_v54, %v11873_v22  ;;  %v1638_v4 = vrot.slane %v11869_v44, %v11874_v14  ;;  %v1642_v16 = vrot.slane %v11871_v9, %v11874_v14 }
 0x234   : > { %11868 = vst [vmem:[#allocation58_spill] sm:$0xff] %v8013_v11  ;;  %v3094_v25 = vmin.f32 %v3092_v27, %v3093_v43  ;;  %v3100_v34 = vmin.f32 %v3098_v37, %v3099_v58  ;;  %v3106_v1 = vmin.f32 %v3104_v24, %v3105_v39  ;;  %v1646_v28 = vrot.slane %v11872_v51, %v11874_v14  ;;  %v8033_v11 = vpop.permute.xlu1 %1696  ;;  %v11875_v43 = vld [vmem:[#allocation50_spill] sm:$0xff]  ;;  %v11876_v58 = vld [vmem:[#allocation65_spill] sm:$0xff] }
 0x235   : > { %v3112_v35 = vmin.f32 %v3110_v32, %v3111_v7  ;;  %v1650_v61 = vrot.slane %v11873_v22, %v11874_v14  ;;  %v1663_v31 = vsub.f32 %v1638_v4, %v1583_v55  ;;  %v1664_v50 = vsub.f32 %v1642_v16, %v1584_v47  ;;  %v11879_v7 = vld [vmem:[#allocation28_spill] sm:$0xff]  ;;  %v11880_v14 = vld [vmem:[#allocation66_spill] sm:$0xff] }
 0x236   : > { %v3095_v18 = vrot.slane %v3094_v25, 1  ;;  %v3101_v54 = vrot.slane %v3100_v34, 1  ;;  %v3107_v38 = vrot.slane %v3106_v1, 1  ;;  %vm3485_vm11 = vcmp.ne.f32.partialorder %v7906_v40, %v7906_v40 }
 0x237   : > { %v1665_v27 = vsub.f32 %v1646_v28, %v1585_v63  ;;  %v3113_v37 = vrot.slane %v3112_v35, 1  ;;  %v1666_v24 = vsub.f32 %v1650_v61, %v1586_v6  ;;  %v11877_v39 = vmax.f32 %v11875_v43, %v11876_v58  ;;  %v11887_v63 = vld [vmem:[#allocation67_spill] sm:$0xff] }
 0x238   : > { %v11881_v55 = vmax.f32 %v11879_v7, %v11880_v14  ;;  %v8045_v4 = vmin.f32 %v3094_v25, %v3095_v18  ;;  %v8047_v16 = vmin.f32 %v3100_v34, %v3101_v54  ;;  %v8049_v53 = vmin.f32 %v3106_v1, %v3107_v38  ;;  %v11892_v18 = vld [vmem:[#allocation68_spill] sm:$0xff] }
 0x239   : > { %v8038_v32 = vmax.f32 %v11877_v39, %v1663_v31  ;;  %v11888_v28 = vmax.f32 %v11886_v20, %v11887_v63  ;;  %v8056_v61 = vmin.f32 %v3112_v35, %v3113_v37  ;;  %v8062_v31 = vsel %vm3484_vm10, 0.0, %v7904_v13  ;;  %v11895_v20 = vld [vmem:[#allocation8_spill] sm:$0xff] }
 0x23a   : > { %v8043_v47 = vmax.f32 %v11881_v55, %v1664_v50  ;;  %11883 = vst [vmem:[#allocation74_spill] sm:$0xff] %v8045_v4  ;;  %11884 = vst [vmem:[#allocation75_spill] sm:$0xff] %v8047_v16  ;;  %v11891_v50 = vld [vmem:[#allocation86_spill] sm:$0xff]  ;;  %v1711_v38 = vmul.f32 %v8033_v11, %v11869_v44  ;;  %vm3147_vm12 = vcmp.eq.f32.partialorder %v3035_v21, %v8045_v4 }
 0x23b   : > { %11878 = vst [vmem:[#allocation46_spill] sm:$0xff] %v8038_v32  ;;  %11885 = vst [vmem:[#allocation76_spill] sm:$0xff] %v8049_v53  ;;  %v8054_v6 = vmax.f32 %v11888_v28, %v1665_v27  ;;  %v11893_v25 = vmax.f32 %v11891_v50, %v11892_v18  ;;  %vm3148_vm13 = vcmp.eq.f32.partialorder %v3036_v59, %v8047_v16  ;;  %v3163_v1 = vsel %vm3147_vm12, %v11895_v20, 8 }
 0x23c   : > { %11882 = vst [vmem:[#allocation14_spill] sm:$0xff] %v8043_v47  ;;  %11890 = vst [vmem:[#allocation34_spill] sm:$0xff] %v8056_v61  ;;  %vm3149_vm14 = vcmp.eq.f32.partialorder %v3037_v2, %v8049_v53  ;;  %vm3486_vm15 = vcmp.ne.f32.partialorder %v7912_v49, %v7912_v49  ;;  %v1712_v13 = vmul.f32 %v8033_v11, %v11871_v9  ;;  %v3164_v35 = vsel %vm3148_vm13, %v11895_v20, 8 }
 0x23d   : > { %11889 = vst [vmem:[#allocation77_spill] sm:$0xff] %v8054_v6  ;;  %v8067_v34 = vmax.f32 %v11893_v25, %v1666_v24  ;;  %vm3150_vm0 = vcmp.eq.f32.partialorder %v3038_v5, %v8056_v61  ;;  %v3165_v54 = vsel %vm3149_vm14, %v11895_v20, 8  ;;  %v3243_v27 = vrot.slane %v3163_v1, 4 }
 0x23e   : > { %v3166_v21 = vsel %vm3150_vm0, %v11895_v20, 8  ;;  %v3252_v59 = vrot.slane %v3164_v35, 4  ;;  %v3261_v37 = vrot.slane %v3165_v54, 4  ;;  %v1713_v24 = vmul.f32 %v8033_v11, %v11872_v51 }
 0x23f   : > { %11894 = vst [vmem:[#allocation13_spill] sm:$0xff] %v8067_v34  ;;  %v3270_v2 = vrot.slane %v3166_v21, 4  ;;  %v1766_v43 = vrot.slane %v11869_v44, %v11854_v12  ;;  %v1770_v5 = vrot.slane %v11871_v9, %v11854_v12  ;;  %vm3244_vm1 = vcmp.lt.s32.totalorder %v3163_v1, %v3243_v27 }
 0x240   : > { %vm3253_vm2 = vcmp.lt.s32.totalorder %v3164_v35, %v3252_v59  ;;  %vm3262_vm3 = vcmp.lt.s32.totalorder %v3165_v54, %v3261_v37  ;;  %v1774_v58 = vrot.slane %v11872_v51, %v11854_v12  ;;  %v3245_v39 = vsel %vm3244_vm1, %v3163_v1, %v3243_v27 }
 0x241   : > { %v3254_v7 = vsel %vm3253_vm2, %v3164_v35, %v3252_v59  ;;  %v3263_v14 = vsel %vm3262_vm3, %v3165_v54, %v3261_v37  ;;  %vm3271_vm5 = vcmp.lt.s32.totalorder %v3166_v21, %v3270_v2  ;;  %v3246_v55 = vrot.slane %v3245_v39, 2 }
 0x242   : > { %v3255_v63 = vrot.slane %v3254_v7, 2  ;;  %v3264_v28 = vrot.slane %v3263_v14, 2  ;;  %v3272_v50 = vsel %vm3271_vm5, %v3166_v21, %v3270_v2  ;;  %v3501_v25 = vsel %vm3485_vm11, 0.0, %v7906_v40 }
 0x243   : > { %v3273_v18 = vrot.slane %v3272_v50, 2  ;;  %v8095_v61 = vsub.f32 %v1766_v43, %v1711_v38  ;;  %v8097_v53 = vsub.f32 %v1770_v5, %v1712_v13  ;;  %vm3247_vm6 = vcmp.lt.s32.totalorder %v3245_v39, %v3246_v55  ;;  %v11902_v13 = vld [vmem:[#allocation103_spill] sm:$0xff] }
 0x244   : > { %vm3256_vm7 = vcmp.lt.s32.totalorder %v3254_v7, %v3255_v63  ;;  %vm3265_vm8 = vcmp.lt.s32.totalorder %v3263_v14, %v3264_v28  ;;  %v8099_v27 = vsub.f32 %v1774_v58, %v1713_v24  ;;  %v3248_v59 = vsel %vm3247_vm6, %v3245_v39, %v3246_v55 }
 0x245   : > { %11896 = vst [vmem:[#allocation50_spill] sm:$0xff] %v8095_v61  ;;  %11897 = vst [vmem:[#allocation65_spill] sm:$0xff] %v8097_v53  ;;  %v3257_v37 = vsel %vm3256_vm7, %v3254_v7, %v3255_v63  ;;  %v3266_v16 = vsel %vm3265_vm8, %v3263_v14, %v3264_v28  ;;  %vm3274_vm9 = vcmp.lt.s32.totalorder %v3272_v50, %v3273_v18  ;;  %v3249_v2 = vrot.slane %v3248_v59, 1 }
 0x246   : > { %11898 = vst [vmem:[#allocation28_spill] sm:$0xff] %v8099_v27  ;;  %v3258_v4 = vrot.slane %v3257_v37, 1  ;;  %v3267_v23 = vrot.slane %v3266_v16, 1  ;;  %v3275_v51 = vsel %vm3274_vm9, %v3272_v50, %v3273_v18  ;;  %v3502_v40 = vsel %vm3486_vm15, 0.0, %v7912_v49 }
 0x247   : > { %v3276_v9 = vrot.slane %v3275_v51, 1  ;;  %vm3250_vm10 = vcmp.lt.s32.totalorder %v3248_v59, %v3249_v2  ;;  %v11903_v38 = vrot.slane %v11902_v13, 4  ;;  %v4912_v53 = vrot.slane %v7964_v42, 2 }
 0x248   : > { %vm3259_vm11 = vcmp.lt.s32.totalorder %v3257_v37, %v3258_v4  ;;  %vm3268_vm12 = vcmp.lt.s32.totalorder %v3266_v16, %v3267_v23  ;;  %v3251_v43 = vsel %vm3250_vm10, %v3248_v59, %v3249_v2  ;;  %vm11398_vm2 = vcmask 1042434  }
 0x249   : > { %v3260_v5 = vsel %vm3259_vm11, %v3257_v37, %v3258_v4  ;;  %v3269_v58 = vsel %vm3268_vm12, %v3266_v16, %v3267_v23  ;;  %vm3277_vm13 = vcmp.lt.s32.totalorder %v3275_v51, %v3276_v9  ;;  %vm3323_vm14 = vcmp.eq.s32.totalorder %v3163_v1, %v3251_v43 }
 0x24a   : > { %v3278_v39 = vsel %vm3277_vm13, %v3275_v51, %v3276_v9  ;;  %vm3324_vm0 = vcmp.eq.s32.totalorder %v3164_v35, %v3260_v5  ;;  %vm3325_vm15 = vcmp.eq.s32.totalorder %v3165_v54, %v3269_v58  ;;  %v8112_v49 = vsel %vm3323_vm14, 1.0, %v11813_v17 }
 0x24b   : > { %vm3326_vm1 = vcmp.eq.s32.totalorder %v3166_v21, %v3278_v39  ;;  %v8115_v7 = vsel %vm3324_vm0, 1.0, %v11813_v17  ;;  %v8118_v14 = vsel %vm3325_vm15, 1.0, %v11813_v17  ;;  %v8125_v23 = vmul.f32 %v8112_v49, %v7980_v8 }
 0x24c   : > { %v8121_v55 = vsel %vm3326_vm1, 1.0, %v11813_v17  ;;  %v8129_v9 = vmul.f32 %v8115_v7, %v8062_v31  ;;  %v8132_v51 = vmul.f32 %v8118_v14, %v3501_v25  ;;  %v3867_v16 = vmul.f32 %v8112_v49, %v11831_v48 }
 0x24d   : > { %v8135_v4 = vmul.f32 %v8121_v55, %v3502_v40  ;;  %v3868_v1 = vmul.f32 %v8115_v7, %v11831_v48  ;;  %v3869_v8 = vmul.f32 %v8118_v14, %v11831_v48  ;;  %v3870_v35 = vmul.f32 %v8121_v55, %v11831_v48 }
 0x24e   : > { %v3883_v31 = vmul.f32 %v8125_v23, %v11837_v36  ;;  %v3884_v54 = vmul.f32 %v8129_v9, %v11837_v36  ;;  %v3885_v21 = vmul.f32 %v8132_v51, %v11837_v36  ;;  %v4374_v28 = vmul.f32 %v8112_v49, %v11838_v19 }
 0x24f   : > { %v3886_v63 = vmul.f32 %v8135_v4, %v11837_v36  ;;  %v4375_v50 = vmul.f32 %v8115_v7, %v11838_v19  ;;  %v4376_v48 = vmul.f32 %v8118_v14, %v11838_v19  ;;  %v4377_v37 = vmul.f32 %v8121_v55, %v11838_v19 }
 0x250   : > { %v3899_v18 = vadd.f32 %v3883_v31, %v3867_v16  ;;  %v3900_v25 = vadd.f32 %v3884_v54, %v3868_v1  ;;  %v3901_v59 = vadd.f32 %v3885_v21, %v3869_v8  ;;  %v4390_v40 = vmul.f32 %v8125_v23, %v11846_v46  ;;  %v11900_v21 = vld [vmem:[#allocation39_spill] sm:$0xff] }
 0x251   : > { %v3902_v2 = vadd.f32 %v3886_v63, %v3870_v35  ;;  %v4391_v36 = vmul.f32 %v8129_v9, %v11846_v46  ;;  %v4392_v43 = vmul.f32 %v8132_v51, %v11846_v46  ;;  %v4393_v16 = vmul.f32 %v8135_v4, %v11846_v46 }
 0x252   : > { %v3955_v5 = vrot.slane %v3899_v18, 4  ;;  %v3961_v58 = vrot.slane %v3900_v25, 4  ;;  %v3967_v39 = vrot.slane %v3901_v59, 4  ;;  %v4406_v8 = vadd.f32 %v4390_v40, %v4374_v28 }
 0x253   : > { %v3973_v1 = vrot.slane %v3902_v2, 4  ;;  %v4407_v31 = vadd.f32 %v4391_v36, %v4375_v50  ;;  %v4408_v19 = vadd.f32 %v4392_v43, %v4376_v48  ;;  %v11899_v35 = vrot.slane %v7823_v33, 2  ;;  %v11906_v36 = vld [vmem:[#allocation70_spill] sm:$0xff] }
 0x254   : > { %v11901_v63 = vrot.slane %v11900_v21, 4  ;;  %v4923_v44 = vadd.f32 %v11903_v38, %v11902_v13  ;;  %v4409_v27 = vadd.f32 %v4393_v16, %v4377_v37  ;;  %v11904_v46 = vrot.slane %v7825_v29, 2 }
 0x255   : > { %v4889_v54 = vadd.f32 %v11899_v35, %v7823_v33  ;;  %v4462_v28 = vrot.slane %v4406_v8, 4  ;;  %v4468_v50 = vrot.slane %v4407_v31, 4  ;;  %v4474_v48 = vrot.slane %v4408_v19, 4 }
 0x256   : > { %v4917_v24 = vadd.f32 %v11901_v63, %v11900_v21  ;;  %v4895_v6 = vadd.f32 %v11904_v46, %v7825_v29  ;;  %v11905_v40 = vrot.slane %v7827_v56, 2  ;;  %v11907_v43 = vrot.slane %v11906_v36, 4 }
 0x257   : > { %v3956_v21 = vadd.f32 %v3955_v5, %v3899_v18  ;;  %v4480_v63 = vrot.slane %v4409_v27, 4  ;;  %v11908_v38 = vrot.slane %v7829_v57, 2  ;;  %v3962_v37 = vadd.f32 %v3961_v58, %v3900_v25 }
 0x258   : > { %v4901_v33 = vadd.f32 %v11905_v40, %v7827_v56  ;;  %v4929_v35 = vadd.f32 %v11907_v43, %v11906_v36  ;;  %v3968_v16 = vadd.f32 %v3967_v39, %v3901_v59  ;;  %v3974_v29 = vadd.f32 %v3973_v1, %v3902_v2 }
 0x259   : > { %v4907_v13 = vadd.f32 %v11908_v38, %v7829_v57  ;;  %v4890_v46 = vrot.slane %v4889_v54, 1  ;;  %v4918_v47 = vrot.slane %v4917_v24, 2  ;;  %v4924_v61 = vrot.slane %v4923_v44, 2 }
 0x25a   : > { %v4463_v32 = vadd.f32 %v4462_v28, %v4406_v8  ;;  %v4469_v56 = vadd.f32 %v4468_v50, %v4407_v31  ;;  %v4475_v40 = vadd.f32 %v4474_v48, %v4408_v19  ;;  %v4481_v17 = vadd.f32 %v4480_v63, %v4409_v27 }
 0x25b   : > { %v4896_v45 = vrot.slane %v4895_v6, 1  ;;  %v4902_v36 = vrot.slane %v4901_v33, 1  ;;  %v4930_v18 = vrot.slane %v4929_v35, 2  ;;  %v3957_v5 = vrot.slane %v3956_v21, 2 }
 0x25c   : > { %v3963_v43 = vrot.slane %v3962_v37, 2  ;;  %v3969_v3 = vrot.slane %v3968_v16, 2  ;;  %v3975_v10 = vrot.slane %v3974_v29, 2  ;;  %v1714_v57 = vmul.f32 %v8033_v11, %v11873_v22 }
 0x25d   : > { %v4913_v25 = vadd.f32 %v4912_v53, %v7964_v42  ;;  %v4919_v59 = vadd.f32 %v4918_v47, %v4917_v24  ;;  %v4925_v2 = vadd.f32 %v4924_v61, %v4923_v44  ;;  %v1778_v58 = vrot.slane %v11873_v22, %v11854_v12 }
 0x25e   : > { %v4464_v39 = vrot.slane %v4463_v32, 2  ;;  %v4470_v1 = vrot.slane %v4469_v56, 2  ;;  %v4476_v27 = vrot.slane %v4475_v40, 2  ;;  %v4482_v8 = vrot.slane %v4481_v17, 2 }
 0x25f   : > { %v4891_v31 = vadd.f32 %v4890_v46, %v4889_v54  ;;  %v4908_v19 = vrot.slane %v4907_v13, 1  ;;  %v4931_v28 = vadd.f32 %v4930_v18, %v4929_v35  ;;  %v3958_v50 = vadd.f32 %v3957_v5, %v3956_v21 }
 0x260   : > { %v3964_v48 = vadd.f32 %v3963_v43, %v3962_v37  ;;  %v3970_v63 = vadd.f32 %v3969_v3, %v3968_v16  ;;  %v3976_v38 = vadd.f32 %v3975_v10, %v3974_v29  ;;  %v8196_v62 = vsub.f32 %v1778_v58, %v1714_v57 }
 0x261   : > { %v4897_v11 = vadd.f32 %v4896_v45, %v4895_v6  ;;  %v4914_v42 = vrot.slane %v4913_v25, 1  ;;  %v4920_v53 = vrot.slane %v4919_v59, 1  ;;  %v4926_v44 = vrot.slane %v4925_v2, 1 }
 0x262   : > { %11909 = vst [vmem:[#allocation66_spill] sm:$0xff] %v8196_v62  ;;  %v4465_v47 = vadd.f32 %v4464_v39, %v4463_v32  ;;  %v4471_v61 = vadd.f32 %v4470_v1, %v4469_v56  ;;  %v4477_v12 = vadd.f32 %v4476_v27, %v4475_v40  ;;  %v4483_v24 = vadd.f32 %v4482_v8, %v4481_v17  ;;  %v1821_v56 = vpop.permute.xlu1 %1820  ;;  %v11915_v8 = vld [vmem:[#allocation52_spill] sm:$0xff] }
 0x263   : > { %v4903_v22 = vadd.f32 %v4902_v36, %v4901_v33  ;;  %v4909_v20 = vadd.f32 %v4908_v19, %v4907_v13  ;;  %v4932_v0 = vrot.slane %v4931_v28, 1  ;;  %v3959_v54 = vrot.slane %v3958_v50, 1 }
 0x264   : > { %v3965_v46 = vrot.slane %v3964_v48, 1  ;;  %v3971_v35 = vrot.slane %v3970_v63, 1  ;;  %v3977_v21 = vrot.slane %v3976_v38, 1  ;;  %v4915_v3 = vadd.f32 %v4914_v42, %v4913_v25 }
 0x265   : > { %v4921_v37 = vadd.f32 %v4920_v53, %v4919_v59  ;;  %v4927_v45 = vadd.f32 %v4926_v44, %v4925_v2  ;;  %v4466_v6 = vrot.slane %v4465_v47, 1  ;;  %v4472_v16 = vrot.slane %v4471_v61, 1  ;;  %v11926_v53 = vld [vmem:[#allocation43_spill] sm:$0xff] }
 0x266   : > { %v4478_v32 = vrot.slane %v4477_v12, 1  ;;  %v4484_v29 = vrot.slane %v4483_v24, 1  ;;  %v4933_v17 = vadd.f32 %v4932_v0, %v4931_v28  ;;  %v8201_v33 = vsel %vm11392_vm4, %v4915_v3, %v4891_v31 }
 0x267   : > { %v8204_v13 = vsel %vm11392_vm4, %v4921_v37, %v4897_v11  ;;  %v8207_v40 = vsel %vm11392_vm4, %v4927_v45, %v4903_v22  ;;  %v3960_v36 = vadd.f32 %v3959_v54, %v3958_v50  ;;  %v3966_v18 = vadd.f32 %v3965_v46, %v3964_v48  ;;  %v11921_v50 = vld [vmem:[#allocation135_spill] sm:$0xff]  ;;  %v11925_v11 = vld [vmem:[#allocation42_spill] sm:$0xff] }
 0x268   : > { %11910 = vst [vmem:[#allocation85_spill] sm:$0xff] %v8207_v40  ;;  %v3972_v5 = vadd.f32 %v3971_v35, %v3970_v63  ;;  %v3978_v43 = vadd.f32 %v3977_v21, %v3976_v38  ;;  %v8210_v57 = vsel %vm11392_vm4, %v4933_v17, %v4909_v20  ;;  %v4862_v25 = vmul.f32 %v8125_v23, %v11849_v15  ;;  %v11924_v63 = vld [vmem:[#allocation41_spill] sm:$0xff]  ;;  %v11929_v46 = vld [vmem:[#allocation54_spill] sm:$0xff]  ;;  %v11930_v37 = vld [vmem:[#allocation55_spill] sm:$0xff] }
 0x269   : > { %11911 = vst [vmem:[#allocation67_spill] sm:$0xff] %v8210_v57  ;;  %v4863_v0 = vmul.f32 %v8129_v9, %v11849_v15  ;;  %v4864_v59 = vmul.f32 %v8132_v51, %v11849_v15  ;;  %v4467_v2 = vadd.f32 %v4466_v6, %v4465_v47  ;;  %v4473_v58 = vadd.f32 %v4472_v16, %v4471_v61  ;;  %v11927_v47 = vld [vmem:[#allocation44_spill] sm:$0xff]  ;;  %v11932_v17 = vld [vmem:[#allocation57_spill] sm:$0xff] }
 0x26a   : > { %v4479_v22 = vadd.f32 %v4478_v32, %v4477_v12  ;;  %v4485_v39 = vadd.f32 %v4484_v29, %v4483_v24  ;;  %v4846_v1 = vmul.f32 %v8112_v49, %v11843_v52  ;;  %v4847_v20 = vmul.f32 %v8115_v7, %v11843_v52  ;;  %v11928_v12 = vld [vmem:[#allocation17_spill] sm:$0xff]  ;;  %v11931_v29 = vld [vmem:[#allocation56_spill] sm:$0xff] }
 0x26b   : > { %v4848_v27 = vmul.f32 %v8118_v14, %v11843_v52  ;;  %v4865_v23 = vmul.f32 %v8135_v4, %v11849_v15  ;;  %v8228_v9 = vsel %vm11398_vm2, %v3960_v36, %v7810_v26  ;;  %v8232_v51 = vsel %vm11398_vm2, %v3966_v18, %v7813_v60  ;;  %v8242_v14 = vpop.permute.xlu1 %1944  ;;  %v11917_v60 = vld [vmem:[#allocation9_spill] sm:$0xff]  ;;  %v11938_v18 = vld [vmem:[#allocation94_spill] sm:$0xff] }
 0x26c   : > { %11912 = vst [vmem:[#allocation86_spill] sm:$0xff] %v8228_v9  ;;  %11913 = vst [vmem:[#allocation68_spill] sm:$0xff] %v8232_v51  ;;  %v8236_v49 = vsel %vm11398_vm2, %v3972_v5, %v7816_v41  ;;  %v8240_v7 = vsel %vm11398_vm2, %v3978_v43, %v11915_v8  ;;  %v4849_v15 = vmul.f32 %v8121_v55, %v11843_v52  ;;  %v11919_v41 = vld [vmem:[#allocation18_spill] sm:$0xff]  ;;  %v723_v45 = vrot.slane %v11930_v37, 4 }
 0x26d   : > { %11914 = vst [vmem:[#allocation39_spill] sm:$0xff] %v8236_v49  ;;  %11916 = vst [vmem:[#allocation103_spill] sm:$0xff] %v8240_v7  ;;  %v4878_v4 = vadd.f32 %v4862_v25, %v4846_v1  ;;  %v8246_v26 = vadd.f32 %v4863_v0, %v4847_v20  ;;  %v8248_v31 = vadd.f32 %v4864_v59, %v4848_v27  ;;  %v735_v36 = vrot.slane %v11932_v17, 4 }
 0x26e   : > { %v8252_v19 = vsel %vm11398_vm2, %v4467_v2, %v11917_v60  ;;  %v8256_v28 = vsel %vm11398_vm2, %v4473_v58, %v11919_v41  ;;  %v8260_v48 = vsel %vm11398_vm2, %v4479_v22, %v11921_v50  ;;  %v8264_v52 = vsel %vm11398_vm2, %v4485_v39, %v7951_v30  ;;  %v11935_v41 = vld [vmem:[#allocation93_spill] sm:$0xff] }
 0x26f   : > { %11918 = vst [vmem:[#allocation70_spill] sm:$0xff] %v8252_v19  ;;  %11920 = vst [vmem:[#allocation52_spill] sm:$0xff] %v8256_v28  ;;  %v8266_v55 = vadd.f32 %v4865_v23, %v4849_v15  ;;  %v1835_v38 = vmul.f32 %v1821_v56, %v11924_v63  ;;  %v1836_v42 = vmul.f32 %v1821_v56, %v11925_v11  ;;  %v717_v30 = vrot.slane %v11929_v46, 4  ;;  %v1941_v16 = vpop.permute.xlu1 %1940 }
 0x270   : > { %11922 = vst [vmem:[#allocation9_spill] sm:$0xff] %v8260_v48  ;;  %11923 = vst [vmem:[#allocation18_spill] sm:$0xff] %v8264_v52  ;;  %v1837_v44 = vmul.f32 %v1821_v56, %v11926_v53  ;;  %v8272_v61 = vmul.f32 %v1821_v56, %v11927_v47  ;;  %v1878_v24 = vrot.slane %v11924_v63, %v11928_v12  ;;  %v4934_v35 = vrot.slane %v4878_v4, 4  ;;  %v11939_v48 = vld [vmem:[#allocation95_spill] sm:$0xff] }
 0x271   : > { %v1882_v54 = vrot.slane %v11925_v11, %v11928_v12  ;;  %v4940_v21 = vrot.slane %v8246_v26, 4  ;;  %v4946_v3 = vrot.slane %v8248_v31, 4  ;;  %v1886_v6 = vrot.slane %v11926_v53, %v11928_v12 }
 0x272   : > { %v718_v32 = vmax.f32 %v11929_v46, %v717_v30  ;;  %v729_v56 = vrot.slane %v11931_v29, 4  ;;  %v8290_v43 = vsub.f32 %v1878_v24, %v1835_v38  ;;  %v724_v25 = vmax.f32 %v11930_v37, %v723_v45 }
 0x273   : > { %v8293_v0 = vsub.f32 %v1882_v54, %v1836_v42  ;;  %v736_v58 = vmax.f32 %v11932_v17, %v735_v36  ;;  %v1955_v39 = vmul.f32 %v1941_v16, %v11929_v46  ;;  %v1956_v1 = vmul.f32 %v1941_v16, %v11930_v37 }
 0x274   : > { %11933 = vst [vmem:[#allocation135_spill] sm:$0xff] %v8290_v43  ;;  %v719_v59 = vrot.slane %v718_v32, 2  ;;  %v730_v2 = vmax.f32 %v11931_v29, %v729_v56  ;;  %v725_v22 = vrot.slane %v724_v25, 2  ;;  %v1957_v20 = vmul.f32 %v1941_v16, %v11931_v29 }
 0x275   : > { %11934 = vst [vmem:[#allocation17_spill] sm:$0xff] %v8293_v0  ;;  %v737_v8 = vrot.slane %v736_v58, 2  ;;  %v1958_v15 = vmul.f32 %v1941_v16, %v11932_v17  ;;  %v1974_v50 = vrot.slane %v11929_v46, %v11935_v41  ;;  %v1978_v38 = vrot.slane %v11930_v37, %v11935_v41 }
 0x276   : > { %v720_v27 = vmax.f32 %v718_v32, %v719_v59  ;;  %v731_v23 = vrot.slane %v730_v2, 2  ;;  %v726_v60 = vmax.f32 %v724_v25, %v725_v22  ;;  %v1982_v42 = vrot.slane %v11931_v29, %v11935_v41 }
 0x277   : > { %v738_v30 = vmax.f32 %v736_v58, %v737_v8  ;;  %v1986_v45 = vrot.slane %v11932_v17, %v11935_v41  ;;  %v2035_v56 = vsub.f32 %v1974_v50, %v1955_v39  ;;  %v2036_v36 = vsub.f32 %v1978_v38, %v1956_v1 }
 0x278   : > { %v721_v24 = vrot.slane %v720_v27, 1  ;;  %v732_v54 = vmax.f32 %v730_v2, %v731_v23  ;;  %v727_v32 = vrot.slane %v726_v60, 1  ;;  %v2037_v16 = vsub.f32 %v1982_v42, %v1957_v20  ;;  %v11940_v2 = vld [vmem:[#allocation96_spill] sm:$0xff] }
 0x279   : > { %v739_v22 = vrot.slane %v738_v30, 1  ;;  %v2038_v10 = vsub.f32 %v1986_v45, %v1958_v15  ;;  %v2051_v52 = vmax.f32 %v11938_v18, %v2035_v56  ;;  %v2052_v28 = vmax.f32 %v11939_v48, %v2036_v36  ;;  %v11943_v18 = vld [vmem:[#allocation8_spill] sm:$0xff]  ;;  %v11944_v48 = vld [vmem:[#allocation97_spill] sm:$0xff] }
 0x27a   : > { %v8309_v25 = vmax.f32 %v720_v27, %v721_v24  ;;  %v733_v59 = vrot.slane %v732_v54, 1  ;;  %v8311_v5 = vmax.f32 %v726_v60, %v727_v32  ;;  %v2053_v58 = vmax.f32 %v11940_v2, %v2037_v16  ;;  %v11955_v45 = vld [vmem:[#allocation116_spill] sm:$0xff]  ;;  %v11956_v56 = vld [vmem:[#allocation117_spill] sm:$0xff]  ;;  %v11957_v16 = vld [vmem:[#allocation118_spill] sm:$0xff] }
 0x27b   : > { %v8316_v23 = vadd.f32 %v4934_v35, %v4878_v4  ;;  %v8320_v39 = vmax.f32 %v738_v30, %v739_v22  ;;  %v8325_v1 = vadd.f32 %v4940_v21, %v8246_v26  ;;  %v2054_v27 = vmax.f32 %v11944_v48, %v2038_v10 }
 0x27c   : > { %11936 = vst [vmem:[#allocation54_spill] sm:$0xff] %v8309_v25  ;;  %11937 = vst [vmem:[#allocation55_spill] sm:$0xff] %v8311_v5  ;;  %v8318_v8 = vmax.f32 %v732_v54, %v733_v59  ;;  %vm831_vm3 = vcmp.eq.f32.partialorder %v11929_v46, %v8309_v25  ;;  %vm832_vm5 = vcmp.eq.f32.partialorder %v11930_v37, %v8311_v5  ;;  %vm8355_vm8 = vcmp.le.f32.partialorder %v2051_v52, 0.0001  ;;  %v11954_v54 = vld [vmem:[#allocation112_spill] sm:$0xff]  ;;  %v11962_v37 = vld [vmem:[#allocation47_spill] sm:$0xff] }
 0x27d   : > { %11942 = vst [vmem:[#allocation57_spill] sm:$0xff] %v8320_v39  ;;  %v8330_v20 = vsel %vm831_vm3, %v11943_v18, 8  ;;  %v8334_v4 = vadd.f32 %v4946_v3, %v8248_v31  ;;  %v8336_v35 = vsub.f32 %v1886_v6, %v1837_v44  ;;  %vm834_vm7 = vcmp.eq.f32.partialorder %v11932_v17, %v8320_v39 }
 0x27e   : > { %11941 = vst [vmem:[#allocation56_spill] sm:$0xff] %v8318_v8  ;;  %vm833_vm6 = vcmp.eq.f32.partialorder %v11931_v29, %v8318_v8  ;;  %v8343_v26 = vsel %vm832_vm5, %v11943_v18, 8  ;;  %v8349_v21 = vsel %vm834_vm7, %v11943_v18, 8  ;;  %v863_v10 = vrot.slane %v8330_v20, 4 }
 0x27f   : > { %11945 = vst [vmem:[#allocation93_spill] sm:$0xff] %v8336_v35  ;;  %v8346_v46 = vsel %vm833_vm6, %v11943_v18, 8  ;;  %v872_v31 = vrot.slane %v8343_v26, 4  ;;  %v890_v3 = vrot.slane %v8349_v21, 4  ;;  %vm8360_vm10 = vcmp.le.f32.partialorder %v2052_v28, 0.0001 }
 0x280   : > { %v881_v44 = vrot.slane %v8346_v46, 4  ;;  %vm864_vm9 = vcmp.lt.s32.totalorder %v8330_v20, %v863_v10  ;;  %vm8364_vm11 = vcmp.le.f32.partialorder %v2053_v58, 0.0001  ;;  %vm8368_vm12 = vcmp.le.f32.partialorder %v2054_v27, 0.0001 }
 0x281   : > { %v865_v15 = vsel %vm864_vm9, %v8330_v20, %v863_v10  ;;  %vm873_vm13 = vcmp.lt.s32.totalorder %v8343_v26, %v872_v31  ;;  %vm891_vm0 = vcmp.lt.s32.totalorder %v8349_v21, %v890_v3  ;;  %v8382_v30 = vsel %vm8355_vm8, %v11954_v54, 3.4028235e+38 }
 0x282   : > { %vm882_vm14 = vcmp.lt.s32.totalorder %v8346_v46, %v881_v44  ;;  %v866_v28 = vrot.slane %v865_v15, 2  ;;  %v874_v52 = vsel %vm873_vm13, %v8343_v26, %v872_v31  ;;  %v892_v50 = vsel %vm891_vm0, %v8349_v21, %v890_v3 }
 0x283   : > { %v883_v60 = vsel %vm882_vm14, %v8346_v46, %v881_v44  ;;  %v875_v38 = vrot.slane %v874_v52, 2  ;;  %v893_v24 = vrot.slane %v892_v50, 2  ;;  %v8387_v32 = vsel %vm8360_vm10, %v11955_v45, 3.4028235e+38  ;;  %v11961_v44 = vld [vmem:[#allocation37_spill] sm:$0xff] }
 0x284   : > { %v884_v42 = vrot.slane %v883_v60, 2  ;;  %vm867_vm15 = vcmp.lt.s32.totalorder %v865_v15, %v866_v28  ;;  %v8392_v36 = vsel %vm8364_vm11, %v11956_v56, 3.4028235e+38  ;;  %v8397_v59 = vsel %vm8368_vm12, %v11957_v16, 3.4028235e+38  ;;  %v11963_v45 = vld [vmem:[#allocation69_spill] sm:$0xff] }
 0x285   : > { %v868_v22 = vsel %vm867_vm15, %v865_v15, %v866_v28  ;;  %vm876_vm1 = vcmp.lt.s32.totalorder %v874_v52, %v875_v38  ;;  %vm894_vm5 = vcmp.lt.s32.totalorder %v892_v50, %v893_v24  ;;  %v11958_v2 = vrot.slane %v8266_v55, 4  ;;  %v11964_v56 = vld [vmem:[#allocation71_spill] sm:$0xff] }
 0x286   : > { %vm885_vm3 = vcmp.lt.s32.totalorder %v883_v60, %v884_v42  ;;  %v11959_v48 = vrot.slane %v11927_v47, %v11928_v12  ;;  %v869_v10 = vrot.slane %v868_v22, 1  ;;  %v877_v31 = vsel %vm876_vm1, %v874_v52, %v875_v38 }
 0x287   : > { %v4953_v58 = vadd.f32 %v11958_v2, %v8266_v55  ;;  %v8410_v3 = vmul.f32 %v8242_v14, %v11961_v44  ;;  %v8414_v6 = vmul.f32 %v8242_v14, %v11962_v37  ;;  %v886_v29 = vsel %vm885_vm3, %v883_v60, %v884_v42 }
 0x288   : > { %v8406_v27 = vsub.f32 %v11959_v48, %v8272_v61  ;;  %v895_v17 = vsel %vm894_vm5, %v892_v50, %v893_v24  ;;  %v4936_v55 = vrot.slane %v8316_v23, 2  ;;  %v4942_v15 = vrot.slane %v8325_v1, 2 }
 0x289   : > { %v878_v28 = vrot.slane %v877_v31, 1  ;;  %v2159_v61 = vrot.slane %v8382_v30, 4  ;;  %vm870_vm6 = vcmp.lt.s32.totalorder %v868_v22, %v869_v10  ;;  %v2165_v12 = vrot.slane %v8387_v32, 4 }
 0x28a   : > { %11960 = vst [vmem:[#allocation94_spill] sm:$0xff] %v8406_v27  ;;  %v2171_v52 = vrot.slane %v8392_v36, 4  ;;  %v2177_v38 = vrot.slane %v8397_v59, 4  ;;  %v4948_v54 = vrot.slane %v8334_v4, 2  ;;  %v8425_v60 = vmul.f32 %v8242_v14, %v11963_v45 }
 0x28b   : > { %v887_v50 = vrot.slane %v886_v29, 1  ;;  %v896_v42 = vrot.slane %v895_v17, 1  ;;  %v4954_v24 = vrot.slane %v4953_v58, 2  ;;  %v8429_v16 = vmul.f32 %v8242_v14, %v11964_v56 }
 0x28c   : > { %v8436_v19 = vadd.f32 %v4936_v55, %v8316_v23  ;;  %v8439_v7 = vadd.f32 %v4942_v15, %v8325_v1  ;;  %v871_v49 = vsel %vm870_vm6, %v868_v22, %v869_v10  ;;  %v2160_v51 = vmin.f32 %v8382_v30, %v2159_v61  ;;  %v11971_v22 = vld [vmem:[#allocation78_spill] sm:$0xff] }
 0x28d   : > { %vm8442_vm7 = vcmp.lt.s32.totalorder %v877_v31, %v878_v28  ;;  %v2166_v14 = vmin.f32 %v8387_v32, %v2165_v12  ;;  %v2172_v2 = vmin.f32 %v8392_v36, %v2171_v52  ;;  %v2178_v27 = vmin.f32 %v8397_v59, %v2177_v38  ;;  %v11972_v61 = vld [vmem:[#allocation110_spill] sm:$0xff]  ;;  %v11973_v38 = vld [vmem:[#allocation132_spill] sm:$0xff] }
 0x28e   : > { %vm8449_vm8 = vcmp.lt.s32.totalorder %v886_v29, %v887_v50  ;;  %vm8453_vm9 = vcmp.lt.s32.totalorder %v895_v17, %v896_v42  ;;  %v2161_v1 = vrot.slane %v2160_v51, 2  ;;  %5556 = vrsqrt.f32 %v11971_v22 }
 0x28f   : > { %v2167_v10 = vrot.slane %v2166_v14, 2  ;;  %v2173_v55 = vrot.slane %v2172_v2, 2  ;;  %v2179_v15 = vrot.slane %v2178_v27, 2  ;;  %5558 = vrsqrt.f32 %v11972_v61 }
 0x290   : > { %v8460_v12 = vadd.f32 %v4948_v54, %v8334_v4  ;;  %v8462_v52 = vadd.f32 %v4954_v24, %v4953_v58  ;;  %v2162_v35 = vmin.f32 %v2160_v51, %v2161_v1  ;;  %v880_v0 = vsel %vm8442_vm7, %v877_v31, %v878_v28  ;;  %v11979_v28 = vld [vmem:[#allocation133_spill] sm:$0xff] }
 0x291   : > { %v2168_v43 = vmin.f32 %v2166_v14, %v2167_v10  ;;  %v2174_v47 = vmin.f32 %v2172_v2, %v2173_v55  ;;  %v2180_v53 = vmin.f32 %v2178_v27, %v2179_v15  ;;  %v889_v11 = vsel %vm8449_vm8, %v886_v29, %v887_v50 }
 0x292   : > { %v898_v63 = vsel %vm8453_vm9, %v895_v17, %v896_v42  ;;  %vm1007_vm10 = vcmp.eq.s32.totalorder %v8330_v20, %v871_v49  ;;  %v2163_v4 = vrot.slane %v2162_v35, 1  ;;  %5560 = vrsqrt.f32 %v11973_v38 }
 0x293   : > { %v2169_v58 = vrot.slane %v2168_v43, 1  ;;  %v2175_v54 = vrot.slane %v2174_v47, 1  ;;  %v2181_v24 = vrot.slane %v2180_v53, 1  ;;  %vm1008_vm11 = vcmp.eq.s32.totalorder %v8343_v26, %v880_v0 }
 0x294   : > { %v8478_v27 = vmin.f32 %v2162_v35, %v2163_v4  ;;  %vm1009_vm12 = vcmp.eq.s32.totalorder %v8346_v46, %v889_v11  ;;  %vm1010_vm13 = vcmp.eq.s32.totalorder %v8349_v21, %v898_v63  ;;  %v11978_v29 = vmov 0.0  }
 0x295   : > { %v8481_v31 = vmin.f32 %v2168_v43, %v2169_v58  ;;  %v8483_v49 = vmin.f32 %v2174_v47, %v2175_v54  ;;  %v8485_v20 = vmin.f32 %v2180_v53, %v2181_v24  ;;  %v8489_v17 = vsel %vm1007_vm10, 1.0, %v11978_v29 }
 0x296   : > { %11974 = vst [vmem:[#allocation95_spill] sm:$0xff] %v8478_v27  ;;  %vm2255_vm14 = vcmp.eq.f32.partialorder %v8382_v30, %v8478_v27  ;;  %5562 = vrsqrt.f32 %v11979_v28  ;;  %vm11397_vm3 = vcmp.le.f32.partialorder %v8309_v25, 0.0  ;;  %v8525_v42 = vsel %vm1009_vm12, 1.0, %v11978_v29 }
 0x297   : > { %11975 = vst [vmem:[#allocation96_spill] sm:$0xff] %v8481_v31  ;;  %11976 = vst [vmem:[#allocation97_spill] sm:$0xff] %v8483_v49  ;;  %vm2256_vm0 = vcmp.eq.f32.partialorder %v8387_v32, %v8481_v31  ;;  %vm2257_vm15 = vcmp.eq.f32.partialorder %v8392_v36, %v8483_v49  ;;  %vm2258_vm1 = vcmp.eq.f32.partialorder %v8397_v59, %v8485_v20  ;;  %v8501_v53 = vsel %vm2255_vm14, %v11943_v18, 8 }
 0x298   : > { %11977 = vst [vmem:[#allocation112_spill] sm:$0xff] %v8485_v20  ;;  %v8504_v47 = vsel %vm2256_vm0, %v11943_v18, 8  ;;  %v8507_v43 = vsel %vm2257_vm15, %v11943_v18, 8  ;;  %v8510_v35 = vsel %vm2258_vm1, %v11943_v18, 8  ;;  %v2287_v30 = vrot.slane %v8501_v53, 4 }
 0x299   : > { %v8516_v32 = vsel %vm1008_vm11, 1.0, %v11978_v29  ;;  %v2296_v36 = vrot.slane %v8504_v47, 4  ;;  %v2305_v59 = vrot.slane %v8507_v43, 4  ;;  %v2314_v50 = vrot.slane %v8510_v35, 4 }
 0x29a   : > { %v8530_v2 = vsel %vm1010_vm13, 1.0, %v11978_v29  ;;  %vm2288_vm5 = vcmp.lt.s32.totalorder %v8501_v53, %v2287_v30  ;;  %vm3365_vm6 = vcmp.eq.f32.partialorder %v11971_v22, inf  ;;  %vm11399_vm7 = vcmp.le.f32.partialorder %v8311_v5, 0.0 }
 0x29b   : > { %v5557_v0 = vpop.eup %5556  ;;  %v2289_v26 = vsel %vm2288_vm5, %v8501_v53, %v2287_v30  ;;  %vm2297_vm8 = vcmp.lt.s32.totalorder %v8504_v47, %v2296_v36  ;;  %vm2306_vm9 = vcmp.lt.s32.totalorder %v8507_v43, %v2305_v59  ;;  %vm2315_vm10 = vcmp.lt.s32.totalorder %v8510_v35, %v2314_v50 }
 0x29c   : > { %v5559_v11 = vpop.eup %5558  ;;  %vm11400_vm11 = vcmp.le.f32.partialorder %v8318_v8, 0.0  ;;  %v2290_v63 = vrot.slane %v2289_v26, 2  ;;  %v2298_v46 = vsel %vm2297_vm8, %v8504_v47, %v2296_v36  ;;  %v2307_v21 = vsel %vm2306_vm9, %v8507_v43, %v2305_v59 }
 0x29d   : > { %v2316_v48 = vsel %vm2315_vm10, %v8510_v35, %v2314_v50  ;;  %v2299_v14 = vrot.slane %v2298_v46, 2  ;;  %v2308_v23 = vrot.slane %v2307_v21, 2  ;;  %vm3367_vm12 = vcmp.eq.f32.partialorder %v11971_v22, 0.0 }
 0x29e   : > { %v2317_v1 = vrot.slane %v2316_v48, 2  ;;  %vm2291_vm13 = vcmp.lt.s32.totalorder %v2289_v26, %v2290_v63  ;;  %v3364_v10 = vmul.f32 %v5557_v0, %v11971_v22  ;;  %v3368_v55 = vand.u32 2147483648, %v11971_v22 }
 0x29f   : > { %v3371_v15 = vmul.f32 %v5559_v11, %v11972_v61  ;;  %v2292_v4 = vsel %vm2291_vm13, %v2289_v26, %v2290_v63  ;;  %vm2300_vm14 = vcmp.lt.s32.totalorder %v2298_v46, %v2299_v14  ;;  %vm2309_vm0 = vcmp.lt.s32.totalorder %v2307_v21, %v2308_v23  ;;  %v5561_v58 = vpop.eup %5560 }
 0x2a0   : > { %vm2318_vm15 = vcmp.lt.s32.totalorder %v2316_v48, %v2317_v1  ;;  %vm11430_vm1 = vcmp.le.f32.partialorder %v8320_v39, 0.0  ;;  %v2301_v54 = vsel %vm2300_vm14, %v2298_v46, %v2299_v14  ;;  %v2310_v24 = vsel %vm2309_vm0, %v2307_v21, %v2308_v23  ;;  %v11980_v14 = vld [vmem:[#allocation36_spill] sm:$0xff] }
 0x2a1   : > { %vm3372_vm5 = vcmp.eq.f32.partialorder %v11972_v61, inf  ;;  %vm3374_vm8 = vcmp.eq.f32.partialorder %v11972_v61, 0.0  ;;  %v2293_v30 = vrot.slane %v2292_v4, 1  ;;  %v2319_v36 = vsel %vm2318_vm15, %v2316_v48, %v2317_v1 }
 0x2a2   : > { %v3375_v59 = vand.u32 2147483648, %v11972_v61  ;;  %vm3379_vm9 = vcmp.eq.f32.partialorder %v11973_v38, inf  ;;  %v2302_v50 = vrot.slane %v2301_v54, 1  ;;  %v2311_v0 = vrot.slane %v2310_v24, 1 }
 0x2a3   : > { %vm3381_vm10 = vcmp.eq.f32.partialorder %v11973_v38, 0.0  ;;  %v3382_v26 = vand.u32 2147483648, %v11973_v38  ;;  %v5563_v11 = vpop.eup %5562  ;;  %v3366_v63 = vsel %vm3365_vm6, %v11971_v22, %v3364_v10  ;;  %v3373_v46 = vsel %vm3372_vm5, %v11972_v61, %v3371_v15 }
 0x2a4   : > { %v3378_v21 = vmul.f32 %v5561_v58, %v11973_v38  ;;  %vm3386_vm13 = vcmp.eq.f32.partialorder %v11979_v28, inf  ;;  %v2320_v48 = vrot.slane %v2319_v36, 1  ;;  %vm3388_vm14 = vcmp.eq.f32.partialorder %v11979_v28, 0.0 }
 0x2a5   : > { %v3635_v23 = vmul.f32 %v8489_v17, %v11980_v14  ;;  %v3636_v1 = vmul.f32 %v8516_v32, %v11980_v14  ;;  %vm8565_vm0 = vcmp.lt.s32.totalorder %v2292_v4, %v2293_v30  ;;  %v3389_v10 = vand.u32 2147483648, %v11979_v28 }
 0x2a6   : > { %vm11431_vm6 = vmmov 1   ;;  %v3637_v58 = vmul.f32 %v8525_v42, %v11980_v14  ;;  %v3638_v9 = vmul.f32 %v8530_v2, %v11980_v14  ;;  %vm8581_vm5 = vcmp.lt.s32.totalorder %v2301_v54, %v2302_v50 }
 0x2a7   : > { %vm8573_vm15 = vmxor %vm11397_vm3, %vm11431_vm6  ;;  %vm8585_vm4 = vcmp.lt.s32.totalorder %v2310_v24, %v2311_v0  ;;  %v8591_v25 = vsel %vm3367_vm12, %v3368_v55, %v3366_v63  ;;  %v8595_v34 = vsel %vm3374_vm8, %v3375_v59, %v3373_v46  ;;  %v3380_v57 = vsel %vm3379_vm9, %v11973_v38, %v3378_v21 }
 0x2a8   : > { %11989 = vst [vmem:[#allocation116_spill] sm:$0xff] %v8591_v25  ;;  %11990 = vst [vmem:[#allocation117_spill] sm:$0xff] %v8595_v34  ;;  %v3385_v40 = vmul.f32 %v5563_v11, %v11979_v28  ;;  %vm3539_vm12 = vcmp.lt.f32.partialorder %v8591_v25, %v8478_v27  ;;  %vm3540_vm8 = vcmp.lt.f32.partialorder %v8595_v34, %v8481_v31  ;;  %v11996_v59 = vmov 0 }
 0x2a9   : > { %vm3524_vm3 = vmxor %vm11399_vm7, %vm11431_vm6  ;;  %vm8615_vm7 = vcmp.lt.s32.totalorder %v2319_v36, %v2320_v48  ;;  %v8621_v55 = vsel %vm3381_vm10, %v3382_v26, %v3380_v57  ;;  %v3651_v11 = vrot.slane %v3635_v23, 4  ;;  %v3657_v63 = vrot.slane %v3636_v1, 4 }
 0x2aa   : > { %vm8607_vm2 = vmxor %vm11400_vm11, %vm11431_vm6  ;;  %11995 = vst [vmem:[#allocation118_spill] sm:$0xff] %v8621_v55  ;;  %v2295_v46 = vsel %vm8565_vm0, %v2292_v4, %v2293_v30  ;;  %v3387_v21 = vsel %vm3386_vm13, %v11979_v28, %v3385_v40  ;;  %vm3541_vm11 = vcmp.lt.f32.partialorder %v8621_v55, %v8483_v49  ;;  %v11999_v57 = vmov 0 }
 0x2ab   : > { %vm8625_vm9 = vmand %vm3539_vm12, %vm8573_vm15  ;;  %v2304_v51 = vsel %vm8581_vm5, %v2301_v54, %v2302_v50  ;;  %v2313_v4 = vsel %vm8585_vm4, %v2310_v24, %v2311_v0  ;;  %v8650_v40 = vsel %vm3388_vm14, %v3389_v10, %v3387_v21  ;;  %v12003_v30 = vmov 0 }
 0x2ac   : > { %v11997_v59 = vsel %vm8625_vm9, 4294967295, %v11996_v59  ;;  %vm8636_vm10 = vmand %vm3540_vm8, %vm3524_vm3  ;;  %12002 = vst [vmem:[#allocation69_spill] sm:$0xff] %v8650_v40  ;;  %v4944_v18 = vrot.slane %v8439_v7, 1  ;;  %v2322_v62 = vsel %vm8615_vm7, %v2319_v36, %v2320_v48  ;;  %v12006_v54 = vrot.slane %v11961_v44, %v11935_v41 }
 0x2ad   : > { %11998 = vst [vmem:[#allocation37_spill] sm:$0xff] %v11997_v59  ;;  %v12000_v57 = vsel %vm8636_vm10, 4294967295, %v11999_v57  ;;  %vm8654_vm3 = vmand %vm3541_vm11, %vm8607_vm2  ;;  %vm3542_vm2 = vcmp.lt.f32.partialorder %v8650_v40, %v8485_v20  ;;  %vm2431_vm7 = vcmp.eq.s32.totalorder %v8501_v53, %v2295_v46  ;;  %v12007_v36 = vmov 0 }
 0x2ae   : > { %12001 = vst [vmem:[#allocation47_spill] sm:$0xff] %v12000_v57  ;;  %v12004_v30 = vsel %vm8654_vm3, 4294967295, %v12003_v30  ;;  %vm3526_vm4 = vmxor %vm11430_vm1, %vm11431_vm6  ;;  %v8678_v24 = vsub.f32 %v12006_v54, %v8410_v3  ;;  %v3652_v50 = vadd.f32 %v3651_v11, %v3635_v23  ;;  %v3663_v0 = vrot.slane %v3637_v58, 4 }
 0x2af   : > { %12005 = vst [vmem:[#allocation71_spill] sm:$0xff] %v12004_v30  ;;  %vm8681_vm11 = vmand %vm3542_vm2, %vm3526_vm4  ;;  %vm2432_vm13 = vcmp.eq.s32.totalorder %v8504_v47, %v2304_v51  ;;  %vm2433_vm14 = vcmp.eq.s32.totalorder %v8507_v43, %v2313_v4  ;;  %v3658_v10 = vadd.f32 %v3657_v63, %v3636_v1  ;;  %v4950_v3 = vrot.slane %v8460_v12, 1 }
 0x2b0   : > { %v12008_v36 = vsel %vm8681_vm11, 4294967295, %v12007_v36  ;;  %v4956_v53 = vrot.slane %v8462_v52, 1  ;;  %vm2434_vm0 = vcmp.eq.s32.totalorder %v8510_v35, %v2322_v62  ;;  %v3669_v15 = vrot.slane %v3638_v9, 4 }
 0x2b1   : > { %12009 = vst [vmem:[#allocation78_spill] sm:$0xff] %v12008_v36  ;;  %v12010_v23 = vrot.slane %v8436_v19, 1  ;;  %v4945_v47 = vadd.f32 %v4944_v18, %v8439_v7  ;;  %v12011_v43 = vrot.slane %v11962_v37, %v11935_v41  ;;  %v8705_v1 = vsel %vm2431_vm7, 1.0, %v11978_v29 }
 0x2b2   : > { %v12012_v35 = vrot.slane %v11963_v45, %v11935_v41  ;;  %v8720_v63 = vsel %vm2432_vm13, 1.0, %v11978_v29  ;;  %v8726_v46 = vsel %vm2434_vm0, 1.0, %v11978_v29  ;;  %v3653_v21 = vrot.slane %v3652_v50, 2 }
 0x2b3   : > { %v4939_v22 = vadd.f32 %v12010_v23, %v8436_v19  ;;  %v8702_v61 = vsub.f32 %v12011_v43, %v8414_v6  ;;  %v12013_v19 = vrot.slane %v11964_v56, %v11935_v41  ;;  %v8723_v6 = vsel %vm2433_vm14, 1.0, %v11978_v29 }
 0x2b4   : > { %v8711_v11 = vsub.f32 %v12012_v35, %v8425_v60  ;;  %v3659_v51 = vrot.slane %v3658_v10, 2  ;;  %v3664_v4 = vadd.f32 %v3663_v0, %v3637_v58  ;;  %v4951_v60 = vadd.f32 %v4950_v3, %v8460_v12  ;;  %v12019_v35 = vld [vmem:[#allocation85_spill] sm:$0xff] }
 0x2b5   : > { %v8717_v7 = vsub.f32 %v12013_v19, %v8429_v16  ;;  %v4957_v18 = vadd.f32 %v4956_v53, %v8462_v52  ;;  %v3670_v62 = vadd.f32 %v3669_v15, %v3638_v9  ;;  %v3747_v16 = vmul.f32 %v8705_v1, %v11980_v14  ;;  %v12018_v9 = vld [vmem:[#allocation49_spill] sm:$0xff]  ;;  %v12022_v19 = vld [vmem:[#allocation67_spill] sm:$0xff] }
 0x2b6   : > { %vm12014_vm15 = vcmask 1042434   ;;  %5564 = vrcp.f32 %v8591_v25  ;;  %v3748_v58 = vmul.f32 %v8720_v63, %v11980_v14  ;;  %v3749_v12 = vmul.f32 %v8723_v6, %v11980_v14 }
 0x2b7   : > { %v8734_v54 = vsel %vm12014_vm15, %v4939_v22, %v8201_v33  ;;  %vm12016_vm5 = vmmov %vm12014_vm15  ;;  %5566 = vrcp.f32 %v8595_v34  ;;  %v3750_v52 = vmul.f32 %v8726_v46, %v11980_v14  ;;  %v4142_v33 = vmul.f32 %v8489_v17, %v12018_v9 }
 0x2b8   : > { %12015 = vst [vmem:[#allocation110_spill] sm:$0xff] %v8734_v54  ;;  %v8738_v23 = vsel %vm12016_vm5, %v4945_v47, %v8204_v13  ;;  %v3654_v0 = vadd.f32 %v3653_v21, %v3652_v50  ;;  %v3660_v3 = vadd.f32 %v3659_v51, %v3658_v10  ;;  %v3665_v13 = vrot.slane %v3664_v4, 2  ;;  %vm12020_vm12 = vmmov %vm12016_vm5 }
 0x2b9   : > { %12017 = vst [vmem:[#allocation132_spill] sm:$0xff] %v8738_v23  ;;  %v4143_v53 = vmul.f32 %v8516_v32, %v12018_v9  ;;  %v3671_v15 = vrot.slane %v3670_v62, 2  ;;  %v3763_v22 = vrot.slane %v3747_v16, 4  ;;  %v4144_v47 = vmul.f32 %v8525_v42, %v12018_v9  ;;  %vm12023_vm8 = vmmov %vm12016_vm5 }
 0x2ba   : > { %v4145_v43 = vmul.f32 %v8530_v2, %v12018_v9  ;;  %v8758_v14 = vsel %vm12020_vm12, %v4951_v60, %v12019_v35  ;;  %v8762_v50 = vsel %vm12023_vm8, %v4957_v18, %v12022_v19  ;;  %5568 = vrcp.f32 %v8621_v55 }
 0x2bb   : > { %12021 = vst [vmem:[#allocation133_spill] sm:$0xff] %v8758_v14  ;;  %12024 = vst [vmem:[#allocation36_spill] sm:$0xff] %v8762_v50  ;;  %v3769_v10 = vrot.slane %v3748_v58, 4  ;;  %5570 = vrcp.f32 %v8650_v40  ;;  %v3775_v21 = vrot.slane %v3749_v12, 4  ;;  %v3781_v51 = vrot.slane %v3750_v52, 4 }
 0x2bc   : > { %v4158_v48 = vrot.slane %v4142_v33, 4  ;;  %v3655_v28 = vrot.slane %v3654_v0, 1  ;;  %v3661_v26 = vrot.slane %v3660_v3, 1  ;;  %v3666_v38 = vadd.f32 %v3665_v13, %v3664_v4 }
 0x2bd   : > { %v4164_v23 = vrot.slane %v4143_v53, 4  ;;  %v3672_v54 = vadd.f32 %v3671_v15, %v3670_v62  ;;  %v3764_v39 = vadd.f32 %v3763_v22, %v3747_v16  ;;  %v4170_v60 = vrot.slane %v4144_v47, 4 }
 0x2be   : > { %v4176_v35 = vrot.slane %v4145_v43, 4  ;;  %v3770_v14 = vadd.f32 %v3769_v10, %v3748_v58  ;;  %v4254_v18 = vmul.f32 %v8705_v1, %v12018_v9  ;;  %v4255_v19 = vmul.f32 %v8720_v63, %v12018_v9 }
 0x2bf   : > { %v4256_v50 = vmul.f32 %v8723_v6, %v12018_v9  ;;  %v3776_v20 = vadd.f32 %v3775_v21, %v3749_v12  ;;  %v3782_v40 = vadd.f32 %v3781_v51, %v3750_v52  ;;  %v4159_v36 = vadd.f32 %v4158_v48, %v4142_v33 }
 0x2c0   : > { %v4257_v4 = vmul.f32 %v8726_v46, %v12018_v9  ;;  %v4165_v62 = vadd.f32 %v4164_v23, %v4143_v53  ;;  %v4270_v16 = vrot.slane %v4254_v18, 4  ;;  %v4276_v13 = vrot.slane %v4255_v19, 4 }
 0x2c1   : > { %v4282_v15 = vrot.slane %v4256_v50, 4  ;;  %v8774_v58 = vadd.f32 %v3655_v28, %v3654_v0  ;;  %v3765_v22 = vrot.slane %v3764_v39, 2  ;;  %v4171_v10 = vadd.f32 %v4170_v60, %v4144_v47 }
 0x2c2   : > { %v4177_v8 = vadd.f32 %v4176_v35, %v4145_v43  ;;  %v8776_v49 = vadd.f32 %v3661_v26, %v3660_v3  ;;  %v3667_v55 = vrot.slane %v3666_v38, 1  ;;  %v3673_v30 = vrot.slane %v3672_v54, 1  ;;  %v12029_v26 = vld [vmem:[#allocation27_spill] sm:$0xff] }
 0x2c3   : > { %12025 = vst [vmem:[#allocation49_spill] sm:$0xff] %v8774_v58  ;;  %v3771_v5 = vrot.slane %v3770_v14, 2  ;;  %v8778_v12 = vpop.eup %5564  ;;  %v3777_v48 = vrot.slane %v3776_v20, 2  ;;  %v3783_v52 = vrot.slane %v3782_v40, 2  ;;  %v4160_v33 = vrot.slane %v4159_v36, 2 }
 0x2c4   : > { %12026 = vst [vmem:[#allocation85_spill] sm:$0xff] %v8776_v49  ;;  %12027 = vst [vmem:[#allocation67_spill] sm:$0xff] %v8778_v12  ;;  %v4288_v9 = vrot.slane %v4257_v4, 4  ;;  %v8780_v23 = vpop.eup %5566  ;;  %v4166_v53 = vrot.slane %v4165_v62, 2  ;;  %v4271_v21 = vadd.f32 %v4270_v16, %v4254_v18  ;;  %v4277_v28 = vadd.f32 %v4276_v13, %v4255_v19 }
 0x2c5   : > { %12028 = vst [vmem:[#allocation136_spill] sm:$0xff] %v8780_v23  ;;  %v4283_v0 = vadd.f32 %v4282_v15, %v4256_v50  ;;  %v3766_v51 = vadd.f32 %v3765_v22, %v3764_v39  ;;  %v4172_v47 = vrot.slane %v4171_v10, 2  ;;  %v4178_v43 = vrot.slane %v4177_v8, 2 }
 0x2c6   : > { %v4614_v3 = vmul.f32 %v8489_v17, %v12029_v26  ;;  %v8784_v60 = vadd.f32 %v3667_v55, %v3666_v38  ;;  %v8786_v35 = vadd.f32 %v3673_v30, %v3672_v54  ;;  %v3772_v49 = vadd.f32 %v3771_v5, %v3770_v14 }
 0x2c7   : > { %v4615_v58 = vmul.f32 %v8516_v32, %v12029_v26  ;;  %v8790_v12 = vpop.eup %5568  ;;  %v3778_v23 = vadd.f32 %v3777_v48, %v3776_v20  ;;  %v3784_v18 = vadd.f32 %v3783_v52, %v3782_v40  ;;  %v4161_v19 = vadd.f32 %v4160_v33, %v4159_v36 }
 0x2c8   : > { %12030 = vst [vmem:[#allocation27_spill] sm:$0xff] %v8784_v60  ;;  %12031 = vst [vmem:[#allocation137_spill] sm:$0xff] %v8786_v35  ;;  %v4289_v50 = vadd.f32 %v4288_v9, %v4257_v4  ;;  %v8792_v39 = vpop.eup %5570  ;;  %v4167_v16 = vadd.f32 %v4166_v53, %v4165_v62  ;;  %v4272_v13 = vrot.slane %v4271_v21, 2  ;;  %v4278_v15 = vrot.slane %v4277_v28, 2 }
 0x2c9   : > { %12032 = vst [vmem:[#allocation138_spill] sm:$0xff] %v8790_v12  ;;  %12033 = vst [vmem:[#allocation139_spill] sm:$0xff] %v8792_v39  ;;  %v4284_v17 = vrot.slane %v4283_v0, 2  ;;  %v3767_v55 = vrot.slane %v3766_v51, 1  ;;  %v4173_v38 = vadd.f32 %v4172_v47, %v4171_v10  ;;  %v4179_v30 = vadd.f32 %v4178_v43, %v4177_v8 }
 0x2ca   : > { %v4630_v54 = vrot.slane %v4614_v3, 4  ;;  %v3773_v5 = vrot.slane %v3772_v49, 1  ;;  %v4616_v32 = vmul.f32 %v8525_v42, %v12029_v26  ;;  %v4617_v20 = vmul.f32 %v8530_v2, %v12029_v26 }
 0x2cb   : > { %v4636_v40 = vrot.slane %v4615_v58, 4  ;;  %v3779_v36 = vrot.slane %v3778_v23, 1  ;;  %v3785_v14 = vrot.slane %v3784_v18, 1  ;;  %v4162_v4 = vrot.slane %v4161_v19, 1 }
 0x2cc   : > { %v4290_v22 = vrot.slane %v4289_v50, 2  ;;  %v4168_v62 = vrot.slane %v4167_v16, 1  ;;  %v4273_v48 = vadd.f32 %v4272_v13, %v4271_v21  ;;  %v4279_v52 = vadd.f32 %v4278_v15, %v4277_v28  ;;  %v1953_v13 = vpop.permute.xlu1 %1952 }
 0x2cd   : > { %v4285_v33 = vadd.f32 %v4284_v17, %v4283_v0  ;;  %v8798_v9 = vadd.f32 %v3767_v55, %v3766_v51  ;;  %v4174_v8 = vrot.slane %v4173_v38, 1  ;;  %v4180_v10 = vrot.slane %v4179_v30, 1  ;;  %v12043_v17 = vld [vmem:[#allocation46_spill] sm:$0xff] }
 0x2ce   : > { %v4631_v53 = vadd.f32 %v4630_v54, %v4614_v3  ;;  %v8800_v47 = vadd.f32 %v3773_v5, %v3772_v49  ;;  %v4637_v42 = vadd.f32 %v4636_v40, %v4615_v58  ;;  %v4642_v43 = vrot.slane %v4616_v32, 4  ;;  %v12042_v3 = vld [vmem:[#allocation104_spill] sm:$0xff]  ;;  %v12048_v40 = vld [vmem:[#allocation65_spill] sm:$0xff] }
 0x2cf   : > { %12034 = vst [vmem:[#allocation140_spill] sm:$0xff] %v8798_v9  ;;  %v4648_v35 = vrot.slane %v4617_v20, 4  ;;  %v8802_v2 = vadd.f32 %v3779_v36, %v3778_v23  ;;  %v8804_v60 = vadd.f32 %v3785_v14, %v3784_v18  ;;  %v8806_v39 = vadd.f32 %v4162_v4, %v4161_v19  ;;  %v12044_v23 = vld [vmem:[#allocation50_spill] sm:$0xff] }
 0x2d0   : > { %12035 = vst [vmem:[#allocation141_spill] sm:$0xff] %v8800_v47  ;;  %v4291_v12 = vadd.f32 %v4290_v22, %v4289_v50  ;;  %v8808_v21 = vadd.f32 %v4168_v62, %v4167_v16  ;;  %v4274_v28 = vrot.slane %v4273_v48, 1  ;;  %v4280_v0 = vrot.slane %v4279_v52, 1  ;;  %v12046_v50 = vld [vmem:[#allocation105_spill] sm:$0xff]  ;;  %v12047_v16 = vld [vmem:[#allocation14_spill] sm:$0xff]  ;;  %v12050_v22 = vld [vmem:[#allocation99_spill] sm:$0xff] }
 0x2d1   : > { %12036 = vst [vmem:[#allocation142_spill] sm:$0xff] %v8802_v2  ;;  %12037 = vst [vmem:[#allocation143_spill] sm:$0xff] %v8804_v60  ;;  %v4286_v51 = vrot.slane %v4285_v33, 1  ;;  %v8810_v15 = vadd.f32 %v4174_v8, %v4173_v38  ;;  %v8812_v49 = vadd.f32 %v4180_v10, %v4179_v30  ;;  %v4632_v58 = vrot.slane %v4631_v53, 2  ;;  %v12051_v38 = vld [vmem:[#allocation77_spill] sm:$0xff]  ;;  %v12052_v62 = vld [vmem:[#allocation28_spill] sm:$0xff] }
 0x2d2   : > { %12038 = vst [vmem:[#allocation144_spill] sm:$0xff] %v8806_v39  ;;  %12039 = vst [vmem:[#allocation145_spill] sm:$0xff] %v8808_v21  ;;  %v12045_v55 = vmax.f32 %v12043_v17, %v12044_v23  ;;  %v4638_v54 = vrot.slane %v4637_v42, 2  ;;  %v4643_v19 = vadd.f32 %v4642_v43, %v4616_v32  ;;  %v4649_v5 = vadd.f32 %v4648_v35, %v4617_v20  ;;  %v12054_v10 = vld [vmem:[#allocation100_spill] sm:$0xff] }
 0x2d3   : > { %12040 = vst [vmem:[#allocation146_spill] sm:$0xff] %v8810_v15  ;;  %12041 = vst [vmem:[#allocation147_spill] sm:$0xff] %v8812_v49  ;;  %v12049_v36 = vmax.f32 %v12047_v16, %v12048_v40  ;;  %v4292_v4 = vrot.slane %v4291_v12, 1  ;;  %v12053_v30 = vmax.f32 %v12051_v38, %v12052_v62  ;;  %v12055_v49 = vld [vmem:[#allocation13_spill] sm:$0xff]  ;;  %v12056_v15 = vld [vmem:[#allocation66_spill] sm:$0xff]  ;;  %v8831_v32 = vadd.f32 %v4274_v28, %v4273_v48 }
 0x2d4   : > { %v1935_v18 = vmax.f32 %v12045_v55, %v12042_v3  ;;  %v12057_v21 = vmax.f32 %v12055_v49, %v12056_v15  ;;  %v12058_v3 = vld [vmem:[#allocation59_spill] sm:$0xff]  ;;  %v8833_v35 = vadd.f32 %v4280_v0, %v4279_v52  ;;  %v8835_v20 = vadd.f32 %v4286_v51, %v4285_v33  ;;  %v12062_v43 = vld [vmem:[#allocation60_spill] sm:$0xff]  ;;  %v12063_v16 = vld [vmem:[#allocation61_spill] sm:$0xff] }
 0x2d5   : > { %v1936_v14 = vmax.f32 %v12049_v36, %v12046_v50  ;;  %v1937_v8 = vmax.f32 %v12053_v30, %v12050_v22  ;;  %v1967_v23 = vmul.f32 %v1953_v13, %v12058_v3  ;;  %12059 = vst [vmem:[#allocation104_spill] sm:$0xff] %v8831_v32  ;;  %v1968_v55 = vmul.f32 %v1953_v13, %v12062_v43  ;;  %v12064_v36 = vld [vmem:[#allocation62_spill] sm:$0xff] }
 0x2d6   : > { %v1938_v17 = vmax.f32 %v12057_v21, %v12054_v10  ;;  %12060 = vst [vmem:[#allocation46_spill] sm:$0xff] %v8833_v35  ;;  %12061 = vst [vmem:[#allocation50_spill] sm:$0xff] %v8835_v20  ;;  %v4633_v50 = vadd.f32 %v4632_v58, %v4631_v53  ;;  %v1969_v40 = vmul.f32 %v1953_v13, %v12063_v16  ;;  %v4644_v21 = vrot.slane %v4643_v19, 2 }
 0x2d7   : > { %v1970_v22 = vmul.f32 %v1953_v13, %v12064_v36  ;;  %v2022_v38 = vrot.slane %v12058_v3, %v11935_v41  ;;  %v4639_v15 = vadd.f32 %v4638_v54, %v4637_v42  ;;  %v4650_v49 = vrot.slane %v4649_v5, 2 }
 0x2d8   : > { %v2026_v48 = vrot.slane %v12062_v43, %v11935_v41  ;;  %v4726_v52 = vmul.f32 %v8705_v1, %v12029_v26  ;;  %v2030_v33 = vrot.slane %v12063_v16, %v11935_v41  ;;  %v2034_v53 = vrot.slane %v12064_v36, %v11935_v41 }
 0x2d9   : > { %v2047_v28 = vsub.f32 %v2022_v38, %v1967_v23  ;;  %v8850_v0 = vadd.f32 %v4292_v4, %v4291_v12  ;;  %v4727_v42 = vmul.f32 %v8720_v63, %v12029_v26  ;;  %v4728_v51 = vmul.f32 %v8723_v6, %v12029_v26  ;;  %v12066_v4 = vld [vmem:[#allocation119_spill] sm:$0xff] }
 0x2da   : > { %v2048_v13 = vsub.f32 %v2026_v48, %v1968_v55  ;;  %v4634_v58 = vrot.slane %v4633_v50, 1  ;;  %v2049_v54 = vsub.f32 %v2030_v33, %v1969_v40  ;;  %v2050_v62 = vsub.f32 %v2034_v53, %v1970_v22  ;;  %v12069_v40 = vld [vmem:[#allocation122_spill] sm:$0xff] }
 0x2db   : > { %12065 = vst [vmem:[#allocation105_spill] sm:$0xff] %v8850_v0  ;;  %v2063_v1 = vmax.f32 %v1935_v18, %v2047_v28  ;;  %v4640_v30 = vrot.slane %v4639_v15, 1  ;;  %v4645_v10 = vadd.f32 %v4644_v21, %v4643_v19  ;;  %v8856_v39 = vadd.f32 %v4650_v49, %v4649_v5  ;;  %v12067_v18 = vld [vmem:[#allocation120_spill] sm:$0xff]  ;;  %v12068_v5 = vld [vmem:[#allocation121_spill] sm:$0xff] }
 0x2dc   : > { %v2064_v20 = vmax.f32 %v1936_v14, %v2048_v13  ;;  %v4742_v41 = vrot.slane %v4726_v52, 4  ;;  %v2065_v23 = vmax.f32 %v1937_v8, %v2049_v54  ;;  %v2066_v12 = vmax.f32 %v1938_v17, %v2050_v62 }
 0x2dd   : > { %vm2079_vm4 = vcmp.le.f32.partialorder %v2063_v1, 0.0001  ;;  %v741_v38 = vrot.slane %v11961_v44, 4  ;;  %v747_v6 = vrot.slane %v11962_v37, 4  ;;  %v4729_v55 = vmul.f32 %v8726_v46, %v12029_v26 }
 0x2de   : > { %vm2080_vm2 = vcmp.le.f32.partialorder %v2064_v20, 0.0001  ;;  %v2155_v63 = vsel %vm2079_vm4, %v12066_v4, 3.4028235e+38  ;;  %vm2081_vm7 = vcmp.le.f32.partialorder %v2065_v23, 0.0001  ;;  %v8866_v33 = vadd.f32 %v4634_v58, %v4633_v50 }
 0x2df   : > { %vm2082_vm13 = vcmp.le.f32.partialorder %v2066_v12, 0.0001  ;;  %v2156_v19 = vsel %vm2080_vm2, %v12067_v18, 3.4028235e+38  ;;  %v2157_v14 = vsel %vm2081_vm7, %v12068_v5, 3.4028235e+38  ;;  %v742_v12 = vmax.f32 %v11961_v44, %v741_v38 }
 0x2e0   : > { %v2158_v8 = vsel %vm2082_vm13, %v12069_v40, 3.4028235e+38  ;;  %v2231_v17 = vrot.slane %v2155_v63, 4  ;;  %v2237_v22 = vrot.slane %v2156_v19, 4  ;;  %v4748_v20 = vrot.slane %v4727_v42, 4  ;;  %12070 = vst [vmem:[#allocation14_spill] sm:$0xff] %v8866_v33 }
 0x2e1   : > { %v4754_v21 = vrot.slane %v4728_v51, 4  ;;  %v2243_v49 = vrot.slane %v2157_v14, 4  ;;  %v2249_v48 = vrot.slane %v2158_v8, 4  ;;  %v4646_v53 = vrot.slane %v4645_v10, 1 }
 0x2e2   : > { %v2232_v28 = vmin.f32 %v2155_v63, %v2231_v17  ;;  %v2238_v13 = vmin.f32 %v2156_v19, %v2237_v22  ;;  %v753_v62 = vrot.slane %v11963_v45, 4  ;;  %v748_v4 = vmax.f32 %v11962_v37, %v747_v6 }
 0x2e3   : > { %v2244_v26 = vmin.f32 %v2157_v14, %v2243_v49  ;;  %v2250_v54 = vmin.f32 %v2158_v8, %v2249_v48  ;;  %v8872_v18 = vadd.f32 %v4640_v30, %v4639_v15  ;;  %v4760_v5 = vrot.slane %v4729_v55, 4 }
 0x2e4   : > { %v2233_v1 = vrot.slane %v2232_v28, 2  ;;  %v2239_v23 = vrot.slane %v2238_v13, 2  ;;  %v8874_v40 = vadd.f32 %v4742_v41, %v4726_v52  ;;  %v8876_v17 = vadd.f32 %v4748_v20, %v4727_v42 }
 0x2e5   : > { %12071 = vst [vmem:[#allocation65_spill] sm:$0xff] %v8872_v18  ;;  %v2245_v50 = vrot.slane %v2244_v26, 2  ;;  %v2251_v58 = vrot.slane %v2250_v54, 2  ;;  %v754_v33 = vmax.f32 %v11963_v45, %v753_v62  ;;  %v759_v0 = vrot.slane %v11964_v56, 4 }
 0x2e6   : > { %v2234_v22 = vmin.f32 %v2232_v28, %v2233_v1  ;;  %v2240_v49 = vmin.f32 %v2238_v13, %v2239_v23  ;;  %v743_v6 = vrot.slane %v742_v12, 2  ;;  %v749_v15 = vrot.slane %v748_v4, 2 }
 0x2e7   : > { %v2246_v48 = vmin.f32 %v2244_v26, %v2245_v50  ;;  %v2252_v46 = vmin.f32 %v2250_v54, %v2251_v58  ;;  %v8880_v30 = vadd.f32 %v4646_v53, %v4645_v10  ;;  %v8882_v18 = vadd.f32 %v4754_v21, %v4728_v51 }
 0x2e8   : > { %v2235_v38 = vrot.slane %v2234_v22, 1  ;;  %v2241_v35 = vrot.slane %v2240_v49, 1  ;;  %v8885_v20 = vadd.f32 %v4760_v5, %v4729_v55  ;;  %v755_v62 = vrot.slane %v754_v33, 2  ;;  %v12077_v55 = vld [vmem:[#allocation8_spill] sm:$0xff] }
 0x2e9   : > { %12072 = vst [vmem:[#allocation99_spill] sm:$0xff] %v8880_v30  ;;  %v2247_v52 = vrot.slane %v2246_v48, 1  ;;  %v2253_v41 = vrot.slane %v2252_v46, 1  ;;  %v760_v10 = vmax.f32 %v11964_v56, %v759_v0  ;;  %v744_v51 = vmax.f32 %v742_v12, %v743_v6 }
 0x2ea   : > { %v8887_v28 = vmin.f32 %v2234_v22, %v2235_v38  ;;  %v8889_v13 = vmin.f32 %v2240_v49, %v2241_v35  ;;  %v750_v21 = vmax.f32 %v748_v4, %v749_v15  ;;  %v756_v50 = vmax.f32 %v754_v33, %v755_v62 }
 0x2eb   : > { %v8891_v26 = vmin.f32 %v2246_v48, %v2247_v52  ;;  %v8893_v54 = vmin.f32 %v2252_v46, %v2253_v41  ;;  %v745_v12 = vrot.slane %v744_v51, 1 }
 0x2ec   : > { %12073 = vst [vmem:[#allocation77_spill] sm:$0xff] %v8887_v28  ;;  %12074 = vst [vmem:[#allocation28_spill] sm:$0xff] %v8889_v13  ;;  %vm2267_vm14 = vcmp.eq.f32.partialorder %v2155_v63, %v8887_v28  ;;  %vm2268_vm0 = vcmp.eq.f32.partialorder %v2156_v19, %v8889_v13  ;;  %v761_v19 = vrot.slane %v760_v10, 2  ;;  %v757_v15 = vrot.slane %v756_v50, 1 }
 0x2ed   : > { %12075 = vst [vmem:[#allocation100_spill] sm:$0xff] %v8891_v26  ;;  %12076 = vst [vmem:[#allocation13_spill] sm:$0xff] %v8893_v54  ;;  %vm2269_vm15 = vcmp.eq.f32.partialorder %v2157_v14, %v8891_v26  ;;  %vm2270_vm5 = vcmp.eq.f32.partialorder %v2158_v8, %v8893_v54  ;;  %v2283_v35 = vsel %vm2267_vm14, %v12077_v55, 8  ;;  %v2284_v53 = vsel %vm2268_vm0, %v12077_v55, 8 }
 0x2ee   : > { %v2285_v46 = vsel %vm2269_vm15, %v12077_v55, 8  ;;  %v2286_v1 = vsel %vm2270_vm5, %v12077_v55, 8  ;;  %v2395_v23 = vrot.slane %v2283_v35, 4  ;;  %v2404_v0 = vrot.slane %v2284_v53, 4 }
 0x2ef   : > { %v2413_v5 = vrot.slane %v2285_v46, 4  ;;  %v2422_v63 = vrot.slane %v2286_v1, 4  ;;  %v751_v14 = vrot.slane %v750_v21, 1  ;;  %v762_v52 = vmax.f32 %v760_v10, %v761_v19 }
 0x2f0   : > { %vm2396_vm12 = vcmp.lt.s32.totalorder %v2283_v35, %v2395_v23  ;;  %vm2405_vm8 = vcmp.lt.s32.totalorder %v2284_v53, %v2404_v0  ;;  %v8904_v33 = vmax.f32 %v744_v51, %v745_v12  ;;  %v8908_v60 = vmax.f32 %v756_v50, %v757_v15 }
 0x2f1   : > { %v2397_v4 = vsel %vm2396_vm12, %v2283_v35, %v2395_v23  ;;  %v2406_v8 = vsel %vm2405_vm8, %v2284_v53, %v2404_v0  ;;  %vm2414_vm4 = vcmp.lt.s32.totalorder %v2285_v46, %v2413_v5  ;;  %vm2423_vm2 = vcmp.lt.s32.totalorder %v2286_v1, %v2422_v63 }
 0x2f2   : > { %v2398_v58 = vrot.slane %v2397_v4, 2  ;;  %v2407_v22 = vrot.slane %v2406_v8, 2  ;;  %v2415_v49 = vsel %vm2414_vm4, %v2285_v46, %v2413_v5  ;;  %v2424_v48 = vsel %vm2423_vm2, %v2286_v1, %v2422_v63  ;;  %12078 = vst [vmem:[#allocation66_spill] sm:$0xff] %v8904_v33  ;;  %12080 = vst [vmem:[#allocation60_spill] sm:$0xff] %v8908_v60 }
 0x2f3   : > { %v2416_v38 = vrot.slane %v2415_v49, 2  ;;  %v2425_v6 = vrot.slane %v2424_v48, 2  ;;  %v8906_v41 = vmax.f32 %v750_v21, %v751_v14  ;;  %v763_v2 = vrot.slane %v762_v52, 1 }
 0x2f4   : > { %vm2399_vm7 = vcmp.lt.s32.totalorder %v2397_v4, %v2398_v58  ;;  %vm2408_vm13 = vcmp.lt.s32.totalorder %v2406_v8, %v2407_v22  ;;  %vm835_vm12 = vcmp.eq.f32.partialorder %v11961_v44, %v8904_v33 }
 0x2f5   : > { %12079 = vst [vmem:[#allocation59_spill] sm:$0xff] %v8906_v41  ;;  %v2400_v62 = vsel %vm2399_vm7, %v2397_v4, %v2398_v58  ;;  %v2409_v42 = vsel %vm2408_vm13, %v2406_v8, %v2407_v22  ;;  %vm2417_vm14 = vcmp.lt.s32.totalorder %v2415_v49, %v2416_v38  ;;  %vm2426_vm0 = vcmp.lt.s32.totalorder %v2424_v48, %v2425_v6 }
 0x2f6   : > { %v2401_v23 = vrot.slane %v2400_v62, 1  ;;  %v2410_v0 = vrot.slane %v2409_v42, 1  ;;  %v2418_v30 = vsel %vm2417_vm14, %v2415_v49, %v2416_v38  ;;  %v2427_v32 = vsel %vm2426_vm0, %v2424_v48, %v2425_v6 }
 0x2f7   : > { %v2419_v5 = vrot.slane %v2418_v30, 1  ;;  %v2428_v63 = vrot.slane %v2427_v32, 1  ;;  %vm836_vm8 = vcmp.eq.f32.partialorder %v11962_v37, %v8906_v41  ;;  %v4750_v58 = vrot.slane %v8876_v17, 2 }
 0x2f8   : > { %vm2402_vm15 = vcmp.lt.s32.totalorder %v2400_v62, %v2401_v23  ;;  %vm2411_vm5 = vcmp.lt.s32.totalorder %v2409_v42, %v2410_v0  ;;  %v8947_v8 = vsel %vm836_vm8, %v12077_v55, 8  ;;  %v4756_v22 = vrot.slane %v8882_v18, 2 }
 0x2f9   : > { %v2403_v10 = vsel %vm2402_vm15, %v2400_v62, %v2401_v23  ;;  %v2412_v51 = vsel %vm2411_vm5, %v2409_v42, %v2410_v0  ;;  %vm2420_vm4 = vcmp.lt.s32.totalorder %v2418_v30, %v2419_v5  ;;  %vm2429_vm2 = vcmp.lt.s32.totalorder %v2427_v32, %v2428_v63  ;;  %v12081_v42 = vld [vmem:[#allocation12_spill] sm:$0xff]  ;;  %v12086_v23 = vld [vmem:[#allocation51_spill] sm:$0xff] }
 0x2fa   : > { %v2421_v21 = vsel %vm2420_vm4, %v2418_v30, %v2419_v5  ;;  %v2430_v19 = vsel %vm2429_vm2, %v2427_v32, %v2428_v63  ;;  %vm2443_vm7 = vcmp.eq.s32.totalorder %v2283_v35, %v2403_v10  ;;  %vm2444_vm13 = vcmp.eq.s32.totalorder %v2284_v53, %v2412_v51 }
 0x2fb   : > { %vm2445_vm14 = vcmp.eq.s32.totalorder %v2285_v46, %v2421_v21  ;;  %vm2446_vm0 = vcmp.eq.s32.totalorder %v2286_v1, %v2430_v19  ;;  %v8915_v50 = vsel %vm2443_vm7, 1.0, %v11978_v29  ;;  %v8918_v12 = vsel %vm2444_vm13, 1.0, %v11978_v29 }
 0x2fc   : > { %v8921_v14 = vsel %vm2445_vm14, 1.0, %v11978_v29  ;;  %v8924_v4 = vsel %vm2446_vm0, 1.0, %v11978_v29  ;;  %v3759_v30 = vmul.f32 %v8915_v50, %v12081_v42  ;;  %v8932_v32 = vsel %vm835_vm12, %v12077_v55, 8 }
 0x2fd   : > { %v12082_v35 = vrot.slane %v8856_v39, 1  ;;  %v3760_v46 = vmul.f32 %v8918_v12, %v12081_v42  ;;  %v3761_v1 = vmul.f32 %v8921_v14, %v12081_v42  ;;  %v4762_v49 = vrot.slane %v8885_v20, 2 }
 0x2fe   : > { %v12084_v48 = vrot.slane %v8874_v40, 2  ;;  %v8957_v6 = vmax.f32 %v762_v52, %v763_v2  ;;  %vm837_vm15 = vcmp.eq.f32.partialorder %v11963_v45, %v8908_v60  ;;  %v899_v15 = vrot.slane %v8932_v32, 4 }
 0x2ff   : > { %v8937_v53 = vadd.f32 %v12082_v35, %v8856_v39  ;;  %v3762_v39 = vmul.f32 %v8924_v4, %v12081_v42  ;;  %v3835_v62 = vrot.slane %v3759_v30, 4  ;;  %v4266_v0 = vmul.f32 %v8915_v50, %v12086_v23 }
 0x300   : > { %v4745_v38 = vadd.f32 %v12084_v48, %v8874_v40  ;;  %12085 = vst [vmem:[#allocation62_spill] sm:$0xff] %v8957_v6  ;;  %v4267_v5 = vmul.f32 %v8918_v12, %v12086_v23  ;;  %v908_v63 = vrot.slane %v8947_v8, 4  ;;  %v3841_v10 = vrot.slane %v3760_v46, 4 }
 0x301   : > { %12083 = vst [vmem:[#allocation61_spill] sm:$0xff] %v8937_v53  ;;  %v3847_v51 = vrot.slane %v3761_v1, 4  ;;  %v4268_v2 = vmul.f32 %v8921_v14, %v12086_v23  ;;  %v4269_v40 = vmul.f32 %v8924_v4, %v12086_v23  ;;  %v4751_v52 = vadd.f32 %v4750_v58, %v8876_v17 }
 0x302   : > { %v4757_v21 = vadd.f32 %v4756_v22, %v8882_v18  ;;  %v4763_v19 = vadd.f32 %v4762_v49, %v8885_v20  ;;  %v3853_v35 = vrot.slane %v3762_v39, 4  ;;  %v4746_v48 = vrot.slane %v4745_v38, 1 }
 0x303   : > { %vm838_vm5 = vcmp.eq.f32.partialorder %v11964_v56, %v8957_v6  ;;  %v8980_v53 = vsel %vm837_vm15, %v12077_v55, 8  ;;  %vm900_vm12 = vcmp.lt.s32.totalorder %v8932_v32, %v899_v15  ;;  %v3836_v47 = vadd.f32 %v3835_v62, %v3759_v30 }
 0x304   : > { %v4342_v9 = vrot.slane %v4266_v0, 4  ;;  %v4348_v17 = vrot.slane %v4267_v5, 4  ;;  %vm8984_vm8 = vcmp.lt.s32.totalorder %v8947_v8, %v908_v63  ;;  %v3842_v20 = vadd.f32 %v3841_v10, %v3760_v46 }
 0x305   : > { %v3848_v58 = vadd.f32 %v3847_v51, %v3761_v1  ;;  %v4354_v22 = vrot.slane %v4268_v2, 4  ;;  %v4360_v49 = vrot.slane %v4269_v40, 4  ;;  %v4752_v23 = vrot.slane %v4751_v52, 1 }
 0x306   : > { %v4758_v54 = vrot.slane %v4757_v21, 1  ;;  %v4764_v42 = vrot.slane %v4763_v19, 1  ;;  %v3854_v26 = vadd.f32 %v3853_v35, %v3762_v39  ;;  %v8988_v13 = vadd.f32 %v4746_v48, %v4745_v38 }
 0x307   : > { %v8994_v30 = vsel %vm838_vm5, %v12077_v55, 8  ;;  %v901_v62 = vsel %vm900_vm12, %v8932_v32, %v899_v15  ;;  %v917_v28 = vrot.slane %v8980_v53, 4  ;;  %v3837_v46 = vrot.slane %v3836_v47, 2 }
 0x308   : > { %12089 = vst [vmem:[#allocation119_spill] sm:$0xff] %v8988_v13  ;;  %v4343_v1 = vadd.f32 %v4342_v9, %v4266_v0  ;;  %v4349_v10 = vadd.f32 %v4348_v17, %v4267_v5  ;;  %v910_v51 = vsel %vm8984_vm8, %v8947_v8, %v908_v63  ;;  %v3843_v39 = vrot.slane %v3842_v20, 2  ;;  %v12094_v17 = vld [vmem:[#allocation35_spill] sm:$0xff] }
 0x309   : > { %v3849_v38 = vrot.slane %v3848_v58, 2  ;;  %v4355_v35 = vadd.f32 %v4354_v22, %v4268_v2  ;;  %v4361_v48 = vadd.f32 %v4360_v49, %v4269_v40  ;;  %v9001_v13 = vadd.f32 %v4752_v23, %v4751_v52 }
 0x30a   : > { %v3855_v31 = vrot.slane %v3854_v26, 2  ;;  %v902_v34 = vrot.slane %v901_v62, 2  ;;  %v926_v57 = vrot.slane %v8994_v30, 4  ;;  %v9004_v15 = vadd.f32 %v4758_v54, %v4757_v21 }
 0x30b   : > { %12090 = vst [vmem:[#allocation120_spill] sm:$0xff] %v9001_v13  ;;  %v9006_v27 = vadd.f32 %v4764_v42, %v4763_v19  ;;  %v911_v9 = vrot.slane %v910_v51, 2  ;;  %vm918_vm4 = vcmp.lt.s32.totalorder %v8980_v53, %v917_v28  ;;  %v9009_v0 = vadd.f32 %v3837_v46, %v3836_v47 }
 0x30c   : > { %12091 = vst [vmem:[#allocation121_spill] sm:$0xff] %v9004_v15  ;;  %v4344_v5 = vrot.slane %v4343_v1, 2  ;;  %v4350_v63 = vrot.slane %v4349_v10, 2  ;;  %v4738_v2 = vmul.f32 %v8915_v50, %v12094_v17  ;;  %v9013_v23 = vadd.f32 %v3843_v39, %v3842_v20 }
 0x30d   : > { %12092 = vst [vmem:[#allocation122_spill] sm:$0xff] %v9006_v27  ;;  %12093 = vst [vmem:[#allocation8_spill] sm:$0xff] %v9009_v0  ;;  %v9015_v40 = vadd.f32 %v3849_v38, %v3848_v58  ;;  %v4356_v52 = vrot.slane %v4355_v35, 2  ;;  %v4362_v18 = vrot.slane %v4361_v48, 2  ;;  %v9017_v54 = vadd.f32 %v3855_v31, %v3854_v26 }
 0x30e   : > { %12095 = vst [vmem:[#allocation148_spill] sm:$0xff] %v9013_v23  ;;  %vm903_vm2 = vcmp.lt.s32.totalorder %v901_v62, %v902_v34  ;;  %v919_v42 = vsel %vm918_vm4, %v8980_v53, %v917_v28  ;;  %vm927_vm7 = vcmp.lt.s32.totalorder %v8994_v30, %v926_v57  ;;  %v4739_v47 = vmul.f32 %v8918_v12, %v12094_v17 }
 0x30f   : > { %12096 = vst [vmem:[#allocation149_spill] sm:$0xff] %v9015_v40  ;;  %12097 = vst [vmem:[#allocation150_spill] sm:$0xff] %v9017_v54  ;;  %v4740_v21 = vmul.f32 %v8921_v14, %v12094_v17  ;;  %v4741_v50 = vmul.f32 %v8924_v4, %v12094_v17  ;;  %vm912_vm13 = vcmp.lt.s32.totalorder %v910_v51, %v911_v9  ;;  %v4814_v26 = vrot.slane %v4738_v2, 4 }
 0x310   : > { %v9028_v20 = vadd.f32 %v4344_v5, %v4343_v1  ;;  %v9030_v31 = vadd.f32 %v4350_v63, %v4349_v10  ;;  %v904_v58 = vsel %vm903_vm2, %v901_v62, %v902_v34  ;;  %v920_v22 = vrot.slane %v919_v42, 2 }
 0x311   : > { %v928_v12 = vsel %vm927_vm7, %v8994_v30, %v926_v57  ;;  %v9034_v49 = vadd.f32 %v4356_v52, %v4355_v35  ;;  %v9036_v14 = vadd.f32 %v4362_v18, %v4361_v48  ;;  %v913_v46 = vsel %vm912_vm13, %v910_v51, %v911_v9  ;;  %v12102_v57 = vld [vmem:[#allocation87_spill] sm:$0xff]  ;;  %v12103_v48 = vld [vmem:[#allocation73_spill] sm:$0xff]  ;;  %v12104_v52 = vld [vmem:[#allocation92_spill] sm:$0xff] }
 0x312   : > { %12098 = vst [vmem:[#allocation151_spill] sm:$0xff] %v9028_v20  ;;  %12099 = vst [vmem:[#allocation152_spill] sm:$0xff] %v9030_v31  ;;  %v929_v4 = vrot.slane %v928_v12, 2  ;;  %v4820_v39 = vrot.slane %v4739_v47, 4  ;;  %v4826_v38 = vrot.slane %v4740_v21, 4  ;;  %v4832_v19 = vrot.slane %v4741_v50, 4 }
 0x313   : > { %12100 = vst [vmem:[#allocation153_spill] sm:$0xff] %v9034_v49  ;;  %12101 = vst [vmem:[#allocation154_spill] sm:$0xff] %v9036_v14  ;;  %vm921_vm14 = vcmp.lt.s32.totalorder %v919_v42, %v920_v22  ;;  %v9039_v10 = vadd.f32 %v4814_v26, %v4738_v2  ;;  %v905_v5 = vrot.slane %v904_v58, 1  ;;  %v914_v34 = vrot.slane %v913_v46, 1  ;;  %v12105_v2 = vld [vmem:[#allocation58_spill] sm:$0xff] }
 0x314   : > { %vm930_vm0 = vcmp.lt.s32.totalorder %v928_v12, %v929_v4  ;;  %v922_v62 = vsel %vm921_vm14, %v919_v42, %v920_v22  ;;  %v2055_v35 = vmax.f32 %v12102_v57, %v8678_v24  ;;  %v2056_v63 = vmax.f32 %v12103_v48, %v8702_v61  ;;  %v2112_v24 = vpop.permute.xlu1 %2111 }
 0x315   : > { %v2057_v18 = vmax.f32 %v12104_v52, %v8711_v11  ;;  %v2058_v26 = vmax.f32 %v12105_v2, %v8717_v7  ;;  %v9051_v1 = vadd.f32 %v4820_v39, %v4739_v47  ;;  %v9053_v28 = vadd.f32 %v4826_v38, %v4740_v21 }
 0x316   : > { %v9055_v42 = vadd.f32 %v4832_v19, %v4741_v50  ;;  %v931_v22 = vsel %vm930_vm0, %v928_v12, %v929_v4  ;;  %v923_v57 = vrot.slane %v922_v62, 1  ;;  %v2087_v48 = vand.u32 2147483647, %v11961_v44 }
 0x317   : > { %v2088_v9 = vand.u32 2147483647, %v11962_v37  ;;  %vm9060_vm15 = vcmp.lt.s32.totalorder %v904_v58, %v905_v5  ;;  %vm9064_vm5 = vcmp.lt.s32.totalorder %v913_v46, %v914_v34  ;;  %v2089_v47 = vand.u32 2147483647, %v11963_v45 }
 0x318   : > { %v2090_v21 = vand.u32 2147483647, %v11964_v56  ;;  %v932_v50 = vrot.slane %v931_v22, 1  ;;  %vm2071_vm12 = vcmp.le.f32.partialorder %v2055_v35, 0.0001  ;;  %v2131_v19 = vmul.f32 %v2112_v24, %v2087_v48  ;;  %v12112_v48 = vld [vmem:[#allocation125_spill] sm:$0xff] }
 0x319   : > { %v2132_v12 = vmul.f32 %v2112_v24, %v2088_v9  ;;  %vm2072_vm8 = vcmp.le.f32.partialorder %v2056_v63, 0.0001  ;;  %vm2073_vm4 = vcmp.le.f32.partialorder %v2057_v18, 0.0001  ;;  %v2133_v44 = vmul.f32 %v2112_v24, %v2089_v47 }
 0x31a   : > { %v2134_v37 = vmul.f32 %v2112_v24, %v2090_v21  ;;  %vm9070_vm2 = vcmp.lt.s32.totalorder %v922_v62, %v923_v57  ;;  %vm2074_vm7 = vcmp.le.f32.partialorder %v2058_v26, 0.0001  ;;  %v2147_v39 = vsel %vm2071_vm12, %v2131_v19, 3.4028235e+38  ;;  %v12113_v19 = vld [vmem:[#allocation126_spill] sm:$0xff] }
 0x31b   : > { %v2148_v38 = vsel %vm2072_vm8, %v2132_v12, 3.4028235e+38  ;;  %v2149_v52 = vsel %vm2073_vm4, %v2133_v44, 3.4028235e+38  ;;  %v2183_v45 = vrot.slane %v2147_v39, 4  ;;  %v907_v56 = vsel %vm9060_vm15, %v904_v58, %v905_v5  ;;  %v12114_v5 = vld [vmem:[#allocation127_spill] sm:$0xff] }
 0x31c   : > { %v2150_v2 = vsel %vm2074_vm7, %v2134_v37, 3.4028235e+38  ;;  %v2189_v51 = vrot.slane %v2148_v38, 4  ;;  %vm933_vm13 = vcmp.lt.s32.totalorder %v931_v22, %v932_v50  ;;  %v2195_v35 = vrot.slane %v2149_v52, 4 }
 0x31d   : > { %v2201_v63 = vrot.slane %v2150_v2, 4  ;;  %v916_v9 = vsel %vm9064_vm5, %v913_v46, %v914_v34  ;;  %v2184_v18 = vmin.f32 %v2147_v39, %v2183_v45  ;;  %5572 = vrsqrt.f32 %v12112_v48  ;;  %v12115_v34 = vld [vmem:[#allocation128_spill] sm:$0xff] }
 0x31e   : > { %v2190_v24 = vmin.f32 %v2148_v38, %v2189_v51  ;;  %v925_v26 = vsel %vm9070_vm2, %v922_v62, %v923_v57  ;;  %v2196_v47 = vmin.f32 %v2149_v52, %v2195_v35  ;;  %5574 = vrsqrt.f32 %v12113_v19 }
 0x31f   : > { %v2202_v21 = vmin.f32 %v2150_v2, %v2201_v63  ;;  %v934_v12 = vsel %vm933_vm13, %v931_v22, %v932_v50  ;;  %v2185_v11 = vrot.slane %v2184_v18, 2  ;;  %5576 = vrsqrt.f32 %v12114_v5 }
 0x320   : > { %v2191_v58 = vrot.slane %v2190_v24, 2  ;;  %vm1011_vm14 = vcmp.eq.s32.totalorder %v8932_v32, %v907_v56  ;;  %v2197_v7 = vrot.slane %v2196_v47, 2  ;;  %5578 = vrsqrt.f32 %v12115_v34 }
 0x321   : > { %v2203_v46 = vrot.slane %v2202_v21, 2  ;;  %vm1012_vm0 = vcmp.eq.s32.totalorder %v8947_v8, %v916_v9  ;;  %vm1013_vm15 = vcmp.eq.s32.totalorder %v8980_v53, %v925_v26  ;;  %v2186_v62 = vmin.f32 %v2184_v18, %v2185_v11 }
 0x322   : > { %v2192_v51 = vmin.f32 %v2190_v24, %v2191_v58  ;;  %vm1014_vm5 = vcmp.eq.s32.totalorder %v8994_v30, %v934_v12  ;;  %v2198_v22 = vmin.f32 %v2196_v47, %v2197_v7  ;;  %v9091_v32 = vsel %vm1011_vm14, 1.0, %v11978_v29  ;;  %v12116_v12 = vld [vmem:[#allocation38_spill] sm:$0xff] }
 0x323   : > { %v2204_v50 = vmin.f32 %v2202_v21, %v2203_v46  ;;  %v2187_v37 = vrot.slane %v2186_v62, 1  ;;  %v9094_v45 = vsel %vm1012_vm0, 1.0, %v11978_v29  ;;  %v9097_v53 = vsel %vm1013_vm15, 1.0, %v11978_v29 }
 0x324   : > { %v2193_v4 = vrot.slane %v2192_v51, 1  ;;  %v2199_v8 = vrot.slane %v2198_v22, 1  ;;  %v9100_v35 = vsel %vm1014_vm5, 1.0, %v11978_v29  ;;  %v9118_v11 = vmul.f32 %v9091_v32, %v12116_v12 }
 0x325   : > { %v2205_v56 = vrot.slane %v2204_v50, 1  ;;  %v9102_v30 = vmin.f32 %v2186_v62, %v2187_v37  ;;  %vm3393_vm13 = vcmp.eq.f32.partialorder %v12112_v48, inf  ;;  %vm3400_vm0 = vcmp.eq.f32.partialorder %v12113_v19, inf }
 0x326   : > { %v9104_v63 = vmin.f32 %v2192_v51, %v2193_v4  ;;  %v9107_v18 = vmin.f32 %v2198_v22, %v2199_v8  ;;  %vm3407_vm15 = vcmp.eq.f32.partialorder %v12114_v5, inf  ;;  %v9145_v22 = vmul.f32 %v9094_v45, %v12116_v12 }
 0x327   : > { %v9109_v24 = vmin.f32 %v2204_v50, %v2205_v56  ;;  %vm2259_vm12 = vcmp.eq.f32.partialorder %v2147_v39, %v9102_v30  ;;  %v9149_v50 = vmul.f32 %v9097_v53, %v12116_v12  ;;  %v9157_v4 = vmul.f32 %v9100_v35, %v12116_v12 }
 0x328   : > { %vm2260_vm8 = vcmp.eq.f32.partialorder %v2148_v38, %v9104_v63  ;;  %vm2261_vm4 = vcmp.eq.f32.partialorder %v2149_v52, %v9107_v18  ;;  %v9123_v58 = vsel %vm2259_vm12, %v12077_v55, 8  ;;  %v3675_v8 = vrot.slane %v9118_v11, 4 }
 0x329   : > { %vm2262_vm2 = vcmp.eq.f32.partialorder %v2150_v2, %v9109_v24  ;;  %v9126_v7 = vsel %vm2260_vm8, %v12077_v55, 8  ;;  %v9130_v39 = vsel %vm2261_vm4, %v12077_v55, 8  ;;  %v2323_v46 = vrot.slane %v9123_v58, 4 }
 0x32a   : > { %v9133_v38 = vsel %vm2262_vm2, %v12077_v55, 8  ;;  %v2332_v52 = vrot.slane %v9126_v7, 4  ;;  %v5573_v2 = vpop.eup %5572  ;;  %v2341_v62 = vrot.slane %v9130_v39, 4  ;;  %vm3414_vm4 = vcmp.eq.f32.partialorder %v12115_v34, inf }
 0x32b   : > { %v2350_v51 = vrot.slane %v9133_v38, 4  ;;  %v5575_v37 = vpop.eup %5574  ;;  %vm2324_vm12 = vcmp.lt.s32.totalorder %v9123_v58, %v2323_v46  ;;  %vm3395_vm14 = vcmp.eq.f32.partialorder %v12112_v48, 0.0  ;;  %vm3402_vm7 = vcmp.eq.f32.partialorder %v12113_v19, 0.0 }
 0x32c   : > { %vm2333_vm8 = vcmp.lt.s32.totalorder %v9126_v7, %v2332_v52  ;;  %v5577_v56 = vpop.eup %5576  ;;  %v2325_v44 = vsel %vm2324_vm12, %v9123_v58, %v2323_v46  ;;  %vm2342_vm1 = vcmp.lt.s32.totalorder %v9130_v39, %v2341_v62  ;;  %v3399_v15 = vmul.f32 %v5575_v37, %v12113_v19 }
 0x32d   : > { %v2334_v57 = vsel %vm2333_vm8, %v9126_v7, %v2332_v52  ;;  %vm2351_vm5 = vcmp.lt.s32.totalorder %v9133_v38, %v2350_v51  ;;  %v5579_v61 = vpop.eup %5578  ;;  %v2326_v21 = vrot.slane %v2325_v44, 2  ;;  %v2343_v26 = vsel %vm2342_vm1, %v9130_v39, %v2341_v62 }
 0x32e   : > { %v2335_v47 = vrot.slane %v2334_v57, 2  ;;  %v2352_v9 = vsel %vm2351_vm5, %v9133_v38, %v2350_v51  ;;  %v2344_v46 = vrot.slane %v2343_v26, 2  ;;  %v3392_v52 = vmul.f32 %v5573_v2, %v12112_v48 }
 0x32f   : > { %v2353_v27 = vrot.slane %v2352_v9, 2  ;;  %vm2327_vm8 = vcmp.lt.s32.totalorder %v2325_v44, %v2326_v21  ;;  %v3406_v62 = vmul.f32 %v5577_v56, %v12114_v5  ;;  %v3413_v51 = vmul.f32 %v5579_v61, %v12115_v34 }
 0x330   : > { %vm2336_vm6 = vcmp.lt.s32.totalorder %v2334_v57, %v2335_v47  ;;  %v2328_v13 = vsel %vm2327_vm8, %v2325_v44, %v2326_v21  ;;  %vm2345_vm1 = vcmp.lt.s32.totalorder %v2343_v26, %v2344_v46  ;;  %v3394_v37 = vsel %vm3393_vm13, %v12112_v48, %v3392_v52 }
 0x331   : > { %v2337_v17 = vsel %vm2336_vm6, %v2334_v57, %v2335_v47  ;;  %vm2354_vm5 = vcmp.lt.s32.totalorder %v2352_v9, %v2353_v27  ;;  %v2329_v20 = vrot.slane %v2328_v13, 1  ;;  %v2346_v40 = vsel %vm2345_vm1, %v2343_v26, %v2344_v46 }
 0x332   : > { %v2338_v54 = vrot.slane %v2337_v17, 1  ;;  %v2355_v23 = vsel %vm2354_vm5, %v2352_v9, %v2353_v27  ;;  %v2347_v0 = vrot.slane %v2346_v40, 1  ;;  %v3681_v25 = vrot.slane %v9145_v22, 4 }
 0x333   : > { %v2356_v2 = vrot.slane %v2355_v23, 1  ;;  %vm2330_vm12 = vcmp.lt.s32.totalorder %v2328_v13, %v2329_v20  ;;  %v3401_v61 = vsel %vm3400_vm0, %v12113_v19, %v3399_v15  ;;  %v3408_v57 = vsel %vm3407_vm15, %v12114_v5, %v3406_v62 }
 0x334   : > { %vm2339_vm2 = vcmp.lt.s32.totalorder %v2337_v17, %v2338_v54  ;;  %v2331_v44 = vsel %vm2330_vm12, %v2328_v13, %v2329_v20  ;;  %vm2348_vm6 = vcmp.lt.s32.totalorder %v2346_v40, %v2347_v0  ;;  %v3415_v27 = vsel %vm3414_vm4, %v12115_v34, %v3413_v51 }
 0x335   : > { %vm2357_vm8 = vcmp.lt.s32.totalorder %v2355_v23, %v2356_v2  ;;  %vm12117_vm13 = vmmov 1   ;;  %vm12118_vm1 = vcmp.le.f32.partialorder %v8904_v33, 0.0  ;;  %v2340_v26 = vsel %vm2339_vm2, %v2337_v17, %v2338_v54 }
 0x336   : > { %vm9191_vm5 = vmxor %vm12118_vm1, %vm12117_vm13  ;;  %v2349_v15 = vsel %vm2348_vm6, %v2346_v40, %v2347_v0  ;;  %vm12121_vm0 = vcmp.le.f32.partialorder %v8906_v41, 0.0  ;;  %v3676_v20 = vadd.f32 %v3675_v8, %v9118_v11  ;;  %v3687_v47 = vrot.slane %v9149_v50, 4 }
 0x337   : > { %vm9198_vm15 = vmxor %vm12121_vm0, %vm12117_vm13  ;;  %v2358_v21 = vsel %vm2357_vm8, %v2355_v23, %v2356_v2  ;;  %v12124_v56 = vand.u32 2147483648, %v12112_v48  ;;  %v12125_v17 = vand.u32 2147483648, %v12113_v19  ;;  %v12126_v40 = vand.u32 2147483648, %v12114_v5 }
 0x338   : > { %vm12127_vm4 = vcmp.eq.f32.partialorder %v12114_v5, 0.0  ;;  %vm12128_vm2 = vcmp.le.f32.partialorder %v8908_v60, 0.0  ;;  %v12131_v48 = vand.u32 2147483648, %v12115_v34  ;;  %vm12132_vm6 = vcmp.eq.f32.partialorder %v12115_v34, 0.0 }
 0x339   : > { %v3397_v46 = vsel %vm3395_vm14, %v12124_v56, %v3394_v37  ;;  %v3404_v0 = vsel %vm3402_vm7, %v12125_v17, %v3401_v61  ;;  %v9216_v54 = vsel %vm12127_vm4, %v12126_v40, %v3408_v57  ;;  %vm9221_vm12 = vmxor %vm12128_vm2, %vm12117_vm13  ;;  %vm2435_vm14 = vcmp.eq.s32.totalorder %v9123_v58, %v2331_v44 }
 0x33a   : > { %v9230_v19 = vsel %vm12132_vm6, %v12131_v48, %v3415_v27  ;;  %vm12133_vm7 = vcmp.le.f32.partialorder %v8957_v6, 0.0  ;;  %vm3543_vm1 = vcmp.lt.f32.partialorder %v3397_v46, %v9102_v30  ;;  %vm3544_vm0 = vcmp.lt.f32.partialorder %v3404_v0, %v9104_v63 }
 0x33b   : > { %vm9235_vm8 = vmxor %vm12133_vm7, %vm12117_vm13  ;;  %vm2436_vm4 = vcmp.eq.s32.totalorder %v9126_v7, %v2340_v26  ;;  %vm2437_vm2 = vcmp.eq.s32.totalorder %v9130_v39, %v2349_v15  ;;  %vm3545_vm11 = vcmp.lt.f32.partialorder %v9216_v54, %v9107_v18  ;;  %vm3546_vm6 = vcmp.lt.f32.partialorder %v9230_v19, %v9109_v24 }
 0x33c   : > { %vm9249_vm7 = vmand %vm3543_vm1, %vm9191_vm5  ;;  %v12136_v34 = vmov 0  ;;  %vm2438_vm3 = vcmp.eq.s32.totalorder %v9133_v38, %v2358_v21  ;;  %v12139_v11 = vmov 0  ;;  %v3682_v7 = vadd.f32 %v3681_v25, %v9145_v22  ;;  %v12163_v21 = vld [vmem:[#allocation15_spill] sm:$0xff] }
 0x33d   : > { %v12137_v34 = vsel %vm9249_vm7, 4294967295, %v12136_v34  ;;  %vm9256_vm10 = vmand %vm3544_vm0, %vm9198_vm15  ;;  %v3575_v58 = vsel %vm9249_vm7, %v3397_v46, %v9102_v30  ;;  %v3693_v39 = vrot.slane %v9157_v4, 4  ;;  %v9266_v8 = vsel %vm2435_vm14, 1.0, %v11978_v29 }
 0x33e   : > { %12138 = vst [vmem:[#allocation87_spill] sm:$0xff] %v12137_v34  ;;  %v12140_v11 = vsel %vm9256_vm10, 4294967295, %v12139_v11  ;;  %vm9270_vm5 = vmand %vm3545_vm11, %vm9221_vm12  ;;  %v12142_v52 = vmov 0  ;;  %v3576_v62 = vsel %vm9256_vm10, %v3404_v0, %v9104_v63  ;;  %vm12145_vm15 = vcmp.le.f32.partialorder %v8904_v33, 0.0 }
 0x33f   : > { %12141 = vst [vmem:[#allocation73_spill] sm:$0xff] %v12140_v11  ;;  %v12143_v52 = vsel %vm9270_vm5, 4294967295, %v12142_v52  ;;  %v9280_v30 = vsel %vm12145_vm15, %v8904_v33, %v3575_v58  ;;  %v3688_v25 = vadd.f32 %v3687_v47, %v9149_v50  ;;  %v9284_v22 = vsel %vm2436_vm4, 1.0, %v11978_v29  ;;  %vm9291_vm11 = vmand %vm3546_vm6, %vm9235_vm8 }
 0x340   : > { %12144 = vst [vmem:[#allocation92_spill] sm:$0xff] %v12143_v52  ;;  %12146 = vst [vmem:[#allocation58_spill] sm:$0xff] %v9280_v30  ;;  %v9287_v51 = vsel %vm2437_vm2, 1.0, %v11978_v29  ;;  %v12147_v2 = vmov 0  ;;  %v3577_v63 = vsel %vm9270_vm5, %v9216_v54, %v9107_v18  ;;  %vm12150_vm12 = vcmp.le.f32.partialorder %v8906_v41, 0.0 }
 0x341   : > { %v12148_v2 = vsel %vm9291_vm11, 4294967295, %v12147_v2  ;;  %v9302_v50 = vsel %vm12150_vm12, %v8906_v41, %v3576_v62  ;;  %v4834_v37 = vrot.slane %v9055_v42, 2  ;;  %v9308_v61 = vsel %vm2438_vm3, 1.0, %v11978_v29 }
 0x342   : > { %12149 = vst [vmem:[#allocation125_spill] sm:$0xff] %v12148_v2  ;;  %12151 = vst [vmem:[#allocation126_spill] sm:$0xff] %v9302_v50  ;;  %v3578_v57 = vsel %vm9291_vm11, %v9230_v19, %v9109_v24  ;;  %vm12152_vm14 = vcmp.le.f32.partialorder %v8908_v60, 0.0  ;;  %vm12154_vm8 = vcmp.le.f32.partialorder %v8957_v6, 0.0  ;;  %v3677_v27 = vrot.slane %v3676_v20, 2 }
 0x343   : > { %v9317_v18 = vsel %vm12152_vm14, %v8908_v60, %v3577_v63  ;;  %v9322_v44 = vsel %vm12154_vm8, %v8957_v6, %v3578_v57  ;;  %v3694_v38 = vadd.f32 %v3693_v39, %v9157_v4  ;;  %v3751_v9 = vmul.f32 %v9266_v8, %v12116_v12 }
 0x344   : > { %12153 = vst [vmem:[#allocation127_spill] sm:$0xff] %v9317_v18  ;;  %12155 = vst [vmem:[#allocation128_spill] sm:$0xff] %v9322_v44  ;;  %v3683_v26 = vrot.slane %v3682_v7, 2  ;;  %v3689_v15 = vrot.slane %v3688_v25, 2  ;;  %v3752_v24 = vmul.f32 %v9284_v22, %v12116_v12  ;;  %v3753_v13 = vmul.f32 %v9287_v51, %v12116_v12 }
 0x345   : > { %v3754_v4 = vmul.f32 %v9308_v61, %v12116_v12  ;;  %v12156_v17 = vrot.slane %v9039_v10, 2  ;;  %v12158_v23 = vrot.slane %v9051_v1, 2  ;;  %v12160_v5 = vrot.slane %v9053_v28, 2 }
 0x346   : > { %v3695_v39 = vrot.slane %v3694_v38, 2  ;;  %v9352_v62 = vadd.f32 %v4834_v37, %v9055_v42  ;;  %v3678_v12 = vadd.f32 %v3677_v27, %v3676_v20  ;;  %v3787_v63 = vrot.slane %v3751_v9, 4 }
 0x347   : > { %v9339_v40 = vadd.f32 %v12156_v17, %v9039_v10  ;;  %v9344_v48 = vadd.f32 %v12158_v23, %v9051_v1  ;;  %v9349_v58 = vadd.f32 %v12160_v5, %v9053_v28  ;;  %v3793_v57 = vrot.slane %v3752_v24, 4 }
 0x348   : > { %12162 = vst [vmem:[#allocation157_spill] sm:$0xff] %v9352_v62  ;;  %v3684_v56 = vadd.f32 %v3683_v26, %v3682_v7  ;;  %v3690_v10 = vadd.f32 %v3689_v15, %v3688_v25  ;;  %v3799_v17 = vrot.slane %v3753_v13, 4  ;;  %v4146_v47 = vmul.f32 %v9091_v32, %v12163_v21 }
 0x349   : > { %12157 = vst [vmem:[#allocation38_spill] sm:$0xff] %v9339_v40  ;;  %12159 = vst [vmem:[#allocation155_spill] sm:$0xff] %v9344_v48  ;;  %5580 = vrcp.f32 %v3397_v46  ;;  %v3805_v1 = vrot.slane %v3754_v4, 4  ;;  %v4147_v23 = vmul.f32 %v9094_v45, %v12163_v21  ;;  %v4148_v28 = vmul.f32 %v9097_v53, %v12163_v21 }
 0x34a   : > { %12161 = vst [vmem:[#allocation156_spill] sm:$0xff] %v9349_v58  ;;  %5582 = vrcp.f32 %v3404_v0  ;;  %v3696_v37 = vadd.f32 %v3695_v39, %v3694_v38  ;;  %v3679_v7 = vrot.slane %v3678_v12, 1  ;;  %v3788_v25 = vadd.f32 %v3787_v63, %v3751_v9 }
 0x34b   : > { %v3794_v27 = vadd.f32 %v3793_v57, %v3752_v24  ;;  %v4149_v26 = vmul.f32 %v9100_v35, %v12163_v21  ;;  %v3685_v46 = vrot.slane %v3684_v56, 1  ;;  %v3691_v15 = vrot.slane %v3690_v10, 1 }
 0x34c   : > { %v3800_v5 = vadd.f32 %v3799_v17, %v3753_v13  ;;  %v4182_v6 = vrot.slane %v4146_v47, 4  ;;  %5584 = vrcp.f32 %v9216_v54  ;;  %v3806_v60 = vadd.f32 %v3805_v1, %v3754_v4 }
 0x34d   : > { %v4188_v41 = vrot.slane %v4147_v23, 4  ;;  %v4194_v33 = vrot.slane %v4148_v28, 4  ;;  %5586 = vrcp.f32 %v9230_v19  ;;  %v3697_v38 = vrot.slane %v3696_v37, 1 }
 0x34e   : > { %v9368_v9 = vadd.f32 %v3679_v7, %v3678_v12  ;;  %v3789_v24 = vrot.slane %v3788_v25, 2  ;;  %v3795_v39 = vrot.slane %v3794_v27, 2  ;;  %v4200_v63 = vrot.slane %v4149_v26, 4 }
 0x34f   : > { %v9370_v57 = vadd.f32 %v3685_v46, %v3684_v56  ;;  %v9372_v13 = vadd.f32 %v3691_v15, %v3690_v10  ;;  %v3801_v54 = vrot.slane %v3800_v5, 2  ;;  %v4183_v4 = vadd.f32 %v4182_v6, %v4146_v47 }
 0x350   : > { %12164 = vst [vmem:[#allocation15_spill] sm:$0xff] %v9368_v9  ;;  %v3807_v17 = vrot.slane %v3806_v60, 2  ;;  %v4189_v1 = vadd.f32 %v4188_v41, %v4147_v23  ;;  %v4195_v20 = vadd.f32 %v4194_v33, %v4148_v28  ;;  %v4258_v0 = vmul.f32 %v9266_v8, %v12163_v21 }
 0x351   : > { %12165 = vst [vmem:[#allocation158_spill] sm:$0xff] %v9370_v57  ;;  %12166 = vst [vmem:[#allocation159_spill] sm:$0xff] %v9372_v13  ;;  %v9376_v42 = vadd.f32 %v3697_v38, %v3696_v37  ;;  %v4259_v19 = vmul.f32 %v9284_v22, %v12163_v21  ;;  %v4260_v12 = vmul.f32 %v9287_v51, %v12163_v21  ;;  %v4184_v41 = vrot.slane %v4183_v4, 2  ;;  %v12168_v38 = vld [vmem:[#allocation10_spill] sm:$0xff] }
 0x352   : > { %v4261_v56 = vmul.f32 %v9308_v61, %v12163_v21  ;;  %v3790_v10 = vadd.f32 %v3789_v24, %v3788_v25  ;;  %v3796_v7 = vadd.f32 %v3795_v39, %v3794_v27  ;;  %v4201_v6 = vadd.f32 %v4200_v63, %v4149_v26 }
 0x353   : > { %12167 = vst [vmem:[#allocation160_spill] sm:$0xff] %v9376_v42  ;;  %v4294_v47 = vrot.slane %v4258_v0, 4  ;;  %v4300_v33 = vrot.slane %v4259_v19, 4  ;;  %v4306_v23 = vrot.slane %v4260_v12, 4  ;;  %v4190_v46 = vrot.slane %v4189_v1, 2 }
 0x354   : > { %v4312_v28 = vrot.slane %v4261_v56, 4  ;;  %v4196_v37 = vrot.slane %v4195_v20, 2  ;;  %v4618_v42 = vmul.f32 %v9091_v32, %v12168_v38  ;;  %v4619_v21 = vmul.f32 %v9094_v45, %v12168_v38 }
 0x355   : > { %v4295_v15 = vadd.f32 %v4294_v47, %v4258_v0  ;;  %v4301_v57 = vadd.f32 %v4300_v33, %v4259_v19  ;;  %v4307_v9 = vadd.f32 %v4306_v23, %v4260_v12  ;;  %v4202_v27 = vrot.slane %v4201_v6, 2 }
 0x356   : > { %v9386_v13 = vpop.eup %5580  ;;  %v4313_v2 = vadd.f32 %v4312_v28, %v4261_v56  ;;  %v4620_v24 = vmul.f32 %v9097_v53, %v12168_v38  ;;  %v4621_v0 = vmul.f32 %v9100_v35, %v12168_v38  ;;  %v4654_v47 = vrot.slane %v4618_v42, 4 }
 0x357   : > { %12169 = vst [vmem:[#allocation10_spill] sm:$0xff] %v9386_v13  ;;  %v9390_v25 = vpop.eup %5582  ;;  %v4296_v26 = vrot.slane %v4295_v15, 2  ;;  %v4302_v39 = vrot.slane %v4301_v57, 2  ;;  %v4308_v32 = vrot.slane %v4307_v9, 2  ;;  %v3802_v19 = vadd.f32 %v3801_v54, %v3800_v5 }
 0x358   : > { %12170 = vst [vmem:[#allocation161_spill] sm:$0xff] %v9390_v25  ;;  %v4314_v63 = vrot.slane %v4313_v2, 2  ;;  %v3808_v12 = vadd.f32 %v3807_v17, %v3806_v60  ;;  %v4185_v56 = vadd.f32 %v4184_v41, %v4183_v4  ;;  %v4660_v33 = vrot.slane %v4619_v21, 4 }
 0x359   : > { %v9396_v23 = vpop.eup %5584  ;;  %v4191_v45 = vadd.f32 %v4190_v46, %v4189_v1  ;;  %v4655_v28 = vadd.f32 %v4654_v47, %v4618_v42  ;;  %v4666_v52 = vrot.slane %v4620_v24, 4  ;;  %v4672_v11 = vrot.slane %v4621_v0, 4 }
 0x35a   : > { %12171 = vst [vmem:[#allocation162_spill] sm:$0xff] %v9396_v23  ;;  %v9398_v34 = vpop.eup %5586  ;;  %v4197_v53 = vadd.f32 %v4196_v37, %v4195_v20  ;;  %v4203_v18 = vadd.f32 %v4202_v27, %v4201_v6  ;;  %v4297_v44 = vadd.f32 %v4296_v26, %v4295_v15  ;;  %v4303_v35 = vadd.f32 %v4302_v39, %v4301_v57 }
 0x35b   : > { %12172 = vst [vmem:[#allocation163_spill] sm:$0xff] %v9398_v34  ;;  %v3791_v30 = vrot.slane %v3790_v10, 1  ;;  %v3797_v50 = vrot.slane %v3796_v7, 1  ;;  %v4309_v62 = vadd.f32 %v4308_v32, %v4307_v9  ;;  %v4315_v58 = vadd.f32 %v4314_v63, %v4313_v2  ;;  %v12185_v32 = vld [vmem:[#allocation41_spill] sm:$0xff] }
 0x35c   : > { %v3803_v5 = vrot.slane %v3802_v19, 1  ;;  %v3809_v60 = vrot.slane %v3808_v12, 1  ;;  %v4186_v54 = vrot.slane %v4185_v56, 1  ;;  %v4661_v4 = vadd.f32 %v4660_v33, %v4619_v21  ;;  %v12187_v33 = vld [vmem:[#allocation43_spill] sm:$0xff] }
 0x35d   : > { %v4192_v17 = vrot.slane %v4191_v45, 1  ;;  %v4656_v41 = vrot.slane %v4655_v28, 2  ;;  %v4667_v1 = vadd.f32 %v4666_v52, %v4620_v24  ;;  %v4673_v42 = vadd.f32 %v4672_v11, %v4621_v0 }
 0x35e   : > { %v4198_v46 = vrot.slane %v4197_v53, 1  ;;  %v4204_v47 = vrot.slane %v4203_v18, 1  ;;  %v4298_v48 = vrot.slane %v4297_v44, 1  ;;  %v4304_v40 = vrot.slane %v4303_v35, 1 }
 0x35f   : > { %v9400_v20 = vadd.f32 %v3791_v30, %v3790_v10  ;;  %v9402_v6 = vadd.f32 %v3797_v50, %v3796_v7  ;;  %v4310_v57 = vrot.slane %v4309_v62, 1  ;;  %v4316_v37 = vrot.slane %v4315_v58, 1 }
 0x360   : > { %v9404_v9 = vadd.f32 %v3803_v5, %v3802_v19  ;;  %v9406_v2 = vadd.f32 %v3809_v60, %v3808_v12  ;;  %v9408_v15 = vadd.f32 %v4186_v54, %v4185_v56  ;;  %v4662_v21 = vrot.slane %v4661_v4, 2  ;;  %v12186_v12 = vld [vmem:[#allocation42_spill] sm:$0xff] }
 0x361   : > { %12173 = vst [vmem:[#allocation164_spill] sm:$0xff] %v9400_v20  ;;  %12174 = vst [vmem:[#allocation165_spill] sm:$0xff] %v9402_v6  ;;  %v9410_v27 = vadd.f32 %v4192_v17, %v4191_v45  ;;  %v4657_v11 = vadd.f32 %v4656_v41, %v4655_v28  ;;  %v4668_v52 = vrot.slane %v4667_v1, 2  ;;  %v4674_v26 = vrot.slane %v4673_v42, 2  ;;  %v12188_v45 = vld [vmem:[#allocation44_spill] sm:$0xff] }
 0x362   : > { %12175 = vst [vmem:[#allocation166_spill] sm:$0xff] %v9404_v9  ;;  %12176 = vst [vmem:[#allocation167_spill] sm:$0xff] %v9406_v2  ;;  %v9412_v24 = vadd.f32 %v4198_v46, %v4197_v53  ;;  %v9414_v30 = vadd.f32 %v4204_v47, %v4203_v18  ;;  %v9416_v50 = vadd.f32 %v4298_v48, %v4297_v44  ;;  %v765_v63 = vrot.slane %v12185_v32, 4  ;;  %v12203_v47 = vld [vmem:[#allocation94_spill] sm:$0xff] }
 0x363   : > { %12177 = vst [vmem:[#allocation168_spill] sm:$0xff] %v9408_v15  ;;  %12178 = vst [vmem:[#allocation169_spill] sm:$0xff] %v9410_v27  ;;  %v9418_v10 = vadd.f32 %v4304_v40, %v4303_v35  ;;  %v9420_v7 = vadd.f32 %v4310_v57, %v4309_v62  ;;  %v9422_v0 = vadd.f32 %v4316_v37, %v4315_v58  ;;  %v771_v56 = vrot.slane %v12186_v12, 4  ;;  %v12204_v27 = vld [vmem:[#allocation64_spill] sm:$0xff]  ;;  %v12205_v15 = vld [vmem:[#allocation91_spill] sm:$0xff] }
 0x364   : > { %12179 = vst [vmem:[#allocation170_spill] sm:$0xff] %v9412_v24  ;;  %12180 = vst [vmem:[#allocation171_spill] sm:$0xff] %v9414_v30  ;;  %v4730_v39 = vmul.f32 %v9266_v8, %v12168_v38  ;;  %v9427_v19 = vadd.f32 %v4662_v21, %v4661_v4  ;;  %v777_v18 = vrot.slane %v12187_v33, 4  ;;  %v783_v44 = vrot.slane %v12188_v45, 4  ;;  %v12190_v30 = vld [vmem:[#allocation135_spill] sm:$0xff]  ;;  %v12191_v24 = vld [vmem:[#allocation82_spill] sm:$0xff] }
 0x365   : > { %12181 = vst [vmem:[#allocation172_spill] sm:$0xff] %v9416_v50  ;;  %12182 = vst [vmem:[#allocation173_spill] sm:$0xff] %v9418_v10  ;;  %v4658_v48 = vrot.slane %v4657_v11, 1  ;;  %v9432_v40 = vadd.f32 %v4668_v52, %v4667_v1  ;;  %v9434_v62 = vadd.f32 %v4674_v26, %v4673_v42  ;;  %v766_v58 = vmax.f32 %v12185_v32, %v765_v63  ;;  %v2119_v50 = vpop.permute.xlu1 %2118 }
 0x366   : > { %12183 = vst [vmem:[#allocation174_spill] sm:$0xff] %v9420_v7  ;;  %12184 = vst [vmem:[#allocation175_spill] sm:$0xff] %v9422_v0  ;;  %v4731_v8 = vmul.f32 %v9284_v22, %v12168_v38  ;;  %v772_v28 = vmax.f32 %v12186_v12, %v771_v56  ;;  %v778_v53 = vmax.f32 %v12187_v33, %v777_v18  ;;  %v4766_v54 = vrot.slane %v4730_v39, 4 }
 0x367   : > { %v784_v35 = vmax.f32 %v12188_v45, %v783_v44  ;;  %v4732_v5 = vmul.f32 %v9287_v51, %v12168_v38  ;;  %v4733_v60 = vmul.f32 %v9308_v61, %v12168_v38  ;;  %v767_v4 = vrot.slane %v766_v58, 2 }
 0x368   : > { %v4664_v17 = vrot.slane %v9427_v19, 1  ;;  %v773_v41 = vrot.slane %v772_v28, 2  ;;  %v779_v1 = vrot.slane %v778_v53, 2  ;;  %v9447_v22 = vadd.f32 %v4658_v48, %v4657_v11  ;;  %v12192_v11 = vld [vmem:[#allocation88_spill] sm:$0xff] }
 0x369   : > { %v785_v42 = vrot.slane %v784_v35, 2  ;;  %v768_v57 = vmax.f32 %v766_v58, %v767_v4  ;;  %v4772_v37 = vrot.slane %v4731_v8, 4  ;;  %v4767_v26 = vadd.f32 %v4766_v54, %v4730_v39  ;;  %v12195_v58 = vld [vmem:[#allocation17_spill] sm:$0xff]  ;;  %v12196_v4 = vld [vmem:[#allocation83_spill] sm:$0xff]  ;;  %v12200_v54 = vld [vmem:[#allocation84_spill] sm:$0xff] }
 0x36a   : > { %12189 = vst [vmem:[#allocation41_spill] sm:$0xff] %v9447_v22  ;;  %v774_v21 = vmax.f32 %v772_v28, %v773_v41  ;;  %v780_v51 = vmax.f32 %v778_v53, %v779_v1  ;;  %v4778_v61 = vrot.slane %v4732_v5, 4  ;;  %v4784_v38 = vrot.slane %v4733_v60, 4  ;;  %v12197_v28 = vld [vmem:[#allocation89_spill] sm:$0xff]  ;;  %v12201_v41 = vld [vmem:[#allocation90_spill] sm:$0xff] }
 0x36b   : > { %v786_v52 = vmax.f32 %v784_v35, %v785_v42  ;;  %v769_v63 = vrot.slane %v768_v57, 1  ;;  %v12193_v48 = vmax.f32 %v12191_v24, %v12192_v11  ;;  %v12198_v53 = vmax.f32 %v12196_v4, %v12197_v28  ;;  %v12199_v39 = vld [vmem:[#allocation93_spill] sm:$0xff]  ;;  %v12211_v28 = vld [vmem:[#allocation107_spill] sm:$0xff] }
 0x36c   : > { %v775_v56 = vrot.slane %v774_v21, 1  ;;  %v781_v18 = vrot.slane %v780_v51, 1  ;;  %v12202_v1 = vmax.f32 %v12200_v54, %v12201_v41  ;;  %v12206_v24 = vmax.f32 %v12204_v27, %v12205_v15 }
 0x36d   : > { %v787_v44 = vrot.slane %v786_v52, 1  ;;  %v9455_v22 = vmax.f32 %v12193_v48, %v12190_v30  ;;  %v9457_v46 = vmax.f32 %v768_v57, %v769_v63  ;;  %v9463_v35 = vmax.f32 %v12198_v53, %v12195_v58  ;;  %v12210_v48 = vld [vmem:[#allocation106_spill] sm:$0xff] }
 0x36e   : > { %v9469_v42 = vmax.f32 %v12202_v1, %v12199_v39  ;;  %v9475_v30 = vmax.f32 %v12206_v24, %v12203_v47  ;;  %v9477_v57 = vmax.f32 %v774_v21, %v775_v56  ;;  %v9479_v63 = vmax.f32 %v780_v51, %v781_v18  ;;  %v12212_v39 = vld [vmem:[#allocation108_spill] sm:$0xff]  ;;  %v12213_v18 = vld [vmem:[#allocation109_spill] sm:$0xff] }
 0x36f   : > { %12194 = vst [vmem:[#allocation42_spill] sm:$0xff] %v9457_v46  ;;  %v9481_v11 = vmax.f32 %v786_v52, %v787_v44  ;;  %v4773_v4 = vadd.f32 %v4772_v37, %v4731_v8  ;;  %vm839_vm3 = vcmp.eq.f32.partialorder %v12185_v32, %v9457_v46  ;;  %v4768_v27 = vrot.slane %v4767_v26, 2 }
 0x370   : > { %12207 = vst [vmem:[#allocation43_spill] sm:$0xff] %v9477_v57  ;;  %12208 = vst [vmem:[#allocation44_spill] sm:$0xff] %v9479_v63  ;;  %v4779_v47 = vadd.f32 %v4778_v61, %v4732_v5  ;;  %v4785_v21 = vadd.f32 %v4784_v38, %v4733_v60  ;;  %vm840_vm1 = vcmp.eq.f32.partialorder %v12186_v12, %v9477_v57  ;;  %v9498_v8 = vsel %vm839_vm3, %v12077_v55, 8 }
 0x371   : > { %12209 = vst [vmem:[#allocation135_spill] sm:$0xff] %v9481_v11  ;;  %vm841_vm0 = vcmp.eq.f32.partialorder %v12187_v33, %v9479_v63  ;;  %vm842_vm4 = vcmp.eq.f32.partialorder %v12188_v45, %v9481_v11  ;;  %v9501_v37 = vsel %vm840_vm1, %v12077_v55, 8  ;;  %v935_v60 = vrot.slane %v9498_v8, 4 }
 0x372   : > { %v9504_v51 = vsel %vm841_vm0, %v12077_v55, 8  ;;  %v9507_v5 = vsel %vm842_vm4, %v12077_v55, 8  ;;  %v944_v52 = vrot.slane %v9501_v37, 4  ;;  %v4774_v61 = vrot.slane %v4773_v4, 2 }
 0x373   : > { %v953_v38 = vrot.slane %v9504_v51, 4  ;;  %v962_v56 = vrot.slane %v9507_v5, 4  ;;  %v2062_v44 = vmax.f32 %v9475_v30, %v12213_v18  ;;  %v4780_v54 = vrot.slane %v4779_v47, 2 }
 0x374   : > { %v4786_v41 = vrot.slane %v4785_v21, 2  ;;  %vm936_vm2 = vcmp.lt.s32.totalorder %v9498_v8, %v935_v60  ;;  %vm945_vm6 = vcmp.lt.s32.totalorder %v9501_v37, %v944_v52  ;;  %v9524_v18 = vadd.f32 %v4664_v17, %v9427_v19 }
 0x375   : > { %v937_v1 = vsel %vm936_vm2, %v9498_v8, %v935_v60  ;;  %v946_v24 = vsel %vm945_vm6, %v9501_v37, %v944_v52  ;;  %vm954_vm15 = vcmp.lt.s32.totalorder %v9504_v51, %v953_v38  ;;  %vm963_vm12 = vcmp.lt.s32.totalorder %v9507_v5, %v962_v56 }
 0x376   : > { %v938_v15 = vrot.slane %v937_v1, 2  ;;  %v947_v53 = vrot.slane %v946_v24, 2  ;;  %v955_v58 = vsel %vm954_vm15, %v9504_v51, %v953_v38  ;;  %v964_v30 = vsel %vm963_vm12, %v9507_v5, %v962_v56  ;;  %12214 = vst [vmem:[#allocation82_spill] sm:$0xff] %v9524_v18 }
 0x377   : > { %v9526_v0 = vadd.f32 %v4768_v27, %v4767_v26  ;;  %v956_v7 = vrot.slane %v955_v58, 2  ;;  %v965_v10 = vrot.slane %v964_v30, 2  ;;  %v9528_v60 = vadd.f32 %v4774_v61, %v4773_v4 }
 0x378   : > { %v9530_v52 = vadd.f32 %v4780_v54, %v4779_v47  ;;  %vm939_vm14 = vcmp.lt.s32.totalorder %v937_v1, %v938_v15  ;;  %vm948_vm8 = vcmp.lt.s32.totalorder %v946_v24, %v947_v53  ;;  %v12215_v38 = vrot.slane %v9432_v40, 1 }
 0x379   : > { %v940_v2 = vsel %vm939_vm14, %v937_v1, %v938_v15  ;;  %v949_v9 = vsel %vm948_vm8, %v946_v24, %v947_v53  ;;  %vm957_vm3 = vcmp.lt.s32.totalorder %v955_v58, %v956_v7  ;;  %vm966_vm1 = vcmp.lt.s32.totalorder %v964_v30, %v965_v10 }
 0x37a   : > { %v9535_v19 = vadd.f32 %v12215_v38, %v9432_v40  ;;  %v9537_v17 = vadd.f32 %v4786_v41, %v4785_v21  ;;  %v958_v26 = vsel %vm957_vm3, %v955_v58, %v956_v7  ;;  %v2091_v4 = vand.u32 2147483647, %v12185_v32 }
 0x37b   : > { %v4770_v27 = vrot.slane %v9526_v0, 1  ;;  %v967_v47 = vsel %vm966_vm1, %v964_v30, %v965_v10  ;;  %v2092_v61 = vand.u32 2147483647, %v12186_v12  ;;  %v2093_v15 = vand.u32 2147483647, %v12187_v33 }
 0x37c   : > { %12216 = vst [vmem:[#allocation88_spill] sm:$0xff] %v9535_v19  ;;  %v941_v56 = vrot.slane %v940_v2, 1  ;;  %v950_v54 = vrot.slane %v949_v9, 1  ;;  %v2135_v1 = vmul.f32 %v2119_v50, %v2091_v4  ;;  %v959_v24 = vrot.slane %v958_v26, 1 }
 0x37d   : > { %v2136_v21 = vmul.f32 %v2119_v50, %v2092_v61  ;;  %v2137_v41 = vmul.f32 %v2119_v50, %v2093_v15  ;;  %v968_v32 = vrot.slane %v967_v47, 1  ;;  %v12217_v10 = vmax.f32 %v9455_v22, %v12210_v48 }
 0x37e   : > { %v2094_v12 = vand.u32 2147483647, %v12188_v45  ;;  %v12218_v33 = vrot.slane %v9434_v62, 1  ;;  %v12220_v30 = vmax.f32 %v9463_v35, %v12211_v28  ;;  %v12221_v38 = vmax.f32 %v9469_v42, %v12212_v39 }
 0x37f   : > { %vm2075_vm0 = vcmp.le.f32.partialorder %v12217_v10, 0.0001  ;;  %vm2078_vm6 = vcmp.le.f32.partialorder %v2062_v44, 0.0001  ;;  %vm942_vm15 = vcmp.lt.s32.totalorder %v940_v2, %v941_v56  ;;  %vm951_vm12 = vcmp.lt.s32.totalorder %v949_v9, %v950_v54  ;;  %v12222_v44 = vld [vmem:[#allocation74_spill] sm:$0xff] }
 0x380   : > { %v9553_v58 = vadd.f32 %v12218_v33, %v9434_v62  ;;  %vm2076_vm4 = vcmp.le.f32.partialorder %v12220_v30, 0.0001  ;;  %vm2077_vm2 = vcmp.le.f32.partialorder %v12221_v38, 0.0001  ;;  %v2138_v22 = vmul.f32 %v2119_v50, %v2094_v12  ;;  %v12223_v12 = vld [vmem:[#allocation75_spill] sm:$0xff] }
 0x381   : > { %v2151_v48 = vsel %vm2075_vm0, %v2135_v1, 3.4028235e+38  ;;  %vm960_vm14 = vcmp.lt.s32.totalorder %v958_v26, %v959_v24  ;;  %v2152_v45 = vsel %vm2076_vm4, %v2136_v21, 3.4028235e+38  ;;  %v2153_v4 = vsel %vm2077_vm2, %v2137_v41, 3.4028235e+38 }
 0x382   : > { %12219 = vst [vmem:[#allocation17_spill] sm:$0xff] %v9553_v58  ;;  %v2207_v61 = vrot.slane %v2151_v48, 4  ;;  %vm969_vm8 = vcmp.lt.s32.totalorder %v967_v47, %v968_v32  ;;  %v2154_v62 = vsel %vm2078_vm6, %v2138_v22, 3.4028235e+38  ;;  %v2213_v15 = vrot.slane %v2152_v45, 4  ;;  %v12224_v22 = vld [vmem:[#allocation76_spill] sm:$0xff] }
 0x383   : > { %v2219_v10 = vrot.slane %v2153_v4, 4  ;;  %v943_v33 = vsel %vm942_vm15, %v940_v2, %v941_v56  ;;  %v952_v35 = vsel %vm951_vm12, %v949_v9, %v950_v54  ;;  %v2225_v30 = vrot.slane %v2154_v62, 4 }
 0x384   : > { %v2208_v28 = vmin.f32 %v2151_v48, %v2207_v61  ;;  %v961_v7 = vsel %vm960_vm14, %v958_v26, %v959_v24  ;;  %v2214_v42 = vmin.f32 %v2152_v45, %v2213_v15  ;;  %5588 = vrsqrt.f32 %v12222_v44 }
 0x385   : > { %v2220_v39 = vmin.f32 %v2153_v4, %v2219_v10  ;;  %v970_v38 = vsel %vm969_vm8, %v967_v47, %v968_v32  ;;  %v2226_v1 = vmin.f32 %v2154_v62, %v2225_v30  ;;  %5590 = vrsqrt.f32 %v12223_v12  ;;  %v12226_v32 = vld [vmem:[#allocation34_spill] sm:$0xff] }
 0x386   : > { %v2209_v50 = vrot.slane %v2208_v28, 2  ;;  %vm1015_vm3 = vcmp.eq.s32.totalorder %v9498_v8, %v943_v33  ;;  %v2215_v21 = vrot.slane %v2214_v42, 2  ;;  %5592 = vrsqrt.f32 %v12224_v22 }
 0x387   : > { %v2221_v41 = vrot.slane %v2220_v39, 2  ;;  %vm1016_vm1 = vcmp.eq.s32.totalorder %v9501_v37, %v952_v35  ;;  %vm1017_vm0 = vcmp.eq.s32.totalorder %v9504_v51, %v961_v7  ;;  %v2227_v2 = vrot.slane %v2226_v1, 2 }
 0x388   : > { %v2210_v9 = vmin.f32 %v2208_v28, %v2209_v50  ;;  %v9568_v26 = vadd.f32 %v4770_v27, %v9526_v0  ;;  %vm1018_vm4 = vcmp.eq.s32.totalorder %v9507_v5, %v970_v38  ;;  %v2216_v47 = vmin.f32 %v2214_v42, %v2215_v21 }
 0x389   : > { %v2222_v56 = vmin.f32 %v2220_v39, %v2221_v41  ;;  %v9572_v54 = vsel %vm1015_vm3, 1.0, %v11978_v29  ;;  %v2228_v24 = vmin.f32 %v2226_v1, %v2227_v2  ;;  %5594 = vrsqrt.f32 %v12226_v32  ;;  %v12229_v39 = vld [vmem:[#allocation11_spill] sm:$0xff] }
 0x38a   : > { %12225 = vst [vmem:[#allocation83_spill] sm:$0xff] %v9568_v26  ;;  %v2211_v8 = vrot.slane %v2210_v9, 1  ;;  %v9576_v37 = vsel %vm1016_vm1, 1.0, %v11978_v29  ;;  %v9579_v51 = vsel %vm1017_vm0, 1.0, %v11978_v29  ;;  %v2217_v7 = vrot.slane %v2216_v47, 1 }
 0x38b   : > { %v2223_v0 = vrot.slane %v2222_v56, 1  ;;  %v9582_v27 = vsel %vm1018_vm4, 1.0, %v11978_v29  ;;  %v2229_v61 = vrot.slane %v2228_v24, 1  ;;  %v9599_v38 = vmul.f32 %v9572_v54, %v12229_v39 }
 0x38c   : > { %v9584_v5 = vmin.f32 %v2210_v9, %v2211_v8  ;;  %v9587_v10 = vmin.f32 %v2216_v47, %v2217_v7  ;;  %v9608_v1 = vmul.f32 %v9576_v37, %v12229_v39  ;;  %vm3421_vm14 = vcmp.eq.f32.partialorder %v12222_v44, inf }
 0x38d   : > { %v9589_v33 = vmin.f32 %v2222_v56, %v2223_v0  ;;  %v9593_v30 = vmin.f32 %v2228_v24, %v2229_v61  ;;  %vm3428_vm3 = vcmp.eq.f32.partialorder %v12223_v12, inf  ;;  %v9636_v56 = vmul.f32 %v9582_v27, %v12229_v39 }
 0x38e   : > { %vm2263_vm2 = vcmp.eq.f32.partialorder %v2151_v48, %v9584_v5  ;;  %vm2264_vm6 = vcmp.eq.f32.partialorder %v2152_v45, %v9587_v10  ;;  %v3699_v8 = vrot.slane %v9599_v38, 4  ;;  %vm3437_vm8 = vcmp.eq.f32.partialorder %v12224_v22, 0.0 }
 0x38f   : > { %12227 = vst [vmem:[#allocation89_spill] sm:$0xff] %v9589_v33  ;;  %12228 = vst [vmem:[#allocation93_spill] sm:$0xff] %v9593_v30  ;;  %vm2265_vm15 = vcmp.eq.f32.partialorder %v2153_v4, %v9589_v33  ;;  %v9604_v50 = vsel %vm2263_vm2, %v12077_v55, 8  ;;  %vm2266_vm12 = vcmp.eq.f32.partialorder %v2154_v62, %v9593_v30  ;;  %v9612_v48 = vsel %vm2264_vm6, %v12077_v55, 8 }
 0x390   : > { %v9615_v21 = vsel %vm2265_vm15, %v12077_v55, 8  ;;  %v2359_v41 = vrot.slane %v9604_v50, 4  ;;  %v9621_v45 = vsel %vm2266_vm12, %v12077_v55, 8  ;;  %v2368_v4 = vrot.slane %v9612_v48, 4 }
 0x391   : > { %v2377_v9 = vrot.slane %v9615_v21, 4  ;;  %v9628_v62 = vmul.f32 %v9579_v51, %v12229_v39  ;;  %v5589_v2 = vpop.eup %5588  ;;  %v2386_v47 = vrot.slane %v9621_v45, 4  ;;  %vm3423_vm2 = vcmp.eq.f32.partialorder %v12222_v44, 0.0 }
 0x392   : > { %vm2360_vm0 = vcmp.lt.s32.totalorder %v9604_v50, %v2359_v41  ;;  %v5591_v24 = vpop.eup %5590  ;;  %vm2369_vm6 = vcmp.lt.s32.totalorder %v9612_v48, %v2368_v4  ;;  %v3420_v0 = vmul.f32 %v5589_v2, %v12222_v44 }
 0x393   : > { %v2361_v7 = vsel %vm2360_vm0, %v9604_v50, %v2359_v41  ;;  %vm2378_vm15 = vcmp.lt.s32.totalorder %v9615_v21, %v2377_v9  ;;  %v5593_v61 = vpop.eup %5592  ;;  %v2370_v53 = vsel %vm2369_vm6, %v9612_v48, %v2368_v4  ;;  %vm2387_vm1 = vcmp.lt.s32.totalorder %v9621_v45, %v2386_v47 }
 0x394   : > { %v2362_v40 = vrot.slane %v2361_v7, 2  ;;  %v2379_v42 = vsel %vm2378_vm15, %v9615_v21, %v2377_v9  ;;  %v2371_v41 = vrot.slane %v2370_v53, 2  ;;  %v2388_v35 = vsel %vm2387_vm1, %v9621_v45, %v2386_v47 }
 0x395   : > { %v2380_v28 = vrot.slane %v2379_v42, 2  ;;  %v2389_v4 = vrot.slane %v2388_v35, 2  ;;  %v3427_v9 = vmul.f32 %v5591_v24, %v12223_v12  ;;  %v3711_v15 = vrot.slane %v9628_v62, 4 }
 0x396   : > { %vm2363_vm4 = vcmp.lt.s32.totalorder %v2361_v7, %v2362_v40  ;;  %v5595_v58 = vpop.eup %5594  ;;  %vm2372_vm15 = vcmp.lt.s32.totalorder %v2370_v53, %v2371_v41  ;;  %v3434_v47 = vmul.f32 %v5593_v61, %v12224_v22  ;;  %v3422_v24 = vsel %vm3421_vm14, %v12222_v44, %v3420_v0 }
 0x397   : > { %v2364_v19 = vsel %vm2363_vm4, %v2361_v7, %v2362_v40  ;;  %vm2381_vm0 = vcmp.lt.s32.totalorder %v2379_v42, %v2380_v28  ;;  %v2373_v2 = vsel %vm2372_vm15, %v2370_v53, %v2371_v41  ;;  %vm2390_vm1 = vcmp.lt.s32.totalorder %v2388_v35, %v2389_v4 }
 0x398   : > { %v2365_v18 = vrot.slane %v2364_v19, 1  ;;  %v2382_v26 = vsel %vm2381_vm0, %v2379_v42, %v2380_v28  ;;  %v2374_v6 = vrot.slane %v2373_v2, 1  ;;  %v2391_v14 = vsel %vm2390_vm1, %v2388_v35, %v2389_v4 }
 0x399   : > { %v2383_v20 = vrot.slane %v2382_v26, 1  ;;  %v2392_v49 = vrot.slane %v2391_v14, 1  ;;  %v3429_v40 = vsel %vm3428_vm3, %v12223_v12, %v3427_v9  ;;  %v3441_v7 = vmul.f32 %v5595_v58, %v12226_v32 }
 0x39a   : > { %vm2366_vm6 = vcmp.lt.s32.totalorder %v2364_v19, %v2365_v18  ;;  %vm2375_vm4 = vcmp.lt.s32.totalorder %v2373_v2, %v2374_v6  ;;  %vm12230_vm0 = vcmp.eq.f32.partialorder %v12224_v22, inf  ;;  %vm12231_vm14 = vcmp.le.f32.partialorder %v9457_v46, 0.0 }
 0x39b   : > { %v2367_v61 = vsel %vm2366_vm6, %v2364_v19, %v2365_v18  ;;  %vm2384_vm15 = vcmp.lt.s32.totalorder %v2382_v26, %v2383_v20  ;;  %v3436_v53 = vsel %vm12230_vm0, %v12224_v22, %v3434_v47  ;;  %v2376_v35 = vsel %vm2375_vm4, %v2373_v2, %v2374_v6  ;;  %vm9671_vm12 = vmxor %vm12231_vm14, %vm12117_vm13 }
 0x39c   : > { %v2385_v28 = vsel %vm2384_vm15, %v2382_v26, %v2383_v20  ;;  %vm2393_vm1 = vcmp.lt.s32.totalorder %v2391_v14, %v2392_v49  ;;  %v3717_v0 = vrot.slane %v9636_v56, 4  ;;  %v12234_v18 = vand.u32 2147483648, %v12222_v44 }
 0x39d   : > { %v2394_v58 = vsel %vm2393_vm1, %v2391_v14, %v2392_v49  ;;  %v12235_v6 = vand.u32 2147483648, %v12223_v12  ;;  %vm12236_vm3 = vcmp.eq.f32.partialorder %v12223_v12, 0.0  ;;  %vm12237_vm6 = vcmp.le.f32.partialorder %v9477_v57, 0.0 }
 0x39e   : > { %v9680_v19 = vsel %vm3423_vm2, %v12234_v18, %v3422_v24  ;;  %vm9691_vm4 = vmxor %vm12237_vm6, %vm12117_vm13  ;;  %v3700_v49 = vadd.f32 %v3699_v8, %v9599_v38  ;;  %vm2439_vm15 = vcmp.eq.s32.totalorder %v9604_v50, %v2367_v61  ;;  %v12240_v14 = vand.u32 2147483648, %v12224_v22 }
 0x39f   : > { %v9686_v20 = vsel %vm12236_vm3, %v12235_v6, %v3429_v40  ;;  %vm12242_vm0 = vcmp.eq.f32.partialorder %v12226_v32, inf  ;;  %vm12243_vm1 = vcmp.le.f32.partialorder %v9479_v63, 0.0  ;;  %v12246_v38 = vand.u32 2147483648, %v12226_v32 }
 0x3a0   : > { %v9702_v44 = vsel %vm3437_vm8, %v12240_v14, %v3436_v53  ;;  %v3443_v12 = vsel %vm12242_vm0, %v12226_v32, %v3441_v7  ;;  %vm9710_vm14 = vmxor %vm12243_vm1, %vm12117_vm13  ;;  %vm12247_vm6 = vcmp.eq.f32.partialorder %v12226_v32, 0.0  ;;  %vm12249_vm8 = vcmp.le.f32.partialorder %v9481_v11, 0.0 }
 0x3a1   : > { %12241 = vst [vmem:[#allocation84_spill] sm:$0xff] %v9702_v44  ;;  %v9719_v22 = vsel %vm12247_vm6, %v12246_v38, %v3443_v12  ;;  %vm9724_vm2 = vmxor %vm12249_vm8, %vm12117_vm13  ;;  %vm3547_vm0 = vcmp.lt.f32.partialorder %v9680_v19, %v9584_v5  ;;  %vm3548_vm1 = vcmp.lt.f32.partialorder %v9686_v20, %v9587_v10  ;;  %vm3549_vm11 = vcmp.lt.f32.partialorder %v9702_v44, %v9589_v33 }
 0x3a2   : > { %12248 = vst [vmem:[#allocation90_spill] sm:$0xff] %v9719_v22  ;;  %vm3550_vm6 = vcmp.lt.f32.partialorder %v9719_v22, %v9593_v30  ;;  %vm9739_vm8 = vmand %vm3547_vm0, %vm9671_vm12  ;;  %v12252_v32 = vmov 0  ;;  %v12255_v8 = vrot.slane %v9608_v1, 4  ;;  %v9747_v9 = vsel %vm2439_vm15, 1.0, %v11978_v29 }
 0x3a3   : > { %v12253_v32 = vsel %vm9739_vm8, 4294967295, %v12252_v32  ;;  %vm9751_vm3 = vmand %vm3548_vm1, %vm9691_vm4  ;;  %v12256_v47 = vmov 0  ;;  %v3701_v24 = vrot.slane %v3700_v49, 2  ;;  %v3712_v40 = vadd.f32 %v3711_v15, %v9628_v62 }
 0x3a4   : > { %12254 = vst [vmem:[#allocation94_spill] sm:$0xff] %v12253_v32  ;;  %v3706_v4 = vadd.f32 %v12255_v8, %v9608_v1  ;;  %v12257_v47 = vsel %vm9751_vm3, 4294967295, %v12256_v47  ;;  %vm12259_vm12 = vcmp.eq.s32.totalorder %v9612_v48, %v2376_v35  ;;  %vm12260_vm15 = vcmp.eq.s32.totalorder %v9615_v21, %v2385_v28  ;;  %vm9772_vm4 = vmand %vm3549_vm11, %vm9710_vm14  ;;  %v12274_v8 = vld [vmem:[#allocation16_spill] sm:$0xff] }
 0x3a5   : > { %12258 = vst [vmem:[#allocation64_spill] sm:$0xff] %v12257_v47  ;;  %v9763_v1 = vsel %vm12259_vm12, 1.0, %v11978_v29  ;;  %v9768_v7 = vsel %vm12260_vm15, 1.0, %v11978_v29  ;;  %v12261_v61 = vmov 0  ;;  %v3718_v48 = vadd.f32 %v3717_v0, %v9636_v56  ;;  %vm9801_vm14 = vmand %vm3550_vm6, %vm9724_vm2  ;;  %v12401_v47 = vld [vmem:[#allocation149_spill] sm:$0xff] }
 0x3a6   : > { %v12262_v61 = vsel %vm9772_vm4, 4294967295, %v12261_v61  ;;  %v12264_v62 = vrot.slane %v9528_v60, 1  ;;  %v12266_v21 = vrot.slane %v9530_v52, 1  ;;  %vm12268_vm11 = vcmp.eq.s32.totalorder %v9621_v45, %v2394_v58 }
 0x3a7   : > { %12263 = vst [vmem:[#allocation91_spill] sm:$0xff] %v12262_v61  ;;  %v9794_v28 = vsel %vm12268_vm11, 1.0, %v11978_v29  ;;  %v12269_v56 = vmov 0  ;;  %v3707_v0 = vrot.slane %v3706_v4, 2  ;;  %v3755_v58 = vmul.f32 %v9747_v9, %v12229_v39 }
 0x3a8   : > { %v9784_v53 = vadd.f32 %v12264_v62, %v9528_v60  ;;  %v9789_v35 = vadd.f32 %v12266_v21, %v9530_v52  ;;  %v12270_v56 = vsel %vm9801_vm14, 4294967295, %v12269_v56  ;;  %v12272_v52 = vrot.slane %v9537_v17, 1 }
 0x3a9   : > { %12271 = vst [vmem:[#allocation108_spill] sm:$0xff] %v12270_v56  ;;  %5596 = vrcp.f32 %v9680_v19  ;;  %v3713_v18 = vrot.slane %v3712_v40, 2  ;;  %v3756_v6 = vmul.f32 %v9763_v1, %v12229_v39  ;;  %v3757_v26 = vmul.f32 %v9768_v7, %v12229_v39 }
 0x3aa   : > { %12265 = vst [vmem:[#allocation106_spill] sm:$0xff] %v9784_v53  ;;  %12267 = vst [vmem:[#allocation107_spill] sm:$0xff] %v9789_v35  ;;  %v9812_v45 = vadd.f32 %v12272_v52, %v9537_v17  ;;  %v3702_v17 = vadd.f32 %v3701_v24, %v3700_v49  ;;  %v3719_v14 = vrot.slane %v3718_v48, 2  ;;  %v3758_v12 = vmul.f32 %v9794_v28, %v12229_v39 }
 0x3ab   : > { %v3811_v41 = vrot.slane %v3755_v58, 4  ;;  %5598 = vrcp.f32 %v9686_v20  ;;  %v3817_v38 = vrot.slane %v3756_v6, 4  ;;  %v3823_v50 = vrot.slane %v3757_v26, 4 }
 0x3ac   : > { %12273 = vst [vmem:[#allocation109_spill] sm:$0xff] %v9812_v45  ;;  %v4150_v62 = vmul.f32 %v9572_v54, %v12274_v8  ;;  %v3708_v21 = vadd.f32 %v3707_v0, %v3706_v4  ;;  %v3829_v42 = vrot.slane %v3758_v12, 4  ;;  %v4151_v60 = vmul.f32 %v9576_v37, %v12274_v8 }
 0x3ad   : > { %v3812_v52 = vadd.f32 %v3811_v41, %v3755_v58  ;;  %v3714_v15 = vadd.f32 %v3713_v18, %v3712_v40  ;;  %v3818_v49 = vadd.f32 %v3817_v38, %v3756_v6  ;;  %v3824_v24 = vadd.f32 %v3823_v50, %v3757_v26 }
 0x3ae   : > { %v4152_v39 = vmul.f32 %v9579_v51, %v12274_v8  ;;  %v3703_v2 = vrot.slane %v3702_v17, 1  ;;  %v3720_v45 = vadd.f32 %v3719_v14, %v3718_v48  ;;  %v3830_v35 = vadd.f32 %v3829_v42, %v3758_v12 }
 0x3af   : > { %v4153_v53 = vmul.f32 %v9582_v27, %v12274_v8  ;;  %v3813_v31 = vrot.slane %v3812_v52, 2  ;;  %v3819_v34 = vrot.slane %v3818_v49, 2  ;;  %v4206_v4 = vrot.slane %v4150_v62, 4 }
 0x3b0   : > { %v4212_v0 = vrot.slane %v4151_v60, 4  ;;  %v3825_v58 = vrot.slane %v3824_v24, 2  ;;  %v3831_v41 = vrot.slane %v3830_v35, 2  ;;  %v4218_v23 = vrot.slane %v4152_v39, 4 }
 0x3b1   : > { %v4224_v25 = vrot.slane %v4153_v53, 4  ;;  %v3709_v40 = vrot.slane %v3708_v21, 1  ;;  %v3715_v18 = vrot.slane %v3714_v15, 1  ;;  %v4207_v6 = vadd.f32 %v4206_v4, %v4150_v62 }
 0x3b2   : > { %v4213_v26 = vadd.f32 %v4212_v0, %v4151_v60  ;;  %5600 = vrcp.f32 %v9702_v44  ;;  %v3721_v38 = vrot.slane %v3720_v45, 1  ;;  %v4219_v48 = vadd.f32 %v4218_v23, %v4152_v39 }
 0x3b3   : > { %v4225_v42 = vadd.f32 %v4224_v25, %v4153_v53  ;;  %v3814_v14 = vadd.f32 %v3813_v31, %v3812_v52  ;;  %v3820_v12 = vadd.f32 %v3819_v34, %v3818_v49  ;;  %v4208_v50 = vrot.slane %v4207_v6, 2 }
 0x3b4   : > { %v4214_v13 = vrot.slane %v4213_v26, 2  ;;  %5602 = vrcp.f32 %v9719_v22  ;;  %v9838_v11 = vadd.f32 %v3703_v2, %v3702_v17  ;;  %v3826_v30 = vadd.f32 %v3825_v58, %v3824_v24 }
 0x3b5   : > { %v3832_v56 = vadd.f32 %v3831_v41, %v3830_v35  ;;  %v9840_v63 = vadd.f32 %v3709_v40, %v3708_v21  ;;  %v9842_v33 = vadd.f32 %v3715_v18, %v3714_v15  ;;  %v4220_v60 = vrot.slane %v4219_v48, 2 }
 0x3b6   : > { %12275 = vst [vmem:[#allocation74_spill] sm:$0xff] %v9838_v11  ;;  %v4226_v62 = vrot.slane %v4225_v42, 2  ;;  %v9844_v4 = vpop.eup %5596  ;;  %v9846_v23 = vadd.f32 %v3721_v38, %v3720_v45  ;;  %v4209_v31 = vadd.f32 %v4208_v50, %v4207_v6  ;;  %v4215_v34 = vadd.f32 %v4214_v13, %v4213_v26  ;;  %v12281_v38 = vld [vmem:[#allocation33_spill] sm:$0xff] }
 0x3b7   : > { %12276 = vst [vmem:[#allocation75_spill] sm:$0xff] %v9840_v63  ;;  %12277 = vst [vmem:[#allocation76_spill] sm:$0xff] %v9842_v33  ;;  %v4262_v25 = vmul.f32 %v9747_v9, %v12274_v8  ;;  %v3815_v53 = vrot.slane %v3814_v14, 1  ;;  %v3821_v2 = vrot.slane %v3820_v12, 1  ;;  %v4263_v35 = vmul.f32 %v9763_v1, %v12274_v8 }
 0x3b8   : > { %12278 = vst [vmem:[#allocation34_spill] sm:$0xff] %v9844_v4  ;;  %12279 = vst [vmem:[#allocation11_spill] sm:$0xff] %v9846_v23  ;;  %v4264_v15 = vmul.f32 %v9768_v7, %v12274_v8  ;;  %v9854_v17 = vpop.eup %5598  ;;  %v3827_v21 = vrot.slane %v3826_v30, 1  ;;  %v3833_v52 = vrot.slane %v3832_v56, 1  ;;  %v4265_v45 = vmul.f32 %v9794_v28, %v12274_v8 }
 0x3b9   : > { %12280 = vst [vmem:[#allocation16_spill] sm:$0xff] %v9854_v17  ;;  %v4318_v49 = vrot.slane %v4262_v25, 4  ;;  %v4221_v13 = vadd.f32 %v4220_v60, %v4219_v48  ;;  %v4227_v24 = vadd.f32 %v4226_v62, %v4225_v42  ;;  %v4324_v39 = vrot.slane %v4263_v35, 4 }
 0x3ba   : > { %v4330_v0 = vrot.slane %v4264_v15, 4  ;;  %v4210_v58 = vrot.slane %v4209_v31, 1  ;;  %v4216_v41 = vrot.slane %v4215_v34, 1  ;;  %v4336_v18 = vrot.slane %v4265_v45, 4 }
 0x3bb   : > { %v4319_v40 = vadd.f32 %v4318_v49, %v4262_v25  ;;  %v4325_v6 = vadd.f32 %v4324_v39, %v4263_v35  ;;  %v4622_v50 = vmul.f32 %v9572_v54, %v12281_v38  ;;  %v4623_v23 = vmul.f32 %v9576_v37, %v12281_v38 }
 0x3bc   : > { %v4331_v26 = vadd.f32 %v4330_v0, %v4264_v15  ;;  %v4337_v63 = vadd.f32 %v4336_v18, %v4265_v45  ;;  %v4624_v8 = vmul.f32 %v9579_v51, %v12281_v38  ;;  %v4625_v48 = vmul.f32 %v9582_v27, %v12281_v38 }
 0x3bd   : > { %v4320_v33 = vrot.slane %v4319_v40, 2  ;;  %v4326_v42 = vrot.slane %v4325_v6, 2  ;;  %v4678_v62 = vrot.slane %v4622_v50, 4  ;;  %v4684_v25 = vrot.slane %v4623_v23, 4 }
 0x3be   : > { %v4332_v60 = vrot.slane %v4331_v26, 2  ;;  %v4338_v15 = vrot.slane %v4337_v63, 2  ;;  %v4690_v49 = vrot.slane %v4624_v8, 4  ;;  %v4696_v39 = vrot.slane %v4625_v48, 4 }
 0x3bf   : > { %v4321_v35 = vadd.f32 %v4320_v33, %v4319_v40  ;;  %v9866_v54 = vpop.eup %5600  ;;  %v4222_v0 = vrot.slane %v4221_v13, 1  ;;  %v4327_v37 = vadd.f32 %v4326_v42, %v4325_v6  ;;  %v4679_v45 = vadd.f32 %v4678_v62, %v4622_v50 }
 0x3c0   : > { %12282 = vst [vmem:[#allocation33_spill] sm:$0xff] %v9866_v54  ;;  %v4333_v11 = vadd.f32 %v4332_v60, %v4331_v26  ;;  %v9868_v18 = vadd.f32 %v3815_v53, %v3814_v14  ;;  %v4228_v51 = vrot.slane %v4227_v24, 1  ;;  %v4339_v17 = vadd.f32 %v4338_v15, %v4337_v63 }
 0x3c1   : > { %v4685_v4 = vadd.f32 %v4684_v25, %v4623_v23  ;;  %v9870_v27 = vpop.eup %5602  ;;  %v9872_v22 = vadd.f32 %v3821_v2, %v3820_v12  ;;  %v9874_v44 = vadd.f32 %v3827_v21, %v3826_v30  ;;  %v4322_v33 = vrot.slane %v4321_v35, 1 }
 0x3c2   : > { %12283 = vst [vmem:[#allocation176_spill] sm:$0xff] %v9868_v18  ;;  %v4691_v40 = vadd.f32 %v4690_v49, %v4624_v8  ;;  %v9876_v61 = vadd.f32 %v3833_v52, %v3832_v56  ;;  %v9878_v54 = vadd.f32 %v4210_v58, %v4209_v31  ;;  %v4328_v6 = vrot.slane %v4327_v37, 1 }
 0x3c3   : > { %12284 = vst [vmem:[#allocation177_spill] sm:$0xff] %v9872_v22  ;;  %12285 = vst [vmem:[#allocation178_spill] sm:$0xff] %v9874_v44  ;;  %v4697_v26 = vadd.f32 %v4696_v39, %v4625_v48  ;;  %v9880_v50 = vadd.f32 %v4216_v41, %v4215_v34  ;;  %v9882_v14 = vadd.f32 %v4222_v0, %v4221_v13  ;;  %v4334_v63 = vrot.slane %v4333_v11, 1 }
 0x3c4   : > { %12286 = vst [vmem:[#allocation179_spill] sm:$0xff] %v9876_v61  ;;  %12287 = vst [vmem:[#allocation180_spill] sm:$0xff] %v9878_v54  ;;  %v4680_v23 = vrot.slane %v4679_v45, 2  ;;  %v9884_v53 = vadd.f32 %v4228_v51, %v4227_v24  ;;  %v4340_v12 = vrot.slane %v4339_v17, 1  ;;  %v4686_v2 = vrot.slane %v4685_v4, 2  ;;  %v12399_v61 = vld [vmem:[#allocation130_spill] sm:$0xff] }
 0x3c5   : > { %12288 = vst [vmem:[#allocation181_spill] sm:$0xff] %v9880_v50  ;;  %12289 = vst [vmem:[#allocation182_spill] sm:$0xff] %v9882_v14  ;;  %v4734_v30 = vmul.f32 %v9747_v9, %v12281_v38  ;;  %v9888_v21 = vadd.f32 %v4322_v33, %v4321_v35  ;;  %v4692_v56 = vrot.slane %v4691_v40, 2  ;;  %v4735_v31 = vmul.f32 %v9763_v1, %v12281_v38 }
 0x3c6   : > { %12290 = vst [vmem:[#allocation183_spill] sm:$0xff] %v9884_v53  ;;  %v4736_v34 = vmul.f32 %v9768_v7, %v12281_v38  ;;  %v9894_v52 = vadd.f32 %v4328_v6, %v4327_v37  ;;  %v4698_v13 = vrot.slane %v4697_v26, 2  ;;  %v4737_v24 = vmul.f32 %v9794_v28, %v12281_v38  ;;  %v12296_v53 = vld [vmem:[#allocation111_spill] sm:$0xff] }
 0x3c7   : > { %12291 = vst [vmem:[#allocation184_spill] sm:$0xff] %v9888_v21  ;;  %v4790_v58 = vrot.slane %v4734_v30, 4  ;;  %v9898_v41 = vadd.f32 %v4334_v63, %v4333_v11  ;;  %v4681_v8 = vadd.f32 %v4680_v23, %v4679_v45  ;;  %v4796_v9 = vrot.slane %v4735_v31, 4 }
 0x3c8   : > { %12292 = vst [vmem:[#allocation185_spill] sm:$0xff] %v9894_v52  ;;  %v4802_v48 = vrot.slane %v4736_v34, 4  ;;  %v9900_v42 = vadd.f32 %v4340_v12, %v4339_v17  ;;  %v4687_v60 = vadd.f32 %v4686_v2, %v4685_v4  ;;  %v4808_v1 = vrot.slane %v4737_v24, 4 }
 0x3c9   : > { %12293 = vst [vmem:[#allocation186_spill] sm:$0xff] %v9898_v41  ;;  %v4791_v62 = vadd.f32 %v4790_v58, %v4734_v30  ;;  %v4797_v25 = vadd.f32 %v4796_v9, %v4735_v31  ;;  %v789_v7 = vrot.slane %v12058_v3, 4  ;;  %v795_v15 = vrot.slane %v12062_v43, 4  ;;  %v12386_v41 = vld [vmem:[#allocation8_spill] sm:$0xff] }
 0x3ca   : > { %12294 = vst [vmem:[#allocation187_spill] sm:$0xff] %v9900_v42  ;;  %v4803_v35 = vadd.f32 %v4802_v48, %v4736_v34  ;;  %v4809_v39 = vadd.f32 %v4808_v1, %v4737_v24  ;;  %v801_v28 = vrot.slane %v12063_v16, 4  ;;  %v807_v11 = vrot.slane %v12064_v36, 4 }
 0x3cb   : > { %v4792_v49 = vrot.slane %v4791_v62, 2  ;;  %v4693_v38 = vadd.f32 %v4692_v56, %v4691_v40  ;;  %v4699_v0 = vadd.f32 %v4698_v13, %v4697_v26  ;;  %v790_v17 = vmax.f32 %v12058_v3, %v789_v7 }
 0x3cc   : > { %v796_v4 = vmax.f32 %v12062_v43, %v795_v15  ;;  %v4682_v37 = vrot.slane %v4681_v8, 1  ;;  %v4798_v45 = vrot.slane %v4797_v25, 2  ;;  %v802_v51 = vmax.f32 %v12063_v16, %v801_v28 }
 0x3cd   : > { %v808_v33 = vmax.f32 %v12064_v36, %v807_v11  ;;  %v4793_v6 = vadd.f32 %v4792_v49, %v4791_v62  ;;  %v4804_v63 = vrot.slane %v4803_v35, 2  ;;  %v791_v23 = vrot.slane %v790_v17, 2 }
 0x3ce   : > { %v797_v12 = vrot.slane %v796_v4, 2  ;;  %v4688_v2 = vrot.slane %v4687_v60, 1  ;;  %v4810_v30 = vrot.slane %v4809_v39, 2  ;;  %v803_v31 = vrot.slane %v802_v51, 2 }
 0x3cf   : > { %v809_v34 = vrot.slane %v808_v33, 2  ;;  %v4694_v40 = vrot.slane %v4693_v38, 1  ;;  %v4700_v26 = vrot.slane %v4699_v0, 1  ;;  %v792_v56 = vmax.f32 %v790_v17, %v791_v23 }
 0x3d0   : > { %v798_v13 = vmax.f32 %v796_v4, %v797_v12  ;;  %v9910_v24 = vadd.f32 %v4682_v37, %v4681_v8  ;;  %v4799_v58 = vadd.f32 %v4798_v45, %v4797_v25  ;;  %v804_v9 = vmax.f32 %v802_v51, %v803_v31 }
 0x3d1   : > { %v810_v48 = vmax.f32 %v808_v33, %v809_v34  ;;  %v4794_v1 = vrot.slane %v4793_v6, 1  ;;  %v4805_v7 = vadd.f32 %v4804_v63, %v4803_v35  ;;  %v793_v15 = vrot.slane %v792_v56, 1 }
 0x3d2   : > { %12295 = vst [vmem:[#allocation188_spill] sm:$0xff] %v9910_v24  ;;  %v799_v62 = vrot.slane %v798_v13, 1  ;;  %v9912_v49 = vadd.f32 %v4810_v30, %v4809_v39  ;;  %v805_v28 = vrot.slane %v804_v9, 1  ;;  %5604 = vrsqrt.f32 %v12296_v53 }
 0x3d3   : > { %v811_v11 = vrot.slane %v810_v48, 1  ;;  %v9915_v14 = vadd.f32 %v4688_v2, %v4687_v60  ;;  %v9917_v50 = vadd.f32 %v4694_v40, %v4693_v38  ;;  %v9919_v17 = vmax.f32 %v792_v56, %v793_v15  ;;  %v12301_v38 = vld [vmem:[#allocation113_spill] sm:$0xff]  ;;  %v12304_v2 = vld [vmem:[#allocation114_spill] sm:$0xff] }
 0x3d4   : > { %v9921_v8 = vmax.f32 %v798_v13, %v799_v62  ;;  %v9923_v25 = vadd.f32 %v4700_v26, %v4699_v0  ;;  %v4800_v4 = vrot.slane %v4799_v58, 1  ;;  %v9925_v35 = vmax.f32 %v804_v9, %v805_v28  ;;  %v12305_v9 = vld [vmem:[#allocation115_spill] sm:$0xff] }
 0x3d5   : > { %12297 = vst [vmem:[#allocation111_spill] sm:$0xff] %v9915_v14  ;;  %12298 = vst [vmem:[#allocation189_spill] sm:$0xff] %v9917_v50  ;;  %v9927_v37 = vmax.f32 %v810_v48, %v811_v11  ;;  %v9929_v39 = vadd.f32 %v4794_v1, %v4793_v6  ;;  %v4806_v45 = vrot.slane %v4805_v7, 1  ;;  %vm843_vm2 = vcmp.eq.f32.partialorder %v12058_v3, %v9919_v17  ;;  %v12352_v50 = vld [vmem:[#allocation44_spill] sm:$0xff] }
 0x3d6   : > { %12299 = vst [vmem:[#allocation190_spill] sm:$0xff] %v9923_v25  ;;  %vm844_vm0 = vcmp.eq.f32.partialorder %v12062_v43, %v9921_v8  ;;  %vm845_vm1 = vcmp.eq.f32.partialorder %v12063_v16, %v9925_v35  ;;  %5606 = vrsqrt.f32 %v12301_v38  ;;  %v9942_v0 = vsel %vm843_vm2, %v12077_v55, 8  ;;  %v12349_v25 = vld [vmem:[#allocation84_spill] sm:$0xff] }
 0x3d7   : > { %12300 = vst [vmem:[#allocation191_spill] sm:$0xff] %v9929_v39  ;;  %vm846_vm6 = vcmp.eq.f32.partialorder %v12064_v36, %v9927_v37  ;;  %v9945_v51 = vsel %vm844_vm0, %v12077_v55, 8  ;;  %v9948_v3 = vsel %vm845_vm1, %v12077_v55, 8  ;;  %v971_v33 = vrot.slane %v9942_v0, 4 }
 0x3d8   : > { %v9951_v43 = vsel %vm846_vm6, %v12077_v55, 8  ;;  %v980_v16 = vrot.slane %v9945_v51, 4  ;;  %v989_v36 = vrot.slane %v9948_v3, 4  ;;  %v9957_v63 = vadd.f32 %v4800_v4, %v4799_v58 }
 0x3d9   : > { %v998_v6 = vrot.slane %v9951_v43, 4  ;;  %v9959_v23 = vadd.f32 %v4806_v45, %v4805_v7  ;;  %v3452_v12 = vand.u32 2147483648, %v12296_v53  ;;  %5608 = vrsqrt.f32 %v12304_v2 }
 0x3da   : > { %12302 = vst [vmem:[#allocation113_spill] sm:$0xff] %v9957_v63  ;;  %vm972_vm12 = vcmp.lt.s32.totalorder %v9942_v0, %v971_v33  ;;  %vm981_vm15 = vcmp.lt.s32.totalorder %v9945_v51, %v980_v16  ;;  %vm990_vm11 = vcmp.lt.s32.totalorder %v9948_v3, %v989_v36  ;;  %v3459_v58 = vand.u32 2147483648, %v12301_v38 }
 0x3db   : > { %12303 = vst [vmem:[#allocation192_spill] sm:$0xff] %v9959_v23  ;;  %vm999_vm2 = vcmp.lt.s32.totalorder %v9951_v43, %v998_v6  ;;  %v973_v55 = vsel %vm972_vm12, %v9942_v0, %v971_v33  ;;  %v982_v30 = vsel %vm981_vm15, %v9945_v51, %v980_v16  ;;  %v991_v31 = vsel %vm990_vm11, %v9948_v3, %v989_v36 }
 0x3dc   : > { %v1000_v34 = vsel %vm999_vm2, %v9951_v43, %v998_v6  ;;  %v974_v40 = vrot.slane %v973_v55, 2  ;;  %v983_v26 = vrot.slane %v982_v30, 2  ;;  %v992_v56 = vrot.slane %v991_v31, 2 }
 0x3dd   : > { %v1001_v13 = vrot.slane %v1000_v34, 2  ;;  %5610 = vrsqrt.f32 %v12305_v9  ;;  %v3466_v16 = vand.u32 2147483648, %v12304_v2  ;;  %vm12345_vm7 = vcmp.eq.f32.partialorder %v12304_v2, inf }
 0x3de   : > { %vm975_vm12 = vcmp.lt.s32.totalorder %v973_v55, %v974_v40  ;;  %vm984_vm15 = vcmp.lt.s32.totalorder %v982_v30, %v983_v26  ;;  %vm993_vm5 = vcmp.lt.s32.totalorder %v991_v31, %v992_v56  ;;  %v12387_v52 = vrot.slane %v12386_v41, 1 }
 0x3df   : > { %vm1002_vm11 = vcmp.lt.s32.totalorder %v1000_v34, %v1001_v13  ;;  %v5605_v48 = vpop.eup %5604  ;;  %v976_v1 = vsel %vm975_vm12, %v973_v55, %v974_v40  ;;  %v985_v7 = vsel %vm984_vm15, %v982_v30, %v983_v26  ;;  %v994_v15 = vsel %vm993_vm5, %v991_v31, %v992_v56 }
 0x3e0   : > { %v1003_v62 = vsel %vm1002_vm11, %v1000_v34, %v1001_v13  ;;  %v977_v28 = vrot.slane %v976_v1, 1  ;;  %v986_v11 = vrot.slane %v985_v7, 1  ;;  %v995_v4 = vrot.slane %v994_v15, 1  ;;  %v12307_v13 = vld [vmem:[#allocation116_spill] sm:$0xff] }
 0x3e1   : > { %v1004_v45 = vrot.slane %v1003_v62, 1  ;;  %v3448_v33 = vmul.f32 %v5605_v48, %v12296_v53  ;;  %v3473_v34 = vand.u32 2147483648, %v12305_v9  ;;  %v12308_v48 = vld [vmem:[#allocation95_spill] sm:$0xff]  ;;  %v10192_v21 = vadd.f32 %v12387_v52, %v12386_v41  ;;  %v12394_v52 = vld [vmem:[#allocation102_spill] sm:$0xff] }
 0x3e2   : > { %vm978_vm12 = vcmp.lt.s32.totalorder %v976_v1, %v977_v28  ;;  %vm987_vm15 = vcmp.lt.s32.totalorder %v985_v7, %v986_v11  ;;  %vm996_vm5 = vcmp.lt.s32.totalorder %v994_v15, %v995_v4  ;;  %v12402_v22 = vrot.slane %v12401_v47, 1 }
 0x3e3   : > { %vm1005_vm11 = vcmp.lt.s32.totalorder %v1003_v62, %v1004_v45  ;;  %v5607_v36 = vpop.eup %5606  ;;  %v979_v6 = vsel %vm978_vm12, %v976_v1, %v977_v28  ;;  %v988_v55 = vsel %vm987_vm15, %v985_v7, %v986_v11  ;;  %v997_v30 = vsel %vm996_vm5, %v994_v15, %v995_v4  ;;  %v12310_v7 = vld [vmem:[#allocation54_spill] sm:$0xff]  ;;  %v12314_v28 = vld [vmem:[#allocation117_spill] sm:$0xff]  ;;  %v12315_v11 = vld [vmem:[#allocation96_spill] sm:$0xff] }
 0x3e4   : > { %v1006_v31 = vsel %vm1005_vm11, %v1003_v62, %v1004_v45  ;;  %vm1019_vm0 = vcmp.eq.s32.totalorder %v9942_v0, %v979_v6  ;;  %vm1020_vm1 = vcmp.eq.s32.totalorder %v9945_v51, %v988_v55  ;;  %vm1021_vm6 = vcmp.eq.s32.totalorder %v9948_v3, %v997_v30  ;;  %v12312_v62 = vld [vmem:[#allocation47_spill] sm:$0xff]  ;;  %v12323_v30 = vld [vmem:[#allocation118_spill] sm:$0xff] }
 0x3e5   : > { %v9992_v40 = vsel %vm1019_vm0, 1.0, %v11978_v29  ;;  %v9995_v26 = vsel %vm1020_vm1, 1.0, %v11978_v29  ;;  %v9998_v56 = vsel %vm1021_vm6, 1.0, %v11978_v29  ;;  %vm12306_vm15 = vcmp.eq.f32.partialorder %v12296_v53, inf  ;;  %v12317_v45 = vld [vmem:[#allocation55_spill] sm:$0xff] }
 0x3e6   : > { %v5609_v0 = vpop.eup %5608  ;;  %v3450_v51 = vsel %vm12306_vm15, %v12296_v53, %v3448_v33  ;;  %v3455_v3 = vmul.f32 %v5607_v36, %v12301_v38  ;;  %v12309_v1 = vsel %vm8625_vm9, %v12307_v13, %v12308_v48  ;;  %vm12311_vm0 = vcmp.le.f32.partialorder %v12310_v7, 0.0  ;;  %v12321_v55 = vld [vmem:[#allocation71_spill] sm:$0xff]  ;;  %v12324_v13 = vld [vmem:[#allocation97_spill] sm:$0xff] }
 0x3e7   : > { %v10013_v15 = vsel %vm12311_vm0, %v12310_v7, %v12309_v1  ;;  %vm12313_vm1 = vnez %v12312_v62  ;;  %vm12318_vm6 = vcmp.le.f32.partialorder %v12317_v45, 0.0  ;;  %vm12319_vm5 = vcmp.eq.f32.partialorder %v12296_v53, 0.0  ;;  %v12326_v1 = vld [vmem:[#allocation56_spill] sm:$0xff]  ;;  %v12330_v53 = vld [vmem:[#allocation69_spill] sm:$0xff] }
 0x3e8   : > { %v12316_v4 = vsel %vm12313_vm1, %v12314_v28, %v12315_v11  ;;  %v3453_v36 = vsel %vm12319_vm5, %v3452_v12, %v3450_v51  ;;  %v3462_v6 = vmul.f32 %v5609_v0, %v12304_v2  ;;  %vm12320_vm11 = vcmp.le.f32.partialorder %v9919_v17, 0.0  ;;  %v12328_v11 = vld [vmem:[#allocation78_spill] sm:$0xff]  ;;  %v12331_v12 = vld [vmem:[#allocation112_spill] sm:$0xff]  ;;  %v12333_v0 = vld [vmem:[#allocation57_spill] sm:$0xff] }
 0x3e9   : > { %v10023_v33 = vsel %vm12318_vm6, %v12317_v45, %v12316_v4  ;;  %vm3535_vm15 = vmxor %vm12320_vm11, %vm12117_vm13  ;;  %vm12322_vm0 = vnez %v12321_v55  ;;  %vm12327_vm6 = vcmp.le.f32.partialorder %v12326_v1, 0.0  ;;  %vm12329_vm10 = vnez %v12328_v11  ;;  %v12405_v11 = vld [vmem:[#allocation67_spill] sm:$0xff]  ;;  %v12406_v55 = vld [vmem:[#allocation10_spill] sm:$0xff] }
 0x3ea   : > { %v12325_v48 = vsel %vm12322_vm0, %v12323_v30, %v12324_v13  ;;  %v12332_v51 = vsel %vm12329_vm10, %v12330_v53, %v12331_v12  ;;  %vm12334_vm5 = vcmp.le.f32.partialorder %v12333_v0, 0.0  ;;  %vm12335_vm11 = vcmp.eq.f32.partialorder %v12301_v38, inf  ;;  %v12339_v13 = vld [vmem:[#allocation77_spill] sm:$0xff]  ;;  %v5611_v23 = vpop.eup %5610 }
 0x3eb   : > { %v10041_v28 = vsel %vm12327_vm6, %v12326_v1, %v12325_v48  ;;  %v10051_v4 = vsel %vm12334_vm5, %v12333_v0, %v12332_v51  ;;  %v3457_v60 = vsel %vm12335_vm11, %v12301_v38, %v3455_v3  ;;  %vm12336_vm12 = vcmp.le.f32.partialorder %v9921_v8, 0.0  ;;  %v12398_v1 = vld [vmem:[#allocation129_spill] sm:$0xff] }
 0x3ec   : > { %vm10059_vm2 = vmxor %vm12336_vm12, %vm12117_vm13  ;;  %vm3551_vm6 = vcmp.lt.f32.partialorder %v3453_v36, %v12339_v13  ;;  %v12340_v48 = vsel %vm9739_vm8, %v9680_v19, %v9584_v5  ;;  %vm12341_vm5 = vcmp.le.f32.partialorder %v9457_v46, 0.0  ;;  %v12342_v3 = vsel %vm9751_vm3, %v9686_v20, %v9587_v10  ;;  %v12350_v10 = vld [vmem:[#allocation89_spill] sm:$0xff] }
 0x3ed   : > { %v10072_v53 = vsel %vm12341_vm5, %v9457_v46, %v12340_v48  ;;  %vm12343_vm12 = vcmp.le.f32.partialorder %v9477_v57, 0.0  ;;  %vm12344_vm11 = vcmp.eq.f32.partialorder %v12301_v38, 0.0  ;;  %v3464_v5 = vsel %vm12345_vm7, %v12304_v2, %v3462_v6  ;;  %vm10089_vm8 = vmand %vm3551_vm6, %vm3535_vm15  ;;  %v12359_v6 = vld [vmem:[#allocation135_spill] sm:$0xff]  ;;  %v12409_v62 = vld [vmem:[#allocation161_spill] sm:$0xff] }
 0x3ee   : > { %v10082_v12 = vsel %vm12343_vm12, %v9477_v57, %v12342_v3  ;;  %v3460_v51 = vsel %vm12344_vm11, %v3459_v58, %v3457_v60  ;;  %v12351_v20 = vsel %vm9772_vm4, %v12349_v25, %v12350_v10  ;;  %vm12353_vm5 = vcmp.le.f32.partialorder %v12352_v50, 0.0  ;;  %v12356_v60 = vld [vmem:[#allocation90_spill] sm:$0xff]  ;;  %v12357_v58 = vld [vmem:[#allocation93_spill] sm:$0xff] }
 0x3ef   : > { %v10101_v3 = vsel %vm12353_vm5, %v12352_v50, %v12351_v20  ;;  %v12358_v14 = vsel %vm9801_vm14, %v12356_v60, %v12357_v58  ;;  %vm12360_vm7 = vcmp.le.f32.partialorder %v12359_v6, 0.0  ;;  %vm12362_vm15 = vcmp.eq.s32.totalorder %v9951_v43, %v1006_v31  ;;  %v12365_v20 = vld [vmem:[#allocation28_spill] sm:$0xff] }
 0x3f0   : > { %12354 = vst [vmem:[#allocation114_spill] sm:$0xff] %v10101_v3  ;;  %v10111_v24 = vsel %vm12360_vm7, %v12359_v6, %v12358_v14  ;;  %v10116_v25 = vsel %vm12362_vm15, 1.0, %v11978_v29  ;;  %vm12363_vm6 = vcmp.eq.f32.partialorder %v12304_v2, 0.0  ;;  %vm12364_vm12 = vcmp.le.f32.partialorder %v9925_v35, 0.0  ;;  %v12366_v58 = vld [vmem:[#allocation100_spill] sm:$0xff] }
 0x3f1   : > { %12361 = vst [vmem:[#allocation115_spill] sm:$0xff] %v10111_v24  ;;  %v3467_v10 = vsel %vm12363_vm6, %v3466_v16, %v3464_v5  ;;  %vm3537_vm11 = vmxor %vm12364_vm12, %vm12117_vm13  ;;  %vm3552_vm5 = vcmp.lt.f32.partialorder %v3460_v51, %v12365_v20  ;;  %v3583_v14 = vsel %vm10089_vm8, %v3453_v36, %v12339_v13  ;;  %v3469_v60 = vmul.f32 %v5611_v23, %v12305_v9  ;;  %v12373_v16 = vld [vmem:[#allocation12_spill] sm:$0xff] }
 0x3f2   : > { %vm3553_vm7 = vcmp.lt.f32.partialorder %v3467_v10, %v12366_v58  ;;  %vm10131_vm15 = vmand %vm3552_vm5, %vm10059_vm2  ;;  %vm12369_vm6 = vcmp.le.f32.partialorder %v9919_v17, 0.0  ;;  %5612 = vrcp.f32 %v3453_v36  ;;  %v3647_v31 = vmul.f32 %v9992_v40, %v12373_v16 }
 0x3f3   : > { %v10138_v43 = vsel %vm12369_vm6, %v9919_v17, %v3583_v14  ;;  %vm10140_vm12 = vmand %vm3553_vm7, %vm3537_vm11  ;;  %v3584_v23 = vsel %vm10131_vm15, %v3460_v51, %v12365_v20  ;;  %5614 = vrcp.f32 %v3460_v51  ;;  %v3648_v30 = vmul.f32 %v9995_v26, %v12373_v16 }
 0x3f4   : > { %12370 = vst [vmem:[#allocation116_spill] sm:$0xff] %v10138_v43  ;;  %vm12374_vm2 = vcmp.eq.f32.partialorder %v12305_v9, inf  ;;  %v3585_v36 = vsel %vm10140_vm12, %v3467_v10, %v12366_v58  ;;  %vm12375_vm11 = vcmp.le.f32.partialorder %v9921_v8, 0.0  ;;  %v3649_v51 = vmul.f32 %v9998_v56, %v12373_v16 }
 0x3f5   : > { %v3471_v13 = vsel %vm12374_vm2, %v12305_v9, %v3469_v60  ;;  %v10160_v5 = vsel %vm12375_vm11, %v9921_v8, %v3584_v23  ;;  %vm12377_vm5 = vcmp.eq.f32.partialorder %v12305_v9, 0.0  ;;  %vm12378_vm7 = vcmp.le.f32.partialorder %v9925_v35, 0.0  ;;  %v12381_v23 = vld [vmem:[#allocation13_spill] sm:$0xff] }
 0x3f6   : > { %12376 = vst [vmem:[#allocation95_spill] sm:$0xff] %v10160_v5  ;;  %v3474_v20 = vsel %vm12377_vm5, %v3473_v34, %v3471_v13  ;;  %v10169_v14 = vsel %vm12378_vm7, %v9925_v35, %v3585_v36  ;;  %v3650_v60 = vmul.f32 %v10116_v25, %v12373_v16  ;;  %v3723_v58 = vrot.slane %v3647_v31, 4 }
 0x3f7   : > { %12379 = vst [vmem:[#allocation117_spill] sm:$0xff] %v10169_v14  ;;  %vm12380_vm6 = vcmp.le.f32.partialorder %v9927_v37, 0.0  ;;  %vm3554_vm11 = vcmp.lt.f32.partialorder %v3474_v20, %v12381_v23  ;;  %5616 = vrcp.f32 %v3467_v10  ;;  %v3729_v63 = vrot.slane %v3648_v30, 4 }
 0x3f8   : > { %vm3538_vm2 = vmxor %vm12380_vm6, %vm12117_vm13  ;;  %v3735_v39 = vrot.slane %v3649_v51, 4  ;;  %v12382_v9 = vrot.slane %v9912_v49, 1  ;;  %5618 = vrcp.f32 %v3474_v20  ;;  %v3724_v16 = vadd.f32 %v3723_v58, %v3647_v31  ;;  %v12390_v31 = vld [vmem:[#allocation148_spill] sm:$0xff] }
 0x3f9   : > { %vm10182_vm5 = vmand %vm3554_vm11, %vm3538_vm2  ;;  %v3741_v36 = vrot.slane %v3650_v60, 4  ;;  %v3730_v42 = vadd.f32 %v3729_v63, %v3648_v30  ;;  %v12391_v58 = vrot.slane %v12390_v31, 1  ;;  %v12393_v30 = vld [vmem:[#allocation101_spill] sm:$0xff]  ;;  %v10223_v32 = vadd.f32 %v12402_v22, %v12401_v47 }
 0x3fa   : > { %v10180_v34 = vadd.f32 %v12382_v9, %v9912_v49  ;;  %v3586_v54 = vsel %vm10182_vm5, %v3474_v20, %v12381_v23  ;;  %v3736_v10 = vadd.f32 %v3735_v39, %v3649_v51  ;;  %vm12388_vm13 = vmmov %vm12380_vm6  ;;  %v3725_v9 = vrot.slane %v3724_v16, 2  ;;  %v12392_v39 = vld [vmem:[#allocation98_spill] sm:$0xff] }
 0x3fb   : > { %v10197_v49 = vsel %vm12388_vm13, %v9927_v37, %v3586_v54  ;;  %v10202_v6 = vadd.f32 %v12391_v58, %v12390_v31  ;;  %v3731_v20 = vrot.slane %v3730_v42, 2  ;;  %v3887_v51 = vmul.f32 %v12393_v30, %v12392_v39  ;;  %v12395_v54 = vld [vmem:[#allocation123_spill] sm:$0xff]  ;;  %v12397_v31 = vld [vmem:[#allocation48_spill] sm:$0xff] }
 0x3fc   : > { %12383 = vst [vmem:[#allocation96_spill] sm:$0xff] %v10180_v34  ;;  %12389 = vst [vmem:[#allocation118_spill] sm:$0xff] %v10197_v49  ;;  %v3742_v34 = vadd.f32 %v3741_v36, %v3650_v60  ;;  %v3737_v63 = vrot.slane %v3736_v10, 2  ;;  %v3888_v41 = vmul.f32 %v12394_v52, %v12392_v39  ;;  %v3726_v23 = vadd.f32 %v3725_v9, %v3724_v16  ;;  %v12396_v60 = vld [vmem:[#allocation124_spill] sm:$0xff]  ;;  %v12400_v16 = vld [vmem:[#allocation131_spill] sm:$0xff] }
 0x3fd   : > { %v3889_v57 = vmul.f32 %v12395_v54, %v12392_v39  ;;  %v3890_v36 = vmul.f32 %v12396_v60, %v12392_v39  ;;  %v3732_v46 = vadd.f32 %v3731_v20, %v3730_v42  ;;  %v3903_v58 = vadd.f32 %v3887_v51, %v12397_v31  ;;  %v12403_v39 = vld [vmem:[#allocation150_spill] sm:$0xff]  ;;  %v12418_v49 = vld [vmem:[#allocation139_spill] sm:$0xff] }
 0x3fe   : > { %v3743_v50 = vrot.slane %v3742_v34, 2  ;;  %v10212_v0 = vadd.f32 %v3737_v63, %v3736_v10  ;;  %v3904_v45 = vadd.f32 %v3888_v41, %v12398_v1  ;;  %v3727_v7 = vrot.slane %v3726_v23, 1 }
 0x3ff   : > { %v3905_v48 = vadd.f32 %v3889_v57, %v12399_v61  ;;  %v3906_v9 = vadd.f32 %v3890_v36, %v12400_v16  ;;  %v3733_v44 = vrot.slane %v3732_v46, 1  ;;  %v3979_v42 = vrot.slane %v3903_v58, 4  ;;  %v5613_v20 = vpop.eup %5612 }
 0x400   : > { %v10216_v38 = vadd.f32 %v3743_v50, %v3742_v34  ;;  %v3985_v10 = vrot.slane %v3904_v45, 4  ;;  %v12404_v1 = vrot.slane %v12403_v39, 1  ;;  %v5615_v61 = vpop.eup %5614  ;;  %v10231_v51 = vadd.f32 %v3727_v7, %v3726_v23 }
 0x401   : > { %v3991_v34 = vrot.slane %v3905_v48, 4  ;;  %v3997_v57 = vrot.slane %v3906_v9, 4  ;;  %v3980_v36 = vadd.f32 %v3979_v42, %v3903_v58  ;;  %v10234_v47 = vadd.f32 %v3733_v44, %v3732_v46  ;;  %v12411_v58 = vld [vmem:[#allocation34_spill] sm:$0xff]  ;;  %v12413_v44 = vld [vmem:[#allocation16_spill] sm:$0xff] }
 0x402   : > { %v10229_v50 = vadd.f32 %v12404_v1, %v12403_v39  ;;  %v3745_v41 = vrot.slane %v10216_v38, 1  ;;  %v3986_v22 = vadd.f32 %v3985_v10, %v3904_v45  ;;  %vm11529_vm7 = vcmask 1043459   ;;  %v12408_v1 = vld [vmem:[#allocation136_spill] sm:$0xff] }
 0x403   : > { %v3992_v31 = vadd.f32 %v3991_v34, %v3905_v48  ;;  %v3998_v16 = vadd.f32 %v3997_v57, %v3906_v9  ;;  %v3981_v63 = vrot.slane %v3980_v36, 2  ;;  %vm12407_vm6 = vcmask 1041409   ;;  %v12415_v34 = vld [vmem:[#allocation138_spill] sm:$0xff] }
 0x404   : > { %v3987_v18 = vrot.slane %v3986_v22, 2  ;;  %v4058_v39 = vsel %vm12407_vm6, %v12406_v55, %v12405_v11  ;;  %vm12410_vm2 = vmmov %vm12407_vm6  ;;  %v5617_v23 = vpop.eup %5616  ;;  %vm12412_vm11 = vcmask 1042434   ;;  %v12416_v57 = vld [vmem:[#allocation162_spill] sm:$0xff] }
 0x405   : > { %v4061_v7 = vsel %vm12410_vm2, %v12409_v62, %v12408_v1  ;;  %v3993_v59 = vrot.slane %v3992_v31, 2  ;;  %v3999_v14 = vrot.slane %v3998_v16, 2  ;;  %v4059_v46 = vsel %vm12412_vm11, %v12411_v58, %v4058_v39  ;;  %vm12414_vm13 = vmmov %vm12412_vm11  ;;  %v5619_v48 = vpop.eup %5618  ;;  %v12419_v39 = vld [vmem:[#allocation163_spill] sm:$0xff] }
 0x406   : > { %v4062_v45 = vsel %vm12414_vm13, %v12413_v44, %v4061_v7  ;;  %v3982_v9 = vadd.f32 %v3981_v63, %v3980_v36  ;;  %v3988_v42 = vadd.f32 %v3987_v18, %v3986_v22  ;;  %v10247_v10 = vsel %vm11529_vm7, %v5613_v20, %v4059_v46  ;;  %vm12417_vm6 = vmmov %vm12410_vm2  ;;  %v12420_v63 = vld [vmem:[#allocation33_spill] sm:$0xff] }
 0x407   : > { %v10250_v55 = vsel %vm11529_vm7, %v5615_v61, %v4062_v45  ;;  %v3994_v11 = vadd.f32 %v3993_v59, %v3992_v31  ;;  %v4000_v62 = vadd.f32 %v3999_v14, %v3998_v16  ;;  %v4064_v1 = vsel %vm12417_vm6, %v12416_v57, %v12415_v34  ;;  %vm12421_vm13 = vmmov %vm12412_vm11  ;;  %v12422_v16 = vld [vmem:[#allocation51_spill] sm:$0xff]  ;;  %v12423_v57 = vld [vmem:[#allocation86_spill] sm:$0xff] }
 0x408   : > { %v4067_v58 = vsel %vm12410_vm2, %v12419_v39, %v12418_v49  ;;  %v3983_v7 = vrot.slane %v3982_v9, 1  ;;  %v3989_v44 = vrot.slane %v3988_v42, 1  ;;  %v4065_v18 = vsel %vm12412_vm11, %v12420_v63, %v4064_v1  ;;  %v12424_v1 = vld [vmem:[#allocation68_spill] sm:$0xff] }
 0x409   : > { %v4068_v20 = vsel %vm12421_vm13, %v9870_v27, %v4067_v58  ;;  %v3995_v61 = vrot.slane %v3994_v11, 1  ;;  %v4001_v36 = vrot.slane %v4000_v62, 1  ;;  %v10263_v59 = vsel %vm11529_vm7, %v5617_v23, %v4065_v18  ;;  %v12425_v58 = vld [vmem:[#allocation39_spill] sm:$0xff]  ;;  %v12428_v18 = vld [vmem:[#allocation20_spill] sm:$0xff] }
 0x40a   : > { %v10266_v14 = vsel %vm11529_vm7, %v5619_v48, %v4068_v20  ;;  %v3984_v22 = vadd.f32 %v3983_v7, %v3982_v9  ;;  %v3990_v31 = vadd.f32 %v3989_v44, %v3988_v42  ;;  %v4154_v49 = vmul.f32 %v9992_v40, %v12422_v16  ;;  %v12426_v44 = vld [vmem:[#allocation103_spill] sm:$0xff] }
 0x40b   : > { %v4155_v46 = vmul.f32 %v9995_v26, %v12422_v16  ;;  %v3996_v45 = vadd.f32 %v3995_v61, %v3994_v11  ;;  %v4002_v34 = vadd.f32 %v4001_v36, %v4000_v62  ;;  %v4156_v27 = vmul.f32 %v9998_v56, %v12422_v16  ;;  %v12427_v62 = vld [vmem:[#allocation19_spill] sm:$0xff]  ;;  %v12429_v61 = vld [vmem:[#allocation21_spill] sm:$0xff] }
 0x40c   : > { %v4157_v23 = vmul.f32 %v10116_v25, %v12422_v16  ;;  %v4024_v48 = vsel %vm11529_vm7, %v3984_v22, %v12423_v57  ;;  %v4027_v9 = vsel %vm11529_vm7, %v3990_v31, %v12424_v1  ;;  %v4230_v42 = vrot.slane %v4154_v49, 4  ;;  %v12430_v16 = vld [vmem:[#allocation22_spill] sm:$0xff] }
 0x40d   : > { %v4236_v39 = vrot.slane %v4155_v46, 4  ;;  %v4030_v7 = vsel %vm11529_vm7, %v3996_v45, %v12425_v58  ;;  %v4033_v11 = vsel %vm11529_vm7, %v4002_v34, %v12426_v44  ;;  %v4038_v63 = vsub.f32 %v12427_v62, %v4024_v48 }
 0x40e   : > { %v4039_v20 = vsub.f32 %v12428_v18, %v4027_v9  ;;  %v4040_v36 = vsub.f32 %v12429_v61, %v4030_v7  ;;  %v4041_v43 = vsub.f32 %v12430_v16, %v4033_v11  ;;  %v4231_v22 = vadd.f32 %v4230_v42, %v4154_v49 }
 0x40f   : > { %v4237_v57 = vadd.f32 %v4236_v39, %v4155_v46  ;;  %v10289_v31 = vmul.f32 %v10247_v10, %v4038_v63  ;;  %v4242_v45 = vrot.slane %v4156_v27, 4  ;;  %v4248_v58 = vrot.slane %v4157_v23, 4 }
 0x410   : > { %v10292_v1 = vmul.f32 %v10250_v55, %v4039_v20  ;;  %v10295_v34 = vmul.f32 %v10263_v59, %v4040_v36  ;;  %v10298_v48 = vmul.f32 %v10266_v14, %v4041_v43  ;;  %v4232_v9 = vrot.slane %v4231_v22, 2 }
 0x411   : > { %12431 = vst [vmem:[#allocation97_spill] sm:$0xff] %v10289_v31  ;;  %v4238_v7 = vrot.slane %v4237_v57, 2  ;;  %v12435_v49 = vrot.slane %v10212_v0, 1  ;;  %v3746_v42 = vadd.f32 %v3745_v41, %v10216_v38  ;;  %v4090_v18 = vrot.slane %v10289_v31, 3 }
 0x412   : > { %12432 = vst [vmem:[#allocation69_spill] sm:$0xff] %v10292_v1  ;;  %12433 = vst [vmem:[#allocation112_spill] sm:$0xff] %v10295_v34  ;;  %v4091_v20 = vrot.slane %v10292_v1, 3  ;;  %v4093_v38 = vrot.slane %v10298_v48, 3  ;;  %v4233_v41 = vadd.f32 %v4232_v9, %v4231_v22  ;;  %v4243_v36 = vadd.f32 %v4242_v45, %v4156_v27  ;;  %v12456_v45 = vld [vmem:[#allocation40_spill] sm:$0xff] }
 0x413   : > { %12434 = vst [vmem:[#allocation77_spill] sm:$0xff] %v10298_v48  ;;  %v3740_v46 = vadd.f32 %v12435_v49, %v10212_v0  ;;  %v4092_v0 = vrot.slane %v10295_v34, 3  ;;  %v4239_v61 = vadd.f32 %v4238_v7, %v4237_v57  ;;  %v4249_v16 = vadd.f32 %v4248_v58, %v4157_v23  ;;  %v12444_v58 = vld [vmem:[#allocation151_spill] sm:$0xff]  ;;  %v12446_v7 = vld [vmem:[#allocation152_spill] sm:$0xff] }
 0x414   : > { %v4122_v49 = vsel %vm10089_vm8, %v4090_v18, %v10192_v21  ;;  %v4123_v43 = vsel %vm10131_vm15, %v4091_v20, %v10202_v6  ;;  %v4125_v62 = vsel %vm10182_vm5, %v4093_v38, %v10229_v50  ;;  %vm12436_vm6 = vcmp.le.f32.partialorder %v9919_v17, 0.0 }
 0x415   : > { %v4124_v63 = vsel %vm10140_vm12, %v4092_v0, %v10223_v32  ;;  %v10329_v27 = vsel %vm12436_vm6, %v10231_v51, %v4122_v49  ;;  %vm12438_vm2 = vcmp.le.f32.partialorder %v9921_v8, 0.0  ;;  %vm12440_vm11 = vcmp.le.f32.partialorder %v9925_v35, 0.0  ;;  %v12450_v0 = vld [vmem:[#allocation154_spill] sm:$0xff] }
 0x416   : > { %12437 = vst [vmem:[#allocation84_spill] sm:$0xff] %v10329_v27  ;;  %v10334_v21 = vsel %vm12438_vm2, %v10234_v47, %v4123_v43  ;;  %v10338_v6 = vsel %vm12440_vm11, %v3740_v46, %v4124_v63  ;;  %vm12442_vm13 = vcmp.le.f32.partialorder %v9927_v37, 0.0  ;;  %v4234_v23 = vrot.slane %v4233_v41, 1  ;;  %v12448_v43 = vld [vmem:[#allocation153_spill] sm:$0xff] }
 0x417   : > { %12439 = vst [vmem:[#allocation89_spill] sm:$0xff] %v10334_v21  ;;  %12441 = vst [vmem:[#allocation90_spill] sm:$0xff] %v10338_v6  ;;  %v10342_v32 = vsel %vm12442_vm13, %v3746_v42, %v4125_v62  ;;  %v4240_v50 = vrot.slane %v4239_v61, 1  ;;  %v4244_v22 = vrot.slane %v4243_v36, 2  ;;  %v4250_v57 = vrot.slane %v4249_v16, 2 }
 0x418   : > { %12443 = vst [vmem:[#allocation93_spill] sm:$0xff] %v10342_v32  ;;  %v12445_v47 = vrot.slane %v12444_v58, 1  ;;  %v12447_v46 = vrot.slane %v12446_v7, 1  ;;  %v12449_v18 = vrot.slane %v12448_v43, 1  ;;  %v12451_v38 = vrot.slane %v12450_v0, 1 }
 0x419   : > { %v10356_v42 = vadd.f32 %v4244_v22, %v4243_v36  ;;  %v10358_v62 = vadd.f32 %v4250_v57, %v4249_v16  ;;  %v10378_v22 = vadd.f32 %v4234_v23, %v4233_v41  ;;  %v10380_v57 = vadd.f32 %v4240_v50, %v4239_v61 }
 0x41a   : > { %v10349_v9 = vadd.f32 %v12445_v47, %v12444_v58  ;;  %v10354_v63 = vadd.f32 %v12447_v46, %v12446_v7  ;;  %v10363_v20 = vadd.f32 %v12449_v18, %v12448_v43  ;;  %v10368_v49 = vadd.f32 %v12451_v38, %v12450_v0  ;;  %v12452_v58 = vld [vmem:[#allocation63_spill] sm:$0xff]  ;;  %v12455_v38 = vld [vmem:[#allocation134_spill] sm:$0xff] }
 0x41b   : > { %v4394_v47 = vmul.f32 %v12393_v30, %v12452_v58  ;;  %v4395_v7 = vmul.f32 %v12394_v52, %v12452_v58  ;;  %v4396_v36 = vmul.f32 %v12395_v54, %v12452_v58  ;;  %v4397_v16 = vmul.f32 %v12396_v60, %v12452_v58  ;;  %v12453_v46 = vld [vmem:[#allocation35_spill] sm:$0xff]  ;;  %v12454_v30 = vld [vmem:[#allocation53_spill] sm:$0xff] }
 0x41c   : > { %v4626_v43 = vmul.f32 %v9992_v40, %v12453_v46  ;;  %v4627_v18 = vmul.f32 %v9995_v26, %v12453_v46  ;;  %v12457_v54 = vld [vmem:[#allocation79_spill] sm:$0xff]  ;;  %v4246_v60 = vrot.slane %v10356_v42, 1  ;;  %v4252_v41 = vrot.slane %v10358_v62, 1 }
 0x41d   : > { %v4410_v0 = vadd.f32 %v4394_v47, %v12454_v30  ;;  %v4411_v52 = vadd.f32 %v4395_v7, %v12455_v38  ;;  %v4412_v51 = vadd.f32 %v4396_v36, %v12456_v45  ;;  %v4413_v11 = vadd.f32 %v4397_v16, %v12457_v54 }
 0x41e   : > { %v4628_v61 = vmul.f32 %v9998_v56, %v12453_v46  ;;  %v4629_v40 = vmul.f32 %v10116_v25, %v12453_v46  ;;  %v4702_v47 = vrot.slane %v4626_v43, 4  ;;  %v4708_v7 = vrot.slane %v4627_v18, 4 }
 0x41f   : > { %v4486_v23 = vrot.slane %v4410_v0, 4  ;;  %v4492_v26 = vrot.slane %v4411_v52, 4  ;;  %v4498_v50 = vrot.slane %v4412_v51, 4  ;;  %v4504_v58 = vrot.slane %v4413_v11, 4 }
 0x420   : > { %v4714_v30 = vrot.slane %v4628_v61, 4  ;;  %v4720_v45 = vrot.slane %v4629_v40, 4  ;;  %v4703_v44 = vadd.f32 %v4702_v47, %v4626_v43  ;;  %v4709_v39 = vadd.f32 %v4708_v7, %v4627_v18 }
 0x421   : > { %v4487_v36 = vadd.f32 %v4486_v23, %v4410_v0  ;;  %v4493_v16 = vadd.f32 %v4492_v26, %v4411_v52  ;;  %v4499_v38 = vadd.f32 %v4498_v50, %v4412_v51  ;;  %v4505_v54 = vadd.f32 %v4504_v58, %v4413_v11 }
 0x422   : > { %v4715_v48 = vadd.f32 %v4714_v30, %v4628_v61  ;;  %v4721_v34 = vadd.f32 %v4720_v45, %v4629_v40  ;;  %v4704_v46 = vrot.slane %v4703_v44, 2  ;;  %v4710_v6 = vrot.slane %v4709_v39, 2 }
 0x423   : > { %v4488_v56 = vrot.slane %v4487_v36, 2  ;;  %v4494_v1 = vrot.slane %v4493_v16, 2  ;;  %v4500_v31 = vrot.slane %v4499_v38, 2  ;;  %v4506_v25 = vrot.slane %v4505_v54, 2 }
 0x424   : > { %v4716_v32 = vrot.slane %v4715_v48, 2  ;;  %v4722_v27 = vrot.slane %v4721_v34, 2  ;;  %v4705_v0 = vadd.f32 %v4704_v46, %v4703_v44  ;;  %v4711_v52 = vadd.f32 %v4710_v6, %v4709_v39 }
 0x425   : > { %v4489_v21 = vadd.f32 %v4488_v56, %v4487_v36  ;;  %v4495_v5 = vadd.f32 %v4494_v1, %v4493_v16  ;;  %v4501_v3 = vadd.f32 %v4500_v31, %v4499_v38  ;;  %v4507_v24 = vadd.f32 %v4506_v25, %v4505_v54  ;;  %v12465_v16 = vld [vmem:[#allocation26_spill] sm:$0xff] }
 0x426   : > { %v4717_v51 = vadd.f32 %v4716_v32, %v4715_v48  ;;  %v4723_v11 = vadd.f32 %v4722_v27, %v4721_v34  ;;  %v4706_v23 = vrot.slane %v4705_v0, 1  ;;  %v4712_v26 = vrot.slane %v4711_v52, 1  ;;  %v12458_v34 = vld [vmem:[#allocation70_spill] sm:$0xff]  ;;  %v12459_v27 = vld [vmem:[#allocation52_spill] sm:$0xff]  ;;  %v12460_v32 = vld [vmem:[#allocation9_spill] sm:$0xff] }
 0x427   : > { %v4490_v43 = vrot.slane %v4489_v21, 1  ;;  %v4496_v18 = vrot.slane %v4495_v5, 1  ;;  %v4502_v61 = vrot.slane %v4501_v3, 1  ;;  %v4508_v40 = vrot.slane %v4507_v24, 1  ;;  %v12466_v25 = vld [vmem:[#allocation38_spill] sm:$0xff] }
 0x428   : > { %v4718_v50 = vrot.slane %v4717_v51, 1  ;;  %v4724_v58 = vrot.slane %v4723_v11, 1  ;;  %v4247_v1 = vadd.f32 %v4246_v60, %v10356_v42  ;;  %v4253_v31 = vadd.f32 %v4252_v41, %v10358_v62  ;;  %v12463_v60 = vld [vmem:[#allocation24_spill] sm:$0xff]  ;;  %v12464_v41 = vld [vmem:[#allocation25_spill] sm:$0xff] }
 0x429   : > { %v4491_v47 = vadd.f32 %v4490_v43, %v4489_v21  ;;  %v4497_v7 = vadd.f32 %v4496_v18, %v4495_v5  ;;  %v4503_v30 = vadd.f32 %v4502_v61, %v4501_v3  ;;  %v4509_v45 = vadd.f32 %v4508_v40, %v4507_v24  ;;  %v12461_v5 = vld [vmem:[#allocation18_spill] sm:$0xff]  ;;  %v12462_v3 = vld [vmem:[#allocation23_spill] sm:$0xff] }
 0x42a   : > { %v10398_v44 = vadd.f32 %v4706_v23, %v4705_v0  ;;  %v10400_v48 = vadd.f32 %v4712_v26, %v4711_v52  ;;  %v10414_v54 = vadd.f32 %v4718_v50, %v4717_v51  ;;  %v10416_v56 = vadd.f32 %v4724_v58, %v4723_v11  ;;  %v12468_v52 = vld [vmem:[#allocation155_spill] sm:$0xff]  ;;  %v12470_v23 = vld [vmem:[#allocation45_spill] sm:$0xff]  ;;  %v12471_v50 = vld [vmem:[#allocation72_spill] sm:$0xff] }
 0x42b   : > { %v4528_v39 = vsel %vm11529_vm7, %v4491_v47, %v12458_v34  ;;  %v4531_v6 = vsel %vm11529_vm7, %v4497_v7, %v12459_v27  ;;  %v4534_v21 = vsel %vm11529_vm7, %v4503_v30, %v12460_v32  ;;  %v4537_v24 = vsel %vm11529_vm7, %v4509_v45, %v12461_v5  ;;  %v12472_v47 = vld [vmem:[#allocation80_spill] sm:$0xff]  ;;  %v12473_v30 = vld [vmem:[#allocation81_spill] sm:$0xff] }
 0x42c   : > { %v4542_v42 = vsub.f32 %v12462_v3, %v4528_v39  ;;  %v4543_v62 = vsub.f32 %v12463_v60, %v4531_v6  ;;  %v4544_v36 = vsub.f32 %v12464_v41, %v4534_v21  ;;  %v4545_v38 = vsub.f32 %v12465_v16, %v4537_v24  ;;  %v12474_v27 = vld [vmem:[#allocation156_spill] sm:$0xff]  ;;  %v12476_v21 = vld [vmem:[#allocation157_spill] sm:$0xff] }
 0x42d   : > { %v12467_v46 = vrot.slane %v12466_v25, 1  ;;  %v12469_v43 = vrot.slane %v12468_v52, 1  ;;  %v4960_v26 = vrot.slane %v12470_v23, 2  ;;  %v4966_v58 = vrot.slane %v12471_v50, 2 }
 0x42e   : > { %v10429_v61 = vmul.f32 %v4542_v42, %v10247_v10  ;;  %v10432_v40 = vmul.f32 %v4543_v62, %v10250_v55  ;;  %v10435_v51 = vmul.f32 %v4544_v36, %v10263_v59  ;;  %v10438_v11 = vmul.f32 %v4545_v38, %v10266_v14 }
 0x42f   : > { %v10421_v0 = vadd.f32 %v12467_v46, %v12466_v25  ;;  %v10426_v18 = vadd.f32 %v12469_v43, %v12468_v52  ;;  %v4972_v7 = vrot.slane %v12472_v47, 2  ;;  %v4978_v45 = vrot.slane %v12473_v30, 2 }
 0x430   : > { %v4554_v34 = vrot.slane %v10429_v61, 1  ;;  %v4555_v39 = vrot.slane %v10432_v40, 1  ;;  %v12475_v6 = vrot.slane %v12474_v27, 1  ;;  %v12477_v5 = vrot.slane %v12476_v21, 1 }
 0x431   : > { %v4562_v41 = vrot.slane %v10429_v61, 3  ;;  %v4563_v36 = vrot.slane %v10432_v40, 3  ;;  %v4564_v16 = vrot.slane %v10435_v51, 3  ;;  %v4565_v38 = vrot.slane %v10438_v11, 3 }
 0x432   : > { %v10449_v32 = vadd.f32 %v12475_v6, %v12474_v27  ;;  %v10454_v24 = vadd.f32 %v12477_v5, %v12476_v21  ;;  %v4961_v25 = vadd.f32 %v4960_v26, %v12470_v23  ;;  %v4967_v46 = vadd.f32 %v4966_v58, %v12471_v50  ;;  %v12480_v5 = vld [vmem:[#allocation128_spill] sm:$0xff] }
 0x433   : > { %v4973_v52 = vadd.f32 %v4972_v7, %v12472_v47  ;;  %v4979_v43 = vadd.f32 %v4978_v45, %v12473_v30  ;;  %v4594_v27 = vsel %vm10089_vm8, %v4562_v41, %v10349_v9  ;;  %v4595_v6 = vsel %vm10131_vm15, %v4563_v36, %v10354_v63  ;;  %v12479_v30 = vld [vmem:[#allocation58_spill] sm:$0xff] }
 0x434   : > { %v4596_v21 = vsel %vm10140_vm12, %v4564_v16, %v10363_v20  ;;  %v4597_v23 = vsel %vm10182_vm5, %v4565_v38, %v10368_v49  ;;  %v10483_v26 = vsel %vm12436_vm6, %v10378_v22, %v4594_v27  ;;  %v10488_v9 = vsel %vm12438_vm2, %v10380_v57, %v4595_v6  ;;  %v12478_v57 = vld [vmem:[#allocation126_spill] sm:$0xff]  ;;  %v12482_v6 = vld [vmem:[#allocation115_spill] sm:$0xff] }
 0x435   : > { %v10492_v63 = vsel %vm12440_vm11, %v4247_v1, %v4596_v21  ;;  %v10496_v20 = vsel %vm12442_vm13, %v4253_v31, %v4597_v23  ;;  %v4962_v50 = vrot.slane %v4961_v25, 1  ;;  %v4968_v49 = vrot.slane %v4967_v46, 1  ;;  %v12481_v1 = vld [vmem:[#allocation127_spill] sm:$0xff]  ;;  %v12483_v21 = vld [vmem:[#allocation114_spill] sm:$0xff] }
 0x436   : > { %v4974_v58 = vrot.slane %v4973_v52, 1  ;;  %v4980_v47 = vrot.slane %v4979_v43, 1  ;;  %v5102_v22 = vcombine.low %v10013_v15, %v10023_v33  ;;  %v5103_v7 = vcombine.low %v10041_v28, %v10051_v4  ;;  %v12484_v15 = vld [vmem:[#allocation95_spill] sm:$0xff]  ;;  %v12485_v33 = vld [vmem:[#allocation116_spill] sm:$0xff]  ;;  %v12486_v28 = vld [vmem:[#allocation118_spill] sm:$0xff] }
 0x437   : > { %v5104_v45 = vcombine.low %v12479_v30, %v12478_v57  ;;  %v5105_v41 = vcombine.low %v12481_v1, %v12480_v5  ;;  %v4963_v36 = vadd.f32 %v4962_v50, %v4961_v25  ;;  %v4969_v16 = vadd.f32 %v4968_v49, %v4967_v46  ;;  %v12487_v4 = vld [vmem:[#allocation117_spill] sm:$0xff]  ;;  %v12488_v57 = vld [vmem:[#allocation110_spill] sm:$0xff]  ;;  %v12489_v5 = vld [vmem:[#allocation132_spill] sm:$0xff] }
 0x438   : > { %v4975_v31 = vadd.f32 %v4974_v58, %v4973_v52  ;;  %v4981_v38 = vadd.f32 %v4980_v47, %v4979_v43  ;;  %v5106_v27 = vcombine.low %v10072_v53, %v10082_v12  ;;  %v5107_v23 = vcombine.low %v12483_v21, %v12482_v6  ;;  %v12490_v46 = vld [vmem:[#allocation133_spill] sm:$0xff]  ;;  %v12491_v53 = vld [vmem:[#allocation36_spill] sm:$0xff]  ;;  %v12493_v49 = vld [vmem:[#allocation30_spill] sm:$0xff] }
 0x439   : > { %v5108_v62 = vcombine.low %v12485_v33, %v12484_v15  ;;  %v5109_v60 = vcombine.low %v12487_v4, %v12486_v28  ;;  %v5000_v30 = vsel %vm11529_vm7, %v4963_v36, %v12488_v57  ;;  %v5003_v25 = vsel %vm11529_vm7, %v4969_v16, %v12489_v5  ;;  %v12492_v43 = vld [vmem:[#allocation29_spill] sm:$0xff]  ;;  %v12494_v47 = vld [vmem:[#allocation31_spill] sm:$0xff]  ;;  %v12495_v6 = vld [vmem:[#allocation32_spill] sm:$0xff] }
 0x43a   : > { %v5006_v52 = vsel %vm11529_vm7, %v4975_v31, %v12490_v46  ;;  %v5009_v12 = vsel %vm11529_vm7, %v4981_v38, %v12491_v53  ;;  %v5014_v50 = vsub.f32 %v12492_v43, %v5000_v30  ;;  %v5015_v58 = vsub.f32 %v12493_v49, %v5003_v25 }
 0x43b   : > { %v5016_v1 = vsub.f32 %v12494_v47, %v5006_v52  ;;  %v5017_v21 = vsub.f32 %v12495_v6, %v5009_v12  ;;  %v5110_v33 = vrot.slane %v5104_v45, 7  ;;  %vm11531_vm6 = vcmask 1045509  }
 0x43c   : > { %v10529_v16 = vmul.f32 %v5014_v50, %v10247_v10  ;;  %v10532_v31 = vmul.f32 %v5015_v58, %v10250_v55  ;;  %vm12496_vm2 = vcmask 1041409   ;;  %v5114_v57 = vrot.slane %v5106_v27, 6 }
 0x43d   : > { %v10535_v38 = vmul.f32 %v5016_v1, %v10263_v59  ;;  %v10538_v28 = vmul.f32 %v5017_v21, %v10266_v14  ;;  %v5111_v4 = vsel %vm12496_vm2, %v5110_v33, %v5102_v22  ;;  %vm11530_vm11 = vcmask 1046534  }
 0x43e   : > { %v5122_v45 = vrot.slane %v5105_v41, 7  ;;  %v5118_v55 = vrot.slane %v5108_v62, 5  ;;  %vm11528_vm13 = vcmask 1047559   ;;  %v5034_v22 = vrot.slane %v10529_v16, 3 }
 0x43f   : > { %v5035_v27 = vrot.slane %v10532_v31, 3  ;;  %v5036_v41 = vrot.slane %v10535_v38, 3  ;;  %v5037_v46 = vrot.slane %v10538_v28, 3  ;;  %v5113_v62 = vsel %vm11531_vm6, %v5110_v33, %v5111_v4 }
 0x440   : > { %v5123_v52 = vsel %vm12496_vm2, %v5122_v45, %v5103_v7  ;;  %v5125_v53 = vrot.slane %v5107_v23, 6  ;;  %v5128_v12 = vrot.slane %v5109_v60, 5  ;;  %v5066_v43 = vsel %vm10089_vm8, %v5034_v22, %v10421_v0  ;;  %v12507_v0 = vld [vmem:[#allocation84_spill] sm:$0xff] }
 0x441   : > { %v5067_v50 = vsel %vm10131_vm15, %v5035_v27, %v10426_v18  ;;  %v5068_v49 = vsel %vm10140_vm12, %v5036_v41, %v10449_v32  ;;  %v5069_v58 = vsel %vm10182_vm5, %v5037_v46, %v10454_v24  ;;  %vm12497_vm2 = vcmp.le.f32.partialorder %v9919_v17, 0.0  ;;  %v12518_v27 = vld [vmem:[#allocation141_spill] sm:$0xff] }
 0x442   : > { %v10572_v60 = vsel %vm12497_vm2, %v10398_v44, %v5066_v43  ;;  %vm12499_vm8 = vcmp.le.f32.partialorder %v9921_v8, 0.0  ;;  %vm12501_vm15 = vcmp.le.f32.partialorder %v9925_v35, 0.0  ;;  %vm12503_vm12 = vcmp.le.f32.partialorder %v9927_v37, 0.0  ;;  %v12506_v44 = vld [vmem:[#allocation89_spill] sm:$0xff] }
 0x443   : > { %12498 = vst [vmem:[#allocation28_spill] sm:$0xff] %v10572_v60  ;;  %v10577_v19 = vsel %vm12499_vm8, %v10400_v48, %v5067_v50  ;;  %v10582_v29 = vsel %vm12501_vm15, %v10414_v54, %v5068_v49  ;;  %v10587_v2 = vsel %vm12503_vm12, %v10416_v56, %v5069_v58  ;;  %vm12505_vm5 = vcmask 1042434   ;;  %v12508_v8 = vld [vmem:[#allocation93_spill] sm:$0xff]  ;;  %v12509_v48 = vld [vmem:[#allocation90_spill] sm:$0xff] }
 0x444   : > { %12500 = vst [vmem:[#allocation100_spill] sm:$0xff] %v10577_v19  ;;  %12502 = vst [vmem:[#allocation12_spill] sm:$0xff] %v10582_v29  ;;  %v5115_v13 = vsel %vm12505_vm5, %v5114_v57, %v5113_v62  ;;  %v5124_v17 = vsel %vm11531_vm6, %v5122_v45, %v5123_v52  ;;  %v5189_v18 = vcombine.low %v12507_v0, %v12506_v44  ;;  %v12516_v45 = vld [vmem:[#allocation97_spill] sm:$0xff]  ;;  %v12521_v52 = vld [vmem:[#allocation142_spill] sm:$0xff] }
 0x445   : > { %12504 = vst [vmem:[#allocation13_spill] sm:$0xff] %v10587_v2  ;;  %v5190_v32 = vcombine.low %v12509_v48, %v12508_v8  ;;  %v5117_v35 = vsel %vm11530_vm11, %v5114_v57, %v5115_v13  ;;  %vm12510_vm2 = vmmov %vm12505_vm5  ;;  %v5197_v54 = vcombine.low %v10483_v26, %v10488_v9  ;;  %v5198_v56 = vcombine.low %v10492_v63, %v10496_v20  ;;  %v12515_v57 = vld [vmem:[#allocation140_spill] sm:$0xff]  ;;  %v12519_v41 = vld [vmem:[#allocation69_spill] sm:$0xff] }
 0x446   : > { %v5126_v37 = vsel %vm12510_vm2, %v5125_v53, %v5124_v17  ;;  %v5119_v24 = vsel %vm11529_vm7, %v5118_v55, %v5117_v35  ;;  %v10622_v20 = vrot.slane %v5189_v18, 5  ;;  %v4110_v22 = vsel %vm8625_vm9, %v12516_v45, %v12515_v57 }
 0x447   : > { %v5127_v7 = vsel %vm11530_vm11, %v5125_v53, %v5126_v37  ;;  %v5121_v26 = vsel %vm11528_vm13, %v5118_v55, %v5119_v24  ;;  %v10624_v21 = vrot.slane %v5190_v32, 5  ;;  %v10626_v33 = vrot.slane %v5197_v54, 5  ;;  %v12522_v53 = vld [vmem:[#allocation112_spill] sm:$0xff] }
 0x448   : > { %v5129_v9 = vsel %vm11529_vm7, %v5128_v12, %v5127_v7  ;;  %5133 = vst [vmem:[%s330_s16] sm:$0xff] %v5121_v26  ;;  %12511 = vst [vmem:[#allocation8_spill] sm:$0xff] %v10622_v20  ;;  %v10628_v4 = vrot.slane %v5198_v56, 5  ;;  %v4111_v62 = vsel %vm12313_vm1, %v12519_v41, %v12518_v27  ;;  %v4112_v43 = vsel %vm12322_vm0, %v12522_v53, %v12521_v52 }
 0x449   : > { %v5130_v63 = vsel %vm11528_vm13, %v5128_v12, %v5129_v9  ;;  %12512 = vst [vmem:[#allocation148_spill] sm:$0xff] %v10624_v21  ;;  %12513 = vst [vmem:[#allocation98_spill] sm:$0xff] %v10626_v33 }
 0x44a   : > { %5134 = vst [vmem:[%s330_s16 + $0x8] sm:$0xff] %v5130_v63  ;;  %12514 = vst [vmem:[#allocation101_spill] sm:$0xff] %v10628_v4 }
 0x44b   : > { %5633 = shalt.err (!%p5630_p3)
}
 0x44c   : > { %s5634_s16 = scalar_lea.hbm %s10617_s23, 256  ;;  %s5638_s26 = scalar_lea.hbm %s11100_s8, 512 }
 0x44d   : > { %p5635_p4 = scmp.ne.s32.totalorder %s10617_s23, %s5634_s16  ;;  %p5639_p9 = scmp.lt.s32.totalorder %s10617_s23, %s11100_s8 }
 0x44e   : > { %p5640_p10 = scmp.lt.s32.totalorder %s5638_s26, %s5634_s16 }
 0x44f   : > { %p5636_p7 = pnand %p5635_p4, %p5815_p5 }
 0x450   : > { %p5641_p11 = por %p5640_p10, %p5639_p9 }
 0x451   : > { %p5637_p8 = pneg %p5636_p7 }
 0x453   : > { %p5642_p12 = pnand %p5641_p11, %p5637_p8 }
 0x455   : > { %5645 = shalt.err (!%p5642_p12)
}
 0x456   : > { %5465 = dma.vmem_to_hbm [thread:$0]  (%p5815_p5), %s10619_s17, 256, %s10617_s23, %s5274_s24   ;;  %v12524_v50 = vld [vmem:[#allocation143_spill] sm:$0xff]  ;;  %v12525_v49 = vld [vmem:[#allocation77_spill] sm:$0xff]  ;;  %v12527_v17 = vld [vmem:[#allocation164_spill] sm:$0xff]  ;;  %v12528_v44 = vrot.slane %v12516_v45, 1  ;;  %v12532_v48 = vrot.slane %v12519_v41, 1 }
 0x457   : > { %v4113_v13 = vsel %vm12329_vm10, %v12525_v49, %v12524_v50  ;;  %v12529_v0 = vld [vmem:[#allocation87_spill] sm:$0xff]  ;;  %v12531_v8 = vld [vmem:[#allocation165_spill] sm:$0xff]  ;;  %v12535_v37 = vld [vmem:[#allocation166_spill] sm:$0xff]  ;;  %v12536_v54 = vrot.slane %v12522_v53, 1  ;;  %v12540_v26 = vrot.slane %v12525_v49, 1  ;;  %v12544_v27 = vrot.slane %v12516_v45, 2 }
 0x458   : > { %vm12530_vm8 = vnez %v12529_v0  ;;  %v12533_v32 = vld [vmem:[#allocation73_spill] sm:$0xff]  ;;  %v12537_v56 = vld [vmem:[#allocation92_spill] sm:$0xff]  ;;  %v12539_v7 = vld [vmem:[#allocation167_spill] sm:$0xff]  ;;  %v12642_v46 = vrot.slane %v10532_v31, 1  ;;  %v12644_v12 = vrot.slane %v10535_v38, 1  ;;  %s5464_s0 = smul.u32 48, %s10541_s28 }
 0x459   : > { %v4114_v18 = vsel %vm12530_vm8, %v12528_v44, %v12527_v17  ;;  %vm12534_vm15 = vnez %v12533_v32  ;;  %vm12538_vm12 = vnez %v12537_v56  ;;  %v12541_v9 = vld [vmem:[#allocation125_spill] sm:$0xff]  ;;  %v12543_v57 = vld [vmem:[#allocation176_spill] sm:$0xff]  ;;  %v12545_v52 = vld [vmem:[#allocation94_spill] sm:$0xff]  ;;  %v12548_v44 = vrot.slane %v12519_v41, 2  ;;  %s12720_s23 = sshll.u32 %s5798_s13, 8  ;;  %s5279_s13 = scalar_lea.sflag [#allocation5], %s10541_s28 }
 0x45a   : > { %v4115_v35 = vsel %vm12534_vm15, %v12532_v48, %v12531_v8  ;;  %v4116_v24 = vsel %vm12538_vm12, %v12536_v54, %v12535_v37  ;;  %vm12542_vm5 = vnez %v12541_v9  ;;  %vm12546_vm2 = vnez %v12545_v52  ;;  %v12547_v17 = vld [vmem:[#allocation177_spill] sm:$0xff]  ;;  %v12550_v47 = vld [vmem:[#allocation178_spill] sm:$0xff]  ;;  %v12552_v54 = vld [vmem:[#allocation91_spill] sm:$0xff]  ;;  %s337_s14 = scalar_lea.vmem [#allocation4], %s5464_s0  ;;  %s11042_s27 = scalar_lea.hbm %s11101_s9, %s12720_s23 }
 0x45b   : > { %v4117_v63 = vsel %vm12542_vm5, %v12540_v26, %v12539_v7  ;;  %v4118_v50 = vsel %vm12546_vm2, %v12544_v27, %v12543_v57  ;;  %v4119_v48 = vsel %vm9751_vm3, %v12548_v44, %v12547_v17  ;;  %v12551_v37 = vrot.slane %v12522_v53, 2  ;;  %v12553_v6 = vld [vmem:[#allocation179_spill] sm:$0xff]  ;;  %v12555_v26 = vld [vmem:[#allocation108_spill] sm:$0xff]  ;;  %v12556_v1 = vld [vmem:[#allocation49_spill] sm:$0xff]  ;;  %s5306_s17 = sshll.u32 %s337_s14, 4  ;;  %s5723_s16 = smov [#allocation4]   ;;  %s11046_s17 = int_to_ptr.vmem [resolvable:$true] %s5306_s17 }
 0x45c   : > { %v12554_v7 = vrot.slane %v12525_v49, 2  ;;  %v12557_v57 = vld [vmem:[#allocation54_spill] sm:$0xff]  ;;  %v12559_v41 = vld [vmem:[#allocation85_spill] sm:$0xff]  ;;  %v12560_v25 = vld [vmem:[#allocation55_spill] sm:$0xff]  ;;  %s5646_s29 = scalar_lea.vmem %s11046_s17, 768  ;;  %s5650_s21 = sshll.u32 %s5723_s16, 4  ;;  %s5651_s21 = int_to_ptr.vmem [resolvable:$false] %s5650_s21 }
 0x45d   : > { %v4120_v23 = vsel %vm9772_vm4, %v12551_v37, %v12550_v47  ;;  %vm12558_vm13 = vcmp.le.f32.partialorder %v12557_v57, 0.0  ;;  %vm12561_vm7 = vcmp.le.f32.partialorder %v12560_v25, 0.0  ;;  %v12562_v53 = vld [vmem:[#allocation27_spill] sm:$0xff]  ;;  %v12563_v44 = vld [vmem:[#allocation56_spill] sm:$0xff]  ;;  %v12565_v37 = vld [vmem:[#allocation137_spill] sm:$0xff]  ;;  %p5647_p13 = scmp.ne.s32.totalorder %s11046_s17, %s5646_s29  ;;  %s5652_s22 = scalar_lea.vmem %s5651_s21, 1536 }
 0x45e   : > { %v4121_v45 = vsel %vm9801_vm14, %v12554_v7, %v12553_v6  ;;  %v10710_v27 = vsel %vm12558_vm13, %v12556_v1, %v4110_v22  ;;  %v10715_v17 = vsel %vm12561_vm7, %v12559_v41, %v4111_v62  ;;  %vm12564_vm11 = vcmp.le.f32.partialorder %v12563_v44, 0.0  ;;  %v12566_v49 = vld [vmem:[#allocation57_spill] sm:$0xff]  ;;  %v12568_v6 = vld [vmem:[#allocation15_spill] sm:$0xff]  ;;  %v12569_v7 = vld [vmem:[#allocation66_spill] sm:$0xff]  ;;  %p5653_p2 = scmp.lt.s32.totalorder %s11046_s17, %s5651_s21  ;;  %p5654_p3 = scmp.lt.s32.totalorder %s5652_s22, %s5646_s29 }
 0x45f   : > { %v10720_v47 = vsel %vm12564_vm11, %v12562_v53, %v4112_v43  ;;  %vm12567_vm6 = vcmp.le.f32.partialorder %v12566_v49, 0.0  ;;  %vm12570_vm14 = vcmp.le.f32.partialorder %v12569_v7, 0.0  ;;  %v12571_v22 = vld [vmem:[#allocation158_spill] sm:$0xff]  ;;  %v12572_v5 = vld [vmem:[#allocation59_spill] sm:$0xff]  ;;  %v12575_v59 = vld [vmem:[#allocation60_spill] sm:$0xff]  ;;  %p5648_p0 = pnand %p5647_p13, %p5815_p5 }
 0x460   : > { %v10725_v14 = vsel %vm12567_vm6, %v12565_v37, %v4113_v13  ;;  %v10730_v1 = vsel %vm12570_vm14, %v12568_v6, %v4114_v18  ;;  %vm12573_vm13 = vcmp.le.f32.partialorder %v12572_v5, 0.0  ;;  %v12574_v41 = vld [vmem:[#allocation159_spill] sm:$0xff]  ;;  %vm12576_vm7 = vcmp.le.f32.partialorder %v12575_v59, 0.0  ;;  %v12577_v53 = vld [vmem:[#allocation160_spill] sm:$0xff]  ;;  %v12578_v30 = vld [vmem:[#allocation62_spill] sm:$0xff]  ;;  %p5655_p4 = por %p5654_p3, %p5653_p2 }
 0x461   : > { %v10735_v62 = vsel %vm12573_vm13, %v12571_v22, %v4115_v35  ;;  %v10740_v43 = vsel %vm12576_vm7, %v12574_v41, %v4116_v24  ;;  %vm12579_vm11 = vcmp.le.f32.partialorder %v12578_v30, 0.0  ;;  %v12580_v37 = vld [vmem:[#allocation74_spill] sm:$0xff]  ;;  %v12583_v6 = vld [vmem:[#allocation75_spill] sm:$0xff]  ;;  %v12586_v22 = vld [vmem:[#allocation76_spill] sm:$0xff]  ;;  %p5649_p1 = pneg %p5648_p0 }
 0x462   : > { %v10745_v13 = vsel %vm12579_vm11, %v12577_v53, %v4117_v63  ;;  %v12581_v10 = vld [vmem:[#allocation42_spill] sm:$0xff]  ;;  %v12584_v15 = vld [vmem:[#allocation43_spill] sm:$0xff]  ;;  %v12587_v36 = vld [vmem:[#allocation44_spill] sm:$0xff]  ;;  %vm12610_vm11 = vnez %v12555_v26 }
 0x463   : > { %vm12582_vm6 = vcmp.le.f32.partialorder %v12581_v10, 0.0  ;;  %vm12585_vm14 = vcmp.le.f32.partialorder %v12584_v15, 0.0  ;;  %vm12588_vm13 = vcmp.le.f32.partialorder %v12587_v36, 0.0  ;;  %v12589_v41 = vld [vmem:[#allocation11_spill] sm:$0xff]  ;;  %v12592_v53 = vld [vmem:[#allocation104_spill] sm:$0xff]  ;;  %v12597_v3 = vld [vmem:[#allocation173_spill] sm:$0xff]  ;;  %p5656_p7 = pnand %p5655_p4, %p5649_p1 }
 0x464   : > { %v10750_v18 = vsel %vm12582_vm6, %v12580_v37, %v4118_v50  ;;  %v10755_v35 = vsel %vm12585_vm14, %v12583_v6, %v4119_v48  ;;  %v10760_v24 = vsel %vm12588_vm13, %v12586_v22, %v4120_v23  ;;  %v12590_v42 = vld [vmem:[#allocation135_spill] sm:$0xff]  ;;  %v4582_v50 = vsel %vm8625_vm9, %v10429_v61, %v12592_v53  ;;  %v12593_v37 = vld [vmem:[#allocation46_spill] sm:$0xff]  ;;  %v12595_v22 = vld [vmem:[#allocation105_spill] sm:$0xff] }
 0x465   : > { %vm12591_vm7 = vcmp.le.f32.partialorder %v12590_v42, 0.0  ;;  %v4583_v48 = vsel %vm12313_vm1, %v10432_v40, %v12593_v37  ;;  %v12594_v6 = vld [vmem:[#allocation50_spill] sm:$0xff]  ;;  %v4587_v37 = vsel %vm12534_vm15, %v4555_v39, %v12597_v3  ;;  %v12600_v19 = vld [vmem:[#allocation175_spill] sm:$0xff]  ;;  %v12602_v4 = vld [vmem:[#allocation184_spill] sm:$0xff]  ;;  %v12605_v39 = vrot.slane %v10432_v40, 2 }
 0x466   : > { %v10765_v63 = vsel %vm12591_vm7, %v12589_v41, %v4121_v45  ;;  %v4584_v23 = vsel %vm12322_vm0, %v10435_v51, %v12594_v6  ;;  %v4585_v45 = vsel %vm12329_vm10, %v10438_v11, %v12595_v22  ;;  %v12596_v41 = vld [vmem:[#allocation172_spill] sm:$0xff]  ;;  %v12598_v2 = vld [vmem:[#allocation174_spill] sm:$0xff]  ;;  %v12599_v6 = vrot.slane %v10435_v51, 1  ;;  %v12604_v33 = vld [vmem:[#allocation185_spill] sm:$0xff] }
 0x467   : > { %v4586_v53 = vsel %vm12530_vm8, %v4554_v34, %v12596_v41  ;;  %v12601_v22 = vrot.slane %v10438_v11, 1  ;;  %v12603_v34 = vrot.slane %v10429_v61, 2  ;;  %v4591_v3 = vsel %vm9751_vm3, %v12605_v39, %v12604_v33  ;;  %v12606_v21 = vld [vmem:[#allocation186_spill] sm:$0xff]  ;;  %v12608_v20 = vld [vmem:[#allocation187_spill] sm:$0xff]  ;;  %v12613_v40 = vld [vmem:[#allocation145_spill] sm:$0xff] }
 0x468   : > { %v4588_v29 = vsel %vm12538_vm12, %v12599_v6, %v12598_v2  ;;  %v12607_v2 = vrot.slane %v10435_v51, 2  ;;  %vm12612_vm6 = vcmp.le.f32.partialorder %v12557_v57, 0.0  ;;  %vm12614_vm14 = vcmp.le.f32.partialorder %v12560_v25, 0.0  ;;  %v12615_v51 = vld [vmem:[#allocation146_spill] sm:$0xff]  ;;  %v12621_v39 = vld [vmem:[#allocation169_spill] sm:$0xff]  ;;  %v12647_v0 = vld [vmem:[#allocation191_spill] sm:$0xff] }
 0x469   : > { %v4589_v60 = vsel %vm12542_vm5, %v12601_v22, %v12600_v19  ;;  %v4590_v41 = vsel %vm12546_vm2, %v12603_v34, %v12602_v4  ;;  %v12609_v19 = vrot.slane %v10438_v11, 2  ;;  %v12611_v22 = vld [vmem:[#allocation144_spill] sm:$0xff]  ;;  %v10831_v33 = vsel %vm12614_vm14, %v12613_v40, %v4583_v48  ;;  %v12617_v34 = vld [vmem:[#allocation147_spill] sm:$0xff]  ;;  %v12623_v48 = vld [vmem:[#allocation170_spill] sm:$0xff] }
 0x46a   : > { %v4592_v6 = vsel %vm9772_vm4, %v12607_v2, %v12606_v21  ;;  %v10826_v4 = vsel %vm12612_vm6, %v12611_v22, %v4582_v50  ;;  %vm12616_vm13 = vcmp.le.f32.partialorder %v12563_v44, 0.0  ;;  %vm12618_vm7 = vcmp.le.f32.partialorder %v12566_v49, 0.0  ;;  %v12625_v22 = vld [vmem:[#allocation171_spill] sm:$0xff]  ;;  %v12627_v40 = vld [vmem:[#allocation180_spill] sm:$0xff]  ;;  %v12645_v58 = vld [vmem:[#allocation109_spill] sm:$0xff] }
 0x46b   : > { %v4593_v61 = vsel %vm12610_vm11, %v12609_v19, %v12608_v20  ;;  %v10836_v21 = vsel %vm12616_vm13, %v12615_v51, %v4584_v23  ;;  %v10841_v11 = vsel %vm12618_vm7, %v12617_v34, %v4585_v45  ;;  %v12619_v20 = vld [vmem:[#allocation168_spill] sm:$0xff]  ;;  %vm12620_vm11 = vcmp.le.f32.partialorder %v12569_v7, 0.0  ;;  %v12629_v51 = vld [vmem:[#allocation181_spill] sm:$0xff]  ;;  %v12631_v34 = vld [vmem:[#allocation182_spill] sm:$0xff] }
 0x46c   : > { %v4602_v50 = vsel %vm12620_vm11, %v12619_v20, %v4586_v53  ;;  %vm12622_vm6 = vcmp.le.f32.partialorder %v12572_v5, 0.0  ;;  %vm12624_vm14 = vcmp.le.f32.partialorder %v12575_v59, 0.0  ;;  %vm12626_vm13 = vcmp.le.f32.partialorder %v12578_v30, 0.0  ;;  %v12633_v20 = vld [vmem:[#allocation183_spill] sm:$0xff]  ;;  %v12649_v32 = vld [vmem:[#allocation113_spill] sm:$0xff]  ;;  %v12651_v56 = vld [vmem:[#allocation192_spill] sm:$0xff] }
 0x46d   : > { %v4603_v2 = vsel %vm12622_vm6, %v12621_v39, %v4587_v37  ;;  %v4604_v19 = vsel %vm12624_vm14, %v12623_v48, %v4588_v29  ;;  %v4605_v23 = vsel %vm12626_vm13, %v12625_v22, %v4589_v60  ;;  %vm12628_vm7 = vcmp.le.f32.partialorder %v12581_v10, 0.0  ;;  %v12635_v39 = vld [vmem:[#allocation119_spill] sm:$0xff]  ;;  %v12636_v48 = vld [vmem:[#allocation120_spill] sm:$0xff]  ;;  %v12637_v22 = vld [vmem:[#allocation121_spill] sm:$0xff] }
 0x46e   : > { %v4606_v45 = vsel %vm12628_vm7, %v12627_v40, %v4590_v41  ;;  %vm12630_vm4 = vcmp.le.f32.partialorder %v12584_v15, 0.0  ;;  %vm12632_vm11 = vcmp.le.f32.partialorder %v12587_v36, 0.0  ;;  %vm12634_vm6 = vcmp.le.f32.partialorder %v12590_v42, 0.0  ;;  %v12639_v40 = vld [vmem:[#allocation83_spill] sm:$0xff]  ;;  %v12654_v9 = vld [vmem:[#allocation96_spill] sm:$0xff]  ;;  %v12657_v52 = vld [vmem:[#allocation14_spill] sm:$0xff] }
 0x46f   : > { %v4607_v53 = vsel %vm12630_vm4, %v12629_v51, %v4591_v3  ;;  %v4608_v37 = vsel %vm12632_vm11, %v12631_v34, %v4592_v6  ;;  %v4609_v29 = vsel %vm12634_vm6, %v12633_v20, %v4593_v61  ;;  %v5054_v60 = vsel %vm8625_vm9, %v10529_v16, %v12635_v39  ;;  %v12638_v6 = vld [vmem:[#allocation122_spill] sm:$0xff]  ;;  %v12643_v39 = vld [vmem:[#allocation107_spill] sm:$0xff] }
 0x470   : > { %v5055_v41 = vsel %vm12313_vm1, %v10532_v31, %v12636_v48  ;;  %v5056_v3 = vsel %vm12322_vm0, %v10535_v38, %v12637_v22  ;;  %v5057_v61 = vsel %vm12329_vm10, %v10538_v28, %v12638_v6  ;;  %v12640_v51 = vrot.slane %v10529_v16, 1  ;;  %v12641_v34 = vld [vmem:[#allocation106_spill] sm:$0xff] }
 0x471   : > { %v5059_v20 = vsel %vm12534_vm15, %v12642_v46, %v12641_v34  ;;  %v5060_v48 = vsel %vm12538_vm12, %v12644_v12, %v12643_v39  ;;  %v12646_v22 = vrot.slane %v10538_v28, 1  ;;  %v12650_v34 = vrot.slane %v10532_v31, 2  ;;  %v12659_v31 = vld [vmem:[#allocation65_spill] sm:$0xff]  ;;  %vm12670_vm12 = vmmov %vm12624_vm14 }
 0x472   : > { %v5058_v55 = vsel %vm12530_vm8, %v12640_v51, %v12639_v40  ;;  %v12648_v40 = vrot.slane %v10529_v16, 2  ;;  %v12652_v39 = vrot.slane %v10535_v38, 2  ;;  %vm12653_vm9 = vnez %v12552_v54  ;;  %v12661_v38 = vld [vmem:[#allocation99_spill] sm:$0xff] }
 0x473   : > { %v5061_v6 = vsel %vm12542_vm5, %v12646_v22, %v12645_v58  ;;  %v5063_v46 = vsel %vm9751_vm3, %v12650_v34, %v12649_v32  ;;  %v12655_v58 = vrot.slane %v10538_v28, 2  ;;  %vm12656_vm10 = vnez %v12555_v26  ;;  %v12665_v26 = vld [vmem:[#allocation41_spill] sm:$0xff]  ;;  %vm12672_vm5 = vmmov %vm12626_vm13  ;;  %v12675_v32 = vld [vmem:[#allocation111_spill] sm:$0xff] }
 0x474   : > { %v5062_v51 = vsel %vm12546_vm2, %v12648_v40, %v12647_v0  ;;  %v5064_v12 = vsel %vm12653_vm9, %v12652_v39, %v12651_v56  ;;  %vm12658_vm4 = vcmp.le.f32.partialorder %v12557_v57, 0.0  ;;  %vm12660_vm3 = vcmp.le.f32.partialorder %v12560_v25, 0.0  ;;  %v12663_v0 = vld [vmem:[#allocation61_spill] sm:$0xff]  ;;  %vm12674_vm2 = vmmov %vm12628_vm7 }
 0x475   : > { %v5065_v16 = vsel %vm12656_vm10, %v12655_v58, %v12654_v9  ;;  %v10926_v22 = vsel %vm12658_vm4, %v12657_v52, %v5054_v60  ;;  %v10931_v8 = vsel %vm12660_vm3, %v12659_v31, %v5055_v41  ;;  %vm12662_vm1 = vcmp.le.f32.partialorder %v12563_v44, 0.0  ;;  %v12667_v60 = vld [vmem:[#allocation82_spill] sm:$0xff]  ;;  %v12669_v41 = vld [vmem:[#allocation88_spill] sm:$0xff]  ;;  %v12671_v44 = vld [vmem:[#allocation17_spill] sm:$0xff] }
 0x476   : > { %v10936_v54 = vsel %vm12662_vm1, %v12661_v38, %v5056_v3  ;;  %vm12664_vm0 = vcmp.le.f32.partialorder %v12566_v49, 0.0  ;;  %vm12666_vm8 = vcmp.le.f32.partialorder %v12569_v7, 0.0  ;;  %vm12668_vm15 = vcmp.le.f32.partialorder %v12572_v5, 0.0  ;;  %v12673_v49 = vld [vmem:[#allocation188_spill] sm:$0xff]  ;;  %vm12678_vm13 = vmmov %vm12632_vm11 }
 0x477   : > { %v10941_v28 = vsel %vm12664_vm0, %v12663_v0, %v5057_v61  ;;  %v5074_v57 = vsel %vm12666_vm8, %v12665_v26, %v5058_v55  ;;  %v5075_v25 = vsel %vm12668_vm15, %v12667_v60, %v5059_v20  ;;  %v10952_v40 = vsel %vm12670_vm12, %v12669_v41, %v5060_v48  ;;  %v12677_v55 = vld [vmem:[#allocation189_spill] sm:$0xff]  ;;  %v12679_v20 = vld [vmem:[#allocation190_spill] sm:$0xff]  ;;  %vm12680_vm7 = vmmov %vm12634_vm6 }
 0x478   : > { %v5077_v3 = vsel %vm12672_vm5, %v12671_v44, %v5061_v6  ;;  %v5078_v61 = vsel %vm12674_vm2, %v12673_v49, %v5062_v51  ;;  %vm12676_vm14 = vcmp.le.f32.partialorder %v12584_v15, 0.0  ;;  %v5080_v5 = vsel %vm12678_vm13, %v12677_v55, %v5064_v12  ;;  %v12706_v41 = vld [vmem:[#allocation101_spill] sm:$0xff]  ;;  %v12710_v55 = vld [vmem:[#allocation28_spill] sm:$0xff] }
 0x479   : > { %v5079_v7 = vsel %vm12676_vm14, %v12675_v32, %v5063_v46  ;;  %v5081_v59 = vsel %vm12680_vm7, %v12679_v20, %v5065_v16  ;;  %v5183_v30 = vcombine.low %v10710_v27, %v10715_v17  ;;  %v5184_v48 = vcombine.low %v10720_v47, %v10725_v14  ;;  %v12693_v16 = vld [vmem:[#allocation8_spill] sm:$0xff] }
 0x47a   : > { %v5185_v10 = vcombine.low %v10730_v1, %v10735_v62  ;;  %v5186_v15 = vcombine.low %v10740_v43, %v10745_v13  ;;  %v5187_v36 = vcombine.low %v10750_v18, %v10755_v35  ;;  %v5188_v42 = vcombine.low %v10760_v24, %v10765_v63 }
 0x47b   : > { %v5191_v6 = vcombine.low %v10826_v4, %v10831_v33  ;;  %v5192_v27 = vcombine.low %v10836_v21, %v10841_v11  ;;  %v5193_v14 = vcombine.low %v4602_v50, %v4603_v2  ;;  %v5194_v17 = vcombine.low %v4604_v19, %v4605_v23 }
 0x47c   : > { %v5195_v47 = vcombine.low %v4606_v45, %v4607_v53  ;;  %v5196_v1 = vcombine.low %v4608_v37, %v4609_v29  ;;  %v5199_v62 = vcombine.low %v10926_v22, %v10931_v8  ;;  %v5200_v43 = vcombine.low %v10936_v54, %v10941_v28  ;;  %v12699_v54 = vld [vmem:[#allocation148_spill] sm:$0xff]  ;;  %v12701_v28 = vld [vmem:[#allocation98_spill] sm:$0xff] }
 0x47d   : > { %v5201_v13 = vcombine.low %v5074_v57, %v5075_v25  ;;  %v5202_v18 = vcombine.low %v10952_v40, %v5077_v3  ;;  %v5203_v35 = vcombine.low %v5078_v61, %v5079_v7  ;;  %v5204_v24 = vcombine.low %v5080_v5, %v5081_v59  ;;  %v12711_v5 = vld [vmem:[#allocation100_spill] sm:$0xff] }
 0x47e   : > { %v5207_v63 = vrot.slane %v5185_v10, 7  ;;  %v5210_v4 = vrot.slane %v5187_v36, 6  ;;  %v5216_v33 = vrot.slane %v5186_v15, 7  ;;  %v5219_v21 = vrot.slane %v5188_v42, 6  ;;  %v12717_v36 = vld [vmem:[#allocation12_spill] sm:$0xff]  ;;  %v12718_v42 = vld [vmem:[#allocation13_spill] sm:$0xff] }
 0x47f   : > { %v5225_v11 = vrot.slane %v5193_v14, 7  ;;  %vm12681_vm11 = vcmask 1041409   ;;  %v5228_v2 = vrot.slane %v5195_v47, 6  ;;  %v5234_v19 = vrot.slane %v5194_v17, 7 }
 0x480   : > { %v5208_v50 = vsel %vm12681_vm11, %v5207_v63, %v5183_v30  ;;  %v5237_v23 = vrot.slane %v5196_v1, 6  ;;  %vm12682_vm6 = vcmask 1045509   ;;  %vm12683_vm9 = vmmov %vm12681_vm11  ;;  %v5243_v29 = vrot.slane %v5201_v13, 7 }
 0x481   : > { %v5209_v45 = vsel %vm12682_vm6, %v5207_v63, %v5208_v50  ;;  %v5217_v53 = vsel %vm12683_vm9, %v5216_v33, %v5184_v48  ;;  %vm12684_vm10 = vmmov %vm12683_vm9  ;;  %vm12685_vm4 = vcmask 1042434   ;;  %vm12689_vm8 = vcmask 1046534  }
 0x482   : > { %v5226_v37 = vsel %vm12684_vm10, %v5225_v11, %v5191_v6  ;;  %v5211_v51 = vsel %vm12685_vm4, %v5210_v4, %v5209_v45  ;;  %vm12686_vm3 = vmmov %vm12682_vm6  ;;  %vm12694_vm2 = vcmask 1043459   ;;  %vm12698_vm11 = vcmask 1047559  }
 0x483   : > { %v5218_v34 = vsel %vm12686_vm3, %v5216_v33, %v5217_v53  ;;  %vm12687_vm1 = vmmov %vm12686_vm3  ;;  %v5212_v39 = vsel %vm12689_vm8, %v5210_v4, %v5211_v51  ;;  %v5246_v61 = vrot.slane %v5203_v35, 6  ;;  %v5252_v32 = vrot.slane %v5202_v18, 7 }
 0x484   : > { %v5227_v46 = vsel %vm12687_vm1, %v5225_v11, %v5226_v37  ;;  %vm12688_vm0 = vmmov %vm12683_vm9  ;;  %v5214_v52 = vsel %vm12694_vm2, %v12693_v16, %v5212_v39  ;;  %v5255_v7 = vrot.slane %v5204_v24, 6  ;;  %v12712_v20 = vcombine.low %v12710_v55, %v12711_v5 }
 0x485   : > { %v5235_v56 = vsel %vm12688_vm0, %v5234_v19, %v5192_v27  ;;  %vm12690_vm15 = vmmov %vm12685_vm4  ;;  %v5215_v38 = vsel %vm12698_vm11, %v12693_v16, %v5214_v52  ;;  %v5244_v44 = vsel %vm12688_vm0, %v5243_v29, %v5199_v62  ;;  %v12719_v6 = vcombine.low %v12717_v36, %v12718_v42 }
 0x486   : > { %v5220_v12 = vsel %vm12690_vm15, %v5219_v21, %v5218_v34  ;;  %vm12691_vm12 = vmmov %vm12685_vm4  ;;  %5267 = vst [vmem:[%s337_s14] sm:$0xff] %v5215_v38  ;;  %v5249_v59 = vrot.slane %v12712_v20, 5 }
 0x487   : > { %v5229_v9 = vsel %vm12691_vm12, %v5228_v2, %v5227_v46  ;;  %vm12692_vm5 = vmmov %vm12687_vm1  ;;  %v5258_v27 = vrot.slane %v12719_v6, 5 }
 0x488   : > { %v5236_v58 = vsel %vm12692_vm5, %v5234_v19, %v5235_v56  ;;  %vm12695_vm14 = vmmov %vm12689_vm8 }
 0x489   : > { %v5221_v22 = vsel %vm12695_vm14, %v5219_v21, %v5220_v12  ;;  %vm12696_vm13 = vmmov %vm12689_vm8 }
 0x48a   : > { %v5230_v31 = vsel %vm12696_vm13, %v5228_v2, %v5229_v9  ;;  %vm12697_vm7 = vmmov %vm12685_vm4 }
 0x48b   : > { %v5238_v8 = vsel %vm12697_vm7, %v5237_v23, %v5236_v58  ;;  %vm12700_vm6 = vmmov %vm12694_vm2 }
 0x48c   : > { %v5223_v0 = vsel %vm12700_vm6, %v12699_v54, %v5221_v22  ;;  %vm12702_vm9 = vmmov %vm12694_vm2 }
 0x48d   : > { %v5232_v26 = vsel %vm12702_vm9, %v12701_v28, %v5230_v31  ;;  %vm12703_vm10 = vmmov %vm12689_vm8 }
 0x48e   : > { %v5239_v57 = vsel %vm12703_vm10, %v5237_v23, %v5238_v8  ;;  %vm12704_vm4 = vmmov %vm12698_vm11 }
 0x48f   : > { %v5224_v60 = vsel %vm12704_vm4, %v12699_v54, %v5223_v0  ;;  %vm12705_vm3 = vmmov %vm12704_vm4 }
 0x490   : > { %v5233_v25 = vsel %vm12705_vm3, %v12701_v28, %v5232_v26  ;;  %vm12707_vm1 = vmmov %vm12694_vm2  ;;  %5268 = vst [vmem:[%s337_s14 + $0x8] sm:$0xff] %v5224_v60 }
 0x491   : > { %v5241_v40 = vsel %vm12707_vm1, %v12706_v41, %v5239_v57  ;;  %vm12708_vm8 = vmmov %vm12705_vm3  ;;  %5269 = vst [vmem:[%s337_s14 + $0x10] sm:$0xff] %v5233_v25 }
 0x492   : > { %v5242_v3 = vsel %vm12708_vm8, %v12706_v41, %v5241_v40  ;;  %vm12709_vm15 = vmmov %vm12692_vm5 }
 0x493   : > { %v5245_v49 = vsel %vm12709_vm15, %v5243_v29, %v5244_v44  ;;  %5270 = vst [vmem:[%s337_s14 + $0x18] sm:$0xff] %v5242_v3  ;;  %vm12713_vm12 = vmmov %vm12697_vm7 }
 0x494   : > { %v5247_v30 = vsel %vm12713_vm12, %v5246_v61, %v5245_v49  ;;  %vm12714_vm5 = vmmov %vm12688_vm0 }
 0x495   : > { %v5253_v48 = vsel %vm12714_vm5, %v5252_v32, %v5200_v43  ;;  %vm12715_vm2 = vmmov %vm12703_vm10 }
 0x496   : > { %v5248_v10 = vsel %vm12715_vm2, %v5246_v61, %v5247_v30  ;;  %vm12716_vm14 = vmmov %vm12709_vm15 }
 0x497   : > { %v5254_v15 = vsel %vm12716_vm14, %v5252_v32, %v5253_v48  ;;  %vm12721_vm13 = vmmov %vm12707_vm1 }
 0x498   : > { %v5250_v14 = vsel %vm12721_vm13, %v5249_v59, %v5248_v10  ;;  %v5256_v17 = vsel %vm12697_vm7, %v5255_v7, %v5254_v15  ;;  %vm12722_vm11 = vmmov %vm12705_vm3 }
 0x499   : > { %v5251_v47 = vsel %vm12722_vm11, %v5249_v59, %v5250_v14  ;;  %vm12723_vm6 = vmmov %vm12715_vm2 }
 0x49a   : > { %v5257_v1 = vsel %vm12723_vm6, %v5255_v7, %v5256_v17  ;;  %vm12724_vm9 = vmmov %vm12707_vm1  ;;  %5271 = vst [vmem:[%s337_s14 + $0x20] sm:$0xff] %v5251_v47 }
 0x49b   : > { %v5259_v62 = vsel %vm12724_vm9, %v5258_v27, %v5257_v1  ;;  %vm12725_vm10 = vmmov %vm12705_vm3 }
 0x49c   : > { %v5260_v43 = vsel %vm12725_vm10, %v5258_v27, %v5259_v62 }
 0x49d   : > { %5272 = vst [vmem:[%s337_s14 + $0x28] sm:$0xff] %v5260_v43 }
 0x49e   : > { %5659 = shalt.err (!%p5656_p7)
}
 0x49f   : > { %s5660_s26 = scalar_lea.hbm %s11042_s27, 768  ;;  %s5664_s23 = scalar_lea.hbm %s11101_s9, 1536 }
 0x4a0   : > { %p5661_p8 = scmp.ne.s32.totalorder %s11042_s27, %s5660_s26  ;;  %p5665_p11 = scmp.lt.s32.totalorder %s11042_s27, %s11101_s9 }
 0x4a1   : > { %p5666_p12 = scmp.lt.s32.totalorder %s5664_s23, %s5660_s26 }
 0x4a2   : > { %p5662_p9 = pnand %p5661_p8, %p5815_p5 }
 0x4a3   : > { %p5667_p13 = por %p5666_p12, %p5665_p11 }
 0x4a4   : > { %p5663_p10 = pneg %p5662_p9 }
 0x4a6   : > { %p5668_p0 = pnand %p5667_p13, %p5663_p10 }
 0x4a8   : > { %5671 = shalt.err (!%p5668_p0)
}
 0x4a9   : > { %s5724_s29 = smov 256   ;;  %s5725_s16 = smov 512  }
 0x4aa   : > { %s5726_s21 = smov 16  }
 0x4ab   : > { %5466 = dma.vmem_to_hbm [thread:$0]  (%p5815_p5), %s11046_s17, 768, %s11042_s27, %s5279_s13, %s5724_s29, %s5725_s16, %s5726_s21  }
 0x4ac PF: > { %p5476_p1 = scmp.ge.s32.totalorder %s5710_s12, 2  ;;  %s5321_s22 = sand.u32 1, %s5698_s30  }
 0x4ad   : > { %s5322_s26 = scalar_lea.sflag [#allocation3], %s5321_s22 }
 0x4ae   : > { %p5470_p2 = pnand %p5476_p1, %p5819_p6 }
 0x4b0   : > { %p5471_p3 = pneg %p5470_p2 }
 0x4b2   : > { %5689 = dma.done.wait (%p5471_p3), %s5322_s26, 256  }
 0x4b3   : > { %5691 = vsyncadd (%p5471_p3), %s5322_s26, 4294967040  ;;  %s5331_s0 = scalar_lea.sflag [#allocation5], %s5321_s22 }
 0x4b4   : > { %5693 = dma.done.wait (%p5471_p3), %s5331_s0, 768  }
 0x4b5   : > { %5695 = vsyncadd (%p5471_p3), %s5331_s0, 4294966528  ;;  %p23_p5 = scmp.ge.s32.totalorder %s5802_s15, 4   ;;  %s12726_s30 = smov %s5702_s10 }
 0x4b6   : > { %s12727_s10 = smov %s5706_s11  ;;  %s12728_s11 = smov %s5813_s18 }
 0x4b7   : > { %s12729_s12 = smov %s5802_s15  ;;  %25 = sbr.rel (!%p23_p5) target bundleno = 7 (0x7), region = 104 }
 0x4bc   :  { %5336 = vsyncpa [#allocation3], 1 }
 0x4bd   :  { %5338 = vsyncpa [#allocation3 + $0x1], 1 }
 0x4be   :  { %5339 = vsyncpa [#allocation5], 1 }
 0x4bf   :  { %5341 = vsyncpa [#allocation5 + $0x1], 1 }

</bundles_post_ra>
